<compile_context>
chip_gen: v7x
topology: tpu7x:2x2x1
jax: 0.10.0
libtpu: 0.0.40
codegen_flags: <defaults>
</compile_context>

<pallas_src>
import jax
import jax.numpy as jnp
from jax import lax
from jax.experimental import pallas as pl
from jax.experimental.pallas import tpu as pltpu


def _upsample_conv_kernel(xm_ref, xh_ref, wf_ref, b_ref, o_ref):
    """One (batch, output-row-tile) grid step.

    xm_ref: (1, Cin, TH_in, Wp)    padded, width-upsampled rows [t*TH_in, +TH_in)
    xh_ref: (1, Cin, TH_in, Wp)    next row block (only its first 2 rows used)
    wf_ref: (12, Cout, Cin)        height-parity folded taps, f32,
                                   index = (p*2 + dh)*3 + kw
    b_ref : (Cout, 1)              bias, f32
    o_ref : (1, Cout, TH_out*Wo)   NCHW-flattened output tile
    """
    th_in = xm_ref.shape[2]
    wp = xm_ref.shape[3]
    wo = wp - 2
    th_out = 2 * th_in

    def load_row(a):  # padded row `a` (local to this tile), shape (Cin, Wp)
        if a < th_in:
            return xm_ref[0, :, a, :]
        return xh_ref[0, :, a - th_in, :]

    for rr in range(th_out):          # static unroll over the tile's output rows
        p = rr % 2
        a = rr // 2 + p
        rows = (load_row(a), load_row(a + 1))
        acc = b_ref[...]              # (Cout, 1) f32, broadcasts over lanes
        for dh in range(2):
            for kw in range(3):
                acc = acc + jnp.dot(
                    wf_ref[(p * 2 + dh) * 3 + kw],                    # (Cout, Cin) f32
                    rows[dh][:, kw:kw + wo].astype(jnp.float32),      # (Cin, Wo)
                    preferred_element_type=jnp.float32)
        o_ref[0, :, rr * wo:(rr + 1) * wo] = acc.astype(o_ref.dtype)


def _pick_row_tile(h, cap=16):
    # Largest divisor of H that is <= cap and a multiple of 8 (sublane friendly;
    # cap keeps double-buffered tiles comfortably under the v7x 32 MiB scoped VMEM).
    for t in range(min(cap, h), 0, -1):
        if h % t == 0 and t % 8 == 0:
            return t
    return None


def upsample_forward(x_nchw, weight, bias, *, row_tile=None):
    """Matches PyTorch Upsample.forward.

    x_nchw: (B, Cin, H, W); weight: (Cout, Cin, 3, 3); bias: (Cout,)
    returns: (B, Cout, 2H, 2W)  in NCHW.
    """
    B, Cin, H, W = x_nchw.shape
    Cout = weight.shape[0]
    Ho, Wo, Wp = 2 * H, 2 * W, 2 * W + 2

    th_in = row_tile if row_tile is not None else _pick_row_tile(H)
    if th_in is None or H % th_in != 0 or th_in % 8 != 0:
        # TODO(synk): support H not divisible by 8 (needs element-level halo blocks).
        raise ValueError(f"H={H} must have a row tile that is a multiple of 8")
    if (2 * th_in * Wo) % 128 != 0 and th_in != H:
        raise ValueError(f"W={W}: output tile lane width must be a multiple of 128")
    n_tiles = H // th_in

    # --- glue (plain JAX, all cheap / fused): bf16 cast, width x2, pad=1 ------
    x_act = x_nchw.astype(jnp.bfloat16)
    xw = jnp.repeat(x_act, 2, axis=3)                         # width nearest x2
    xwp = jnp.pad(xw, ((0, 0), (0, 0), (1, 1), (1, 1)))       # (B, Cin, H+2, Wp)

    # Height-parity folded weights: index = (p*2 + dh)*3 + kw, f32.
    w = weight.astype(jnp.float32)
    w0, w1, w2 = w[:, :, 0, :], w[:, :, 1, :], w[:, :, 2, :]  # (Cout, Cin, 3)
    wfold = jnp.stack([w0, w1 + w2, w0 + w1, w2], axis=0)     # (4, Cout, Cin, 3)
    wfold = jnp.transpose(wfold, (0, 3, 1, 2)).reshape(12, Cout, Cin)
    b2 = bias.astype(jnp.float32).reshape(Cout, 1)

    # VMEM budget (double-buffered blocks) -> explicit limit with headroom.
    in_block = Cin * th_in * Wp * 2                 # bf16
    out_block = Cout * 2 * th_in * Wo * 4           # f32
    w_bytes = 12 * Cout * Cin * 4 + Cout * 4
    need = 2 * (2 * in_block + out_block + w_bytes)
    vmem_limit = int(min(32 * 1024 * 1024, max(4 * need, 8 * 1024 * 1024)))

    out_flat = pl.pallas_call(
        _upsample_conv_kernel,
        out_shape=jax.ShapeDtypeStruct((B, Cout, Ho * Wo), x_nchw.dtype),
        grid=(B, n_tiles),
        in_specs=[
            # main row block of this tile
            pl.BlockSpec((1, Cin, th_in, Wp), lambda b, t: (b, 0, t, 0)),
            # same array, shifted one block down -> provides the 2-row bottom halo
            pl.BlockSpec((1, Cin, th_in, Wp), lambda b, t: (b, 0, t + 1, 0)),
            pl.BlockSpec((12, Cout, Cin), lambda b, t: (0, 0, 0)),
            pl.BlockSpec((Cout, 1), lambda b, t: (0, 0)),
        ],
        out_specs=pl.BlockSpec((1, Cout, 2 * th_in * Wo), lambda b, t: (b, 0, t)),
        compiler_params=pltpu.CompilerParams(
            dimension_semantics=("parallel", "parallel"),
            vmem_limit_bytes=vmem_limit),
    )(xwp, xwp, wfold, b2)

    return out_flat.reshape(B, Cout, Ho, Wo)       # free reshape, already NCHW


if __name__ == "__main__":
    B, Cin, Cout, H, W = 2, 4, 8, 16, 16

    key = jax.random.PRNGKey(0)
    kx, kw, kb = jax.random.split(key, 3)
    x = jax.random.normal(kx, (B, Cin, H, W), dtype=jnp.float32)
    weight = 0.1 * jax.random.normal(kw, (Cout, Cin, 3, 3), dtype=jnp.float32)
    bias = 0.1 * jax.random.normal(kb, (Cout,), dtype=jnp.float32)

    out = upsample_forward(x, weight, bias)
    jax.block_until_ready(out)

    # Pure-JAX reference of the same forward pass (same bf16-quantized
    # activations the kernel consumes, f32 conv at highest precision).
    xq = x.astype(jnp.bfloat16).astype(jnp.float32)
    x_up = jnp.repeat(jnp.repeat(xq, 2, axis=2), 2, axis=3)
    ref = lax.conv_general_dilated(
        x_up, weight, window_strides=(1, 1), padding=((1, 1), (1, 1)),
        dimension_numbers=("NCHW", "OIHW", "NCHW"),
        precision=lax.Precision.HIGHEST,
    ) + bias[None, :, None, None]

    assert out.shape == (B, Cout, 2 * H, 2 * W), out.shape
    max_err = float(jnp.max(jnp.abs(out - ref)))
    assert max_err < 2e-2, max_err

    print("KERNEL_OK")
</pallas_src>

<mosaic_0001>
module attributes {stable_mosaic.version = 11 : i64} {
  func.func @_upsample_conv_kernel(%arg0: i32, %arg1: i32, %arg2: memref<1x4x16x34xbf16, #tpu.memory_space<vmem>>, %arg3: memref<1x4x16x34xbf16, #tpu.memory_space<vmem>>, %arg4: memref<12x8x4xf32, #tpu.memory_space<vmem>>, %arg5: memref<8x1xf32, #tpu.memory_space<vmem>>, %arg6: memref<1x8x1024xf32, #tpu.memory_space<vmem>>) attributes {dimension_semantics = [#tpu.dimension_semantics<parallel>, #tpu.dimension_semantics<parallel>], iteration_bounds = array<i64: 2, 1>, scalar_prefetch = 0 : i64, scratch_operands = 0 : i64, tpu.core_type = #tpu.core_type<tc>, window_params = [{transform_indices = @transform_0, window_bounds = array<i64: 1, 4, 16, 34>}, {transform_indices = @transform_1, window_bounds = array<i64: 1, 4, 16, 34>}, {pipeline_mode = #tpu.pipeline_mode<synchronous>, transform_indices = @transform_2, window_bounds = array<i64: 12, 8, 4>}, {pipeline_mode = #tpu.pipeline_mode<synchronous>, transform_indices = @transform_3, window_bounds = array<i64: 8, 1>}, {transform_indices = @transform_4, window_bounds = array<i64: 1, 8, 1024>}]} {
    %c0 = arith.constant 0 : index
    %c0_0 = arith.constant 0 : index
    %c0_1 = arith.constant 0 : index
    %c0_2 = arith.constant 0 : index
    %0 = vector.load %arg2[%c0, %c0_0, %c0_1, %c0_2] : memref<1x4x16x34xbf16, #tpu.memory_space<vmem>>, vector<1x4x1x34xbf16>
    %1 = vector.shape_cast %0 : vector<1x4x1x34xbf16> to vector<4x34xbf16>
    %c0_3 = arith.constant 0 : index
    %c0_4 = arith.constant 0 : index
    %c1 = arith.constant 1 : index
    %c0_5 = arith.constant 0 : index
    %2 = vector.load %arg2[%c0_3, %c0_4, %c1, %c0_5] : memref<1x4x16x34xbf16, #tpu.memory_space<vmem>>, vector<1x4x1x34xbf16>
    %3 = vector.shape_cast %2 : vector<1x4x1x34xbf16> to vector<4x34xbf16>
    %c0_6 = arith.constant 0 : index
    %c0_7 = arith.constant 0 : index
    %4 = vector.load %arg5[%c0_6, %c0_7] : memref<8x1xf32, #tpu.memory_space<vmem>>, vector<8x1xf32>
    %c0_8 = arith.constant 0 : index
    %c0_9 = arith.constant 0 : index
    %c0_10 = arith.constant 0 : index
    %5 = vector.load %arg4[%c0_8, %c0_9, %c0_10] : memref<12x8x4xf32, #tpu.memory_space<vmem>>, vector<1x8x4xf32>
    %6 = vector.shape_cast %5 : vector<1x8x4xf32> to vector<8x4xf32>
    %7 = vector.extract_strided_slice %1 {offsets = [0, 0], sizes = [4, 32], strides = [1, 1]} : vector<4x34xbf16> to vector<4x32xbf16>
    %8 = arith.extf %7 : vector<4x32xbf16> to vector<4x32xf32>
    %cst = arith.constant dense<0.000000e+00> : vector<8x32xf32>
    %9 = tpu.matmul %6, %8, %cst {dimension_numbers = #tpu.dot_dimension_numbers<[1], [0], [0], [1], [0, 0, 1, 1], [], []>} : vector<8x4xf32>, vector<4x32xf32>, vector<8x32xf32> -> vector<8x32xf32>
    %10 = vector.broadcast %4 : vector<8x1xf32> to vector<8x32xf32>
    %11 = arith.addf %10, %9 : vector<8x32xf32>
    %c1_11 = arith.constant 1 : index
    %c0_12 = arith.constant 0 : index
    %c0_13 = arith.constant 0 : index
    %12 = vector.load %arg4[%c1_11, %c0_12, %c0_13] : memref<12x8x4xf32, #tpu.memory_space<vmem>>, vector<1x8x4xf32>
    %13 = vector.shape_cast %12 : vector<1x8x4xf32> to vector<8x4xf32>
    %14 = vector.extract_strided_slice %1 {offsets = [0, 1], sizes = [4, 32], strides = [1, 1]} : vector<4x34xbf16> to vector<4x32xbf16>
    %15 = arith.extf %14 : vector<4x32xbf16> to vector<4x32xf32>
    %cst_14 = arith.constant dense<0.000000e+00> : vector<8x32xf32>
    %16 = tpu.matmul %13, %15, %cst_14 {dimension_numbers = #tpu.dot_dimension_numbers<[1], [0], [0], [1], [0, 0, 1, 1], [], []>} : vector<8x4xf32>, vector<4x32xf32>, vector<8x32xf32> -> vector<8x32xf32>
    %17 = arith.addf %11, %16 : vector<8x32xf32>
    %c2 = arith.constant 2 : index
    %c0_15 = arith.constant 0 : index
    %c0_16 = arith.constant 0 : index
    %18 = vector.load %arg4[%c2, %c0_15, %c0_16] : memref<12x8x4xf32, #tpu.memory_space<vmem>>, vector<1x8x4xf32>
    %19 = vector.shape_cast %18 : vector<1x8x4xf32> to vector<8x4xf32>
    %20 = vector.extract_strided_slice %1 {offsets = [0, 2], sizes = [4, 32], strides = [1, 1]} : vector<4x34xbf16> to vector<4x32xbf16>
    %21 = arith.extf %20 : vector<4x32xbf16> to vector<4x32xf32>
    %cst_17 = arith.constant dense<0.000000e+00> : vector<8x32xf32>
    %22 = tpu.matmul %19, %21, %cst_17 {dimension_numbers = #tpu.dot_dimension_numbers<[1], [0], [0], [1], [0, 0, 1, 1], [], []>} : vector<8x4xf32>, vector<4x32xf32>, vector<8x32xf32> -> vector<8x32xf32>
    %23 = arith.addf %17, %22 : vector<8x32xf32>
    %c3 = arith.constant 3 : index
    %c0_18 = arith.constant 0 : index
    %c0_19 = arith.constant 0 : index
    %24 = vector.load %arg4[%c3, %c0_18, %c0_19] : memref<12x8x4xf32, #tpu.memory_space<vmem>>, vector<1x8x4xf32>
    %25 = vector.shape_cast %24 : vector<1x8x4xf32> to vector<8x4xf32>
    %26 = vector.extract_strided_slice %3 {offsets = [0, 0], sizes = [4, 32], strides = [1, 1]} : vector<4x34xbf16> to vector<4x32xbf16>
    %27 = arith.extf %26 : vector<4x32xbf16> to vector<4x32xf32>
    %cst_20 = arith.constant dense<0.000000e+00> : vector<8x32xf32>
    %28 = tpu.matmul %25, %27, %cst_20 {dimension_numbers = #tpu.dot_dimension_numbers<[1], [0], [0], [1], [0, 0, 1, 1], [], []>} : vector<8x4xf32>, vector<4x32xf32>, vector<8x32xf32> -> vector<8x32xf32>
    %29 = arith.addf %23, %28 : vector<8x32xf32>
    %c4 = arith.constant 4 : index
    %c0_21 = arith.constant 0 : index
    %c0_22 = arith.constant 0 : index
    %30 = vector.load %arg4[%c4, %c0_21, %c0_22] : memref<12x8x4xf32, #tpu.memory_space<vmem>>, vector<1x8x4xf32>
    %31 = vector.shape_cast %30 : vector<1x8x4xf32> to vector<8x4xf32>
    %32 = vector.extract_strided_slice %3 {offsets = [0, 1], sizes = [4, 32], strides = [1, 1]} : vector<4x34xbf16> to vector<4x32xbf16>
    %33 = arith.extf %32 : vector<4x32xbf16> to vector<4x32xf32>
    %cst_23 = arith.constant dense<0.000000e+00> : vector<8x32xf32>
    %34 = tpu.matmul %31, %33, %cst_23 {dimension_numbers = #tpu.dot_dimension_numbers<[1], [0], [0], [1], [0, 0, 1, 1], [], []>} : vector<8x4xf32>, vector<4x32xf32>, vector<8x32xf32> -> vector<8x32xf32>
    %35 = arith.addf %29, %34 : vector<8x32xf32>
    %c5 = arith.constant 5 : index
    %c0_24 = arith.constant 0 : index
    %c0_25 = arith.constant 0 : index
    %36 = vector.load %arg4[%c5, %c0_24, %c0_25] : memref<12x8x4xf32, #tpu.memory_space<vmem>>, vector<1x8x4xf32>
    %37 = vector.shape_cast %36 : vector<1x8x4xf32> to vector<8x4xf32>
    %38 = vector.extract_strided_slice %3 {offsets = [0, 2], sizes = [4, 32], strides = [1, 1]} : vector<4x34xbf16> to vector<4x32xbf16>
    %39 = arith.extf %38 : vector<4x32xbf16> to vector<4x32xf32>
    %cst_26 = arith.constant dense<0.000000e+00> : vector<8x32xf32>
    %40 = tpu.matmul %37, %39, %cst_26 {dimension_numbers = #tpu.dot_dimension_numbers<[1], [0], [0], [1], [0, 0, 1, 1], [], []>} : vector<8x4xf32>, vector<4x32xf32>, vector<8x32xf32> -> vector<8x32xf32>
    %41 = arith.addf %35, %40 : vector<8x32xf32>
    %c0_27 = arith.constant 0 : index
    %c0_28 = arith.constant 0 : index
    %c0_29 = arith.constant 0 : index
    %42 = vector.load %arg6[%c0_27, %c0_28, %c0_29] : memref<1x8x1024xf32, #tpu.memory_space<vmem>>, vector<1x8x32xf32>
    %43 = vector.shape_cast %42 : vector<1x8x32xf32> to vector<8x32xf32>
    %44 = vector.shape_cast %41 : vector<8x32xf32> to vector<1x8x32xf32>
    tpu.vector_store %arg6[%c0_27, %c0_28, %c0_29], %44 {strides = array<i32>} : memref<1x8x1024xf32, #tpu.memory_space<vmem>>, vector<1x8x32xf32>,
    %c0_30 = arith.constant 0 : index
    %c0_31 = arith.constant 0 : index
    %c1_32 = arith.constant 1 : index
    %c0_33 = arith.constant 0 : index
    %45 = vector.load %arg2[%c0_30, %c0_31, %c1_32, %c0_33] : memref<1x4x16x34xbf16, #tpu.memory_space<vmem>>, vector<1x4x1x34xbf16>
    %46 = vector.shape_cast %45 : vector<1x4x1x34xbf16> to vector<4x34xbf16>
    %c0_34 = arith.constant 0 : index
    %c0_35 = arith.constant 0 : index
    %c2_36 = arith.constant 2 : index
    %c0_37 = arith.constant 0 : index
    %47 = vector.load %arg2[%c0_34, %c0_35, %c2_36, %c0_37] : memref<1x4x16x34xbf16, #tpu.memory_space<vmem>>, vector<1x4x1x34xbf16>
    %48 = vector.shape_cast %47 : vector<1x4x1x34xbf16> to vector<4x34xbf16>
    %c0_38 = arith.constant 0 : index
    %c0_39 = arith.constant 0 : index
    %49 = vector.load %arg5[%c0_38, %c0_39] : memref<8x1xf32, #tpu.memory_space<vmem>>, vector<8x1xf32>
    %c6 = arith.constant 6 : index
    %c0_40 = arith.constant 0 : index
    %c0_41 = arith.constant 0 : index
    %50 = vector.load %arg4[%c6, %c0_40, %c0_41] : memref<12x8x4xf32, #tpu.memory_space<vmem>>, vector<1x8x4xf32>
    %51 = vector.shape_cast %50 : vector<1x8x4xf32> to vector<8x4xf32>
    %52 = vector.extract_strided_slice %46 {offsets = [0, 0], sizes = [4, 32], strides = [1, 1]} : vector<4x34xbf16> to vector<4x32xbf16>
    %53 = arith.extf %52 : vector<4x32xbf16> to vector<4x32xf32>
    %cst_42 = arith.constant dense<0.000000e+00> : vector<8x32xf32>
    %54 = tpu.matmul %51, %53, %cst_42 {dimension_numbers = #tpu.dot_dimension_numbers<[1], [0], [0], [1], [0, 0, 1, 1], [], []>} : vector<8x4xf32>, vector<4x32xf32>, vector<8x32xf32> -> vector<8x32xf32>
    %55 = vector.broadcast %49 : vector<8x1xf32> to vector<8x32xf32>
    %56 = arith.addf %55, %54 : vector<8x32xf32>
    %c7 = arith.constant 7 : index
    %c0_43 = arith.constant 0 : index
    %c0_44 = arith.constant 0 : index
    %57 = vector.load %arg4[%c7, %c0_43, %c0_44] : memref<12x8x4xf32, #tpu.memory_space<vmem>>, vector<1x8x4xf32>
    %58 = vector.shape_cast %57 : vector<1x8x4xf32> to vector<8x4xf32>
    %59 = vector.extract_strided_slice %46 {offsets = [0, 1], sizes = [4, 32], strides = [1, 1]} : vector<4x34xbf16> to vector<4x32xbf16>
    %60 = arith.extf %59 : vector<4x32xbf16> to vector<4x32xf32>
    %cst_45 = arith.constant dense<0.000000e+00> : vector<8x32xf32>
    %61 = tpu.matmul %58, %60, %cst_45 {dimension_numbers = #tpu.dot_dimension_numbers<[1], [0], [0], [1], [0, 0, 1, 1], [], []>} : vector<8x4xf32>, vector<4x32xf32>, vector<8x32xf32> -> vector<8x32xf32>
    %62 = arith.addf %56, %61 : vector<8x32xf32>
    %c8 = arith.constant 8 : index
    %c0_46 = arith.constant 0 : index
    %c0_47 = arith.constant 0 : index
    %63 = vector.load %arg4[%c8, %c0_46, %c0_47] : memref<12x8x4xf32, #tpu.memory_space<vmem>>, vector<1x8x4xf32>
    %64 = vector.shape_cast %63 : vector<1x8x4xf32> to vector<8x4xf32>
    %65 = vector.extract_strided_slice %46 {offsets = [0, 2], sizes = [4, 32], strides = [1, 1]} : vector<4x34xbf16> to vector<4x32xbf16>
    %66 = arith.extf %65 : vector<4x32xbf16> to vector<4x32xf32>
    %cst_48 = arith.constant dense<0.000000e+00> : vector<8x32xf32>
    %67 = tpu.matmul %64, %66, %cst_48 {dimension_numbers = #tpu.dot_dimension_numbers<[1], [0], [0], [1], [0, 0, 1, 1], [], []>} : vector<8x4xf32>, vector<4x32xf32>, vector<8x32xf32> -> vector<8x32xf32>
    %68 = arith.addf %62, %67 : vector<8x32xf32>
    %c9 = arith.constant 9 : index
    %c0_49 = arith.constant 0 : index
    %c0_50 = arith.constant 0 : index
    %69 = vector.load %arg4[%c9, %c0_49, %c0_50] : memref<12x8x4xf32, #tpu.memory_space<vmem>>, vector<1x8x4xf32>
    %70 = vector.shape_cast %69 : vector<1x8x4xf32> to vector<8x4xf32>
    %71 = vector.extract_strided_slice %48 {offsets = [0, 0], sizes = [4, 32], strides = [1, 1]} : vector<4x34xbf16> to vector<4x32xbf16>
    %72 = arith.extf %71 : vector<4x32xbf16> to vector<4x32xf32>
    %cst_51 = arith.constant dense<0.000000e+00> : vector<8x32xf32>
    %73 = tpu.matmul %70, %72, %cst_51 {dimension_numbers = #tpu.dot_dimension_numbers<[1], [0], [0], [1], [0, 0, 1, 1], [], []>} : vector<8x4xf32>, vector<4x32xf32>, vector<8x32xf32> -> vector<8x32xf32>
    %74 = arith.addf %68, %73 : vector<8x32xf32>
    %c10 = arith.constant 10 : index
    %c0_52 = arith.constant 0 : index
    %c0_53 = arith.constant 0 : index
    %75 = vector.load %arg4[%c10, %c0_52, %c0_53] : memref<12x8x4xf32, #tpu.memory_space<vmem>>, vector<1x8x4xf32>
    %76 = vector.shape_cast %75 : vector<1x8x4xf32> to vector<8x4xf32>
    %77 = vector.extract_strided_slice %48 {offsets = [0, 1], sizes = [4, 32], strides = [1, 1]} : vector<4x34xbf16> to vector<4x32xbf16>
    %78 = arith.extf %77 : vector<4x32xbf16> to vector<4x32xf32>
    %cst_54 = arith.constant dense<0.000000e+00> : vector<8x32xf32>
    %79 = tpu.matmul %76, %78, %cst_54 {dimension_numbers = #tpu.dot_dimension_numbers<[1], [0], [0], [1], [0, 0, 1, 1], [], []>} : vector<8x4xf32>, vector<4x32xf32>, vector<8x32xf32> -> vector<8x32xf32>
    %80 = arith.addf %74, %79 : vector<8x32xf32>
    %c11 = arith.constant 11 : index
    %c0_55 = arith.constant 0 : index
    %c0_56 = arith.constant 0 : index
    %81 = vector.load %arg4[%c11, %c0_55, %c0_56] : memref<12x8x4xf32, #tpu.memory_space<vmem>>, vector<1x8x4xf32>
    %82 = vector.shape_cast %81 : vector<1x8x4xf32> to vector<8x4xf32>
    %83 = vector.extract_strided_slice %48 {offsets = [0, 2], sizes = [4, 32], strides = [1, 1]} : vector<4x34xbf16> to vector<4x32xbf16>
    %84 = arith.extf %83 : vector<4x32xbf16> to vector<4x32xf32>
    %cst_57 = arith.constant dense<0.000000e+00> : vector<8x32xf32>
    %85 = tpu.matmul %82, %84, %cst_57 {dimension_numbers = #tpu.dot_dimension_numbers<[1], [0], [0], [1], [0, 0, 1, 1], [], []>} : vector<8x4xf32>, vector<4x32xf32>, vector<8x32xf32> -> vector<8x32xf32>
    %86 = arith.addf %80, %85 : vector<8x32xf32>
    %c0_58 = arith.constant 0 : index
    %c0_59 = arith.constant 0 : index
    %c32 = arith.constant 32 : index
    %87 = vector.load %arg6[%c0_58, %c0_59, %c32] : memref<1x8x1024xf32, #tpu.memory_space<vmem>>, vector<1x8x32xf32>
    %88 = vector.shape_cast %87 : vector<1x8x32xf32> to vector<8x32xf32>
    %89 = vector.shape_cast %86 : vector<8x32xf32> to vector<1x8x32xf32>
    tpu.vector_store %arg6[%c0_58, %c0_59, %c32], %89 {strides = array<i32>} : memref<1x8x1024xf32, #tpu.memory_space<vmem>>, vector<1x8x32xf32>,
    %c0_60 = arith.constant 0 : index
    %c0_61 = arith.constant 0 : index
    %c1_62 = arith.constant 1 : index
    %c0_63 = arith.constant 0 : index
    %90 = vector.load %arg2[%c0_60, %c0_61, %c1_62, %c0_63] : memref<1x4x16x34xbf16, #tpu.memory_space<vmem>>, vector<1x4x1x34xbf16>
    %91 = vector.shape_cast %90 : vector<1x4x1x34xbf16> to vector<4x34xbf16>
    %c0_64 = arith.constant 0 : index
    %c0_65 = arith.constant 0 : index
    %c2_66 = arith.constant 2 : index
    %c0_67 = arith.constant 0 : index
    %92 = vector.load %arg2[%c0_64, %c0_65, %c2_66, %c0_67] : memref<1x4x16x34xbf16, #tpu.memory_space<vmem>>, vector<1x4x1x34xbf16>
    %93 = vector.shape_cast %92 : vector<1x4x1x34xbf16> to vector<4x34xbf16>
    %c0_68 = arith.constant 0 : index
    %c0_69 = arith.constant 0 : index
    %94 = vector.load %arg5[%c0_68, %c0_69] : memref<8x1xf32, #tpu.memory_space<vmem>>, vector<8x1xf32>
    %c0_70 = arith.constant 0 : index
    %c0_71 = arith.constant 0 : index
    %c0_72 = arith.constant 0 : index
    %95 = vector.load %arg4[%c0_70, %c0_71, %c0_72] : memref<12x8x4xf32, #tpu.memory_space<vmem>>, vector<1x8x4xf32>
    %96 = vector.shape_cast %95 : vector<1x8x4xf32> to vector<8x4xf32>
    %97 = vector.extract_strided_slice %91 {offsets = [0, 0], sizes = [4, 32], strides = [1, 1]} : vector<4x34xbf16> to vector<4x32xbf16>
    %98 = arith.extf %97 : vector<4x32xbf16> to vector<4x32xf32>
    %cst_73 = arith.constant dense<0.000000e+00> : vector<8x32xf32>
    %99 = tpu.matmul %96, %98, %cst_73 {dimension_numbers = #tpu.dot_dimension_numbers<[1], [0], [0], [1], [0, 0, 1, 1], [], []>} : vector<8x4xf32>, vector<4x32xf32>, vector<8x32xf32> -> vector<8x32xf32>
    %100 = vector.broadcast %94 : vector<8x1xf32> to vector<8x32xf32>
    %101 = arith.addf %100, %99 : vector<8x32xf32>
    %c1_74 = arith.constant 1 : index
    %c0_75 = arith.constant 0 : index
    %c0_76 = arith.constant 0 : index
    %102 = vector.load %arg4[%c1_74, %c0_75, %c0_76] : memref<12x8x4xf32, #tpu.memory_space<vmem>>, vector<1x8x4xf32>
    %103 = vector.shape_cast %102 : vector<1x8x4xf32> to vector<8x4xf32>
    %104 = vector.extract_strided_slice %91 {offsets = [0, 1], sizes = [4, 32], strides = [1, 1]} : vector<4x34xbf16> to vector<4x32xbf16>
    %105 = arith.extf %104 : vector<4x32xbf16> to vector<4x32xf32>
    %cst_77 = arith.constant dense<0.000000e+00> : vector<8x32xf32>
    %106 = tpu.matmul %103, %105, %cst_77 {dimension_numbers = #tpu.dot_dimension_numbers<[1], [0], [0], [1], [0, 0, 1, 1], [], []>} : vector<8x4xf32>, vector<4x32xf32>, vector<8x32xf32> -> vector<8x32xf32>
    %107 = arith.addf %101, %106 : vector<8x32xf32>
    %c2_78 = arith.constant 2 : index
    %c0_79 = arith.constant 0 : index
    %c0_80 = arith.constant 0 : index
    %108 = vector.load %arg4[%c2_78, %c0_79, %c0_80] : memref<12x8x4xf32, #tpu.memory_space<vmem>>, vector<1x8x4xf32>
    %109 = vector.shape_cast %108 : vector<1x8x4xf32> to vector<8x4xf32>
    %110 = vector.extract_strided_slice %91 {offsets = [0, 2], sizes = [4, 32], strides = [1, 1]} : vector<4x34xbf16> to vector<4x32xbf16>
    %111 = arith.extf %110 : vector<4x32xbf16> to vector<4x32xf32>
    %cst_81 = arith.constant dense<0.000000e+00> : vector<8x32xf32>
    %112 = tpu.matmul %109, %111, %cst_81 {dimension_numbers = #tpu.dot_dimension_numbers<[1], [0], [0], [1], [0, 0, 1, 1], [], []>} : vector<8x4xf32>, vector<4x32xf32>, vector<8x32xf32> -> vector<8x32xf32>
    %113 = arith.addf %107, %112 : vector<8x32xf32>
    %c3_82 = arith.constant 3 : index
    %c0_83 = arith.constant 0 : index
    %c0_84 = arith.constant 0 : index
    %114 = vector.load %arg4[%c3_82, %c0_83, %c0_84] : memref<12x8x4xf32, #tpu.memory_space<vmem>>, vector<1x8x4xf32>
    %115 = vector.shape_cast %114 : vector<1x8x4xf32> to vector<8x4xf32>
    %116 = vector.extract_strided_slice %93 {offsets = [0, 0], sizes = [4, 32], strides = [1, 1]} : vector<4x34xbf16> to vector<4x32xbf16>
    %117 = arith.extf %116 : vector<4x32xbf16> to vector<4x32xf32>
    %cst_85 = arith.constant dense<0.000000e+00> : vector<8x32xf32>
    %118 = tpu.matmul %115, %117, %cst_85 {dimension_numbers = #tpu.dot_dimension_numbers<[1], [0], [0], [1], [0, 0, 1, 1], [], []>} : vector<8x4xf32>, vector<4x32xf32>, vector<8x32xf32> -> vector<8x32xf32>
    %119 = arith.addf %113, %118 : vector<8x32xf32>
    %c4_86 = arith.constant 4 : index
    %c0_87 = arith.constant 0 : index
    %c0_88 = arith.constant 0 : index
    %120 = vector.load %arg4[%c4_86, %c0_87, %c0_88] : memref<12x8x4xf32, #tpu.memory_space<vmem>>, vector<1x8x4xf32>
    %121 = vector.shape_cast %120 : vector<1x8x4xf32> to vector<8x4xf32>
    %122 = vector.extract_strided_slice %93 {offsets = [0, 1], sizes = [4, 32], strides = [1, 1]} : vector<4x34xbf16> to vector<4x32xbf16>
    %123 = arith.extf %122 : vector<4x32xbf16> to vector<4x32xf32>
    %cst_89 = arith.constant dense<0.000000e+00> : vector<8x32xf32>
    %124 = tpu.matmul %121, %123, %cst_89 {dimension_numbers = #tpu.dot_dimension_numbers<[1], [0], [0], [1], [0, 0, 1, 1], [], []>} : vector<8x4xf32>, vector<4x32xf32>, vector<8x32xf32> -> vector<8x32xf32>
    %125 = arith.addf %119, %124 : vector<8x32xf32>
    %c5_90 = arith.constant 5 : index
    %c0_91 = arith.constant 0 : index
    %c0_92 = arith.constant 0 : index
    %126 = vector.load %arg4[%c5_90, %c0_91, %c0_92] : memref<12x8x4xf32, #tpu.memory_space<vmem>>, vector<1x8x4xf32>
    %127 = vector.shape_cast %126 : vector<1x8x4xf32> to vector<8x4xf32>
    %128 = vector.extract_strided_slice %93 {offsets = [0, 2], sizes = [4, 32], strides = [1, 1]} : vector<4x34xbf16> to vector<4x32xbf16>
    %129 = arith.extf %128 : vector<4x32xbf16> to vector<4x32xf32>
    %cst_93 = arith.constant dense<0.000000e+00> : vector<8x32xf32>
    %130 = tpu.matmul %127, %129, %cst_93 {dimension_numbers = #tpu.dot_dimension_numbers<[1], [0], [0], [1], [0, 0, 1, 1], [], []>} : vector<8x4xf32>, vector<4x32xf32>, vector<8x32xf32> -> vector<8x32xf32>
    %131 = arith.addf %125, %130 : vector<8x32xf32>
    %c0_94 = arith.constant 0 : index
    %c0_95 = arith.constant 0 : index
    %c64 = arith.constant 64 : index
    %132 = vector.load %arg6[%c0_94, %c0_95, %c64] : memref<1x8x1024xf32, #tpu.memory_space<vmem>>, vector<1x8x32xf32>
    %133 = vector.shape_cast %132 : vector<1x8x32xf32> to vector<8x32xf32>
    %134 = vector.shape_cast %131 : vector<8x32xf32> to vector<1x8x32xf32>
    tpu.vector_store %arg6[%c0_94, %c0_95, %c64], %134 {strides = array<i32>} : memref<1x8x1024xf32, #tpu.memory_space<vmem>>, vector<1x8x32xf32>,
    %c0_96 = arith.constant 0 : index
    %c0_97 = arith.constant 0 : index
    %c2_98 = arith.constant 2 : index
    %c0_99 = arith.constant 0 : index
    %135 = vector.load %arg2[%c0_96, %c0_97, %c2_98, %c0_99] : memref<1x4x16x34xbf16, #tpu.memory_space<vmem>>, vector<1x4x1x34xbf16>
    %136 = vector.shape_cast %135 : vector<1x4x1x34xbf16> to vector<4x34xbf16>
    %c0_100 = arith.constant 0 : index
    %c0_101 = arith.constant 0 : index
    %c3_102 = arith.constant 3 : index
    %c0_103 = arith.constant 0 : index
    %137 = vector.load %arg2[%c0_100, %c0_101, %c3_102, %c0_103] : memref<1x4x16x34xbf16, #tpu.memory_space<vmem>>, vector<1x4x1x34xbf16>
    %138 = vector.shape_cast %137 : vector<1x4x1x34xbf16> to vector<4x34xbf16>
    %c0_104 = arith.constant 0 : index
    %c0_105 = arith.constant 0 : index
    %139 = vector.load %arg5[%c0_104, %c0_105] : memref<8x1xf32, #tpu.memory_space<vmem>>, vector<8x1xf32>
    %c6_106 = arith.constant 6 : index
    %c0_107 = arith.constant 0 : index
    %c0_108 = arith.constant 0 : index
    %140 = vector.load %arg4[%c6_106, %c0_107, %c0_108] : memref<12x8x4xf32, #tpu.memory_space<vmem>>, vector<1x8x4xf32>
    %141 = vector.shape_cast %140 : vector<1x8x4xf32> to vector<8x4xf32>
    %142 = vector.extract_strided_slice %136 {offsets = [0, 0], sizes = [4, 32], strides = [1, 1]} : vector<4x34xbf16> to vector<4x32xbf16>
    %143 = arith.extf %142 : vector<4x32xbf16> to vector<4x32xf32>
    %cst_109 = arith.constant dense<0.000000e+00> : vector<8x32xf32>
    %144 = tpu.matmul %141, %143, %cst_109 {dimension_numbers = #tpu.dot_dimension_numbers<[1], [0], [0], [1], [0, 0, 1, 1], [], []>} : vector<8x4xf32>, vector<4x32xf32>, vector<8x32xf32> -> vector<8x32xf32>
    %145 = vector.broadcast %139 : vector<8x1xf32> to vector<8x32xf32>
    %146 = arith.addf %145, %144 : vector<8x32xf32>
    %c7_110 = arith.constant 7 : index
    %c0_111 = arith.constant 0 : index
    %c0_112 = arith.constant 0 : index
    %147 = vector.load %arg4[%c7_110, %c0_111, %c0_112] : memref<12x8x4xf32, #tpu.memory_space<vmem>>, vector<1x8x4xf32>
    %148 = vector.shape_cast %147 : vector<1x8x4xf32> to vector<8x4xf32>
    %149 = vector.extract_strided_slice %136 {offsets = [0, 1], sizes = [4, 32], strides = [1, 1]} : vector<4x34xbf16> to vector<4x32xbf16>
    %150 = arith.extf %149 : vector<4x32xbf16> to vector<4x32xf32>
    %cst_113 = arith.constant dense<0.000000e+00> : vector<8x32xf32>
    %151 = tpu.matmul %148, %150, %cst_113 {dimension_numbers = #tpu.dot_dimension_numbers<[1], [0], [0], [1], [0, 0, 1, 1], [], []>} : vector<8x4xf32>, vector<4x32xf32>, vector<8x32xf32> -> vector<8x32xf32>
    %152 = arith.addf %146, %151 : vector<8x32xf32>
    %c8_114 = arith.constant 8 : index
    %c0_115 = arith.constant 0 : index
    %c0_116 = arith.constant 0 : index
    %153 = vector.load %arg4[%c8_114, %c0_115, %c0_116] : memref<12x8x4xf32, #tpu.memory_space<vmem>>, vector<1x8x4xf32>
    %154 = vector.shape_cast %153 : vector<1x8x4xf32> to vector<8x4xf32>
    %155 = vector.extract_strided_slice %136 {offsets = [0, 2], sizes = [4, 32], strides = [1, 1]} : vector<4x34xbf16> to vector<4x32xbf16>
    %156 = arith.extf %155 : vector<4x32xbf16> to vector<4x32xf32>
    %cst_117 = arith.constant dense<0.000000e+00> : vector<8x32xf32>
    %157 = tpu.matmul %154, %156, %cst_117 {dimension_numbers = #tpu.dot_dimension_numbers<[1], [0], [0], [1], [0, 0, 1, 1], [], []>} : vector<8x4xf32>, vector<4x32xf32>, vector<8x32xf32> -> vector<8x32xf32>
    %158 = arith.addf %152, %157 : vector<8x32xf32>
    %c9_118 = arith.constant 9 : index
    %c0_119 = arith.constant 0 : index
    %c0_120 = arith.constant 0 : index
    %159 = vector.load %arg4[%c9_118, %c0_119, %c0_120] : memref<12x8x4xf32, #tpu.memory_space<vmem>>, vector<1x8x4xf32>
    %160 = vector.shape_cast %159 : vector<1x8x4xf32> to vector<8x4xf32>
    %161 = vector.extract_strided_slice %138 {offsets = [0, 0], sizes = [4, 32], strides = [1, 1]} : vector<4x34xbf16> to vector<4x32xbf16>
    %162 = arith.extf %161 : vector<4x32xbf16> to vector<4x32xf32>
    %cst_121 = arith.constant dense<0.000000e+00> : vector<8x32xf32>
    %163 = tpu.matmul %160, %162, %cst_121 {dimension_numbers = #tpu.dot_dimension_numbers<[1], [0], [0], [1], [0, 0, 1, 1], [], []>} : vector<8x4xf32>, vector<4x32xf32>, vector<8x32xf32> -> vector<8x32xf32>
    %164 = arith.addf %158, %163 : vector<8x32xf32>
    %c10_122 = arith.constant 10 : index
    %c0_123 = arith.constant 0 : index
    %c0_124 = arith.constant 0 : index
    %165 = vector.load %arg4[%c10_122, %c0_123, %c0_124] : memref<12x8x4xf32, #tpu.memory_space<vmem>>, vector<1x8x4xf32>
    %166 = vector.shape_cast %165 : vector<1x8x4xf32> to vector<8x4xf32>
    %167 = vector.extract_strided_slice %138 {offsets = [0, 1], sizes = [4, 32], strides = [1, 1]} : vector<4x34xbf16> to vector<4x32xbf16>
    %168 = arith.extf %167 : vector<4x32xbf16> to vector<4x32xf32>
    %cst_125 = arith.constant dense<0.000000e+00> : vector<8x32xf32>
    %169 = tpu.matmul %166, %168, %cst_125 {dimension_numbers = #tpu.dot_dimension_numbers<[1], [0], [0], [1], [0, 0, 1, 1], [], []>} : vector<8x4xf32>, vector<4x32xf32>, vector<8x32xf32> -> vector<8x32xf32>
    %170 = arith.addf %164, %169 : vector<8x32xf32>
    %c11_126 = arith.constant 11 : index
    %c0_127 = arith.constant 0 : index
    %c0_128 = arith.constant 0 : index
    %171 = vector.load %arg4[%c11_126, %c0_127, %c0_128] : memref<12x8x4xf32, #tpu.memory_space<vmem>>, vector<1x8x4xf32>
    %172 = vector.shape_cast %171 : vector<1x8x4xf32> to vector<8x4xf32>
    %173 = vector.extract_strided_slice %138 {offsets = [0, 2], sizes = [4, 32], strides = [1, 1]} : vector<4x34xbf16> to vector<4x32xbf16>
    %174 = arith.extf %173 : vector<4x32xbf16> to vector<4x32xf32>
    %cst_129 = arith.constant dense<0.000000e+00> : vector<8x32xf32>
    %175 = tpu.matmul %172, %174, %cst_129 {dimension_numbers = #tpu.dot_dimension_numbers<[1], [0], [0], [1], [0, 0, 1, 1], [], []>} : vector<8x4xf32>, vector<4x32xf32>, vector<8x32xf32> -> vector<8x32xf32>
    %176 = arith.addf %170, %175 : vector<8x32xf32>
    %c0_130 = arith.constant 0 : index
    %c0_131 = arith.constant 0 : index
    %c96 = arith.constant 96 : index
    %177 = vector.load %arg6[%c0_130, %c0_131, %c96] : memref<1x8x1024xf32, #tpu.memory_space<vmem>>, vector<1x8x32xf32>
    %178 = vector.shape_cast %177 : vector<1x8x32xf32> to vector<8x32xf32>
    %179 = vector.shape_cast %176 : vector<8x32xf32> to vector<1x8x32xf32>
    tpu.vector_store %arg6[%c0_130, %c0_131, %c96], %179 {strides = array<i32>} : memref<1x8x1024xf32, #tpu.memory_space<vmem>>, vector<1x8x32xf32>,
    %c0_132 = arith.constant 0 : index
    %c0_133 = arith.constant 0 : index
    %c2_134 = arith.constant 2 : index
    %c0_135 = arith.constant 0 : index
    %180 = vector.load %arg2[%c0_132, %c0_133, %c2_134, %c0_135] : memref<1x4x16x34xbf16, #tpu.memory_space<vmem>>, vector<1x4x1x34xbf16>
    %181 = vector.shape_cast %180 : vector<1x4x1x34xbf16> to vector<4x34xbf16>
    %c0_136 = arith.constant 0 : index
    %c0_137 = arith.constant 0 : index
    %c3_138 = arith.constant 3 : index
    %c0_139 = arith.constant 0 : index
    %182 = vector.load %arg2[%c0_136, %c0_137, %c3_138, %c0_139] : memref<1x4x16x34xbf16, #tpu.memory_space<vmem>>, vector<1x4x1x34xbf16>
    %183 = vector.shape_cast %182 : vector<1x4x1x34xbf16> to vector<4x34xbf16>
    %c0_140 = arith.constant 0 : index
    %c0_141 = arith.constant 0 : index
    %184 = vector.load %arg5[%c0_140, %c0_141] : memref<8x1xf32, #tpu.memory_space<vmem>>, vector<8x1xf32>
    %c0_142 = arith.constant 0 : index
    %c0_143 = arith.constant 0 : index
    %c0_144 = arith.constant 0 : index
    %185 = vector.load %arg4[%c0_142, %c0_143, %c0_144] : memref<12x8x4xf32, #tpu.memory_space<vmem>>, vector<1x8x4xf32>
    %186 = vector.shape_cast %185 : vector<1x8x4xf32> to vector<8x4xf32>
    %187 = vector.extract_strided_slice %181 {offsets = [0, 0], sizes = [4, 32], strides = [1, 1]} : vector<4x34xbf16> to vector<4x32xbf16>
    %188 = arith.extf %187 : vector<4x32xbf16> to vector<4x32xf32>
    %cst_145 = arith.constant dense<0.000000e+00> : vector<8x32xf32>
    %189 = tpu.matmul %186, %188, %cst_145 {dimension_numbers = #tpu.dot_dimension_numbers<[1], [0], [0], [1], [0, 0, 1, 1], [], []>} : vector<8x4xf32>, vector<4x32xf32>, vector<8x32xf32> -> vector<8x32xf32>
    %190 = vector.broadcast %184 : vector<8x1xf32> to vector<8x32xf32>
    %191 = arith.addf %190, %189 : vector<8x32xf32>
    %c1_146 = arith.constant 1 : index
    %c0_147 = arith.constant 0 : index
    %c0_148 = arith.constant 0 : index
    %192 = vector.load %arg4[%c1_146, %c0_147, %c0_148] : memref<12x8x4xf32, #tpu.memory_space<vmem>>, vector<1x8x4xf32>
    %193 = vector.shape_cast %192 : vector<1x8x4xf32> to vector<8x4xf32>
    %194 = vector.extract_strided_slice %181 {offsets = [0, 1], sizes = [4, 32], strides = [1, 1]} : vector<4x34xbf16> to vector<4x32xbf16>
    %195 = arith.extf %194 : vector<4x32xbf16> to vector<4x32xf32>
    %cst_149 = arith.constant dense<0.000000e+00> : vector<8x32xf32>
    %196 = tpu.matmul %193, %195, %cst_149 {dimension_numbers = #tpu.dot_dimension_numbers<[1], [0], [0], [1], [0, 0, 1, 1], [], []>} : vector<8x4xf32>, vector<4x32xf32>, vector<8x32xf32> -> vector<8x32xf32>
    %197 = arith.addf %191, %196 : vector<8x32xf32>
    %c2_150 = arith.constant 2 : index
    %c0_151 = arith.constant 0 : index
    %c0_152 = arith.constant 0 : index
    %198 = vector.load %arg4[%c2_150, %c0_151, %c0_152] : memref<12x8x4xf32, #tpu.memory_space<vmem>>, vector<1x8x4xf32>
    %199 = vector.shape_cast %198 : vector<1x8x4xf32> to vector<8x4xf32>
    %200 = vector.extract_strided_slice %181 {offsets = [0, 2], sizes = [4, 32], strides = [1, 1]} : vector<4x34xbf16> to vector<4x32xbf16>
    %201 = arith.extf %200 : vector<4x32xbf16> to vector<4x32xf32>
    %cst_153 = arith.constant dense<0.000000e+00> : vector<8x32xf32>
    %202 = tpu.matmul %199, %201, %cst_153 {dimension_numbers = #tpu.dot_dimension_numbers<[1], [0], [0], [1], [0, 0, 1, 1], [], []>} : vector<8x4xf32>, vector<4x32xf32>, vector<8x32xf32> -> vector<8x32xf32>
    %203 = arith.addf %197, %202 : vector<8x32xf32>
    %c3_154 = arith.constant 3 : index
    %c0_155 = arith.constant 0 : index
    %c0_156 = arith.constant 0 : index
    %204 = vector.load %arg4[%c3_154, %c0_155, %c0_156] : memref<12x8x4xf32, #tpu.memory_space<vmem>>, vector<1x8x4xf32>
    %205 = vector.shape_cast %204 : vector<1x8x4xf32> to vector<8x4xf32>
    %206 = vector.extract_strided_slice %183 {offsets = [0, 0], sizes = [4, 32], strides = [1, 1]} : vector<4x34xbf16> to vector<4x32xbf16>
    %207 = arith.extf %206 : vector<4x32xbf16> to vector<4x32xf32>
    %cst_157 = arith.constant dense<0.000000e+00> : vector<8x32xf32>
    %208 = tpu.matmul %205, %207, %cst_157 {dimension_numbers = #tpu.dot_dimension_numbers<[1], [0], [0], [1], [0, 0, 1, 1], [], []>} : vector<8x4xf32>, vector<4x32xf32>, vector<8x32xf32> -> vector<8x32xf32>
    %209 = arith.addf %203, %208 : vector<8x32xf32>
    %c4_158 = arith.constant 4 : index
    %c0_159 = arith.constant 0 : index
    %c0_160 = arith.constant 0 : index
    %210 = vector.load %arg4[%c4_158, %c0_159, %c0_160] : memref<12x8x4xf32, #tpu.memory_space<vmem>>, vector<1x8x4xf32>
    %211 = vector.shape_cast %210 : vector<1x8x4xf32> to vector<8x4xf32>
    %212 = vector.extract_strided_slice %183 {offsets = [0, 1], sizes = [4, 32], strides = [1, 1]} : vector<4x34xbf16> to vector<4x32xbf16>
    %213 = arith.extf %212 : vector<4x32xbf16> to vector<4x32xf32>
    %cst_161 = arith.constant dense<0.000000e+00> : vector<8x32xf32>
    %214 = tpu.matmul %211, %213, %cst_161 {dimension_numbers = #tpu.dot_dimension_numbers<[1], [0], [0], [1], [0, 0, 1, 1], [], []>} : vector<8x4xf32>, vector<4x32xf32>, vector<8x32xf32> -> vector<8x32xf32>
    %215 = arith.addf %209, %214 : vector<8x32xf32>
    %c5_162 = arith.constant 5 : index
    %c0_163 = arith.constant 0 : index
    %c0_164 = arith.constant 0 : index
    %216 = vector.load %arg4[%c5_162, %c0_163, %c0_164] : memref<12x8x4xf32, #tpu.memory_space<vmem>>, vector<1x8x4xf32>
    %217 = vector.shape_cast %216 : vector<1x8x4xf32> to vector<8x4xf32>
    %218 = vector.extract_strided_slice %183 {offsets = [0, 2], sizes = [4, 32], strides = [1, 1]} : vector<4x34xbf16> to vector<4x32xbf16>
    %219 = arith.extf %218 : vector<4x32xbf16> to vector<4x32xf32>
    %cst_165 = arith.constant dense<0.000000e+00> : vector<8x32xf32>
    %220 = tpu.matmul %217, %219, %cst_165 {dimension_numbers = #tpu.dot_dimension_numbers<[1], [0], [0], [1], [0, 0, 1, 1], [], []>} : vector<8x4xf32>, vector<4x32xf32>, vector<8x32xf32> -> vector<8x32xf32>
    %221 = arith.addf %215, %220 : vector<8x32xf32>
    %c0_166 = arith.constant 0 : index
    %c0_167 = arith.constant 0 : index
    %c128 = arith.constant 128 : index
    %222 = vector.load %arg6[%c0_166, %c0_167, %c128] : memref<1x8x1024xf32, #tpu.memory_space<vmem>>, vector<1x8x32xf32>
    %223 = vector.shape_cast %222 : vector<1x8x32xf32> to vector<8x32xf32>
    %224 = vector.shape_cast %221 : vector<8x32xf32> to vector<1x8x32xf32>
    tpu.vector_store %arg6[%c0_166, %c0_167, %c128], %224 {strides = array<i32>} : memref<1x8x1024xf32, #tpu.memory_space<vmem>>, vector<1x8x32xf32>,
    %c0_168 = arith.constant 0 : index
    %c0_169 = arith.constant 0 : index
    %c3_170 = arith.constant 3 : index
    %c0_171 = arith.constant 0 : index
    %225 = vector.load %arg2[%c0_168, %c0_169, %c3_170, %c0_171] : memref<1x4x16x34xbf16, #tpu.memory_space<vmem>>, vector<1x4x1x34xbf16>
    %226 = vector.shape_cast %225 : vector<1x4x1x34xbf16> to vector<4x34xbf16>
    %c0_172 = arith.constant 0 : index
    %c0_173 = arith.constant 0 : index
    %c4_174 = arith.constant 4 : index
    %c0_175 = arith.constant 0 : index
    %227 = vector.load %arg2[%c0_172, %c0_173, %c4_174, %c0_175] : memref<1x4x16x34xbf16, #tpu.memory_space<vmem>>, vector<1x4x1x34xbf16>
    %228 = vector.shape_cast %227 : vector<1x4x1x34xbf16> to vector<4x34xbf16>
    %c0_176 = arith.constant 0 : index
    %c0_177 = arith.constant 0 : index
    %229 = vector.load %arg5[%c0_176, %c0_177] : memref<8x1xf32, #tpu.memory_space<vmem>>, vector<8x1xf32>
    %c6_178 = arith.constant 6 : index
    %c0_179 = arith.constant 0 : index
    %c0_180 = arith.constant 0 : index
    %230 = vector.load %arg4[%c6_178, %c0_179, %c0_180] : memref<12x8x4xf32, #tpu.memory_space<vmem>>, vector<1x8x4xf32>
    %231 = vector.shape_cast %230 : vector<1x8x4xf32> to vector<8x4xf32>
    %232 = vector.extract_strided_slice %226 {offsets = [0, 0], sizes = [4, 32], strides = [1, 1]} : vector<4x34xbf16> to vector<4x32xbf16>
    %233 = arith.extf %232 : vector<4x32xbf16> to vector<4x32xf32>
    %cst_181 = arith.constant dense<0.000000e+00> : vector<8x32xf32>
    %234 = tpu.matmul %231, %233, %cst_181 {dimension_numbers = #tpu.dot_dimension_numbers<[1], [0], [0], [1], [0, 0, 1, 1], [], []>} : vector<8x4xf32>, vector<4x32xf32>, vector<8x32xf32> -> vector<8x32xf32>
    %235 = vector.broadcast %229 : vector<8x1xf32> to vector<8x32xf32>
    %236 = arith.addf %235, %234 : vector<8x32xf32>
    %c7_182 = arith.constant 7 : index
    %c0_183 = arith.constant 0 : index
    %c0_184 = arith.constant 0 : index
    %237 = vector.load %arg4[%c7_182, %c0_183, %c0_184] : memref<12x8x4xf32, #tpu.memory_space<vmem>>, vector<1x8x4xf32>
    %238 = vector.shape_cast %237 : vector<1x8x4xf32> to vector<8x4xf32>
    %239 = vector.extract_strided_slice %226 {offsets = [0, 1], sizes = [4, 32], strides = [1, 1]} : vector<4x34xbf16> to vector<4x32xbf16>
    %240 = arith.extf %239 : vector<4x32xbf16> to vector<4x32xf32>
    %cst_185 = arith.constant dense<0.000000e+00> : vector<8x32xf32>
    %241 = tpu.matmul %238, %240, %cst_185 {dimension_numbers = #tpu.dot_dimension_numbers<[1], [0], [0], [1], [0, 0, 1, 1], [], []>} : vector<8x4xf32>, vector<4x32xf32>, vector<8x32xf32> -> vector<8x32xf32>
    %242 = arith.addf %236, %241 : vector<8x32xf32>
    %c8_186 = arith.constant 8 : index
    %c0_187 = arith.constant 0 : index
    %c0_188 = arith.constant 0 : index
    %243 = vector.load %arg4[%c8_186, %c0_187, %c0_188] : memref<12x8x4xf32, #tpu.memory_space<vmem>>, vector<1x8x4xf32>
    %244 = vector.shape_cast %243 : vector<1x8x4xf32> to vector<8x4xf32>
    %245 = vector.extract_strided_slice %226 {offsets = [0, 2], sizes = [4, 32], strides = [1, 1]} : vector<4x34xbf16> to vector<4x32xbf16>
    %246 = arith.extf %245 : vector<4x32xbf16> to vector<4x32xf32>
    %cst_189 = arith.constant dense<0.000000e+00> : vector<8x32xf32>
    %247 = tpu.matmul %244, %246, %cst_189 {dimension_numbers = #tpu.dot_dimension_numbers<[1], [0], [0], [1], [0, 0, 1, 1], [], []>} : vector<8x4xf32>, vector<4x32xf32>, vector<8x32xf32> -> vector<8x32xf32>
    %248 = arith.addf %242, %247 : vector<8x32xf32>
    %c9_190 = arith.constant 9 : index
    %c0_191 = arith.constant 0 : index
    %c0_192 = arith.constant 0 : index
    %249 = vector.load %arg4[%c9_190, %c0_191, %c0_192] : memref<12x8x4xf32, #tpu.memory_space<vmem>>, vector<1x8x4xf32>
    %250 = vector.shape_cast %249 : vector<1x8x4xf32> to vector<8x4xf32>
    %251 = vector.extract_strided_slice %228 {offsets = [0, 0], sizes = [4, 32], strides = [1, 1]} : vector<4x34xbf16> to vector<4x32xbf16>
    %252 = arith.extf %251 : vector<4x32xbf16> to vector<4x32xf32>
    %cst_193 = arith.constant dense<0.000000e+00> : vector<8x32xf32>
    %253 = tpu.matmul %250, %252, %cst_193 {dimension_numbers = #tpu.dot_dimension_numbers<[1], [0], [0], [1], [0, 0, 1, 1], [], []>} : vector<8x4xf32>, vector<4x32xf32>, vector<8x32xf32> -> vector<8x32xf32>
    %254 = arith.addf %248, %253 : vector<8x32xf32>
    %c10_194 = arith.constant 10 : index
    %c0_195 = arith.constant 0 : index
    %c0_196 = arith.constant 0 : index
    %255 = vector.load %arg4[%c10_194, %c0_195, %c0_196] : memref<12x8x4xf32, #tpu.memory_space<vmem>>, vector<1x8x4xf32>
    %256 = vector.shape_cast %255 : vector<1x8x4xf32> to vector<8x4xf32>
    %257 = vector.extract_strided_slice %228 {offsets = [0, 1], sizes = [4, 32], strides = [1, 1]} : vector<4x34xbf16> to vector<4x32xbf16>
    %258 = arith.extf %257 : vector<4x32xbf16> to vector<4x32xf32>
    %cst_197 = arith.constant dense<0.000000e+00> : vector<8x32xf32>
    %259 = tpu.matmul %256, %258, %cst_197 {dimension_numbers = #tpu.dot_dimension_numbers<[1], [0], [0], [1], [0, 0, 1, 1], [], []>} : vector<8x4xf32>, vector<4x32xf32>, vector<8x32xf32> -> vector<8x32xf32>
    %260 = arith.addf %254, %259 : vector<8x32xf32>
    %c11_198 = arith.constant 11 : index
    %c0_199 = arith.constant 0 : index
    %c0_200 = arith.constant 0 : index
    %261 = vector.load %arg4[%c11_198, %c0_199, %c0_200] : memref<12x8x4xf32, #tpu.memory_space<vmem>>, vector<1x8x4xf32>
    %262 = vector.shape_cast %261 : vector<1x8x4xf32> to vector<8x4xf32>
    %263 = vector.extract_strided_slice %228 {offsets = [0, 2], sizes = [4, 32], strides = [1, 1]} : vector<4x34xbf16> to vector<4x32xbf16>
    %264 = arith.extf %263 : vector<4x32xbf16> to vector<4x32xf32>
    %cst_201 = arith.constant dense<0.000000e+00> : vector<8x32xf32>
    %265 = tpu.matmul %262, %264, %cst_201 {dimension_numbers = #tpu.dot_dimension_numbers<[1], [0], [0], [1], [0, 0, 1, 1], [], []>} : vector<8x4xf32>, vector<4x32xf32>, vector<8x32xf32> -> vector<8x32xf32>
    %266 = arith.addf %260, %265 : vector<8x32xf32>
    %c0_202 = arith.constant 0 : index
    %c0_203 = arith.constant 0 : index
    %c160 = arith.constant 160 : index
    %267 = vector.load %arg6[%c0_202, %c0_203, %c160] : memref<1x8x1024xf32, #tpu.memory_space<vmem>>, vector<1x8x32xf32>
    %268 = vector.shape_cast %267 : vector<1x8x32xf32> to vector<8x32xf32>
    %269 = vector.shape_cast %266 : vector<8x32xf32> to vector<1x8x32xf32>
    tpu.vector_store %arg6[%c0_202, %c0_203, %c160], %269 {strides = array<i32>} : memref<1x8x1024xf32, #tpu.memory_space<vmem>>, vector<1x8x32xf32>,
    %c0_204 = arith.constant 0 : index
    %c0_205 = arith.constant 0 : index
    %c3_206 = arith.constant 3 : index
    %c0_207 = arith.constant 0 : index
    %270 = vector.load %arg2[%c0_204, %c0_205, %c3_206, %c0_207] : memref<1x4x16x34xbf16, #tpu.memory_space<vmem>>, vector<1x4x1x34xbf16>
    %271 = vector.shape_cast %270 : vector<1x4x1x34xbf16> to vector<4x34xbf16>
    %c0_208 = arith.constant 0 : index
    %c0_209 = arith.constant 0 : index
    %c4_210 = arith.constant 4 : index
    %c0_211 = arith.constant 0 : index
    %272 = vector.load %arg2[%c0_208, %c0_209, %c4_210, %c0_211] : memref<1x4x16x34xbf16, #tpu.memory_space<vmem>>, vector<1x4x1x34xbf16>
    %273 = vector.shape_cast %272 : vector<1x4x1x34xbf16> to vector<4x34xbf16>
    %c0_212 = arith.constant 0 : index
    %c0_213 = arith.constant 0 : index
    %274 = vector.load %arg5[%c0_212, %c0_213] : memref<8x1xf32, #tpu.memory_space<vmem>>, vector<8x1xf32>
    %c0_214 = arith.constant 0 : index
    %c0_215 = arith.constant 0 : index
    %c0_216 = arith.constant 0 : index
    %275 = vector.load %arg4[%c0_214, %c0_215, %c0_216] : memref<12x8x4xf32, #tpu.memory_space<vmem>>, vector<1x8x4xf32>
    %276 = vector.shape_cast %275 : vector<1x8x4xf32> to vector<8x4xf32>
    %277 = vector.extract_strided_slice %271 {offsets = [0, 0], sizes = [4, 32], strides = [1, 1]} : vector<4x34xbf16> to vector<4x32xbf16>
    %278 = arith.extf %277 : vector<4x32xbf16> to vector<4x32xf32>
    %cst_217 = arith.constant dense<0.000000e+00> : vector<8x32xf32>
    %279 = tpu.matmul %276, %278, %cst_217 {dimension_numbers = #tpu.dot_dimension_numbers<[1], [0], [0], [1], [0, 0, 1, 1], [], []>} : vector<8x4xf32>, vector<4x32xf32>, vector<8x32xf32> -> vector<8x32xf32>
    %280 = vector.broadcast %274 : vector<8x1xf32> to vector<8x32xf32>
    %281 = arith.addf %280, %279 : vector<8x32xf32>
    %c1_218 = arith.constant 1 : index
    %c0_219 = arith.constant 0 : index
    %c0_220 = arith.constant 0 : index
    %282 = vector.load %arg4[%c1_218, %c0_219, %c0_220] : memref<12x8x4xf32, #tpu.memory_space<vmem>>, vector<1x8x4xf32>
    %283 = vector.shape_cast %282 : vector<1x8x4xf32> to vector<8x4xf32>
    %284 = vector.extract_strided_slice %271 {offsets = [0, 1], sizes = [4, 32], strides = [1, 1]} : vector<4x34xbf16> to vector<4x32xbf16>
    %285 = arith.extf %284 : vector<4x32xbf16> to vector<4x32xf32>
    %cst_221 = arith.constant dense<0.000000e+00> : vector<8x32xf32>
    %286 = tpu.matmul %283, %285, %cst_221 {dimension_numbers = #tpu.dot_dimension_numbers<[1], [0], [0], [1], [0, 0, 1, 1], [], []>} : vector<8x4xf32>, vector<4x32xf32>, vector<8x32xf32> -> vector<8x32xf32>
    %287 = arith.addf %281, %286 : vector<8x32xf32>
    %c2_222 = arith.constant 2 : index
    %c0_223 = arith.constant 0 : index
    %c0_224 = arith.constant 0 : index
    %288 = vector.load %arg4[%c2_222, %c0_223, %c0_224] : memref<12x8x4xf32, #tpu.memory_space<vmem>>, vector<1x8x4xf32>
    %289 = vector.shape_cast %288 : vector<1x8x4xf32> to vector<8x4xf32>
    %290 = vector.extract_strided_slice %271 {offsets = [0, 2], sizes = [4, 32], strides = [1, 1]} : vector<4x34xbf16> to vector<4x32xbf16>
    %291 = arith.extf %290 : vector<4x32xbf16> to vector<4x32xf32>
    %cst_225 = arith.constant dense<0.000000e+00> : vector<8x32xf32>
    %292 = tpu.matmul %289, %291, %cst_225 {dimension_numbers = #tpu.dot_dimension_numbers<[1], [0], [0], [1], [0, 0, 1, 1], [], []>} : vector<8x4xf32>, vector<4x32xf32>, vector<8x32xf32> -> vector<8x32xf32>
    %293 = arith.addf %287, %292 : vector<8x32xf32>
    %c3_226 = arith.constant 3 : index
    %c0_227 = arith.constant 0 : index
    %c0_228 = arith.constant 0 : index
    %294 = vector.load %arg4[%c3_226, %c0_227, %c0_228] : memref<12x8x4xf32, #tpu.memory_space<vmem>>, vector<1x8x4xf32>
    %295 = vector.shape_cast %294 : vector<1x8x4xf32> to vector<8x4xf32>
    %296 = vector.extract_strided_slice %273 {offsets = [0, 0], sizes = [4, 32], strides = [1, 1]} : vector<4x34xbf16> to vector<4x32xbf16>
    %297 = arith.extf %296 : vector<4x32xbf16> to vector<4x32xf32>
    %cst_229 = arith.constant dense<0.000000e+00> : vector<8x32xf32>
    %298 = tpu.matmul %295, %297, %cst_229 {dimension_numbers = #tpu.dot_dimension_numbers<[1], [0], [0], [1], [0, 0, 1, 1], [], []>} : vector<8x4xf32>, vector<4x32xf32>, vector<8x32xf32> -> vector<8x32xf32>
    %299 = arith.addf %293, %298 : vector<8x32xf32>
    %c4_230 = arith.constant 4 : index
    %c0_231 = arith.constant 0 : index
    %c0_232 = arith.constant 0 : index
    %300 = vector.load %arg4[%c4_230, %c0_231, %c0_232] : memref<12x8x4xf32, #tpu.memory_space<vmem>>, vector<1x8x4xf32>
    %301 = vector.shape_cast %300 : vector<1x8x4xf32> to vector<8x4xf32>
    %302 = vector.extract_strided_slice %273 {offsets = [0, 1], sizes = [4, 32], strides = [1, 1]} : vector<4x34xbf16> to vector<4x32xbf16>
    %303 = arith.extf %302 : vector<4x32xbf16> to vector<4x32xf32>
    %cst_233 = arith.constant dense<0.000000e+00> : vector<8x32xf32>
    %304 = tpu.matmul %301, %303, %cst_233 {dimension_numbers = #tpu.dot_dimension_numbers<[1], [0], [0], [1], [0, 0, 1, 1], [], []>} : vector<8x4xf32>, vector<4x32xf32>, vector<8x32xf32> -> vector<8x32xf32>
    %305 = arith.addf %299, %304 : vector<8x32xf32>
    %c5_234 = arith.constant 5 : index
    %c0_235 = arith.constant 0 : index
    %c0_236 = arith.constant 0 : index
    %306 = vector.load %arg4[%c5_234, %c0_235, %c0_236] : memref<12x8x4xf32, #tpu.memory_space<vmem>>, vector<1x8x4xf32>
    %307 = vector.shape_cast %306 : vector<1x8x4xf32> to vector<8x4xf32>
    %308 = vector.extract_strided_slice %273 {offsets = [0, 2], sizes = [4, 32], strides = [1, 1]} : vector<4x34xbf16> to vector<4x32xbf16>
    %309 = arith.extf %308 : vector<4x32xbf16> to vector<4x32xf32>
    %cst_237 = arith.constant dense<0.000000e+00> : vector<8x32xf32>
    %310 = tpu.matmul %307, %309, %cst_237 {dimension_numbers = #tpu.dot_dimension_numbers<[1], [0], [0], [1], [0, 0, 1, 1], [], []>} : vector<8x4xf32>, vector<4x32xf32>, vector<8x32xf32> -> vector<8x32xf32>
    %311 = arith.addf %305, %310 : vector<8x32xf32>
    %c0_238 = arith.constant 0 : index
    %c0_239 = arith.constant 0 : index
    %c192 = arith.constant 192 : index
    %312 = vector.load %arg6[%c0_238, %c0_239, %c192] : memref<1x8x1024xf32, #tpu.memory_space<vmem>>, vector<1x8x32xf32>
    %313 = vector.shape_cast %312 : vector<1x8x32xf32> to vector<8x32xf32>
    %314 = vector.shape_cast %311 : vector<8x32xf32> to vector<1x8x32xf32>
    tpu.vector_store %arg6[%c0_238, %c0_239, %c192], %314 {strides = array<i32>} : memref<1x8x1024xf32, #tpu.memory_space<vmem>>, vector<1x8x32xf32>,
    %c0_240 = arith.constant 0 : index
    %c0_241 = arith.constant 0 : index
    %c4_242 = arith.constant 4 : index
    %c0_243 = arith.constant 0 : index
    %315 = vector.load %arg2[%c0_240, %c0_241, %c4_242, %c0_243] : memref<1x4x16x34xbf16, #tpu.memory_space<vmem>>, vector<1x4x1x34xbf16>
    %316 = vector.shape_cast %315 : vector<1x4x1x34xbf16> to vector<4x34xbf16>
    %c0_244 = arith.constant 0 : index
    %c0_245 = arith.constant 0 : index
    %c5_246 = arith.constant 5 : index
    %c0_247 = arith.constant 0 : index
    %317 = vector.load %arg2[%c0_244, %c0_245, %c5_246, %c0_247] : memref<1x4x16x34xbf16, #tpu.memory_space<vmem>>, vector<1x4x1x34xbf16>
    %318 = vector.shape_cast %317 : vector<1x4x1x34xbf16> to vector<4x34xbf16>
    %c0_248 = arith.constant 0 : index
    %c0_249 = arith.constant 0 : index
    %319 = vector.load %arg5[%c0_248, %c0_249] : memref<8x1xf32, #tpu.memory_space<vmem>>, vector<8x1xf32>
    %c6_250 = arith.constant 6 : index
    %c0_251 = arith.constant 0 : index
    %c0_252 = arith.constant 0 : index
    %320 = vector.load %arg4[%c6_250, %c0_251, %c0_252] : memref<12x8x4xf32, #tpu.memory_space<vmem>>, vector<1x8x4xf32>
    %321 = vector.shape_cast %320 : vector<1x8x4xf32> to vector<8x4xf32>
    %322 = vector.extract_strided_slice %316 {offsets = [0, 0], sizes = [4, 32], strides = [1, 1]} : vector<4x34xbf16> to vector<4x32xbf16>
    %323 = arith.extf %322 : vector<4x32xbf16> to vector<4x32xf32>
    %cst_253 = arith.constant dense<0.000000e+00> : vector<8x32xf32>
    %324 = tpu.matmul %321, %323, %cst_253 {dimension_numbers = #tpu.dot_dimension_numbers<[1], [0], [0], [1], [0, 0, 1, 1], [], []>} : vector<8x4xf32>, vector<4x32xf32>, vector<8x32xf32> -> vector<8x32xf32>
    %325 = vector.broadcast %319 : vector<8x1xf32> to vector<8x32xf32>
    %326 = arith.addf %325, %324 : vector<8x32xf32>
    %c7_254 = arith.constant 7 : index
    %c0_255 = arith.constant 0 : index
    %c0_256 = arith.constant 0 : index
    %327 = vector.load %arg4[%c7_254, %c0_255, %c0_256] : memref<12x8x4xf32, #tpu.memory_space<vmem>>, vector<1x8x4xf32>
    %328 = vector.shape_cast %327 : vector<1x8x4xf32> to vector<8x4xf32>
    %329 = vector.extract_strided_slice %316 {offsets = [0, 1], sizes = [4, 32], strides = [1, 1]} : vector<4x34xbf16> to vector<4x32xbf16>
    %330 = arith.extf %329 : vector<4x32xbf16> to vector<4x32xf32>
    %cst_257 = arith.constant dense<0.000000e+00> : vector<8x32xf32>
    %331 = tpu.matmul %328, %330, %cst_257 {dimension_numbers = #tpu.dot_dimension_numbers<[1], [0], [0], [1], [0, 0, 1, 1], [], []>} : vector<8x4xf32>, vector<4x32xf32>, vector<8x32xf32> -> vector<8x32xf32>
    %332 = arith.addf %326, %331 : vector<8x32xf32>
    %c8_258 = arith.constant 8 : index
    %c0_259 = arith.constant 0 : index
    %c0_260 = arith.constant 0 : index
    %333 = vector.load %arg4[%c8_258, %c0_259, %c0_260] : memref<12x8x4xf32, #tpu.memory_space<vmem>>, vector<1x8x4xf32>
    %334 = vector.shape_cast %333 : vector<1x8x4xf32> to vector<8x4xf32>
    %335 = vector.extract_strided_slice %316 {offsets = [0, 2], sizes = [4, 32], strides = [1, 1]} : vector<4x34xbf16> to vector<4x32xbf16>
    %336 = arith.extf %335 : vector<4x32xbf16> to vector<4x32xf32>
    %cst_261 = arith.constant dense<0.000000e+00> : vector<8x32xf32>
    %337 = tpu.matmul %334, %336, %cst_261 {dimension_numbers = #tpu.dot_dimension_numbers<[1], [0], [0], [1], [0, 0, 1, 1], [], []>} : vector<8x4xf32>, vector<4x32xf32>, vector<8x32xf32> -> vector<8x32xf32>
    %338 = arith.addf %332, %337 : vector<8x32xf32>
    %c9_262 = arith.constant 9 : index
    %c0_263 = arith.constant 0 : index
    %c0_264 = arith.constant 0 : index
    %339 = vector.load %arg4[%c9_262, %c0_263, %c0_264] : memref<12x8x4xf32, #tpu.memory_space<vmem>>, vector<1x8x4xf32>
    %340 = vector.shape_cast %339 : vector<1x8x4xf32> to vector<8x4xf32>
    %341 = vector.extract_strided_slice %318 {offsets = [0, 0], sizes = [4, 32], strides = [1, 1]} : vector<4x34xbf16> to vector<4x32xbf16>
    %342 = arith.extf %341 : vector<4x32xbf16> to vector<4x32xf32>
    %cst_265 = arith.constant dense<0.000000e+00> : vector<8x32xf32>
    %343 = tpu.matmul %340, %342, %cst_265 {dimension_numbers = #tpu.dot_dimension_numbers<[1], [0], [0], [1], [0, 0, 1, 1], [], []>} : vector<8x4xf32>, vector<4x32xf32>, vector<8x32xf32> -> vector<8x32xf32>
    %344 = arith.addf %338, %343 : vector<8x32xf32>
    %c10_266 = arith.constant 10 : index
    %c0_267 = arith.constant 0 : index
    %c0_268 = arith.constant 0 : index
    %345 = vector.load %arg4[%c10_266, %c0_267, %c0_268] : memref<12x8x4xf32, #tpu.memory_space<vmem>>, vector<1x8x4xf32>
    %346 = vector.shape_cast %345 : vector<1x8x4xf32> to vector<8x4xf32>
    %347 = vector.extract_strided_slice %318 {offsets = [0, 1], sizes = [4, 32], strides = [1, 1]} : vector<4x34xbf16> to vector<4x32xbf16>
    %348 = arith.extf %347 : vector<4x32xbf16> to vector<4x32xf32>
    %cst_269 = arith.constant dense<0.000000e+00> : vector<8x32xf32>
    %349 = tpu.matmul %346, %348, %cst_269 {dimension_numbers = #tpu.dot_dimension_numbers<[1], [0], [0], [1], [0, 0, 1, 1], [], []>} : vector<8x4xf32>, vector<4x32xf32>, vector<8x32xf32> -> vector<8x32xf32>
    %350 = arith.addf %344, %349 : vector<8x32xf32>
    %c11_270 = arith.constant 11 : index
    %c0_271 = arith.constant 0 : index
    %c0_272 = arith.constant 0 : index
    %351 = vector.load %arg4[%c11_270, %c0_271, %c0_272] : memref<12x8x4xf32, #tpu.memory_space<vmem>>, vector<1x8x4xf32>
    %352 = vector.shape_cast %351 : vector<1x8x4xf32> to vector<8x4xf32>
    %353 = vector.extract_strided_slice %318 {offsets = [0, 2], sizes = [4, 32], strides = [1, 1]} : vector<4x34xbf16> to vector<4x32xbf16>
    %354 = arith.extf %353 : vector<4x32xbf16> to vector<4x32xf32>
    %cst_273 = arith.constant dense<0.000000e+00> : vector<8x32xf32>
    %355 = tpu.matmul %352, %354, %cst_273 {dimension_numbers = #tpu.dot_dimension_numbers<[1], [0], [0], [1], [0, 0, 1, 1], [], []>} : vector<8x4xf32>, vector<4x32xf32>, vector<8x32xf32> -> vector<8x32xf32>
    %356 = arith.addf %350, %355 : vector<8x32xf32>
    %c0_274 = arith.constant 0 : index
    %c0_275 = arith.constant 0 : index
    %c224 = arith.constant 224 : index
    %357 = vector.load %arg6[%c0_274, %c0_275, %c224] : memref<1x8x1024xf32, #tpu.memory_space<vmem>>, vector<1x8x32xf32>
    %358 = vector.shape_cast %357 : vector<1x8x32xf32> to vector<8x32xf32>
    %359 = vector.shape_cast %356 : vector<8x32xf32> to vector<1x8x32xf32>
    tpu.vector_store %arg6[%c0_274, %c0_275, %c224], %359 {strides = array<i32>} : memref<1x8x1024xf32, #tpu.memory_space<vmem>>, vector<1x8x32xf32>,
    %c0_276 = arith.constant 0 : index
    %c0_277 = arith.constant 0 : index
    %c4_278 = arith.constant 4 : index
    %c0_279 = arith.constant 0 : index
    %360 = vector.load %arg2[%c0_276, %c0_277, %c4_278, %c0_279] : memref<1x4x16x34xbf16, #tpu.memory_space<vmem>>, vector<1x4x1x34xbf16>
    %361 = vector.shape_cast %360 : vector<1x4x1x34xbf16> to vector<4x34xbf16>
    %c0_280 = arith.constant 0 : index
    %c0_281 = arith.constant 0 : index
    %c5_282 = arith.constant 5 : index
    %c0_283 = arith.constant 0 : index
    %362 = vector.load %arg2[%c0_280, %c0_281, %c5_282, %c0_283] : memref<1x4x16x34xbf16, #tpu.memory_space<vmem>>, vector<1x4x1x34xbf16>
    %363 = vector.shape_cast %362 : vector<1x4x1x34xbf16> to vector<4x34xbf16>
    %c0_284 = arith.constant 0 : index
    %c0_285 = arith.constant 0 : index
    %364 = vector.load %arg5[%c0_284, %c0_285] : memref<8x1xf32, #tpu.memory_space<vmem>>, vector<8x1xf32>
    %c0_286 = arith.constant 0 : index
    %c0_287 = arith.constant 0 : index
    %c0_288 = arith.constant 0 : index
    %365 = vector.load %arg4[%c0_286, %c0_287, %c0_288] : memref<12x8x4xf32, #tpu.memory_space<vmem>>, vector<1x8x4xf32>
    %366 = vector.shape_cast %365 : vector<1x8x4xf32> to vector<8x4xf32>
    %367 = vector.extract_strided_slice %361 {offsets = [0, 0], sizes = [4, 32], strides = [1, 1]} : vector<4x34xbf16> to vector<4x32xbf16>
    %368 = arith.extf %367 : vector<4x32xbf16> to vector<4x32xf32>
    %cst_289 = arith.constant dense<0.000000e+00> : vector<8x32xf32>
    %369 = tpu.matmul %366, %368, %cst_289 {dimension_numbers = #tpu.dot_dimension_numbers<[1], [0], [0], [1], [0, 0, 1, 1], [], []>} : vector<8x4xf32>, vector<4x32xf32>, vector<8x32xf32> -> vector<8x32xf32>
    %370 = vector.broadcast %364 : vector<8x1xf32> to vector<8x32xf32>
    %371 = arith.addf %370, %369 : vector<8x32xf32>
    %c1_290 = arith.constant 1 : index
    %c0_291 = arith.constant 0 : index
    %c0_292 = arith.constant 0 : index
    %372 = vector.load %arg4[%c1_290, %c0_291, %c0_292] : memref<12x8x4xf32, #tpu.memory_space<vmem>>, vector<1x8x4xf32>
    %373 = vector.shape_cast %372 : vector<1x8x4xf32> to vector<8x4xf32>
    %374 = vector.extract_strided_slice %361 {offsets = [0, 1], sizes = [4, 32], strides = [1, 1]} : vector<4x34xbf16> to vector<4x32xbf16>
    %375 = arith.extf %374 : vector<4x32xbf16> to vector<4x32xf32>
    %cst_293 = arith.constant dense<0.000000e+00> : vector<8x32xf32>
    %376 = tpu.matmul %373, %375, %cst_293 {dimension_numbers = #tpu.dot_dimension_numbers<[1], [0], [0], [1], [0, 0, 1, 1], [], []>} : vector<8x4xf32>, vector<4x32xf32>, vector<8x32xf32> -> vector<8x32xf32>
    %377 = arith.addf %371, %376 : vector<8x32xf32>
    %c2_294 = arith.constant 2 : index
    %c0_295 = arith.constant 0 : index
    %c0_296 = arith.constant 0 : index
    %378 = vector.load %arg4[%c2_294, %c0_295, %c0_296] : memref<12x8x4xf32, #tpu.memory_space<vmem>>, vector<1x8x4xf32>
    %379 = vector.shape_cast %378 : vector<1x8x4xf32> to vector<8x4xf32>
    %380 = vector.extract_strided_slice %361 {offsets = [0, 2], sizes = [4, 32], strides = [1, 1]} : vector<4x34xbf16> to vector<4x32xbf16>
    %381 = arith.extf %380 : vector<4x32xbf16> to vector<4x32xf32>
    %cst_297 = arith.constant dense<0.000000e+00> : vector<8x32xf32>
    %382 = tpu.matmul %379, %381, %cst_297 {dimension_numbers = #tpu.dot_dimension_numbers<[1], [0], [0], [1], [0, 0, 1, 1], [], []>} : vector<8x4xf32>, vector<4x32xf32>, vector<8x32xf32> -> vector<8x32xf32>
    %383 = arith.addf %377, %382 : vector<8x32xf32>
    %c3_298 = arith.constant 3 : index
    %c0_299 = arith.constant 0 : index
    %c0_300 = arith.constant 0 : index
    %384 = vector.load %arg4[%c3_298, %c0_299, %c0_300] : memref<12x8x4xf32, #tpu.memory_space<vmem>>, vector<1x8x4xf32>
    %385 = vector.shape_cast %384 : vector<1x8x4xf32> to vector<8x4xf32>
    %386 = vector.extract_strided_slice %363 {offsets = [0, 0], sizes = [4, 32], strides = [1, 1]} : vector<4x34xbf16> to vector<4x32xbf16>
    %387 = arith.extf %386 : vector<4x32xbf16> to vector<4x32xf32>
    %cst_301 = arith.constant dense<0.000000e+00> : vector<8x32xf32>
    %388 = tpu.matmul %385, %387, %cst_301 {dimension_numbers = #tpu.dot_dimension_numbers<[1], [0], [0], [1], [0, 0, 1, 1], [], []>} : vector<8x4xf32>, vector<4x32xf32>, vector<8x32xf32> -> vector<8x32xf32>
    %389 = arith.addf %383, %388 : vector<8x32xf32>
    %c4_302 = arith.constant 4 : index
    %c0_303 = arith.constant 0 : index
    %c0_304 = arith.constant 0 : index
    %390 = vector.load %arg4[%c4_302, %c0_303, %c0_304] : memref<12x8x4xf32, #tpu.memory_space<vmem>>, vector<1x8x4xf32>
    %391 = vector.shape_cast %390 : vector<1x8x4xf32> to vector<8x4xf32>
    %392 = vector.extract_strided_slice %363 {offsets = [0, 1], sizes = [4, 32], strides = [1, 1]} : vector<4x34xbf16> to vector<4x32xbf16>
    %393 = arith.extf %392 : vector<4x32xbf16> to vector<4x32xf32>
    %cst_305 = arith.constant dense<0.000000e+00> : vector<8x32xf32>
    %394 = tpu.matmul %391, %393, %cst_305 {dimension_numbers = #tpu.dot_dimension_numbers<[1], [0], [0], [1], [0, 0, 1, 1], [], []>} : vector<8x4xf32>, vector<4x32xf32>, vector<8x32xf32> -> vector<8x32xf32>
    %395 = arith.addf %389, %394 : vector<8x32xf32>
    %c5_306 = arith.constant 5 : index
    %c0_307 = arith.constant 0 : index
    %c0_308 = arith.constant 0 : index
    %396 = vector.load %arg4[%c5_306, %c0_307, %c0_308] : memref<12x8x4xf32, #tpu.memory_space<vmem>>, vector<1x8x4xf32>
    %397 = vector.shape_cast %396 : vector<1x8x4xf32> to vector<8x4xf32>
    %398 = vector.extract_strided_slice %363 {offsets = [0, 2], sizes = [4, 32], strides = [1, 1]} : vector<4x34xbf16> to vector<4x32xbf16>
    %399 = arith.extf %398 : vector<4x32xbf16> to vector<4x32xf32>
    %cst_309 = arith.constant dense<0.000000e+00> : vector<8x32xf32>
    %400 = tpu.matmul %397, %399, %cst_309 {dimension_numbers = #tpu.dot_dimension_numbers<[1], [0], [0], [1], [0, 0, 1, 1], [], []>} : vector<8x4xf32>, vector<4x32xf32>, vector<8x32xf32> -> vector<8x32xf32>
    %401 = arith.addf %395, %400 : vector<8x32xf32>
    %c0_310 = arith.constant 0 : index
    %c0_311 = arith.constant 0 : index
    %c256 = arith.constant 256 : index
    %402 = vector.load %arg6[%c0_310, %c0_311, %c256] : memref<1x8x1024xf32, #tpu.memory_space<vmem>>, vector<1x8x32xf32>
    %403 = vector.shape_cast %402 : vector<1x8x32xf32> to vector<8x32xf32>
    %404 = vector.shape_cast %401 : vector<8x32xf32> to vector<1x8x32xf32>
    tpu.vector_store %arg6[%c0_310, %c0_311, %c256], %404 {strides = array<i32>} : memref<1x8x1024xf32, #tpu.memory_space<vmem>>, vector<1x8x32xf32>,
    %c0_312 = arith.constant 0 : index
    %c0_313 = arith.constant 0 : index
    %c5_314 = arith.constant 5 : index
    %c0_315 = arith.constant 0 : index
    %405 = vector.load %arg2[%c0_312, %c0_313, %c5_314, %c0_315] : memref<1x4x16x34xbf16, #tpu.memory_space<vmem>>, vector<1x4x1x34xbf16>
    %406 = vector.shape_cast %405 : vector<1x4x1x34xbf16> to vector<4x34xbf16>
    %c0_316 = arith.constant 0 : index
    %c0_317 = arith.constant 0 : index
    %c6_318 = arith.constant 6 : index
    %c0_319 = arith.constant 0 : index
    %407 = vector.load %arg2[%c0_316, %c0_317, %c6_318, %c0_319] : memref<1x4x16x34xbf16, #tpu.memory_space<vmem>>, vector<1x4x1x34xbf16>
    %408 = vector.shape_cast %407 : vector<1x4x1x34xbf16> to vector<4x34xbf16>
    %c0_320 = arith.constant 0 : index
    %c0_321 = arith.constant 0 : index
    %409 = vector.load %arg5[%c0_320, %c0_321] : memref<8x1xf32, #tpu.memory_space<vmem>>, vector<8x1xf32>
    %c6_322 = arith.constant 6 : index
    %c0_323 = arith.constant 0 : index
    %c0_324 = arith.constant 0 : index
    %410 = vector.load %arg4[%c6_322, %c0_323, %c0_324] : memref<12x8x4xf32, #tpu.memory_space<vmem>>, vector<1x8x4xf32>
    %411 = vector.shape_cast %410 : vector<1x8x4xf32> to vector<8x4xf32>
    %412 = vector.extract_strided_slice %406 {offsets = [0, 0], sizes = [4, 32], strides = [1, 1]} : vector<4x34xbf16> to vector<4x32xbf16>
    %413 = arith.extf %412 : vector<4x32xbf16> to vector<4x32xf32>
    %cst_325 = arith.constant dense<0.000000e+00> : vector<8x32xf32>
    %414 = tpu.matmul %411, %413, %cst_325 {dimension_numbers = #tpu.dot_dimension_numbers<[1], [0], [0], [1], [0, 0, 1, 1], [], []>} : vector<8x4xf32>, vector<4x32xf32>, vector<8x32xf32> -> vector<8x32xf32>
    %415 = vector.broadcast %409 : vector<8x1xf32> to vector<8x32xf32>
    %416 = arith.addf %415, %414 : vector<8x32xf32>
    %c7_326 = arith.constant 7 : index
    %c0_327 = arith.constant 0 : index
    %c0_328 = arith.constant 0 : index
    %417 = vector.load %arg4[%c7_326, %c0_327, %c0_328] : memref<12x8x4xf32, #tpu.memory_space<vmem>>, vector<1x8x4xf32>
    %418 = vector.shape_cast %417 : vector<1x8x4xf32> to vector<8x4xf32>
    %419 = vector.extract_strided_slice %406 {offsets = [0, 1], sizes = [4, 32], strides = [1, 1]} : vector<4x34xbf16> to vector<4x32xbf16>
    %420 = arith.extf %419 : vector<4x32xbf16> to vector<4x32xf32>
    %cst_329 = arith.constant dense<0.000000e+00> : vector<8x32xf32>
    %421 = tpu.matmul %418, %420, %cst_329 {dimension_numbers = #tpu.dot_dimension_numbers<[1], [0], [0], [1], [0, 0, 1, 1], [], []>} : vector<8x4xf32>, vector<4x32xf32>, vector<8x32xf32> -> vector<8x32xf32>
    %422 = arith.addf %416, %421 : vector<8x32xf32>
    %c8_330 = arith.constant 8 : index
    %c0_331 = arith.constant 0 : index
    %c0_332 = arith.constant 0 : index
    %423 = vector.load %arg4[%c8_330, %c0_331, %c0_332] : memref<12x8x4xf32, #tpu.memory_space<vmem>>, vector<1x8x4xf32>
    %424 = vector.shape_cast %423 : vector<1x8x4xf32> to vector<8x4xf32>
    %425 = vector.extract_strided_slice %406 {offsets = [0, 2], sizes = [4, 32], strides = [1, 1]} : vector<4x34xbf16> to vector<4x32xbf16>
    %426 = arith.extf %425 : vector<4x32xbf16> to vector<4x32xf32>
    %cst_333 = arith.constant dense<0.000000e+00> : vector<8x32xf32>
    %427 = tpu.matmul %424, %426, %cst_333 {dimension_numbers = #tpu.dot_dimension_numbers<[1], [0], [0], [1], [0, 0, 1, 1], [], []>} : vector<8x4xf32>, vector<4x32xf32>, vector<8x32xf32> -> vector<8x32xf32>
    %428 = arith.addf %422, %427 : vector<8x32xf32>
    %c9_334 = arith.constant 9 : index
    %c0_335 = arith.constant 0 : index
    %c0_336 = arith.constant 0 : index
    %429 = vector.load %arg4[%c9_334, %c0_335, %c0_336] : memref<12x8x4xf32, #tpu.memory_space<vmem>>, vector<1x8x4xf32>
    %430 = vector.shape_cast %429 : vector<1x8x4xf32> to vector<8x4xf32>
    %431 = vector.extract_strided_slice %408 {offsets = [0, 0], sizes = [4, 32], strides = [1, 1]} : vector<4x34xbf16> to vector<4x32xbf16>
    %432 = arith.extf %431 : vector<4x32xbf16> to vector<4x32xf32>
    %cst_337 = arith.constant dense<0.000000e+00> : vector<8x32xf32>
    %433 = tpu.matmul %430, %432, %cst_337 {dimension_numbers = #tpu.dot_dimension_numbers<[1], [0], [0], [1], [0, 0, 1, 1], [], []>} : vector<8x4xf32>, vector<4x32xf32>, vector<8x32xf32> -> vector<8x32xf32>
    %434 = arith.addf %428, %433 : vector<8x32xf32>
    %c10_338 = arith.constant 10 : index
    %c0_339 = arith.constant 0 : index
    %c0_340 = arith.constant 0 : index
    %435 = vector.load %arg4[%c10_338, %c0_339, %c0_340] : memref<12x8x4xf32, #tpu.memory_space<vmem>>, vector<1x8x4xf32>
    %436 = vector.shape_cast %435 : vector<1x8x4xf32> to vector<8x4xf32>
    %437 = vector.extract_strided_slice %408 {offsets = [0, 1], sizes = [4, 32], strides = [1, 1]} : vector<4x34xbf16> to vector<4x32xbf16>
    %438 = arith.extf %437 : vector<4x32xbf16> to vector<4x32xf32>
    %cst_341 = arith.constant dense<0.000000e+00> : vector<8x32xf32>
    %439 = tpu.matmul %436, %438, %cst_341 {dimension_numbers = #tpu.dot_dimension_numbers<[1], [0], [0], [1], [0, 0, 1, 1], [], []>} : vector<8x4xf32>, vector<4x32xf32>, vector<8x32xf32> -> vector<8x32xf32>
    %440 = arith.addf %434, %439 : vector<8x32xf32>
    %c11_342 = arith.constant 11 : index
    %c0_343 = arith.constant 0 : index
    %c0_344 = arith.constant 0 : index
    %441 = vector.load %arg4[%c11_342, %c0_343, %c0_344] : memref<12x8x4xf32, #tpu.memory_space<vmem>>, vector<1x8x4xf32>
    %442 = vector.shape_cast %441 : vector<1x8x4xf32> to vector<8x4xf32>
    %443 = vector.extract_strided_slice %408 {offsets = [0, 2], sizes = [4, 32], strides = [1, 1]} : vector<4x34xbf16> to vector<4x32xbf16>
    %444 = arith.extf %443 : vector<4x32xbf16> to vector<4x32xf32>
    %cst_345 = arith.constant dense<0.000000e+00> : vector<8x32xf32>
    %445 = tpu.matmul %442, %444, %cst_345 {dimension_numbers = #tpu.dot_dimension_numbers<[1], [0], [0], [1], [0, 0, 1, 1], [], []>} : vector<8x4xf32>, vector<4x32xf32>, vector<8x32xf32> -> vector<8x32xf32>
    %446 = arith.addf %440, %445 : vector<8x32xf32>
    %c0_346 = arith.constant 0 : index
    %c0_347 = arith.constant 0 : index
    %c288 = arith.constant 288 : index
    %447 = vector.load %arg6[%c0_346, %c0_347, %c288] : memref<1x8x1024xf32, #tpu.memory_space<vmem>>, vector<1x8x32xf32>
    %448 = vector.shape_cast %447 : vector<1x8x32xf32> to vector<8x32xf32>
    %449 = vector.shape_cast %446 : vector<8x32xf32> to vector<1x8x32xf32>
    tpu.vector_store %arg6[%c0_346, %c0_347, %c288], %449 {strides = array<i32>} : memref<1x8x1024xf32, #tpu.memory_space<vmem>>, vector<1x8x32xf32>,
    %c0_348 = arith.constant 0 : index
    %c0_349 = arith.constant 0 : index
    %c5_350 = arith.constant 5 : index
    %c0_351 = arith.constant 0 : index
    %450 = vector.load %arg2[%c0_348, %c0_349, %c5_350, %c0_351] : memref<1x4x16x34xbf16, #tpu.memory_space<vmem>>, vector<1x4x1x34xbf16>
    %451 = vector.shape_cast %450 : vector<1x4x1x34xbf16> to vector<4x34xbf16>
    %c0_352 = arith.constant 0 : index
    %c0_353 = arith.constant 0 : index
    %c6_354 = arith.constant 6 : index
    %c0_355 = arith.constant 0 : index
    %452 = vector.load %arg2[%c0_352, %c0_353, %c6_354, %c0_355] : memref<1x4x16x34xbf16, #tpu.memory_space<vmem>>, vector<1x4x1x34xbf16>
    %453 = vector.shape_cast %452 : vector<1x4x1x34xbf16> to vector<4x34xbf16>
    %c0_356 = arith.constant 0 : index
    %c0_357 = arith.constant 0 : index
    %454 = vector.load %arg5[%c0_356, %c0_357] : memref<8x1xf32, #tpu.memory_space<vmem>>, vector<8x1xf32>
    %c0_358 = arith.constant 0 : index
    %c0_359 = arith.constant 0 : index
    %c0_360 = arith.constant 0 : index
    %455 = vector.load %arg4[%c0_358, %c0_359, %c0_360] : memref<12x8x4xf32, #tpu.memory_space<vmem>>, vector<1x8x4xf32>
    %456 = vector.shape_cast %455 : vector<1x8x4xf32> to vector<8x4xf32>
    %457 = vector.extract_strided_slice %451 {offsets = [0, 0], sizes = [4, 32], strides = [1, 1]} : vector<4x34xbf16> to vector<4x32xbf16>
    %458 = arith.extf %457 : vector<4x32xbf16> to vector<4x32xf32>
    %cst_361 = arith.constant dense<0.000000e+00> : vector<8x32xf32>
    %459 = tpu.matmul %456, %458, %cst_361 {dimension_numbers = #tpu.dot_dimension_numbers<[1], [0], [0], [1], [0, 0, 1, 1], [], []>} : vector<8x4xf32>, vector<4x32xf32>, vector<8x32xf32> -> vector<8x32xf32>
    %460 = vector.broadcast %454 : vector<8x1xf32> to vector<8x32xf32>
    %461 = arith.addf %460, %459 : vector<8x32xf32>
    %c1_362 = arith.constant 1 : index
    %c0_363 = arith.constant 0 : index
    %c0_364 = arith.constant 0 : index
    %462 = vector.load %arg4[%c1_362, %c0_363, %c0_364] : memref<12x8x4xf32, #tpu.memory_space<vmem>>, vector<1x8x4xf32>
    %463 = vector.shape_cast %462 : vector<1x8x4xf32> to vector<8x4xf32>
    %464 = vector.extract_strided_slice %451 {offsets = [0, 1], sizes = [4, 32], strides = [1, 1]} : vector<4x34xbf16> to vector<4x32xbf16>
    %465 = arith.extf %464 : vector<4x32xbf16> to vector<4x32xf32>
    %cst_365 = arith.constant dense<0.000000e+00> : vector<8x32xf32>
    %466 = tpu.matmul %463, %465, %cst_365 {dimension_numbers = #tpu.dot_dimension_numbers<[1], [0], [0], [1], [0, 0, 1, 1], [], []>} : vector<8x4xf32>, vector<4x32xf32>, vector<8x32xf32> -> vector<8x32xf32>
    %467 = arith.addf %461, %466 : vector<8x32xf32>
    %c2_366 = arith.constant 2 : index
    %c0_367 = arith.constant 0 : index
    %c0_368 = arith.constant 0 : index
    %468 = vector.load %arg4[%c2_366, %c0_367, %c0_368] : memref<12x8x4xf32, #tpu.memory_space<vmem>>, vector<1x8x4xf32>
    %469 = vector.shape_cast %468 : vector<1x8x4xf32> to vector<8x4xf32>
    %470 = vector.extract_strided_slice %451 {offsets = [0, 2], sizes = [4, 32], strides = [1, 1]} : vector<4x34xbf16> to vector<4x32xbf16>
    %471 = arith.extf %470 : vector<4x32xbf16> to vector<4x32xf32>
    %cst_369 = arith.constant dense<0.000000e+00> : vector<8x32xf32>
    %472 = tpu.matmul %469, %471, %cst_369 {dimension_numbers = #tpu.dot_dimension_numbers<[1], [0], [0], [1], [0, 0, 1, 1], [], []>} : vector<8x4xf32>, vector<4x32xf32>, vector<8x32xf32> -> vector<8x32xf32>
    %473 = arith.addf %467, %472 : vector<8x32xf32>
    %c3_370 = arith.constant 3 : index
    %c0_371 = arith.constant 0 : index
    %c0_372 = arith.constant 0 : index
    %474 = vector.load %arg4[%c3_370, %c0_371, %c0_372] : memref<12x8x4xf32, #tpu.memory_space<vmem>>, vector<1x8x4xf32>
    %475 = vector.shape_cast %474 : vector<1x8x4xf32> to vector<8x4xf32>
    %476 = vector.extract_strided_slice %453 {offsets = [0, 0], sizes = [4, 32], strides = [1, 1]} : vector<4x34xbf16> to vector<4x32xbf16>
    %477 = arith.extf %476 : vector<4x32xbf16> to vector<4x32xf32>
    %cst_373 = arith.constant dense<0.000000e+00> : vector<8x32xf32>
    %478 = tpu.matmul %475, %477, %cst_373 {dimension_numbers = #tpu.dot_dimension_numbers<[1], [0], [0], [1], [0, 0, 1, 1], [], []>} : vector<8x4xf32>, vector<4x32xf32>, vector<8x32xf32> -> vector<8x32xf32>
    %479 = arith.addf %473, %478 : vector<8x32xf32>
    %c4_374 = arith.constant 4 : index
    %c0_375 = arith.constant 0 : index
    %c0_376 = arith.constant 0 : index
    %480 = vector.load %arg4[%c4_374, %c0_375, %c0_376] : memref<12x8x4xf32, #tpu.memory_space<vmem>>, vector<1x8x4xf32>
    %481 = vector.shape_cast %480 : vector<1x8x4xf32> to vector<8x4xf32>
    %482 = vector.extract_strided_slice %453 {offsets = [0, 1], sizes = [4, 32], strides = [1, 1]} : vector<4x34xbf16> to vector<4x32xbf16>
    %483 = arith.extf %482 : vector<4x32xbf16> to vector<4x32xf32>
    %cst_377 = arith.constant dense<0.000000e+00> : vector<8x32xf32>
    %484 = tpu.matmul %481, %483, %cst_377 {dimension_numbers = #tpu.dot_dimension_numbers<[1], [0], [0], [1], [0, 0, 1, 1], [], []>} : vector<8x4xf32>, vector<4x32xf32>, vector<8x32xf32> -> vector<8x32xf32>
    %485 = arith.addf %479, %484 : vector<8x32xf32>
    %c5_378 = arith.constant 5 : index
    %c0_379 = arith.constant 0 : index
    %c0_380 = arith.constant 0 : index
    %486 = vector.load %arg4[%c5_378, %c0_379, %c0_380] : memref<12x8x4xf32, #tpu.memory_space<vmem>>, vector<1x8x4xf32>
    %487 = vector.shape_cast %486 : vector<1x8x4xf32> to vector<8x4xf32>
    %488 = vector.extract_strided_slice %453 {offsets = [0, 2], sizes = [4, 32], strides = [1, 1]} : vector<4x34xbf16> to vector<4x32xbf16>
    %489 = arith.extf %488 : vector<4x32xbf16> to vector<4x32xf32>
    %cst_381 = arith.constant dense<0.000000e+00> : vector<8x32xf32>
    %490 = tpu.matmul %487, %489, %cst_381 {dimension_numbers = #tpu.dot_dimension_numbers<[1], [0], [0], [1], [0, 0, 1, 1], [], []>} : vector<8x4xf32>, vector<4x32xf32>, vector<8x32xf32> -> vector<8x32xf32>
    %491 = arith.addf %485, %490 : vector<8x32xf32>
    %c0_382 = arith.constant 0 : index
    %c0_383 = arith.constant 0 : index
    %c320 = arith.constant 320 : index
    %492 = vector.load %arg6[%c0_382, %c0_383, %c320] : memref<1x8x1024xf32, #tpu.memory_space<vmem>>, vector<1x8x32xf32>
    %493 = vector.shape_cast %492 : vector<1x8x32xf32> to vector<8x32xf32>
    %494 = vector.shape_cast %491 : vector<8x32xf32> to vector<1x8x32xf32>
    tpu.vector_store %arg6[%c0_382, %c0_383, %c320], %494 {strides = array<i32>} : memref<1x8x1024xf32, #tpu.memory_space<vmem>>, vector<1x8x32xf32>,
    %c0_384 = arith.constant 0 : index
    %c0_385 = arith.constant 0 : index
    %c6_386 = arith.constant 6 : index
    %c0_387 = arith.constant 0 : index
    %495 = vector.load %arg2[%c0_384, %c0_385, %c6_386, %c0_387] : memref<1x4x16x34xbf16, #tpu.memory_space<vmem>>, vector<1x4x1x34xbf16>
    %496 = vector.shape_cast %495 : vector<1x4x1x34xbf16> to vector<4x34xbf16>
    %c0_388 = arith.constant 0 : index
    %c0_389 = arith.constant 0 : index
    %c7_390 = arith.constant 7 : index
    %c0_391 = arith.constant 0 : index
    %497 = vector.load %arg2[%c0_388, %c0_389, %c7_390, %c0_391] : memref<1x4x16x34xbf16, #tpu.memory_space<vmem>>, vector<1x4x1x34xbf16>
    %498 = vector.shape_cast %497 : vector<1x4x1x34xbf16> to vector<4x34xbf16>
    %c0_392 = arith.constant 0 : index
    %c0_393 = arith.constant 0 : index
    %499 = vector.load %arg5[%c0_392, %c0_393] : memref<8x1xf32, #tpu.memory_space<vmem>>, vector<8x1xf32>
    %c6_394 = arith.constant 6 : index
    %c0_395 = arith.constant 0 : index
    %c0_396 = arith.constant 0 : index
    %500 = vector.load %arg4[%c6_394, %c0_395, %c0_396] : memref<12x8x4xf32, #tpu.memory_space<vmem>>, vector<1x8x4xf32>
    %501 = vector.shape_cast %500 : vector<1x8x4xf32> to vector<8x4xf32>
    %502 = vector.extract_strided_slice %496 {offsets = [0, 0], sizes = [4, 32], strides = [1, 1]} : vector<4x34xbf16> to vector<4x32xbf16>
    %503 = arith.extf %502 : vector<4x32xbf16> to vector<4x32xf32>
    %cst_397 = arith.constant dense<0.000000e+00> : vector<8x32xf32>
    %504 = tpu.matmul %501, %503, %cst_397 {dimension_numbers = #tpu.dot_dimension_numbers<[1], [0], [0], [1], [0, 0, 1, 1], [], []>} : vector<8x4xf32>, vector<4x32xf32>, vector<8x32xf32> -> vector<8x32xf32>
    %505 = vector.broadcast %499 : vector<8x1xf32> to vector<8x32xf32>
    %506 = arith.addf %505, %504 : vector<8x32xf32>
    %c7_398 = arith.constant 7 : index
    %c0_399 = arith.constant 0 : index
    %c0_400 = arith.constant 0 : index
    %507 = vector.load %arg4[%c7_398, %c0_399, %c0_400] : memref<12x8x4xf32, #tpu.memory_space<vmem>>, vector<1x8x4xf32>
    %508 = vector.shape_cast %507 : vector<1x8x4xf32> to vector<8x4xf32>
    %509 = vector.extract_strided_slice %496 {offsets = [0, 1], sizes = [4, 32], strides = [1, 1]} : vector<4x34xbf16> to vector<4x32xbf16>
    %510 = arith.extf %509 : vector<4x32xbf16> to vector<4x32xf32>
    %cst_401 = arith.constant dense<0.000000e+00> : vector<8x32xf32>
    %511 = tpu.matmul %508, %510, %cst_401 {dimension_numbers = #tpu.dot_dimension_numbers<[1], [0], [0], [1], [0, 0, 1, 1], [], []>} : vector<8x4xf32>, vector<4x32xf32>, vector<8x32xf32> -> vector<8x32xf32>
    %512 = arith.addf %506, %511 : vector<8x32xf32>
    %c8_402 = arith.constant 8 : index
    %c0_403 = arith.constant 0 : index
    %c0_404 = arith.constant 0 : index
    %513 = vector.load %arg4[%c8_402, %c0_403, %c0_404] : memref<12x8x4xf32, #tpu.memory_space<vmem>>, vector<1x8x4xf32>
    %514 = vector.shape_cast %513 : vector<1x8x4xf32> to vector<8x4xf32>
    %515 = vector.extract_strided_slice %496 {offsets = [0, 2], sizes = [4, 32], strides = [1, 1]} : vector<4x34xbf16> to vector<4x32xbf16>
    %516 = arith.extf %515 : vector<4x32xbf16> to vector<4x32xf32>
    %cst_405 = arith.constant dense<0.000000e+00> : vector<8x32xf32>
    %517 = tpu.matmul %514, %516, %cst_405 {dimension_numbers = #tpu.dot_dimension_numbers<[1], [0], [0], [1], [0, 0, 1, 1], [], []>} : vector<8x4xf32>, vector<4x32xf32>, vector<8x32xf32> -> vector<8x32xf32>
    %518 = arith.addf %512, %517 : vector<8x32xf32>
    %c9_406 = arith.constant 9 : index
    %c0_407 = arith.constant 0 : index
    %c0_408 = arith.constant 0 : index
    %519 = vector.load %arg4[%c9_406, %c0_407, %c0_408] : memref<12x8x4xf32, #tpu.memory_space<vmem>>, vector<1x8x4xf32>
    %520 = vector.shape_cast %519 : vector<1x8x4xf32> to vector<8x4xf32>
    %521 = vector.extract_strided_slice %498 {offsets = [0, 0], sizes = [4, 32], strides = [1, 1]} : vector<4x34xbf16> to vector<4x32xbf16>
    %522 = arith.extf %521 : vector<4x32xbf16> to vector<4x32xf32>
    %cst_409 = arith.constant dense<0.000000e+00> : vector<8x32xf32>
    %523 = tpu.matmul %520, %522, %cst_409 {dimension_numbers = #tpu.dot_dimension_numbers<[1], [0], [0], [1], [0, 0, 1, 1], [], []>} : vector<8x4xf32>, vector<4x32xf32>, vector<8x32xf32> -> vector<8x32xf32>
    %524 = arith.addf %518, %523 : vector<8x32xf32>
    %c10_410 = arith.constant 10 : index
    %c0_411 = arith.constant 0 : index
    %c0_412 = arith.constant 0 : index
    %525 = vector.load %arg4[%c10_410, %c0_411, %c0_412] : memref<12x8x4xf32, #tpu.memory_space<vmem>>, vector<1x8x4xf32>
    %526 = vector.shape_cast %525 : vector<1x8x4xf32> to vector<8x4xf32>
    %527 = vector.extract_strided_slice %498 {offsets = [0, 1], sizes = [4, 32], strides = [1, 1]} : vector<4x34xbf16> to vector<4x32xbf16>
    %528 = arith.extf %527 : vector<4x32xbf16> to vector<4x32xf32>
    %cst_413 = arith.constant dense<0.000000e+00> : vector<8x32xf32>
    %529 = tpu.matmul %526, %528, %cst_413 {dimension_numbers = #tpu.dot_dimension_numbers<[1], [0], [0], [1], [0, 0, 1, 1], [], []>} : vector<8x4xf32>, vector<4x32xf32>, vector<8x32xf32> -> vector<8x32xf32>
    %530 = arith.addf %524, %529 : vector<8x32xf32>
    %c11_414 = arith.constant 11 : index
    %c0_415 = arith.constant 0 : index
    %c0_416 = arith.constant 0 : index
    %531 = vector.load %arg4[%c11_414, %c0_415, %c0_416] : memref<12x8x4xf32, #tpu.memory_space<vmem>>, vector<1x8x4xf32>
    %532 = vector.shape_cast %531 : vector<1x8x4xf32> to vector<8x4xf32>
    %533 = vector.extract_strided_slice %498 {offsets = [0, 2], sizes = [4, 32], strides = [1, 1]} : vector<4x34xbf16> to vector<4x32xbf16>
    %534 = arith.extf %533 : vector<4x32xbf16> to vector<4x32xf32>
    %cst_417 = arith.constant dense<0.000000e+00> : vector<8x32xf32>
    %535 = tpu.matmul %532, %534, %cst_417 {dimension_numbers = #tpu.dot_dimension_numbers<[1], [0], [0], [1], [0, 0, 1, 1], [], []>} : vector<8x4xf32>, vector<4x32xf32>, vector<8x32xf32> -> vector<8x32xf32>
    %536 = arith.addf %530, %535 : vector<8x32xf32>
    %c0_418 = arith.constant 0 : index
    %c0_419 = arith.constant 0 : index
    %c352 = arith.constant 352 : index
    %537 = vector.load %arg6[%c0_418, %c0_419, %c352] : memref<1x8x1024xf32, #tpu.memory_space<vmem>>, vector<1x8x32xf32>
    %538 = vector.shape_cast %537 : vector<1x8x32xf32> to vector<8x32xf32>
    %539 = vector.shape_cast %536 : vector<8x32xf32> to vector<1x8x32xf32>
    tpu.vector_store %arg6[%c0_418, %c0_419, %c352], %539 {strides = array<i32>} : memref<1x8x1024xf32, #tpu.memory_space<vmem>>, vector<1x8x32xf32>,
    %c0_420 = arith.constant 0 : index
    %c0_421 = arith.constant 0 : index
    %c6_422 = arith.constant 6 : index
    %c0_423 = arith.constant 0 : index
    %540 = vector.load %arg2[%c0_420, %c0_421, %c6_422, %c0_423] : memref<1x4x16x34xbf16, #tpu.memory_space<vmem>>, vector<1x4x1x34xbf16>
    %541 = vector.shape_cast %540 : vector<1x4x1x34xbf16> to vector<4x34xbf16>
    %c0_424 = arith.constant 0 : index
    %c0_425 = arith.constant 0 : index
    %c7_426 = arith.constant 7 : index
    %c0_427 = arith.constant 0 : index
    %542 = vector.load %arg2[%c0_424, %c0_425, %c7_426, %c0_427] : memref<1x4x16x34xbf16, #tpu.memory_space<vmem>>, vector<1x4x1x34xbf16>
    %543 = vector.shape_cast %542 : vector<1x4x1x34xbf16> to vector<4x34xbf16>
    %c0_428 = arith.constant 0 : index
    %c0_429 = arith.constant 0 : index
    %544 = vector.load %arg5[%c0_428, %c0_429] : memref<8x1xf32, #tpu.memory_space<vmem>>, vector<8x1xf32>
    %c0_430 = arith.constant 0 : index
    %c0_431 = arith.constant 0 : index
    %c0_432 = arith.constant 0 : index
    %545 = vector.load %arg4[%c0_430, %c0_431, %c0_432] : memref<12x8x4xf32, #tpu.memory_space<vmem>>, vector<1x8x4xf32>
    %546 = vector.shape_cast %545 : vector<1x8x4xf32> to vector<8x4xf32>
    %547 = vector.extract_strided_slice %541 {offsets = [0, 0], sizes = [4, 32], strides = [1, 1]} : vector<4x34xbf16> to vector<4x32xbf16>
    %548 = arith.extf %547 : vector<4x32xbf16> to vector<4x32xf32>
    %cst_433 = arith.constant dense<0.000000e+00> : vector<8x32xf32>
    %549 = tpu.matmul %546, %548, %cst_433 {dimension_numbers = #tpu.dot_dimension_numbers<[1], [0], [0], [1], [0, 0, 1, 1], [], []>} : vector<8x4xf32>, vector<4x32xf32>, vector<8x32xf32> -> vector<8x32xf32>
    %550 = vector.broadcast %544 : vector<8x1xf32> to vector<8x32xf32>
    %551 = arith.addf %550, %549 : vector<8x32xf32>
    %c1_434 = arith.constant 1 : index
    %c0_435 = arith.constant 0 : index
    %c0_436 = arith.constant 0 : index
    %552 = vector.load %arg4[%c1_434, %c0_435, %c0_436] : memref<12x8x4xf32, #tpu.memory_space<vmem>>, vector<1x8x4xf32>
    %553 = vector.shape_cast %552 : vector<1x8x4xf32> to vector<8x4xf32>
    %554 = vector.extract_strided_slice %541 {offsets = [0, 1], sizes = [4, 32], strides = [1, 1]} : vector<4x34xbf16> to vector<4x32xbf16>
    %555 = arith.extf %554 : vector<4x32xbf16> to vector<4x32xf32>
    %cst_437 = arith.constant dense<0.000000e+00> : vector<8x32xf32>
    %556 = tpu.matmul %553, %555, %cst_437 {dimension_numbers = #tpu.dot_dimension_numbers<[1], [0], [0], [1], [0, 0, 1, 1], [], []>} : vector<8x4xf32>, vector<4x32xf32>, vector<8x32xf32> -> vector<8x32xf32>
    %557 = arith.addf %551, %556 : vector<8x32xf32>
    %c2_438 = arith.constant 2 : index
    %c0_439 = arith.constant 0 : index
    %c0_440 = arith.constant 0 : index
    %558 = vector.load %arg4[%c2_438, %c0_439, %c0_440] : memref<12x8x4xf32, #tpu.memory_space<vmem>>, vector<1x8x4xf32>
    %559 = vector.shape_cast %558 : vector<1x8x4xf32> to vector<8x4xf32>
    %560 = vector.extract_strided_slice %541 {offsets = [0, 2], sizes = [4, 32], strides = [1, 1]} : vector<4x34xbf16> to vector<4x32xbf16>
    %561 = arith.extf %560 : vector<4x32xbf16> to vector<4x32xf32>
    %cst_441 = arith.constant dense<0.000000e+00> : vector<8x32xf32>
    %562 = tpu.matmul %559, %561, %cst_441 {dimension_numbers = #tpu.dot_dimension_numbers<[1], [0], [0], [1], [0, 0, 1, 1], [], []>} : vector<8x4xf32>, vector<4x32xf32>, vector<8x32xf32> -> vector<8x32xf32>
    %563 = arith.addf %557, %562 : vector<8x32xf32>
    %c3_442 = arith.constant 3 : index
    %c0_443 = arith.constant 0 : index
    %c0_444 = arith.constant 0 : index
    %564 = vector.load %arg4[%c3_442, %c0_443, %c0_444] : memref<12x8x4xf32, #tpu.memory_space<vmem>>, vector<1x8x4xf32>
    %565 = vector.shape_cast %564 : vector<1x8x4xf32> to vector<8x4xf32>
    %566 = vector.extract_strided_slice %543 {offsets = [0, 0], sizes = [4, 32], strides = [1, 1]} : vector<4x34xbf16> to vector<4x32xbf16>
    %567 = arith.extf %566 : vector<4x32xbf16> to vector<4x32xf32>
    %cst_445 = arith.constant dense<0.000000e+00> : vector<8x32xf32>
    %568 = tpu.matmul %565, %567, %cst_445 {dimension_numbers = #tpu.dot_dimension_numbers<[1], [0], [0], [1], [0, 0, 1, 1], [], []>} : vector<8x4xf32>, vector<4x32xf32>, vector<8x32xf32> -> vector<8x32xf32>
    %569 = arith.addf %563, %568 : vector<8x32xf32>
    %c4_446 = arith.constant 4 : index
    %c0_447 = arith.constant 0 : index
    %c0_448 = arith.constant 0 : index
    %570 = vector.load %arg4[%c4_446, %c0_447, %c0_448] : memref<12x8x4xf32, #tpu.memory_space<vmem>>, vector<1x8x4xf32>
    %571 = vector.shape_cast %570 : vector<1x8x4xf32> to vector<8x4xf32>
    %572 = vector.extract_strided_slice %543 {offsets = [0, 1], sizes = [4, 32], strides = [1, 1]} : vector<4x34xbf16> to vector<4x32xbf16>
    %573 = arith.extf %572 : vector<4x32xbf16> to vector<4x32xf32>
    %cst_449 = arith.constant dense<0.000000e+00> : vector<8x32xf32>
    %574 = tpu.matmul %571, %573, %cst_449 {dimension_numbers = #tpu.dot_dimension_numbers<[1], [0], [0], [1], [0, 0, 1, 1], [], []>} : vector<8x4xf32>, vector<4x32xf32>, vector<8x32xf32> -> vector<8x32xf32>
    %575 = arith.addf %569, %574 : vector<8x32xf32>
    %c5_450 = arith.constant 5 : index
    %c0_451 = arith.constant 0 : index
    %c0_452 = arith.constant 0 : index
    %576 = vector.load %arg4[%c5_450, %c0_451, %c0_452] : memref<12x8x4xf32, #tpu.memory_space<vmem>>, vector<1x8x4xf32>
    %577 = vector.shape_cast %576 : vector<1x8x4xf32> to vector<8x4xf32>
    %578 = vector.extract_strided_slice %543 {offsets = [0, 2], sizes = [4, 32], strides = [1, 1]} : vector<4x34xbf16> to vector<4x32xbf16>
    %579 = arith.extf %578 : vector<4x32xbf16> to vector<4x32xf32>
    %cst_453 = arith.constant dense<0.000000e+00> : vector<8x32xf32>
    %580 = tpu.matmul %577, %579, %cst_453 {dimension_numbers = #tpu.dot_dimension_numbers<[1], [0], [0], [1], [0, 0, 1, 1], [], []>} : vector<8x4xf32>, vector<4x32xf32>, vector<8x32xf32> -> vector<8x32xf32>
    %581 = arith.addf %575, %580 : vector<8x32xf32>
    %c0_454 = arith.constant 0 : index
    %c0_455 = arith.constant 0 : index
    %c384 = arith.constant 384 : index
    %582 = vector.load %arg6[%c0_454, %c0_455, %c384] : memref<1x8x1024xf32, #tpu.memory_space<vmem>>, vector<1x8x32xf32>
    %583 = vector.shape_cast %582 : vector<1x8x32xf32> to vector<8x32xf32>
    %584 = vector.shape_cast %581 : vector<8x32xf32> to vector<1x8x32xf32>
    tpu.vector_store %arg6[%c0_454, %c0_455, %c384], %584 {strides = array<i32>} : memref<1x8x1024xf32, #tpu.memory_space<vmem>>, vector<1x8x32xf32>,
    %c0_456 = arith.constant 0 : index
    %c0_457 = arith.constant 0 : index
    %c7_458 = arith.constant 7 : index
    %c0_459 = arith.constant 0 : index
    %585 = vector.load %arg2[%c0_456, %c0_457, %c7_458, %c0_459] : memref<1x4x16x34xbf16, #tpu.memory_space<vmem>>, vector<1x4x1x34xbf16>
    %586 = vector.shape_cast %585 : vector<1x4x1x34xbf16> to vector<4x34xbf16>
    %c0_460 = arith.constant 0 : index
    %c0_461 = arith.constant 0 : index
    %c8_462 = arith.constant 8 : index
    %c0_463 = arith.constant 0 : index
    %587 = vector.load %arg2[%c0_460, %c0_461, %c8_462, %c0_463] : memref<1x4x16x34xbf16, #tpu.memory_space<vmem>>, vector<1x4x1x34xbf16>
    %588 = vector.shape_cast %587 : vector<1x4x1x34xbf16> to vector<4x34xbf16>
    %c0_464 = arith.constant 0 : index
    %c0_465 = arith.constant 0 : index
    %589 = vector.load %arg5[%c0_464, %c0_465] : memref<8x1xf32, #tpu.memory_space<vmem>>, vector<8x1xf32>
    %c6_466 = arith.constant 6 : index
    %c0_467 = arith.constant 0 : index
    %c0_468 = arith.constant 0 : index
    %590 = vector.load %arg4[%c6_466, %c0_467, %c0_468] : memref<12x8x4xf32, #tpu.memory_space<vmem>>, vector<1x8x4xf32>
    %591 = vector.shape_cast %590 : vector<1x8x4xf32> to vector<8x4xf32>
    %592 = vector.extract_strided_slice %586 {offsets = [0, 0], sizes = [4, 32], strides = [1, 1]} : vector<4x34xbf16> to vector<4x32xbf16>
    %593 = arith.extf %592 : vector<4x32xbf16> to vector<4x32xf32>
    %cst_469 = arith.constant dense<0.000000e+00> : vector<8x32xf32>
    %594 = tpu.matmul %591, %593, %cst_469 {dimension_numbers = #tpu.dot_dimension_numbers<[1], [0], [0], [1], [0, 0, 1, 1], [], []>} : vector<8x4xf32>, vector<4x32xf32>, vector<8x32xf32> -> vector<8x32xf32>
    %595 = vector.broadcast %589 : vector<8x1xf32> to vector<8x32xf32>
    %596 = arith.addf %595, %594 : vector<8x32xf32>
    %c7_470 = arith.constant 7 : index
    %c0_471 = arith.constant 0 : index
    %c0_472 = arith.constant 0 : index
    %597 = vector.load %arg4[%c7_470, %c0_471, %c0_472] : memref<12x8x4xf32, #tpu.memory_space<vmem>>, vector<1x8x4xf32>
    %598 = vector.shape_cast %597 : vector<1x8x4xf32> to vector<8x4xf32>
    %599 = vector.extract_strided_slice %586 {offsets = [0, 1], sizes = [4, 32], strides = [1, 1]} : vector<4x34xbf16> to vector<4x32xbf16>
    %600 = arith.extf %599 : vector<4x32xbf16> to vector<4x32xf32>
    %cst_473 = arith.constant dense<0.000000e+00> : vector<8x32xf32>
    %601 = tpu.matmul %598, %600, %cst_473 {dimension_numbers = #tpu.dot_dimension_numbers<[1], [0], [0], [1], [0, 0, 1, 1], [], []>} : vector<8x4xf32>, vector<4x32xf32>, vector<8x32xf32> -> vector<8x32xf32>
    %602 = arith.addf %596, %601 : vector<8x32xf32>
    %c8_474 = arith.constant 8 : index
    %c0_475 = arith.constant 0 : index
    %c0_476 = arith.constant 0 : index
    %603 = vector.load %arg4[%c8_474, %c0_475, %c0_476] : memref<12x8x4xf32, #tpu.memory_space<vmem>>, vector<1x8x4xf32>
    %604 = vector.shape_cast %603 : vector<1x8x4xf32> to vector<8x4xf32>
    %605 = vector.extract_strided_slice %586 {offsets = [0, 2], sizes = [4, 32], strides = [1, 1]} : vector<4x34xbf16> to vector<4x32xbf16>
    %606 = arith.extf %605 : vector<4x32xbf16> to vector<4x32xf32>
    %cst_477 = arith.constant dense<0.000000e+00> : vector<8x32xf32>
    %607 = tpu.matmul %604, %606, %cst_477 {dimension_numbers = #tpu.dot_dimension_numbers<[1], [0], [0], [1], [0, 0, 1, 1], [], []>} : vector<8x4xf32>, vector<4x32xf32>, vector<8x32xf32> -> vector<8x32xf32>
    %608 = arith.addf %602, %607 : vector<8x32xf32>
    %c9_478 = arith.constant 9 : index
    %c0_479 = arith.constant 0 : index
    %c0_480 = arith.constant 0 : index
    %609 = vector.load %arg4[%c9_478, %c0_479, %c0_480] : memref<12x8x4xf32, #tpu.memory_space<vmem>>, vector<1x8x4xf32>
    %610 = vector.shape_cast %609 : vector<1x8x4xf32> to vector<8x4xf32>
    %611 = vector.extract_strided_slice %588 {offsets = [0, 0], sizes = [4, 32], strides = [1, 1]} : vector<4x34xbf16> to vector<4x32xbf16>
    %612 = arith.extf %611 : vector<4x32xbf16> to vector<4x32xf32>
    %cst_481 = arith.constant dense<0.000000e+00> : vector<8x32xf32>
    %613 = tpu.matmul %610, %612, %cst_481 {dimension_numbers = #tpu.dot_dimension_numbers<[1], [0], [0], [1], [0, 0, 1, 1], [], []>} : vector<8x4xf32>, vector<4x32xf32>, vector<8x32xf32> -> vector<8x32xf32>
    %614 = arith.addf %608, %613 : vector<8x32xf32>
    %c10_482 = arith.constant 10 : index
    %c0_483 = arith.constant 0 : index
    %c0_484 = arith.constant 0 : index
    %615 = vector.load %arg4[%c10_482, %c0_483, %c0_484] : memref<12x8x4xf32, #tpu.memory_space<vmem>>, vector<1x8x4xf32>
    %616 = vector.shape_cast %615 : vector<1x8x4xf32> to vector<8x4xf32>
    %617 = vector.extract_strided_slice %588 {offsets = [0, 1], sizes = [4, 32], strides = [1, 1]} : vector<4x34xbf16> to vector<4x32xbf16>
    %618 = arith.extf %617 : vector<4x32xbf16> to vector<4x32xf32>
    %cst_485 = arith.constant dense<0.000000e+00> : vector<8x32xf32>
    %619 = tpu.matmul %616, %618, %cst_485 {dimension_numbers = #tpu.dot_dimension_numbers<[1], [0], [0], [1], [0, 0, 1, 1], [], []>} : vector<8x4xf32>, vector<4x32xf32>, vector<8x32xf32> -> vector<8x32xf32>
    %620 = arith.addf %614, %619 : vector<8x32xf32>
    %c11_486 = arith.constant 11 : index
    %c0_487 = arith.constant 0 : index
    %c0_488 = arith.constant 0 : index
    %621 = vector.load %arg4[%c11_486, %c0_487, %c0_488] : memref<12x8x4xf32, #tpu.memory_space<vmem>>, vector<1x8x4xf32>
    %622 = vector.shape_cast %621 : vector<1x8x4xf32> to vector<8x4xf32>
    %623 = vector.extract_strided_slice %588 {offsets = [0, 2], sizes = [4, 32], strides = [1, 1]} : vector<4x34xbf16> to vector<4x32xbf16>
    %624 = arith.extf %623 : vector<4x32xbf16> to vector<4x32xf32>
    %cst_489 = arith.constant dense<0.000000e+00> : vector<8x32xf32>
    %625 = tpu.matmul %622, %624, %cst_489 {dimension_numbers = #tpu.dot_dimension_numbers<[1], [0], [0], [1], [0, 0, 1, 1], [], []>} : vector<8x4xf32>, vector<4x32xf32>, vector<8x32xf32> -> vector<8x32xf32>
    %626 = arith.addf %620, %625 : vector<8x32xf32>
    %c0_490 = arith.constant 0 : index
    %c0_491 = arith.constant 0 : index
    %c416 = arith.constant 416 : index
    %627 = vector.load %arg6[%c0_490, %c0_491, %c416] : memref<1x8x1024xf32, #tpu.memory_space<vmem>>, vector<1x8x32xf32>
    %628 = vector.shape_cast %627 : vector<1x8x32xf32> to vector<8x32xf32>
    %629 = vector.shape_cast %626 : vector<8x32xf32> to vector<1x8x32xf32>
    tpu.vector_store %arg6[%c0_490, %c0_491, %c416], %629 {strides = array<i32>} : memref<1x8x1024xf32, #tpu.memory_space<vmem>>, vector<1x8x32xf32>,
    %c0_492 = arith.constant 0 : index
    %c0_493 = arith.constant 0 : index
    %c7_494 = arith.constant 7 : index
    %c0_495 = arith.constant 0 : index
    %630 = vector.load %arg2[%c0_492, %c0_493, %c7_494, %c0_495] : memref<1x4x16x34xbf16, #tpu.memory_space<vmem>>, vector<1x4x1x34xbf16>
    %631 = vector.shape_cast %630 : vector<1x4x1x34xbf16> to vector<4x34xbf16>
    %c0_496 = arith.constant 0 : index
    %c0_497 = arith.constant 0 : index
    %c8_498 = arith.constant 8 : index
    %c0_499 = arith.constant 0 : index
    %632 = vector.load %arg2[%c0_496, %c0_497, %c8_498, %c0_499] : memref<1x4x16x34xbf16, #tpu.memory_space<vmem>>, vector<1x4x1x34xbf16>
    %633 = vector.shape_cast %632 : vector<1x4x1x34xbf16> to vector<4x34xbf16>
    %c0_500 = arith.constant 0 : index
    %c0_501 = arith.constant 0 : index
    %634 = vector.load %arg5[%c0_500, %c0_501] : memref<8x1xf32, #tpu.memory_space<vmem>>, vector<8x1xf32>
    %c0_502 = arith.constant 0 : index
    %c0_503 = arith.constant 0 : index
    %c0_504 = arith.constant 0 : index
    %635 = vector.load %arg4[%c0_502, %c0_503, %c0_504] : memref<12x8x4xf32, #tpu.memory_space<vmem>>, vector<1x8x4xf32>
    %636 = vector.shape_cast %635 : vector<1x8x4xf32> to vector<8x4xf32>
    %637 = vector.extract_strided_slice %631 {offsets = [0, 0], sizes = [4, 32], strides = [1, 1]} : vector<4x34xbf16> to vector<4x32xbf16>
    %638 = arith.extf %637 : vector<4x32xbf16> to vector<4x32xf32>
    %cst_505 = arith.constant dense<0.000000e+00> : vector<8x32xf32>
    %639 = tpu.matmul %636, %638, %cst_505 {dimension_numbers = #tpu.dot_dimension_numbers<[1], [0], [0], [1], [0, 0, 1, 1], [], []>} : vector<8x4xf32>, vector<4x32xf32>, vector<8x32xf32> -> vector<8x32xf32>
    %640 = vector.broadcast %634 : vector<8x1xf32> to vector<8x32xf32>
    %641 = arith.addf %640, %639 : vector<8x32xf32>
    %c1_506 = arith.constant 1 : index
    %c0_507 = arith.constant 0 : index
    %c0_508 = arith.constant 0 : index
    %642 = vector.load %arg4[%c1_506, %c0_507, %c0_508] : memref<12x8x4xf32, #tpu.memory_space<vmem>>, vector<1x8x4xf32>
    %643 = vector.shape_cast %642 : vector<1x8x4xf32> to vector<8x4xf32>
    %644 = vector.extract_strided_slice %631 {offsets = [0, 1], sizes = [4, 32], strides = [1, 1]} : vector<4x34xbf16> to vector<4x32xbf16>
    %645 = arith.extf %644 : vector<4x32xbf16> to vector<4x32xf32>
    %cst_509 = arith.constant dense<0.000000e+00> : vector<8x32xf32>
    %646 = tpu.matmul %643, %645, %cst_509 {dimension_numbers = #tpu.dot_dimension_numbers<[1], [0], [0], [1], [0, 0, 1, 1], [], []>} : vector<8x4xf32>, vector<4x32xf32>, vector<8x32xf32> -> vector<8x32xf32>
    %647 = arith.addf %641, %646 : vector<8x32xf32>
    %c2_510 = arith.constant 2 : index
    %c0_511 = arith.constant 0 : index
    %c0_512 = arith.constant 0 : index
    %648 = vector.load %arg4[%c2_510, %c0_511, %c0_512] : memref<12x8x4xf32, #tpu.memory_space<vmem>>, vector<1x8x4xf32>
    %649 = vector.shape_cast %648 : vector<1x8x4xf32> to vector<8x4xf32>
    %650 = vector.extract_strided_slice %631 {offsets = [0, 2], sizes = [4, 32], strides = [1, 1]} : vector<4x34xbf16> to vector<4x32xbf16>
    %651 = arith.extf %650 : vector<4x32xbf16> to vector<4x32xf32>
    %cst_513 = arith.constant dense<0.000000e+00> : vector<8x32xf32>
    %652 = tpu.matmul %649, %651, %cst_513 {dimension_numbers = #tpu.dot_dimension_numbers<[1], [0], [0], [1], [0, 0, 1, 1], [], []>} : vector<8x4xf32>, vector<4x32xf32>, vector<8x32xf32> -> vector<8x32xf32>
    %653 = arith.addf %647, %652 : vector<8x32xf32>
    %c3_514 = arith.constant 3 : index
    %c0_515 = arith.constant 0 : index
    %c0_516 = arith.constant 0 : index
    %654 = vector.load %arg4[%c3_514, %c0_515, %c0_516] : memref<12x8x4xf32, #tpu.memory_space<vmem>>, vector<1x8x4xf32>
    %655 = vector.shape_cast %654 : vector<1x8x4xf32> to vector<8x4xf32>
    %656 = vector.extract_strided_slice %633 {offsets = [0, 0], sizes = [4, 32], strides = [1, 1]} : vector<4x34xbf16> to vector<4x32xbf16>
    %657 = arith.extf %656 : vector<4x32xbf16> to vector<4x32xf32>
    %cst_517 = arith.constant dense<0.000000e+00> : vector<8x32xf32>
    %658 = tpu.matmul %655, %657, %cst_517 {dimension_numbers = #tpu.dot_dimension_numbers<[1], [0], [0], [1], [0, 0, 1, 1], [], []>} : vector<8x4xf32>, vector<4x32xf32>, vector<8x32xf32> -> vector<8x32xf32>
    %659 = arith.addf %653, %658 : vector<8x32xf32>
    %c4_518 = arith.constant 4 : index
    %c0_519 = arith.constant 0 : index
    %c0_520 = arith.constant 0 : index
    %660 = vector.load %arg4[%c4_518, %c0_519, %c0_520] : memref<12x8x4xf32, #tpu.memory_space<vmem>>, vector<1x8x4xf32>
    %661 = vector.shape_cast %660 : vector<1x8x4xf32> to vector<8x4xf32>
    %662 = vector.extract_strided_slice %633 {offsets = [0, 1], sizes = [4, 32], strides = [1, 1]} : vector<4x34xbf16> to vector<4x32xbf16>
    %663 = arith.extf %662 : vector<4x32xbf16> to vector<4x32xf32>
    %cst_521 = arith.constant dense<0.000000e+00> : vector<8x32xf32>
    %664 = tpu.matmul %661, %663, %cst_521 {dimension_numbers = #tpu.dot_dimension_numbers<[1], [0], [0], [1], [0, 0, 1, 1], [], []>} : vector<8x4xf32>, vector<4x32xf32>, vector<8x32xf32> -> vector<8x32xf32>
    %665 = arith.addf %659, %664 : vector<8x32xf32>
    %c5_522 = arith.constant 5 : index
    %c0_523 = arith.constant 0 : index
    %c0_524 = arith.constant 0 : index
    %666 = vector.load %arg4[%c5_522, %c0_523, %c0_524] : memref<12x8x4xf32, #tpu.memory_space<vmem>>, vector<1x8x4xf32>
    %667 = vector.shape_cast %666 : vector<1x8x4xf32> to vector<8x4xf32>
    %668 = vector.extract_strided_slice %633 {offsets = [0, 2], sizes = [4, 32], strides = [1, 1]} : vector<4x34xbf16> to vector<4x32xbf16>
    %669 = arith.extf %668 : vector<4x32xbf16> to vector<4x32xf32>
    %cst_525 = arith.constant dense<0.000000e+00> : vector<8x32xf32>
    %670 = tpu.matmul %667, %669, %cst_525 {dimension_numbers = #tpu.dot_dimension_numbers<[1], [0], [0], [1], [0, 0, 1, 1], [], []>} : vector<8x4xf32>, vector<4x32xf32>, vector<8x32xf32> -> vector<8x32xf32>
    %671 = arith.addf %665, %670 : vector<8x32xf32>
    %c0_526 = arith.constant 0 : index
    %c0_527 = arith.constant 0 : index
    %c448 = arith.constant 448 : index
    %672 = vector.load %arg6[%c0_526, %c0_527, %c448] : memref<1x8x1024xf32, #tpu.memory_space<vmem>>, vector<1x8x32xf32>
    %673 = vector.shape_cast %672 : vector<1x8x32xf32> to vector<8x32xf32>
    %674 = vector.shape_cast %671 : vector<8x32xf32> to vector<1x8x32xf32>
    tpu.vector_store %arg6[%c0_526, %c0_527, %c448], %674 {strides = array<i32>} : memref<1x8x1024xf32, #tpu.memory_space<vmem>>, vector<1x8x32xf32>,
    %c0_528 = arith.constant 0 : index
    %c0_529 = arith.constant 0 : index
    %c8_530 = arith.constant 8 : index
    %c0_531 = arith.constant 0 : index
    %675 = vector.load %arg2[%c0_528, %c0_529, %c8_530, %c0_531] : memref<1x4x16x34xbf16, #tpu.memory_space<vmem>>, vector<1x4x1x34xbf16>
    %676 = vector.shape_cast %675 : vector<1x4x1x34xbf16> to vector<4x34xbf16>
    %c0_532 = arith.constant 0 : index
    %c0_533 = arith.constant 0 : index
    %c9_534 = arith.constant 9 : index
    %c0_535 = arith.constant 0 : index
    %677 = vector.load %arg2[%c0_532, %c0_533, %c9_534, %c0_535] : memref<1x4x16x34xbf16, #tpu.memory_space<vmem>>, vector<1x4x1x34xbf16>
    %678 = vector.shape_cast %677 : vector<1x4x1x34xbf16> to vector<4x34xbf16>
    %c0_536 = arith.constant 0 : index
    %c0_537 = arith.constant 0 : index
    %679 = vector.load %arg5[%c0_536, %c0_537] : memref<8x1xf32, #tpu.memory_space<vmem>>, vector<8x1xf32>
    %c6_538 = arith.constant 6 : index
    %c0_539 = arith.constant 0 : index
    %c0_540 = arith.constant 0 : index
    %680 = vector.load %arg4[%c6_538, %c0_539, %c0_540] : memref<12x8x4xf32, #tpu.memory_space<vmem>>, vector<1x8x4xf32>
    %681 = vector.shape_cast %680 : vector<1x8x4xf32> to vector<8x4xf32>
    %682 = vector.extract_strided_slice %676 {offsets = [0, 0], sizes = [4, 32], strides = [1, 1]} : vector<4x34xbf16> to vector<4x32xbf16>
    %683 = arith.extf %682 : vector<4x32xbf16> to vector<4x32xf32>
    %cst_541 = arith.constant dense<0.000000e+00> : vector<8x32xf32>
    %684 = tpu.matmul %681, %683, %cst_541 {dimension_numbers = #tpu.dot_dimension_numbers<[1], [0], [0], [1], [0, 0, 1, 1], [], []>} : vector<8x4xf32>, vector<4x32xf32>, vector<8x32xf32> -> vector<8x32xf32>
    %685 = vector.broadcast %679 : vector<8x1xf32> to vector<8x32xf32>
    %686 = arith.addf %685, %684 : vector<8x32xf32>
    %c7_542 = arith.constant 7 : index
    %c0_543 = arith.constant 0 : index
    %c0_544 = arith.constant 0 : index
    %687 = vector.load %arg4[%c7_542, %c0_543, %c0_544] : memref<12x8x4xf32, #tpu.memory_space<vmem>>, vector<1x8x4xf32>
    %688 = vector.shape_cast %687 : vector<1x8x4xf32> to vector<8x4xf32>
    %689 = vector.extract_strided_slice %676 {offsets = [0, 1], sizes = [4, 32], strides = [1, 1]} : vector<4x34xbf16> to vector<4x32xbf16>
    %690 = arith.extf %689 : vector<4x32xbf16> to vector<4x32xf32>
    %cst_545 = arith.constant dense<0.000000e+00> : vector<8x32xf32>
    %691 = tpu.matmul %688, %690, %cst_545 {dimension_numbers = #tpu.dot_dimension_numbers<[1], [0], [0], [1], [0, 0, 1, 1], [], []>} : vector<8x4xf32>, vector<4x32xf32>, vector<8x32xf32> -> vector<8x32xf32>
    %692 = arith.addf %686, %691 : vector<8x32xf32>
    %c8_546 = arith.constant 8 : index
    %c0_547 = arith.constant 0 : index
    %c0_548 = arith.constant 0 : index
    %693 = vector.load %arg4[%c8_546, %c0_547, %c0_548] : memref<12x8x4xf32, #tpu.memory_space<vmem>>, vector<1x8x4xf32>
    %694 = vector.shape_cast %693 : vector<1x8x4xf32> to vector<8x4xf32>
    %695 = vector.extract_strided_slice %676 {offsets = [0, 2], sizes = [4, 32], strides = [1, 1]} : vector<4x34xbf16> to vector<4x32xbf16>
    %696 = arith.extf %695 : vector<4x32xbf16> to vector<4x32xf32>
    %cst_549 = arith.constant dense<0.000000e+00> : vector<8x32xf32>
    %697 = tpu.matmul %694, %696, %cst_549 {dimension_numbers = #tpu.dot_dimension_numbers<[1], [0], [0], [1], [0, 0, 1, 1], [], []>} : vector<8x4xf32>, vector<4x32xf32>, vector<8x32xf32> -> vector<8x32xf32>
    %698 = arith.addf %692, %697 : vector<8x32xf32>
    %c9_550 = arith.constant 9 : index
    %c0_551 = arith.constant 0 : index
    %c0_552 = arith.constant 0 : index
    %699 = vector.load %arg4[%c9_550, %c0_551, %c0_552] : memref<12x8x4xf32, #tpu.memory_space<vmem>>, vector<1x8x4xf32>
    %700 = vector.shape_cast %699 : vector<1x8x4xf32> to vector<8x4xf32>
    %701 = vector.extract_strided_slice %678 {offsets = [0, 0], sizes = [4, 32], strides = [1, 1]} : vector<4x34xbf16> to vector<4x32xbf16>
    %702 = arith.extf %701 : vector<4x32xbf16> to vector<4x32xf32>
    %cst_553 = arith.constant dense<0.000000e+00> : vector<8x32xf32>
    %703 = tpu.matmul %700, %702, %cst_553 {dimension_numbers = #tpu.dot_dimension_numbers<[1], [0], [0], [1], [0, 0, 1, 1], [], []>} : vector<8x4xf32>, vector<4x32xf32>, vector<8x32xf32> -> vector<8x32xf32>
    %704 = arith.addf %698, %703 : vector<8x32xf32>
    %c10_554 = arith.constant 10 : index
    %c0_555 = arith.constant 0 : index
    %c0_556 = arith.constant 0 : index
    %705 = vector.load %arg4[%c10_554, %c0_555, %c0_556] : memref<12x8x4xf32, #tpu.memory_space<vmem>>, vector<1x8x4xf32>
    %706 = vector.shape_cast %705 : vector<1x8x4xf32> to vector<8x4xf32>
    %707 = vector.extract_strided_slice %678 {offsets = [0, 1], sizes = [4, 32], strides = [1, 1]} : vector<4x34xbf16> to vector<4x32xbf16>
    %708 = arith.extf %707 : vector<4x32xbf16> to vector<4x32xf32>
    %cst_557 = arith.constant dense<0.000000e+00> : vector<8x32xf32>
    %709 = tpu.matmul %706, %708, %cst_557 {dimension_numbers = #tpu.dot_dimension_numbers<[1], [0], [0], [1], [0, 0, 1, 1], [], []>} : vector<8x4xf32>, vector<4x32xf32>, vector<8x32xf32> -> vector<8x32xf32>
    %710 = arith.addf %704, %709 : vector<8x32xf32>
    %c11_558 = arith.constant 11 : index
    %c0_559 = arith.constant 0 : index
    %c0_560 = arith.constant 0 : index
    %711 = vector.load %arg4[%c11_558, %c0_559, %c0_560] : memref<12x8x4xf32, #tpu.memory_space<vmem>>, vector<1x8x4xf32>
    %712 = vector.shape_cast %711 : vector<1x8x4xf32> to vector<8x4xf32>
    %713 = vector.extract_strided_slice %678 {offsets = [0, 2], sizes = [4, 32], strides = [1, 1]} : vector<4x34xbf16> to vector<4x32xbf16>
    %714 = arith.extf %713 : vector<4x32xbf16> to vector<4x32xf32>
    %cst_561 = arith.constant dense<0.000000e+00> : vector<8x32xf32>
    %715 = tpu.matmul %712, %714, %cst_561 {dimension_numbers = #tpu.dot_dimension_numbers<[1], [0], [0], [1], [0, 0, 1, 1], [], []>} : vector<8x4xf32>, vector<4x32xf32>, vector<8x32xf32> -> vector<8x32xf32>
    %716 = arith.addf %710, %715 : vector<8x32xf32>
    %c0_562 = arith.constant 0 : index
    %c0_563 = arith.constant 0 : index
    %c480 = arith.constant 480 : index
    %717 = vector.load %arg6[%c0_562, %c0_563, %c480] : memref<1x8x1024xf32, #tpu.memory_space<vmem>>, vector<1x8x32xf32>
    %718 = vector.shape_cast %717 : vector<1x8x32xf32> to vector<8x32xf32>
    %719 = vector.shape_cast %716 : vector<8x32xf32> to vector<1x8x32xf32>
    tpu.vector_store %arg6[%c0_562, %c0_563, %c480], %719 {strides = array<i32>} : memref<1x8x1024xf32, #tpu.memory_space<vmem>>, vector<1x8x32xf32>,
    %c0_564 = arith.constant 0 : index
    %c0_565 = arith.constant 0 : index
    %c8_566 = arith.constant 8 : index
    %c0_567 = arith.constant 0 : index
    %720 = vector.load %arg2[%c0_564, %c0_565, %c8_566, %c0_567] : memref<1x4x16x34xbf16, #tpu.memory_space<vmem>>, vector<1x4x1x34xbf16>
    %721 = vector.shape_cast %720 : vector<1x4x1x34xbf16> to vector<4x34xbf16>
    %c0_568 = arith.constant 0 : index
    %c0_569 = arith.constant 0 : index
    %c9_570 = arith.constant 9 : index
    %c0_571 = arith.constant 0 : index
    %722 = vector.load %arg2[%c0_568, %c0_569, %c9_570, %c0_571] : memref<1x4x16x34xbf16, #tpu.memory_space<vmem>>, vector<1x4x1x34xbf16>
    %723 = vector.shape_cast %722 : vector<1x4x1x34xbf16> to vector<4x34xbf16>
    %c0_572 = arith.constant 0 : index
    %c0_573 = arith.constant 0 : index
    %724 = vector.load %arg5[%c0_572, %c0_573] : memref<8x1xf32, #tpu.memory_space<vmem>>, vector<8x1xf32>
    %c0_574 = arith.constant 0 : index
    %c0_575 = arith.constant 0 : index
    %c0_576 = arith.constant 0 : index
    %725 = vector.load %arg4[%c0_574, %c0_575, %c0_576] : memref<12x8x4xf32, #tpu.memory_space<vmem>>, vector<1x8x4xf32>
    %726 = vector.shape_cast %725 : vector<1x8x4xf32> to vector<8x4xf32>
    %727 = vector.extract_strided_slice %721 {offsets = [0, 0], sizes = [4, 32], strides = [1, 1]} : vector<4x34xbf16> to vector<4x32xbf16>
    %728 = arith.extf %727 : vector<4x32xbf16> to vector<4x32xf32>
    %cst_577 = arith.constant dense<0.000000e+00> : vector<8x32xf32>
    %729 = tpu.matmul %726, %728, %cst_577 {dimension_numbers = #tpu.dot_dimension_numbers<[1], [0], [0], [1], [0, 0, 1, 1], [], []>} : vector<8x4xf32>, vector<4x32xf32>, vector<8x32xf32> -> vector<8x32xf32>
    %730 = vector.broadcast %724 : vector<8x1xf32> to vector<8x32xf32>
    %731 = arith.addf %730, %729 : vector<8x32xf32>
    %c1_578 = arith.constant 1 : index
    %c0_579 = arith.constant 0 : index
    %c0_580 = arith.constant 0 : index
    %732 = vector.load %arg4[%c1_578, %c0_579, %c0_580] : memref<12x8x4xf32, #tpu.memory_space<vmem>>, vector<1x8x4xf32>
    %733 = vector.shape_cast %732 : vector<1x8x4xf32> to vector<8x4xf32>
    %734 = vector.extract_strided_slice %721 {offsets = [0, 1], sizes = [4, 32], strides = [1, 1]} : vector<4x34xbf16> to vector<4x32xbf16>
    %735 = arith.extf %734 : vector<4x32xbf16> to vector<4x32xf32>
    %cst_581 = arith.constant dense<0.000000e+00> : vector<8x32xf32>
    %736 = tpu.matmul %733, %735, %cst_581 {dimension_numbers = #tpu.dot_dimension_numbers<[1], [0], [0], [1], [0, 0, 1, 1], [], []>} : vector<8x4xf32>, vector<4x32xf32>, vector<8x32xf32> -> vector<8x32xf32>
    %737 = arith.addf %731, %736 : vector<8x32xf32>
    %c2_582 = arith.constant 2 : index
    %c0_583 = arith.constant 0 : index
    %c0_584 = arith.constant 0 : index
    %738 = vector.load %arg4[%c2_582, %c0_583, %c0_584] : memref<12x8x4xf32, #tpu.memory_space<vmem>>, vector<1x8x4xf32>
    %739 = vector.shape_cast %738 : vector<1x8x4xf32> to vector<8x4xf32>
    %740 = vector.extract_strided_slice %721 {offsets = [0, 2], sizes = [4, 32], strides = [1, 1]} : vector<4x34xbf16> to vector<4x32xbf16>
    %741 = arith.extf %740 : vector<4x32xbf16> to vector<4x32xf32>
    %cst_585 = arith.constant dense<0.000000e+00> : vector<8x32xf32>
    %742 = tpu.matmul %739, %741, %cst_585 {dimension_numbers = #tpu.dot_dimension_numbers<[1], [0], [0], [1], [0, 0, 1, 1], [], []>} : vector<8x4xf32>, vector<4x32xf32>, vector<8x32xf32> -> vector<8x32xf32>
    %743 = arith.addf %737, %742 : vector<8x32xf32>
    %c3_586 = arith.constant 3 : index
    %c0_587 = arith.constant 0 : index
    %c0_588 = arith.constant 0 : index
    %744 = vector.load %arg4[%c3_586, %c0_587, %c0_588] : memref<12x8x4xf32, #tpu.memory_space<vmem>>, vector<1x8x4xf32>
    %745 = vector.shape_cast %744 : vector<1x8x4xf32> to vector<8x4xf32>
    %746 = vector.extract_strided_slice %723 {offsets = [0, 0], sizes = [4, 32], strides = [1, 1]} : vector<4x34xbf16> to vector<4x32xbf16>
    %747 = arith.extf %746 : vector<4x32xbf16> to vector<4x32xf32>
    %cst_589 = arith.constant dense<0.000000e+00> : vector<8x32xf32>
    %748 = tpu.matmul %745, %747, %cst_589 {dimension_numbers = #tpu.dot_dimension_numbers<[1], [0], [0], [1], [0, 0, 1, 1], [], []>} : vector<8x4xf32>, vector<4x32xf32>, vector<8x32xf32> -> vector<8x32xf32>
    %749 = arith.addf %743, %748 : vector<8x32xf32>
    %c4_590 = arith.constant 4 : index
    %c0_591 = arith.constant 0 : index
    %c0_592 = arith.constant 0 : index
    %750 = vector.load %arg4[%c4_590, %c0_591, %c0_592] : memref<12x8x4xf32, #tpu.memory_space<vmem>>, vector<1x8x4xf32>
    %751 = vector.shape_cast %750 : vector<1x8x4xf32> to vector<8x4xf32>
    %752 = vector.extract_strided_slice %723 {offsets = [0, 1], sizes = [4, 32], strides = [1, 1]} : vector<4x34xbf16> to vector<4x32xbf16>
    %753 = arith.extf %752 : vector<4x32xbf16> to vector<4x32xf32>
    %cst_593 = arith.constant dense<0.000000e+00> : vector<8x32xf32>
    %754 = tpu.matmul %751, %753, %cst_593 {dimension_numbers = #tpu.dot_dimension_numbers<[1], [0], [0], [1], [0, 0, 1, 1], [], []>} : vector<8x4xf32>, vector<4x32xf32>, vector<8x32xf32> -> vector<8x32xf32>
    %755 = arith.addf %749, %754 : vector<8x32xf32>
    %c5_594 = arith.constant 5 : index
    %c0_595 = arith.constant 0 : index
    %c0_596 = arith.constant 0 : index
    %756 = vector.load %arg4[%c5_594, %c0_595, %c0_596] : memref<12x8x4xf32, #tpu.memory_space<vmem>>, vector<1x8x4xf32>
    %757 = vector.shape_cast %756 : vector<1x8x4xf32> to vector<8x4xf32>
    %758 = vector.extract_strided_slice %723 {offsets = [0, 2], sizes = [4, 32], strides = [1, 1]} : vector<4x34xbf16> to vector<4x32xbf16>
    %759 = arith.extf %758 : vector<4x32xbf16> to vector<4x32xf32>
    %cst_597 = arith.constant dense<0.000000e+00> : vector<8x32xf32>
    %760 = tpu.matmul %757, %759, %cst_597 {dimension_numbers = #tpu.dot_dimension_numbers<[1], [0], [0], [1], [0, 0, 1, 1], [], []>} : vector<8x4xf32>, vector<4x32xf32>, vector<8x32xf32> -> vector<8x32xf32>
    %761 = arith.addf %755, %760 : vector<8x32xf32>
    %c0_598 = arith.constant 0 : index
    %c0_599 = arith.constant 0 : index
    %c512 = arith.constant 512 : index
    %762 = vector.load %arg6[%c0_598, %c0_599, %c512] : memref<1x8x1024xf32, #tpu.memory_space<vmem>>, vector<1x8x32xf32>
    %763 = vector.shape_cast %762 : vector<1x8x32xf32> to vector<8x32xf32>
    %764 = vector.shape_cast %761 : vector<8x32xf32> to vector<1x8x32xf32>
    tpu.vector_store %arg6[%c0_598, %c0_599, %c512], %764 {strides = array<i32>} : memref<1x8x1024xf32, #tpu.memory_space<vmem>>, vector<1x8x32xf32>,
    %c0_600 = arith.constant 0 : index
    %c0_601 = arith.constant 0 : index
    %c9_602 = arith.constant 9 : index
    %c0_603 = arith.constant 0 : index
    %765 = vector.load %arg2[%c0_600, %c0_601, %c9_602, %c0_603] : memref<1x4x16x34xbf16, #tpu.memory_space<vmem>>, vector<1x4x1x34xbf16>
    %766 = vector.shape_cast %765 : vector<1x4x1x34xbf16> to vector<4x34xbf16>
    %c0_604 = arith.constant 0 : index
    %c0_605 = arith.constant 0 : index
    %c10_606 = arith.constant 10 : index
    %c0_607 = arith.constant 0 : index
    %767 = vector.load %arg2[%c0_604, %c0_605, %c10_606, %c0_607] : memref<1x4x16x34xbf16, #tpu.memory_space<vmem>>, vector<1x4x1x34xbf16>
    %768 = vector.shape_cast %767 : vector<1x4x1x34xbf16> to vector<4x34xbf16>
    %c0_608 = arith.constant 0 : index
    %c0_609 = arith.constant 0 : index
    %769 = vector.load %arg5[%c0_608, %c0_609] : memref<8x1xf32, #tpu.memory_space<vmem>>, vector<8x1xf32>
    %c6_610 = arith.constant 6 : index
    %c0_611 = arith.constant 0 : index
    %c0_612 = arith.constant 0 : index
    %770 = vector.load %arg4[%c6_610, %c0_611, %c0_612] : memref<12x8x4xf32, #tpu.memory_space<vmem>>, vector<1x8x4xf32>
    %771 = vector.shape_cast %770 : vector<1x8x4xf32> to vector<8x4xf32>
    %772 = vector.extract_strided_slice %766 {offsets = [0, 0], sizes = [4, 32], strides = [1, 1]} : vector<4x34xbf16> to vector<4x32xbf16>
    %773 = arith.extf %772 : vector<4x32xbf16> to vector<4x32xf32>
    %cst_613 = arith.constant dense<0.000000e+00> : vector<8x32xf32>
    %774 = tpu.matmul %771, %773, %cst_613 {dimension_numbers = #tpu.dot_dimension_numbers<[1], [0], [0], [1], [0, 0, 1, 1], [], []>} : vector<8x4xf32>, vector<4x32xf32>, vector<8x32xf32> -> vector<8x32xf32>
    %775 = vector.broadcast %769 : vector<8x1xf32> to vector<8x32xf32>
    %776 = arith.addf %775, %774 : vector<8x32xf32>
    %c7_614 = arith.constant 7 : index
    %c0_615 = arith.constant 0 : index
    %c0_616 = arith.constant 0 : index
    %777 = vector.load %arg4[%c7_614, %c0_615, %c0_616] : memref<12x8x4xf32, #tpu.memory_space<vmem>>, vector<1x8x4xf32>
    %778 = vector.shape_cast %777 : vector<1x8x4xf32> to vector<8x4xf32>
    %779 = vector.extract_strided_slice %766 {offsets = [0, 1], sizes = [4, 32], strides = [1, 1]} : vector<4x34xbf16> to vector<4x32xbf16>
    %780 = arith.extf %779 : vector<4x32xbf16> to vector<4x32xf32>
    %cst_617 = arith.constant dense<0.000000e+00> : vector<8x32xf32>
    %781 = tpu.matmul %778, %780, %cst_617 {dimension_numbers = #tpu.dot_dimension_numbers<[1], [0], [0], [1], [0, 0, 1, 1], [], []>} : vector<8x4xf32>, vector<4x32xf32>, vector<8x32xf32> -> vector<8x32xf32>
    %782 = arith.addf %776, %781 : vector<8x32xf32>
    %c8_618 = arith.constant 8 : index
    %c0_619 = arith.constant 0 : index
    %c0_620 = arith.constant 0 : index
    %783 = vector.load %arg4[%c8_618, %c0_619, %c0_620] : memref<12x8x4xf32, #tpu.memory_space<vmem>>, vector<1x8x4xf32>
    %784 = vector.shape_cast %783 : vector<1x8x4xf32> to vector<8x4xf32>
    %785 = vector.extract_strided_slice %766 {offsets = [0, 2], sizes = [4, 32], strides = [1, 1]} : vector<4x34xbf16> to vector<4x32xbf16>
    %786 = arith.extf %785 : vector<4x32xbf16> to vector<4x32xf32>
    %cst_621 = arith.constant dense<0.000000e+00> : vector<8x32xf32>
    %787 = tpu.matmul %784, %786, %cst_621 {dimension_numbers = #tpu.dot_dimension_numbers<[1], [0], [0], [1], [0, 0, 1, 1], [], []>} : vector<8x4xf32>, vector<4x32xf32>, vector<8x32xf32> -> vector<8x32xf32>
    %788 = arith.addf %782, %787 : vector<8x32xf32>
    %c9_622 = arith.constant 9 : index
    %c0_623 = arith.constant 0 : index
    %c0_624 = arith.constant 0 : index
    %789 = vector.load %arg4[%c9_622, %c0_623, %c0_624] : memref<12x8x4xf32, #tpu.memory_space<vmem>>, vector<1x8x4xf32>
    %790 = vector.shape_cast %789 : vector<1x8x4xf32> to vector<8x4xf32>
    %791 = vector.extract_strided_slice %768 {offsets = [0, 0], sizes = [4, 32], strides = [1, 1]} : vector<4x34xbf16> to vector<4x32xbf16>
    %792 = arith.extf %791 : vector<4x32xbf16> to vector<4x32xf32>
    %cst_625 = arith.constant dense<0.000000e+00> : vector<8x32xf32>
    %793 = tpu.matmul %790, %792, %cst_625 {dimension_numbers = #tpu.dot_dimension_numbers<[1], [0], [0], [1], [0, 0, 1, 1], [], []>} : vector<8x4xf32>, vector<4x32xf32>, vector<8x32xf32> -> vector<8x32xf32>
    %794 = arith.addf %788, %793 : vector<8x32xf32>
    %c10_626 = arith.constant 10 : index
    %c0_627 = arith.constant 0 : index
    %c0_628 = arith.constant 0 : index
    %795 = vector.load %arg4[%c10_626, %c0_627, %c0_628] : memref<12x8x4xf32, #tpu.memory_space<vmem>>, vector<1x8x4xf32>
    %796 = vector.shape_cast %795 : vector<1x8x4xf32> to vector<8x4xf32>
    %797 = vector.extract_strided_slice %768 {offsets = [0, 1], sizes = [4, 32], strides = [1, 1]} : vector<4x34xbf16> to vector<4x32xbf16>
    %798 = arith.extf %797 : vector<4x32xbf16> to vector<4x32xf32>
    %cst_629 = arith.constant dense<0.000000e+00> : vector<8x32xf32>
    %799 = tpu.matmul %796, %798, %cst_629 {dimension_numbers = #tpu.dot_dimension_numbers<[1], [0], [0], [1], [0, 0, 1, 1], [], []>} : vector<8x4xf32>, vector<4x32xf32>, vector<8x32xf32> -> vector<8x32xf32>
    %800 = arith.addf %794, %799 : vector<8x32xf32>
    %c11_630 = arith.constant 11 : index
    %c0_631 = arith.constant 0 : index
    %c0_632 = arith.constant 0 : index
    %801 = vector.load %arg4[%c11_630, %c0_631, %c0_632] : memref<12x8x4xf32, #tpu.memory_space<vmem>>, vector<1x8x4xf32>
    %802 = vector.shape_cast %801 : vector<1x8x4xf32> to vector<8x4xf32>
    %803 = vector.extract_strided_slice %768 {offsets = [0, 2], sizes = [4, 32], strides = [1, 1]} : vector<4x34xbf16> to vector<4x32xbf16>
    %804 = arith.extf %803 : vector<4x32xbf16> to vector<4x32xf32>
    %cst_633 = arith.constant dense<0.000000e+00> : vector<8x32xf32>
    %805 = tpu.matmul %802, %804, %cst_633 {dimension_numbers = #tpu.dot_dimension_numbers<[1], [0], [0], [1], [0, 0, 1, 1], [], []>} : vector<8x4xf32>, vector<4x32xf32>, vector<8x32xf32> -> vector<8x32xf32>
    %806 = arith.addf %800, %805 : vector<8x32xf32>
    %c0_634 = arith.constant 0 : index
    %c0_635 = arith.constant 0 : index
    %c544 = arith.constant 544 : index
    %807 = vector.load %arg6[%c0_634, %c0_635, %c544] : memref<1x8x1024xf32, #tpu.memory_space<vmem>>, vector<1x8x32xf32>
    %808 = vector.shape_cast %807 : vector<1x8x32xf32> to vector<8x32xf32>
    %809 = vector.shape_cast %806 : vector<8x32xf32> to vector<1x8x32xf32>
    tpu.vector_store %arg6[%c0_634, %c0_635, %c544], %809 {strides = array<i32>} : memref<1x8x1024xf32, #tpu.memory_space<vmem>>, vector<1x8x32xf32>,
    %c0_636 = arith.constant 0 : index
    %c0_637 = arith.constant 0 : index
    %c9_638 = arith.constant 9 : index
    %c0_639 = arith.constant 0 : index
    %810 = vector.load %arg2[%c0_636, %c0_637, %c9_638, %c0_639] : memref<1x4x16x34xbf16, #tpu.memory_space<vmem>>, vector<1x4x1x34xbf16>
    %811 = vector.shape_cast %810 : vector<1x4x1x34xbf16> to vector<4x34xbf16>
    %c0_640 = arith.constant 0 : index
    %c0_641 = arith.constant 0 : index
    %c10_642 = arith.constant 10 : index
    %c0_643 = arith.constant 0 : index
    %812 = vector.load %arg2[%c0_640, %c0_641, %c10_642, %c0_643] : memref<1x4x16x34xbf16, #tpu.memory_space<vmem>>, vector<1x4x1x34xbf16>
    %813 = vector.shape_cast %812 : vector<1x4x1x34xbf16> to vector<4x34xbf16>
    %c0_644 = arith.constant 0 : index
    %c0_645 = arith.constant 0 : index
    %814 = vector.load %arg5[%c0_644, %c0_645] : memref<8x1xf32, #tpu.memory_space<vmem>>, vector<8x1xf32>
    %c0_646 = arith.constant 0 : index
    %c0_647 = arith.constant 0 : index
    %c0_648 = arith.constant 0 : index
    %815 = vector.load %arg4[%c0_646, %c0_647, %c0_648] : memref<12x8x4xf32, #tpu.memory_space<vmem>>, vector<1x8x4xf32>
    %816 = vector.shape_cast %815 : vector<1x8x4xf32> to vector<8x4xf32>
    %817 = vector.extract_strided_slice %811 {offsets = [0, 0], sizes = [4, 32], strides = [1, 1]} : vector<4x34xbf16> to vector<4x32xbf16>
    %818 = arith.extf %817 : vector<4x32xbf16> to vector<4x32xf32>
    %cst_649 = arith.constant dense<0.000000e+00> : vector<8x32xf32>
    %819 = tpu.matmul %816, %818, %cst_649 {dimension_numbers = #tpu.dot_dimension_numbers<[1], [0], [0], [1], [0, 0, 1, 1], [], []>} : vector<8x4xf32>, vector<4x32xf32>, vector<8x32xf32> -> vector<8x32xf32>
    %820 = vector.broadcast %814 : vector<8x1xf32> to vector<8x32xf32>
    %821 = arith.addf %820, %819 : vector<8x32xf32>
    %c1_650 = arith.constant 1 : index
    %c0_651 = arith.constant 0 : index
    %c0_652 = arith.constant 0 : index
    %822 = vector.load %arg4[%c1_650, %c0_651, %c0_652] : memref<12x8x4xf32, #tpu.memory_space<vmem>>, vector<1x8x4xf32>
    %823 = vector.shape_cast %822 : vector<1x8x4xf32> to vector<8x4xf32>
    %824 = vector.extract_strided_slice %811 {offsets = [0, 1], sizes = [4, 32], strides = [1, 1]} : vector<4x34xbf16> to vector<4x32xbf16>
    %825 = arith.extf %824 : vector<4x32xbf16> to vector<4x32xf32>
    %cst_653 = arith.constant dense<0.000000e+00> : vector<8x32xf32>
    %826 = tpu.matmul %823, %825, %cst_653 {dimension_numbers = #tpu.dot_dimension_numbers<[1], [0], [0], [1], [0, 0, 1, 1], [], []>} : vector<8x4xf32>, vector<4x32xf32>, vector<8x32xf32> -> vector<8x32xf32>
    %827 = arith.addf %821, %826 : vector<8x32xf32>
    %c2_654 = arith.constant 2 : index
    %c0_655 = arith.constant 0 : index
    %c0_656 = arith.constant 0 : index
    %828 = vector.load %arg4[%c2_654, %c0_655, %c0_656] : memref<12x8x4xf32, #tpu.memory_space<vmem>>, vector<1x8x4xf32>
    %829 = vector.shape_cast %828 : vector<1x8x4xf32> to vector<8x4xf32>
    %830 = vector.extract_strided_slice %811 {offsets = [0, 2], sizes = [4, 32], strides = [1, 1]} : vector<4x34xbf16> to vector<4x32xbf16>
    %831 = arith.extf %830 : vector<4x32xbf16> to vector<4x32xf32>
    %cst_657 = arith.constant dense<0.000000e+00> : vector<8x32xf32>
    %832 = tpu.matmul %829, %831, %cst_657 {dimension_numbers = #tpu.dot_dimension_numbers<[1], [0], [0], [1], [0, 0, 1, 1], [], []>} : vector<8x4xf32>, vector<4x32xf32>, vector<8x32xf32> -> vector<8x32xf32>
    %833 = arith.addf %827, %832 : vector<8x32xf32>
    %c3_658 = arith.constant 3 : index
    %c0_659 = arith.constant 0 : index
    %c0_660 = arith.constant 0 : index
    %834 = vector.load %arg4[%c3_658, %c0_659, %c0_660] : memref<12x8x4xf32, #tpu.memory_space<vmem>>, vector<1x8x4xf32>
    %835 = vector.shape_cast %834 : vector<1x8x4xf32> to vector<8x4xf32>
    %836 = vector.extract_strided_slice %813 {offsets = [0, 0], sizes = [4, 32], strides = [1, 1]} : vector<4x34xbf16> to vector<4x32xbf16>
    %837 = arith.extf %836 : vector<4x32xbf16> to vector<4x32xf32>
    %cst_661 = arith.constant dense<0.000000e+00> : vector<8x32xf32>
    %838 = tpu.matmul %835, %837, %cst_661 {dimension_numbers = #tpu.dot_dimension_numbers<[1], [0], [0], [1], [0, 0, 1, 1], [], []>} : vector<8x4xf32>, vector<4x32xf32>, vector<8x32xf32> -> vector<8x32xf32>
    %839 = arith.addf %833, %838 : vector<8x32xf32>
    %c4_662 = arith.constant 4 : index
    %c0_663 = arith.constant 0 : index
    %c0_664 = arith.constant 0 : index
    %840 = vector.load %arg4[%c4_662, %c0_663, %c0_664] : memref<12x8x4xf32, #tpu.memory_space<vmem>>, vector<1x8x4xf32>
    %841 = vector.shape_cast %840 : vector<1x8x4xf32> to vector<8x4xf32>
    %842 = vector.extract_strided_slice %813 {offsets = [0, 1], sizes = [4, 32], strides = [1, 1]} : vector<4x34xbf16> to vector<4x32xbf16>
    %843 = arith.extf %842 : vector<4x32xbf16> to vector<4x32xf32>
    %cst_665 = arith.constant dense<0.000000e+00> : vector<8x32xf32>
    %844 = tpu.matmul %841, %843, %cst_665 {dimension_numbers = #tpu.dot_dimension_numbers<[1], [0], [0], [1], [0, 0, 1, 1], [], []>} : vector<8x4xf32>, vector<4x32xf32>, vector<8x32xf32> -> vector<8x32xf32>
    %845 = arith.addf %839, %844 : vector<8x32xf32>
    %c5_666 = arith.constant 5 : index
    %c0_667 = arith.constant 0 : index
    %c0_668 = arith.constant 0 : index
    %846 = vector.load %arg4[%c5_666, %c0_667, %c0_668] : memref<12x8x4xf32, #tpu.memory_space<vmem>>, vector<1x8x4xf32>
    %847 = vector.shape_cast %846 : vector<1x8x4xf32> to vector<8x4xf32>
    %848 = vector.extract_strided_slice %813 {offsets = [0, 2], sizes = [4, 32], strides = [1, 1]} : vector<4x34xbf16> to vector<4x32xbf16>
    %849 = arith.extf %848 : vector<4x32xbf16> to vector<4x32xf32>
    %cst_669 = arith.constant dense<0.000000e+00> : vector<8x32xf32>
    %850 = tpu.matmul %847, %849, %cst_669 {dimension_numbers = #tpu.dot_dimension_numbers<[1], [0], [0], [1], [0, 0, 1, 1], [], []>} : vector<8x4xf32>, vector<4x32xf32>, vector<8x32xf32> -> vector<8x32xf32>
    %851 = arith.addf %845, %850 : vector<8x32xf32>
    %c0_670 = arith.constant 0 : index
    %c0_671 = arith.constant 0 : index
    %c576 = arith.constant 576 : index
    %852 = vector.load %arg6[%c0_670, %c0_671, %c576] : memref<1x8x1024xf32, #tpu.memory_space<vmem>>, vector<1x8x32xf32>
    %853 = vector.shape_cast %852 : vector<1x8x32xf32> to vector<8x32xf32>
    %854 = vector.shape_cast %851 : vector<8x32xf32> to vector<1x8x32xf32>
    tpu.vector_store %arg6[%c0_670, %c0_671, %c576], %854 {strides = array<i32>} : memref<1x8x1024xf32, #tpu.memory_space<vmem>>, vector<1x8x32xf32>,
    %c0_672 = arith.constant 0 : index
    %c0_673 = arith.constant 0 : index
    %c10_674 = arith.constant 10 : index
    %c0_675 = arith.constant 0 : index
    %855 = vector.load %arg2[%c0_672, %c0_673, %c10_674, %c0_675] : memref<1x4x16x34xbf16, #tpu.memory_space<vmem>>, vector<1x4x1x34xbf16>
    %856 = vector.shape_cast %855 : vector<1x4x1x34xbf16> to vector<4x34xbf16>
    %c0_676 = arith.constant 0 : index
    %c0_677 = arith.constant 0 : index
    %c11_678 = arith.constant 11 : index
    %c0_679 = arith.constant 0 : index
    %857 = vector.load %arg2[%c0_676, %c0_677, %c11_678, %c0_679] : memref<1x4x16x34xbf16, #tpu.memory_space<vmem>>, vector<1x4x1x34xbf16>
    %858 = vector.shape_cast %857 : vector<1x4x1x34xbf16> to vector<4x34xbf16>
    %c0_680 = arith.constant 0 : index
    %c0_681 = arith.constant 0 : index
    %859 = vector.load %arg5[%c0_680, %c0_681] : memref<8x1xf32, #tpu.memory_space<vmem>>, vector<8x1xf32>
    %c6_682 = arith.constant 6 : index
    %c0_683 = arith.constant 0 : index
    %c0_684 = arith.constant 0 : index
    %860 = vector.load %arg4[%c6_682, %c0_683, %c0_684] : memref<12x8x4xf32, #tpu.memory_space<vmem>>, vector<1x8x4xf32>
    %861 = vector.shape_cast %860 : vector<1x8x4xf32> to vector<8x4xf32>
    %862 = vector.extract_strided_slice %856 {offsets = [0, 0], sizes = [4, 32], strides = [1, 1]} : vector<4x34xbf16> to vector<4x32xbf16>
    %863 = arith.extf %862 : vector<4x32xbf16> to vector<4x32xf32>
    %cst_685 = arith.constant dense<0.000000e+00> : vector<8x32xf32>
    %864 = tpu.matmul %861, %863, %cst_685 {dimension_numbers = #tpu.dot_dimension_numbers<[1], [0], [0], [1], [0, 0, 1, 1], [], []>} : vector<8x4xf32>, vector<4x32xf32>, vector<8x32xf32> -> vector<8x32xf32>
    %865 = vector.broadcast %859 : vector<8x1xf32> to vector<8x32xf32>
    %866 = arith.addf %865, %864 : vector<8x32xf32>
    %c7_686 = arith.constant 7 : index
    %c0_687 = arith.constant 0 : index
    %c0_688 = arith.constant 0 : index
    %867 = vector.load %arg4[%c7_686, %c0_687, %c0_688] : memref<12x8x4xf32, #tpu.memory_space<vmem>>, vector<1x8x4xf32>
    %868 = vector.shape_cast %867 : vector<1x8x4xf32> to vector<8x4xf32>
    %869 = vector.extract_strided_slice %856 {offsets = [0, 1], sizes = [4, 32], strides = [1, 1]} : vector<4x34xbf16> to vector<4x32xbf16>
    %870 = arith.extf %869 : vector<4x32xbf16> to vector<4x32xf32>
    %cst_689 = arith.constant dense<0.000000e+00> : vector<8x32xf32>
    %871 = tpu.matmul %868, %870, %cst_689 {dimension_numbers = #tpu.dot_dimension_numbers<[1], [0], [0], [1], [0, 0, 1, 1], [], []>} : vector<8x4xf32>, vector<4x32xf32>, vector<8x32xf32> -> vector<8x32xf32>
    %872 = arith.addf %866, %871 : vector<8x32xf32>
    %c8_690 = arith.constant 8 : index
    %c0_691 = arith.constant 0 : index
    %c0_692 = arith.constant 0 : index
    %873 = vector.load %arg4[%c8_690, %c0_691, %c0_692] : memref<12x8x4xf32, #tpu.memory_space<vmem>>, vector<1x8x4xf32>
    %874 = vector.shape_cast %873 : vector<1x8x4xf32> to vector<8x4xf32>
    %875 = vector.extract_strided_slice %856 {offsets = [0, 2], sizes = [4, 32], strides = [1, 1]} : vector<4x34xbf16> to vector<4x32xbf16>
    %876 = arith.extf %875 : vector<4x32xbf16> to vector<4x32xf32>
    %cst_693 = arith.constant dense<0.000000e+00> : vector<8x32xf32>
    %877 = tpu.matmul %874, %876, %cst_693 {dimension_numbers = #tpu.dot_dimension_numbers<[1], [0], [0], [1], [0, 0, 1, 1], [], []>} : vector<8x4xf32>, vector<4x32xf32>, vector<8x32xf32> -> vector<8x32xf32>
    %878 = arith.addf %872, %877 : vector<8x32xf32>
    %c9_694 = arith.constant 9 : index
    %c0_695 = arith.constant 0 : index
    %c0_696 = arith.constant 0 : index
    %879 = vector.load %arg4[%c9_694, %c0_695, %c0_696] : memref<12x8x4xf32, #tpu.memory_space<vmem>>, vector<1x8x4xf32>
    %880 = vector.shape_cast %879 : vector<1x8x4xf32> to vector<8x4xf32>
    %881 = vector.extract_strided_slice %858 {offsets = [0, 0], sizes = [4, 32], strides = [1, 1]} : vector<4x34xbf16> to vector<4x32xbf16>
    %882 = arith.extf %881 : vector<4x32xbf16> to vector<4x32xf32>
    %cst_697 = arith.constant dense<0.000000e+00> : vector<8x32xf32>
    %883 = tpu.matmul %880, %882, %cst_697 {dimension_numbers = #tpu.dot_dimension_numbers<[1], [0], [0], [1], [0, 0, 1, 1], [], []>} : vector<8x4xf32>, vector<4x32xf32>, vector<8x32xf32> -> vector<8x32xf32>
    %884 = arith.addf %878, %883 : vector<8x32xf32>
    %c10_698 = arith.constant 10 : index
    %c0_699 = arith.constant 0 : index
    %c0_700 = arith.constant 0 : index
    %885 = vector.load %arg4[%c10_698, %c0_699, %c0_700] : memref<12x8x4xf32, #tpu.memory_space<vmem>>, vector<1x8x4xf32>
    %886 = vector.shape_cast %885 : vector<1x8x4xf32> to vector<8x4xf32>
    %887 = vector.extract_strided_slice %858 {offsets = [0, 1], sizes = [4, 32], strides = [1, 1]} : vector<4x34xbf16> to vector<4x32xbf16>
    %888 = arith.extf %887 : vector<4x32xbf16> to vector<4x32xf32>
    %cst_701 = arith.constant dense<0.000000e+00> : vector<8x32xf32>
    %889 = tpu.matmul %886, %888, %cst_701 {dimension_numbers = #tpu.dot_dimension_numbers<[1], [0], [0], [1], [0, 0, 1, 1], [], []>} : vector<8x4xf32>, vector<4x32xf32>, vector<8x32xf32> -> vector<8x32xf32>
    %890 = arith.addf %884, %889 : vector<8x32xf32>
    %c11_702 = arith.constant 11 : index
    %c0_703 = arith.constant 0 : index
    %c0_704 = arith.constant 0 : index
    %891 = vector.load %arg4[%c11_702, %c0_703, %c0_704] : memref<12x8x4xf32, #tpu.memory_space<vmem>>, vector<1x8x4xf32>
    %892 = vector.shape_cast %891 : vector<1x8x4xf32> to vector<8x4xf32>
    %893 = vector.extract_strided_slice %858 {offsets = [0, 2], sizes = [4, 32], strides = [1, 1]} : vector<4x34xbf16> to vector<4x32xbf16>
    %894 = arith.extf %893 : vector<4x32xbf16> to vector<4x32xf32>
    %cst_705 = arith.constant dense<0.000000e+00> : vector<8x32xf32>
    %895 = tpu.matmul %892, %894, %cst_705 {dimension_numbers = #tpu.dot_dimension_numbers<[1], [0], [0], [1], [0, 0, 1, 1], [], []>} : vector<8x4xf32>, vector<4x32xf32>, vector<8x32xf32> -> vector<8x32xf32>
    %896 = arith.addf %890, %895 : vector<8x32xf32>
    %c0_706 = arith.constant 0 : index
    %c0_707 = arith.constant 0 : index
    %c608 = arith.constant 608 : index
    %897 = vector.load %arg6[%c0_706, %c0_707, %c608] : memref<1x8x1024xf32, #tpu.memory_space<vmem>>, vector<1x8x32xf32>
    %898 = vector.shape_cast %897 : vector<1x8x32xf32> to vector<8x32xf32>
    %899 = vector.shape_cast %896 : vector<8x32xf32> to vector<1x8x32xf32>
    tpu.vector_store %arg6[%c0_706, %c0_707, %c608], %899 {strides = array<i32>} : memref<1x8x1024xf32, #tpu.memory_space<vmem>>, vector<1x8x32xf32>,
    %c0_708 = arith.constant 0 : index
    %c0_709 = arith.constant 0 : index
    %c10_710 = arith.constant 10 : index
    %c0_711 = arith.constant 0 : index
    %900 = vector.load %arg2[%c0_708, %c0_709, %c10_710, %c0_711] : memref<1x4x16x34xbf16, #tpu.memory_space<vmem>>, vector<1x4x1x34xbf16>
    %901 = vector.shape_cast %900 : vector<1x4x1x34xbf16> to vector<4x34xbf16>
    %c0_712 = arith.constant 0 : index
    %c0_713 = arith.constant 0 : index
    %c11_714 = arith.constant 11 : index
    %c0_715 = arith.constant 0 : index
    %902 = vector.load %arg2[%c0_712, %c0_713, %c11_714, %c0_715] : memref<1x4x16x34xbf16, #tpu.memory_space<vmem>>, vector<1x4x1x34xbf16>
    %903 = vector.shape_cast %902 : vector<1x4x1x34xbf16> to vector<4x34xbf16>
    %c0_716 = arith.constant 0 : index
    %c0_717 = arith.constant 0 : index
    %904 = vector.load %arg5[%c0_716, %c0_717] : memref<8x1xf32, #tpu.memory_space<vmem>>, vector<8x1xf32>
    %c0_718 = arith.constant 0 : index
    %c0_719 = arith.constant 0 : index
    %c0_720 = arith.constant 0 : index
    %905 = vector.load %arg4[%c0_718, %c0_719, %c0_720] : memref<12x8x4xf32, #tpu.memory_space<vmem>>, vector<1x8x4xf32>
    %906 = vector.shape_cast %905 : vector<1x8x4xf32> to vector<8x4xf32>
    %907 = vector.extract_strided_slice %901 {offsets = [0, 0], sizes = [4, 32], strides = [1, 1]} : vector<4x34xbf16> to vector<4x32xbf16>
    %908 = arith.extf %907 : vector<4x32xbf16> to vector<4x32xf32>
    %cst_721 = arith.constant dense<0.000000e+00> : vector<8x32xf32>
    %909 = tpu.matmul %906, %908, %cst_721 {dimension_numbers = #tpu.dot_dimension_numbers<[1], [0], [0], [1], [0, 0, 1, 1], [], []>} : vector<8x4xf32>, vector<4x32xf32>, vector<8x32xf32> -> vector<8x32xf32>
    %910 = vector.broadcast %904 : vector<8x1xf32> to vector<8x32xf32>
    %911 = arith.addf %910, %909 : vector<8x32xf32>
    %c1_722 = arith.constant 1 : index
    %c0_723 = arith.constant 0 : index
    %c0_724 = arith.constant 0 : index
    %912 = vector.load %arg4[%c1_722, %c0_723, %c0_724] : memref<12x8x4xf32, #tpu.memory_space<vmem>>, vector<1x8x4xf32>
    %913 = vector.shape_cast %912 : vector<1x8x4xf32> to vector<8x4xf32>
    %914 = vector.extract_strided_slice %901 {offsets = [0, 1], sizes = [4, 32], strides = [1, 1]} : vector<4x34xbf16> to vector<4x32xbf16>
    %915 = arith.extf %914 : vector<4x32xbf16> to vector<4x32xf32>
    %cst_725 = arith.constant dense<0.000000e+00> : vector<8x32xf32>
    %916 = tpu.matmul %913, %915, %cst_725 {dimension_numbers = #tpu.dot_dimension_numbers<[1], [0], [0], [1], [0, 0, 1, 1], [], []>} : vector<8x4xf32>, vector<4x32xf32>, vector<8x32xf32> -> vector<8x32xf32>
    %917 = arith.addf %911, %916 : vector<8x32xf32>
    %c2_726 = arith.constant 2 : index
    %c0_727 = arith.constant 0 : index
    %c0_728 = arith.constant 0 : index
    %918 = vector.load %arg4[%c2_726, %c0_727, %c0_728] : memref<12x8x4xf32, #tpu.memory_space<vmem>>, vector<1x8x4xf32>
    %919 = vector.shape_cast %918 : vector<1x8x4xf32> to vector<8x4xf32>
    %920 = vector.extract_strided_slice %901 {offsets = [0, 2], sizes = [4, 32], strides = [1, 1]} : vector<4x34xbf16> to vector<4x32xbf16>
    %921 = arith.extf %920 : vector<4x32xbf16> to vector<4x32xf32>
    %cst_729 = arith.constant dense<0.000000e+00> : vector<8x32xf32>
    %922 = tpu.matmul %919, %921, %cst_729 {dimension_numbers = #tpu.dot_dimension_numbers<[1], [0], [0], [1], [0, 0, 1, 1], [], []>} : vector<8x4xf32>, vector<4x32xf32>, vector<8x32xf32> -> vector<8x32xf32>
    %923 = arith.addf %917, %922 : vector<8x32xf32>
    %c3_730 = arith.constant 3 : index
    %c0_731 = arith.constant 0 : index
    %c0_732 = arith.constant 0 : index
    %924 = vector.load %arg4[%c3_730, %c0_731, %c0_732] : memref<12x8x4xf32, #tpu.memory_space<vmem>>, vector<1x8x4xf32>
    %925 = vector.shape_cast %924 : vector<1x8x4xf32> to vector<8x4xf32>
    %926 = vector.extract_strided_slice %903 {offsets = [0, 0], sizes = [4, 32], strides = [1, 1]} : vector<4x34xbf16> to vector<4x32xbf16>
    %927 = arith.extf %926 : vector<4x32xbf16> to vector<4x32xf32>
    %cst_733 = arith.constant dense<0.000000e+00> : vector<8x32xf32>
    %928 = tpu.matmul %925, %927, %cst_733 {dimension_numbers = #tpu.dot_dimension_numbers<[1], [0], [0], [1], [0, 0, 1, 1], [], []>} : vector<8x4xf32>, vector<4x32xf32>, vector<8x32xf32> -> vector<8x32xf32>
    %929 = arith.addf %923, %928 : vector<8x32xf32>
    %c4_734 = arith.constant 4 : index
    %c0_735 = arith.constant 0 : index
    %c0_736 = arith.constant 0 : index
    %930 = vector.load %arg4[%c4_734, %c0_735, %c0_736] : memref<12x8x4xf32, #tpu.memory_space<vmem>>, vector<1x8x4xf32>
    %931 = vector.shape_cast %930 : vector<1x8x4xf32> to vector<8x4xf32>
    %932 = vector.extract_strided_slice %903 {offsets = [0, 1], sizes = [4, 32], strides = [1, 1]} : vector<4x34xbf16> to vector<4x32xbf16>
    %933 = arith.extf %932 : vector<4x32xbf16> to vector<4x32xf32>
    %cst_737 = arith.constant dense<0.000000e+00> : vector<8x32xf32>
    %934 = tpu.matmul %931, %933, %cst_737 {dimension_numbers = #tpu.dot_dimension_numbers<[1], [0], [0], [1], [0, 0, 1, 1], [], []>} : vector<8x4xf32>, vector<4x32xf32>, vector<8x32xf32> -> vector<8x32xf32>
    %935 = arith.addf %929, %934 : vector<8x32xf32>
    %c5_738 = arith.constant 5 : index
    %c0_739 = arith.constant 0 : index
    %c0_740 = arith.constant 0 : index
    %936 = vector.load %arg4[%c5_738, %c0_739, %c0_740] : memref<12x8x4xf32, #tpu.memory_space<vmem>>, vector<1x8x4xf32>
    %937 = vector.shape_cast %936 : vector<1x8x4xf32> to vector<8x4xf32>
    %938 = vector.extract_strided_slice %903 {offsets = [0, 2], sizes = [4, 32], strides = [1, 1]} : vector<4x34xbf16> to vector<4x32xbf16>
    %939 = arith.extf %938 : vector<4x32xbf16> to vector<4x32xf32>
    %cst_741 = arith.constant dense<0.000000e+00> : vector<8x32xf32>
    %940 = tpu.matmul %937, %939, %cst_741 {dimension_numbers = #tpu.dot_dimension_numbers<[1], [0], [0], [1], [0, 0, 1, 1], [], []>} : vector<8x4xf32>, vector<4x32xf32>, vector<8x32xf32> -> vector<8x32xf32>
    %941 = arith.addf %935, %940 : vector<8x32xf32>
    %c0_742 = arith.constant 0 : index
    %c0_743 = arith.constant 0 : index
    %c640 = arith.constant 640 : index
    %942 = vector.load %arg6[%c0_742, %c0_743, %c640] : memref<1x8x1024xf32, #tpu.memory_space<vmem>>, vector<1x8x32xf32>
    %943 = vector.shape_cast %942 : vector<1x8x32xf32> to vector<8x32xf32>
    %944 = vector.shape_cast %941 : vector<8x32xf32> to vector<1x8x32xf32>
    tpu.vector_store %arg6[%c0_742, %c0_743, %c640], %944 {strides = array<i32>} : memref<1x8x1024xf32, #tpu.memory_space<vmem>>, vector<1x8x32xf32>,
    %c0_744 = arith.constant 0 : index
    %c0_745 = arith.constant 0 : index
    %c11_746 = arith.constant 11 : index
    %c0_747 = arith.constant 0 : index
    %945 = vector.load %arg2[%c0_744, %c0_745, %c11_746, %c0_747] : memref<1x4x16x34xbf16, #tpu.memory_space<vmem>>, vector<1x4x1x34xbf16>
    %946 = vector.shape_cast %945 : vector<1x4x1x34xbf16> to vector<4x34xbf16>
    %c0_748 = arith.constant 0 : index
    %c0_749 = arith.constant 0 : index
    %c12 = arith.constant 12 : index
    %c0_750 = arith.constant 0 : index
    %947 = vector.load %arg2[%c0_748, %c0_749, %c12, %c0_750] : memref<1x4x16x34xbf16, #tpu.memory_space<vmem>>, vector<1x4x1x34xbf16>
    %948 = vector.shape_cast %947 : vector<1x4x1x34xbf16> to vector<4x34xbf16>
    %c0_751 = arith.constant 0 : index
    %c0_752 = arith.constant 0 : index
    %949 = vector.load %arg5[%c0_751, %c0_752] : memref<8x1xf32, #tpu.memory_space<vmem>>, vector<8x1xf32>
    %c6_753 = arith.constant 6 : index
    %c0_754 = arith.constant 0 : index
    %c0_755 = arith.constant 0 : index
    %950 = vector.load %arg4[%c6_753, %c0_754, %c0_755] : memref<12x8x4xf32, #tpu.memory_space<vmem>>, vector<1x8x4xf32>
    %951 = vector.shape_cast %950 : vector<1x8x4xf32> to vector<8x4xf32>
    %952 = vector.extract_strided_slice %946 {offsets = [0, 0], sizes = [4, 32], strides = [1, 1]} : vector<4x34xbf16> to vector<4x32xbf16>
    %953 = arith.extf %952 : vector<4x32xbf16> to vector<4x32xf32>
    %cst_756 = arith.constant dense<0.000000e+00> : vector<8x32xf32>
    %954 = tpu.matmul %951, %953, %cst_756 {dimension_numbers = #tpu.dot_dimension_numbers<[1], [0], [0], [1], [0, 0, 1, 1], [], []>} : vector<8x4xf32>, vector<4x32xf32>, vector<8x32xf32> -> vector<8x32xf32>
    %955 = vector.broadcast %949 : vector<8x1xf32> to vector<8x32xf32>
    %956 = arith.addf %955, %954 : vector<8x32xf32>
    %c7_757 = arith.constant 7 : index
    %c0_758 = arith.constant 0 : index
    %c0_759 = arith.constant 0 : index
    %957 = vector.load %arg4[%c7_757, %c0_758, %c0_759] : memref<12x8x4xf32, #tpu.memory_space<vmem>>, vector<1x8x4xf32>
    %958 = vector.shape_cast %957 : vector<1x8x4xf32> to vector<8x4xf32>
    %959 = vector.extract_strided_slice %946 {offsets = [0, 1], sizes = [4, 32], strides = [1, 1]} : vector<4x34xbf16> to vector<4x32xbf16>
    %960 = arith.extf %959 : vector<4x32xbf16> to vector<4x32xf32>
    %cst_760 = arith.constant dense<0.000000e+00> : vector<8x32xf32>
    %961 = tpu.matmul %958, %960, %cst_760 {dimension_numbers = #tpu.dot_dimension_numbers<[1], [0], [0], [1], [0, 0, 1, 1], [], []>} : vector<8x4xf32>, vector<4x32xf32>, vector<8x32xf32> -> vector<8x32xf32>
    %962 = arith.addf %956, %961 : vector<8x32xf32>
    %c8_761 = arith.constant 8 : index
    %c0_762 = arith.constant 0 : index
    %c0_763 = arith.constant 0 : index
    %963 = vector.load %arg4[%c8_761, %c0_762, %c0_763] : memref<12x8x4xf32, #tpu.memory_space<vmem>>, vector<1x8x4xf32>
    %964 = vector.shape_cast %963 : vector<1x8x4xf32> to vector<8x4xf32>
    %965 = vector.extract_strided_slice %946 {offsets = [0, 2], sizes = [4, 32], strides = [1, 1]} : vector<4x34xbf16> to vector<4x32xbf16>
    %966 = arith.extf %965 : vector<4x32xbf16> to vector<4x32xf32>
    %cst_764 = arith.constant dense<0.000000e+00> : vector<8x32xf32>
    %967 = tpu.matmul %964, %966, %cst_764 {dimension_numbers = #tpu.dot_dimension_numbers<[1], [0], [0], [1], [0, 0, 1, 1], [], []>} : vector<8x4xf32>, vector<4x32xf32>, vector<8x32xf32> -> vector<8x32xf32>
    %968 = arith.addf %962, %967 : vector<8x32xf32>
    %c9_765 = arith.constant 9 : index
    %c0_766 = arith.constant 0 : index
    %c0_767 = arith.constant 0 : index
    %969 = vector.load %arg4[%c9_765, %c0_766, %c0_767] : memref<12x8x4xf32, #tpu.memory_space<vmem>>, vector<1x8x4xf32>
    %970 = vector.shape_cast %969 : vector<1x8x4xf32> to vector<8x4xf32>
    %971 = vector.extract_strided_slice %948 {offsets = [0, 0], sizes = [4, 32], strides = [1, 1]} : vector<4x34xbf16> to vector<4x32xbf16>
    %972 = arith.extf %971 : vector<4x32xbf16> to vector<4x32xf32>
    %cst_768 = arith.constant dense<0.000000e+00> : vector<8x32xf32>
    %973 = tpu.matmul %970, %972, %cst_768 {dimension_numbers = #tpu.dot_dimension_numbers<[1], [0], [0], [1], [0, 0, 1, 1], [], []>} : vector<8x4xf32>, vector<4x32xf32>, vector<8x32xf32> -> vector<8x32xf32>
    %974 = arith.addf %968, %973 : vector<8x32xf32>
    %c10_769 = arith.constant 10 : index
    %c0_770 = arith.constant 0 : index
    %c0_771 = arith.constant 0 : index
    %975 = vector.load %arg4[%c10_769, %c0_770, %c0_771] : memref<12x8x4xf32, #tpu.memory_space<vmem>>, vector<1x8x4xf32>
    %976 = vector.shape_cast %975 : vector<1x8x4xf32> to vector<8x4xf32>
    %977 = vector.extract_strided_slice %948 {offsets = [0, 1], sizes = [4, 32], strides = [1, 1]} : vector<4x34xbf16> to vector<4x32xbf16>
    %978 = arith.extf %977 : vector<4x32xbf16> to vector<4x32xf32>
    %cst_772 = arith.constant dense<0.000000e+00> : vector<8x32xf32>
    %979 = tpu.matmul %976, %978, %cst_772 {dimension_numbers = #tpu.dot_dimension_numbers<[1], [0], [0], [1], [0, 0, 1, 1], [], []>} : vector<8x4xf32>, vector<4x32xf32>, vector<8x32xf32> -> vector<8x32xf32>
    %980 = arith.addf %974, %979 : vector<8x32xf32>
    %c11_773 = arith.constant 11 : index
    %c0_774 = arith.constant 0 : index
    %c0_775 = arith.constant 0 : index
    %981 = vector.load %arg4[%c11_773, %c0_774, %c0_775] : memref<12x8x4xf32, #tpu.memory_space<vmem>>, vector<1x8x4xf32>
    %982 = vector.shape_cast %981 : vector<1x8x4xf32> to vector<8x4xf32>
    %983 = vector.extract_strided_slice %948 {offsets = [0, 2], sizes = [4, 32], strides = [1, 1]} : vector<4x34xbf16> to vector<4x32xbf16>
    %984 = arith.extf %983 : vector<4x32xbf16> to vector<4x32xf32>
    %cst_776 = arith.constant dense<0.000000e+00> : vector<8x32xf32>
    %985 = tpu.matmul %982, %984, %cst_776 {dimension_numbers = #tpu.dot_dimension_numbers<[1], [0], [0], [1], [0, 0, 1, 1], [], []>} : vector<8x4xf32>, vector<4x32xf32>, vector<8x32xf32> -> vector<8x32xf32>
    %986 = arith.addf %980, %985 : vector<8x32xf32>
    %c0_777 = arith.constant 0 : index
    %c0_778 = arith.constant 0 : index
    %c672 = arith.constant 672 : index
    %987 = vector.load %arg6[%c0_777, %c0_778, %c672] : memref<1x8x1024xf32, #tpu.memory_space<vmem>>, vector<1x8x32xf32>
    %988 = vector.shape_cast %987 : vector<1x8x32xf32> to vector<8x32xf32>
    %989 = vector.shape_cast %986 : vector<8x32xf32> to vector<1x8x32xf32>
    tpu.vector_store %arg6[%c0_777, %c0_778, %c672], %989 {strides = array<i32>} : memref<1x8x1024xf32, #tpu.memory_space<vmem>>, vector<1x8x32xf32>,
    %c0_779 = arith.constant 0 : index
    %c0_780 = arith.constant 0 : index
    %c11_781 = arith.constant 11 : index
    %c0_782 = arith.constant 0 : index
    %990 = vector.load %arg2[%c0_779, %c0_780, %c11_781, %c0_782] : memref<1x4x16x34xbf16, #tpu.memory_space<vmem>>, vector<1x4x1x34xbf16>
    %991 = vector.shape_cast %990 : vector<1x4x1x34xbf16> to vector<4x34xbf16>
    %c0_783 = arith.constant 0 : index
    %c0_784 = arith.constant 0 : index
    %c12_785 = arith.constant 12 : index
    %c0_786 = arith.constant 0 : index
    %992 = vector.load %arg2[%c0_783, %c0_784, %c12_785, %c0_786] : memref<1x4x16x34xbf16, #tpu.memory_space<vmem>>, vector<1x4x1x34xbf16>
    %993 = vector.shape_cast %992 : vector<1x4x1x34xbf16> to vector<4x34xbf16>
    %c0_787 = arith.constant 0 : index
    %c0_788 = arith.constant 0 : index
    %994 = vector.load %arg5[%c0_787, %c0_788] : memref<8x1xf32, #tpu.memory_space<vmem>>, vector<8x1xf32>
    %c0_789 = arith.constant 0 : index
    %c0_790 = arith.constant 0 : index
    %c0_791 = arith.constant 0 : index
    %995 = vector.load %arg4[%c0_789, %c0_790, %c0_791] : memref<12x8x4xf32, #tpu.memory_space<vmem>>, vector<1x8x4xf32>
    %996 = vector.shape_cast %995 : vector<1x8x4xf32> to vector<8x4xf32>
    %997 = vector.extract_strided_slice %991 {offsets = [0, 0], sizes = [4, 32], strides = [1, 1]} : vector<4x34xbf16> to vector<4x32xbf16>
    %998 = arith.extf %997 : vector<4x32xbf16> to vector<4x32xf32>
    %cst_792 = arith.constant dense<0.000000e+00> : vector<8x32xf32>
    %999 = tpu.matmul %996, %998, %cst_792 {dimension_numbers = #tpu.dot_dimension_numbers<[1], [0], [0], [1], [0, 0, 1, 1], [], []>} : vector<8x4xf32>, vector<4x32xf32>, vector<8x32xf32> -> vector<8x32xf32>
    %1000 = vector.broadcast %994 : vector<8x1xf32> to vector<8x32xf32>
    %1001 = arith.addf %1000, %999 : vector<8x32xf32>
    %c1_793 = arith.constant 1 : index
    %c0_794 = arith.constant 0 : index
    %c0_795 = arith.constant 0 : index
    %1002 = vector.load %arg4[%c1_793, %c0_794, %c0_795] : memref<12x8x4xf32, #tpu.memory_space<vmem>>, vector<1x8x4xf32>
    %1003 = vector.shape_cast %1002 : vector<1x8x4xf32> to vector<8x4xf32>
    %1004 = vector.extract_strided_slice %991 {offsets = [0, 1], sizes = [4, 32], strides = [1, 1]} : vector<4x34xbf16> to vector<4x32xbf16>
    %1005 = arith.extf %1004 : vector<4x32xbf16> to vector<4x32xf32>
    %cst_796 = arith.constant dense<0.000000e+00> : vector<8x32xf32>
    %1006 = tpu.matmul %1003, %1005, %cst_796 {dimension_numbers = #tpu.dot_dimension_numbers<[1], [0], [0], [1], [0, 0, 1, 1], [], []>} : vector<8x4xf32>, vector<4x32xf32>, vector<8x32xf32> -> vector<8x32xf32>
    %1007 = arith.addf %1001, %1006 : vector<8x32xf32>
    %c2_797 = arith.constant 2 : index
    %c0_798 = arith.constant 0 : index
    %c0_799 = arith.constant 0 : index
    %1008 = vector.load %arg4[%c2_797, %c0_798, %c0_799] : memref<12x8x4xf32, #tpu.memory_space<vmem>>, vector<1x8x4xf32>
    %1009 = vector.shape_cast %1008 : vector<1x8x4xf32> to vector<8x4xf32>
    %1010 = vector.extract_strided_slice %991 {offsets = [0, 2], sizes = [4, 32], strides = [1, 1]} : vector<4x34xbf16> to vector<4x32xbf16>
    %1011 = arith.extf %1010 : vector<4x32xbf16> to vector<4x32xf32>
    %cst_800 = arith.constant dense<0.000000e+00> : vector<8x32xf32>
    %1012 = tpu.matmul %1009, %1011, %cst_800 {dimension_numbers = #tpu.dot_dimension_numbers<[1], [0], [0], [1], [0, 0, 1, 1], [], []>} : vector<8x4xf32>, vector<4x32xf32>, vector<8x32xf32> -> vector<8x32xf32>
    %1013 = arith.addf %1007, %1012 : vector<8x32xf32>
    %c3_801 = arith.constant 3 : index
    %c0_802 = arith.constant 0 : index
    %c0_803 = arith.constant 0 : index
    %1014 = vector.load %arg4[%c3_801, %c0_802, %c0_803] : memref<12x8x4xf32, #tpu.memory_space<vmem>>, vector<1x8x4xf32>
    %1015 = vector.shape_cast %1014 : vector<1x8x4xf32> to vector<8x4xf32>
    %1016 = vector.extract_strided_slice %993 {offsets = [0, 0], sizes = [4, 32], strides = [1, 1]} : vector<4x34xbf16> to vector<4x32xbf16>
    %1017 = arith.extf %1016 : vector<4x32xbf16> to vector<4x32xf32>
    %cst_804 = arith.constant dense<0.000000e+00> : vector<8x32xf32>
    %1018 = tpu.matmul %1015, %1017, %cst_804 {dimension_numbers = #tpu.dot_dimension_numbers<[1], [0], [0], [1], [0, 0, 1, 1], [], []>} : vector<8x4xf32>, vector<4x32xf32>, vector<8x32xf32> -> vector<8x32xf32>
    %1019 = arith.addf %1013, %1018 : vector<8x32xf32>
    %c4_805 = arith.constant 4 : index
    %c0_806 = arith.constant 0 : index
    %c0_807 = arith.constant 0 : index
    %1020 = vector.load %arg4[%c4_805, %c0_806, %c0_807] : memref<12x8x4xf32, #tpu.memory_space<vmem>>, vector<1x8x4xf32>
    %1021 = vector.shape_cast %1020 : vector<1x8x4xf32> to vector<8x4xf32>
    %1022 = vector.extract_strided_slice %993 {offsets = [0, 1], sizes = [4, 32], strides = [1, 1]} : vector<4x34xbf16> to vector<4x32xbf16>
    %1023 = arith.extf %1022 : vector<4x32xbf16> to vector<4x32xf32>
    %cst_808 = arith.constant dense<0.000000e+00> : vector<8x32xf32>
    %1024 = tpu.matmul %1021, %1023, %cst_808 {dimension_numbers = #tpu.dot_dimension_numbers<[1], [0], [0], [1], [0, 0, 1, 1], [], []>} : vector<8x4xf32>, vector<4x32xf32>, vector<8x32xf32> -> vector<8x32xf32>
    %1025 = arith.addf %1019, %1024 : vector<8x32xf32>
    %c5_809 = arith.constant 5 : index
    %c0_810 = arith.constant 0 : index
    %c0_811 = arith.constant 0 : index
    %1026 = vector.load %arg4[%c5_809, %c0_810, %c0_811] : memref<12x8x4xf32, #tpu.memory_space<vmem>>, vector<1x8x4xf32>
    %1027 = vector.shape_cast %1026 : vector<1x8x4xf32> to vector<8x4xf32>
    %1028 = vector.extract_strided_slice %993 {offsets = [0, 2], sizes = [4, 32], strides = [1, 1]} : vector<4x34xbf16> to vector<4x32xbf16>
    %1029 = arith.extf %1028 : vector<4x32xbf16> to vector<4x32xf32>
    %cst_812 = arith.constant dense<0.000000e+00> : vector<8x32xf32>
    %1030 = tpu.matmul %1027, %1029, %cst_812 {dimension_numbers = #tpu.dot_dimension_numbers<[1], [0], [0], [1], [0, 0, 1, 1], [], []>} : vector<8x4xf32>, vector<4x32xf32>, vector<8x32xf32> -> vector<8x32xf32>
    %1031 = arith.addf %1025, %1030 : vector<8x32xf32>
    %c0_813 = arith.constant 0 : index
    %c0_814 = arith.constant 0 : index
    %c704 = arith.constant 704 : index
    %1032 = vector.load %arg6[%c0_813, %c0_814, %c704] : memref<1x8x1024xf32, #tpu.memory_space<vmem>>, vector<1x8x32xf32>
    %1033 = vector.shape_cast %1032 : vector<1x8x32xf32> to vector<8x32xf32>
    %1034 = vector.shape_cast %1031 : vector<8x32xf32> to vector<1x8x32xf32>
    tpu.vector_store %arg6[%c0_813, %c0_814, %c704], %1034 {strides = array<i32>} : memref<1x8x1024xf32, #tpu.memory_space<vmem>>, vector<1x8x32xf32>,
    %c0_815 = arith.constant 0 : index
    %c0_816 = arith.constant 0 : index
    %c12_817 = arith.constant 12 : index
    %c0_818 = arith.constant 0 : index
    %1035 = vector.load %arg2[%c0_815, %c0_816, %c12_817, %c0_818] : memref<1x4x16x34xbf16, #tpu.memory_space<vmem>>, vector<1x4x1x34xbf16>
    %1036 = vector.shape_cast %1035 : vector<1x4x1x34xbf16> to vector<4x34xbf16>
    %c0_819 = arith.constant 0 : index
    %c0_820 = arith.constant 0 : index
    %c13 = arith.constant 13 : index
    %c0_821 = arith.constant 0 : index
    %1037 = vector.load %arg2[%c0_819, %c0_820, %c13, %c0_821] : memref<1x4x16x34xbf16, #tpu.memory_space<vmem>>, vector<1x4x1x34xbf16>
    %1038 = vector.shape_cast %1037 : vector<1x4x1x34xbf16> to vector<4x34xbf16>
    %c0_822 = arith.constant 0 : index
    %c0_823 = arith.constant 0 : index
    %1039 = vector.load %arg5[%c0_822, %c0_823] : memref<8x1xf32, #tpu.memory_space<vmem>>, vector<8x1xf32>
    %c6_824 = arith.constant 6 : index
    %c0_825 = arith.constant 0 : index
    %c0_826 = arith.constant 0 : index
    %1040 = vector.load %arg4[%c6_824, %c0_825, %c0_826] : memref<12x8x4xf32, #tpu.memory_space<vmem>>, vector<1x8x4xf32>
    %1041 = vector.shape_cast %1040 : vector<1x8x4xf32> to vector<8x4xf32>
    %1042 = vector.extract_strided_slice %1036 {offsets = [0, 0], sizes = [4, 32], strides = [1, 1]} : vector<4x34xbf16> to vector<4x32xbf16>
    %1043 = arith.extf %1042 : vector<4x32xbf16> to vector<4x32xf32>
    %cst_827 = arith.constant dense<0.000000e+00> : vector<8x32xf32>
    %1044 = tpu.matmul %1041, %1043, %cst_827 {dimension_numbers = #tpu.dot_dimension_numbers<[1], [0], [0], [1], [0, 0, 1, 1], [], []>} : vector<8x4xf32>, vector<4x32xf32>, vector<8x32xf32> -> vector<8x32xf32>
    %1045 = vector.broadcast %1039 : vector<8x1xf32> to vector<8x32xf32>
    %1046 = arith.addf %1045, %1044 : vector<8x32xf32>
    %c7_828 = arith.constant 7 : index
    %c0_829 = arith.constant 0 : index
    %c0_830 = arith.constant 0 : index
    %1047 = vector.load %arg4[%c7_828, %c0_829, %c0_830] : memref<12x8x4xf32, #tpu.memory_space<vmem>>, vector<1x8x4xf32>
    %1048 = vector.shape_cast %1047 : vector<1x8x4xf32> to vector<8x4xf32>
    %1049 = vector.extract_strided_slice %1036 {offsets = [0, 1], sizes = [4, 32], strides = [1, 1]} : vector<4x34xbf16> to vector<4x32xbf16>
    %1050 = arith.extf %1049 : vector<4x32xbf16> to vector<4x32xf32>
    %cst_831 = arith.constant dense<0.000000e+00> : vector<8x32xf32>
    %1051 = tpu.matmul %1048, %1050, %cst_831 {dimension_numbers = #tpu.dot_dimension_numbers<[1], [0], [0], [1], [0, 0, 1, 1], [], []>} : vector<8x4xf32>, vector<4x32xf32>, vector<8x32xf32> -> vector<8x32xf32>
    %1052 = arith.addf %1046, %1051 : vector<8x32xf32>
    %c8_832 = arith.constant 8 : index
    %c0_833 = arith.constant 0 : index
    %c0_834 = arith.constant 0 : index
    %1053 = vector.load %arg4[%c8_832, %c0_833, %c0_834] : memref<12x8x4xf32, #tpu.memory_space<vmem>>, vector<1x8x4xf32>
    %1054 = vector.shape_cast %1053 : vector<1x8x4xf32> to vector<8x4xf32>
    %1055 = vector.extract_strided_slice %1036 {offsets = [0, 2], sizes = [4, 32], strides = [1, 1]} : vector<4x34xbf16> to vector<4x32xbf16>
    %1056 = arith.extf %1055 : vector<4x32xbf16> to vector<4x32xf32>
    %cst_835 = arith.constant dense<0.000000e+00> : vector<8x32xf32>
    %1057 = tpu.matmul %1054, %1056, %cst_835 {dimension_numbers = #tpu.dot_dimension_numbers<[1], [0], [0], [1], [0, 0, 1, 1], [], []>} : vector<8x4xf32>, vector<4x32xf32>, vector<8x32xf32> -> vector<8x32xf32>
    %1058 = arith.addf %1052, %1057 : vector<8x32xf32>
    %c9_836 = arith.constant 9 : index
    %c0_837 = arith.constant 0 : index
    %c0_838 = arith.constant 0 : index
    %1059 = vector.load %arg4[%c9_836, %c0_837, %c0_838] : memref<12x8x4xf32, #tpu.memory_space<vmem>>, vector<1x8x4xf32>
    %1060 = vector.shape_cast %1059 : vector<1x8x4xf32> to vector<8x4xf32>
    %1061 = vector.extract_strided_slice %1038 {offsets = [0, 0], sizes = [4, 32], strides = [1, 1]} : vector<4x34xbf16> to vector<4x32xbf16>
    %1062 = arith.extf %1061 : vector<4x32xbf16> to vector<4x32xf32>
    %cst_839 = arith.constant dense<0.000000e+00> : vector<8x32xf32>
    %1063 = tpu.matmul %1060, %1062, %cst_839 {dimension_numbers = #tpu.dot_dimension_numbers<[1], [0], [0], [1], [0, 0, 1, 1], [], []>} : vector<8x4xf32>, vector<4x32xf32>, vector<8x32xf32> -> vector<8x32xf32>
    %1064 = arith.addf %1058, %1063 : vector<8x32xf32>
    %c10_840 = arith.constant 10 : index
    %c0_841 = arith.constant 0 : index
    %c0_842 = arith.constant 0 : index
    %1065 = vector.load %arg4[%c10_840, %c0_841, %c0_842] : memref<12x8x4xf32, #tpu.memory_space<vmem>>, vector<1x8x4xf32>
    %1066 = vector.shape_cast %1065 : vector<1x8x4xf32> to vector<8x4xf32>
    %1067 = vector.extract_strided_slice %1038 {offsets = [0, 1], sizes = [4, 32], strides = [1, 1]} : vector<4x34xbf16> to vector<4x32xbf16>
    %1068 = arith.extf %1067 : vector<4x32xbf16> to vector<4x32xf32>
    %cst_843 = arith.constant dense<0.000000e+00> : vector<8x32xf32>
    %1069 = tpu.matmul %1066, %1068, %cst_843 {dimension_numbers = #tpu.dot_dimension_numbers<[1], [0], [0], [1], [0, 0, 1, 1], [], []>} : vector<8x4xf32>, vector<4x32xf32>, vector<8x32xf32> -> vector<8x32xf32>
    %1070 = arith.addf %1064, %1069 : vector<8x32xf32>
    %c11_844 = arith.constant 11 : index
    %c0_845 = arith.constant 0 : index
    %c0_846 = arith.constant 0 : index
    %1071 = vector.load %arg4[%c11_844, %c0_845, %c0_846] : memref<12x8x4xf32, #tpu.memory_space<vmem>>, vector<1x8x4xf32>
    %1072 = vector.shape_cast %1071 : vector<1x8x4xf32> to vector<8x4xf32>
    %1073 = vector.extract_strided_slice %1038 {offsets = [0, 2], sizes = [4, 32], strides = [1, 1]} : vector<4x34xbf16> to vector<4x32xbf16>
    %1074 = arith.extf %1073 : vector<4x32xbf16> to vector<4x32xf32>
    %cst_847 = arith.constant dense<0.000000e+00> : vector<8x32xf32>
    %1075 = tpu.matmul %1072, %1074, %cst_847 {dimension_numbers = #tpu.dot_dimension_numbers<[1], [0], [0], [1], [0, 0, 1, 1], [], []>} : vector<8x4xf32>, vector<4x32xf32>, vector<8x32xf32> -> vector<8x32xf32>
    %1076 = arith.addf %1070, %1075 : vector<8x32xf32>
    %c0_848 = arith.constant 0 : index
    %c0_849 = arith.constant 0 : index
    %c736 = arith.constant 736 : index
    %1077 = vector.load %arg6[%c0_848, %c0_849, %c736] : memref<1x8x1024xf32, #tpu.memory_space<vmem>>, vector<1x8x32xf32>
    %1078 = vector.shape_cast %1077 : vector<1x8x32xf32> to vector<8x32xf32>
    %1079 = vector.shape_cast %1076 : vector<8x32xf32> to vector<1x8x32xf32>
    tpu.vector_store %arg6[%c0_848, %c0_849, %c736], %1079 {strides = array<i32>} : memref<1x8x1024xf32, #tpu.memory_space<vmem>>, vector<1x8x32xf32>,
    %c0_850 = arith.constant 0 : index
    %c0_851 = arith.constant 0 : index
    %c12_852 = arith.constant 12 : index
    %c0_853 = arith.constant 0 : index
    %1080 = vector.load %arg2[%c0_850, %c0_851, %c12_852, %c0_853] : memref<1x4x16x34xbf16, #tpu.memory_space<vmem>>, vector<1x4x1x34xbf16>
    %1081 = vector.shape_cast %1080 : vector<1x4x1x34xbf16> to vector<4x34xbf16>
    %c0_854 = arith.constant 0 : index
    %c0_855 = arith.constant 0 : index
    %c13_856 = arith.constant 13 : index
    %c0_857 = arith.constant 0 : index
    %1082 = vector.load %arg2[%c0_854, %c0_855, %c13_856, %c0_857] : memref<1x4x16x34xbf16, #tpu.memory_space<vmem>>, vector<1x4x1x34xbf16>
    %1083 = vector.shape_cast %1082 : vector<1x4x1x34xbf16> to vector<4x34xbf16>
    %c0_858 = arith.constant 0 : index
    %c0_859 = arith.constant 0 : index
    %1084 = vector.load %arg5[%c0_858, %c0_859] : memref<8x1xf32, #tpu.memory_space<vmem>>, vector<8x1xf32>
    %c0_860 = arith.constant 0 : index
    %c0_861 = arith.constant 0 : index
    %c0_862 = arith.constant 0 : index
    %1085 = vector.load %arg4[%c0_860, %c0_861, %c0_862] : memref<12x8x4xf32, #tpu.memory_space<vmem>>, vector<1x8x4xf32>
    %1086 = vector.shape_cast %1085 : vector<1x8x4xf32> to vector<8x4xf32>
    %1087 = vector.extract_strided_slice %1081 {offsets = [0, 0], sizes = [4, 32], strides = [1, 1]} : vector<4x34xbf16> to vector<4x32xbf16>
    %1088 = arith.extf %1087 : vector<4x32xbf16> to vector<4x32xf32>
    %cst_863 = arith.constant dense<0.000000e+00> : vector<8x32xf32>
    %1089 = tpu.matmul %1086, %1088, %cst_863 {dimension_numbers = #tpu.dot_dimension_numbers<[1], [0], [0], [1], [0, 0, 1, 1], [], []>} : vector<8x4xf32>, vector<4x32xf32>, vector<8x32xf32> -> vector<8x32xf32>
    %1090 = vector.broadcast %1084 : vector<8x1xf32> to vector<8x32xf32>
    %1091 = arith.addf %1090, %1089 : vector<8x32xf32>
    %c1_864 = arith.constant 1 : index
    %c0_865 = arith.constant 0 : index
    %c0_866 = arith.constant 0 : index
    %1092 = vector.load %arg4[%c1_864, %c0_865, %c0_866] : memref<12x8x4xf32, #tpu.memory_space<vmem>>, vector<1x8x4xf32>
    %1093 = vector.shape_cast %1092 : vector<1x8x4xf32> to vector<8x4xf32>
    %1094 = vector.extract_strided_slice %1081 {offsets = [0, 1], sizes = [4, 32], strides = [1, 1]} : vector<4x34xbf16> to vector<4x32xbf16>
    %1095 = arith.extf %1094 : vector<4x32xbf16> to vector<4x32xf32>
    %cst_867 = arith.constant dense<0.000000e+00> : vector<8x32xf32>
    %1096 = tpu.matmul %1093, %1095, %cst_867 {dimension_numbers = #tpu.dot_dimension_numbers<[1], [0], [0], [1], [0, 0, 1, 1], [], []>} : vector<8x4xf32>, vector<4x32xf32>, vector<8x32xf32> -> vector<8x32xf32>
    %1097 = arith.addf %1091, %1096 : vector<8x32xf32>
    %c2_868 = arith.constant 2 : index
    %c0_869 = arith.constant 0 : index
    %c0_870 = arith.constant 0 : index
    %1098 = vector.load %arg4[%c2_868, %c0_869, %c0_870] : memref<12x8x4xf32, #tpu.memory_space<vmem>>, vector<1x8x4xf32>
    %1099 = vector.shape_cast %1098 : vector<1x8x4xf32> to vector<8x4xf32>
    %1100 = vector.extract_strided_slice %1081 {offsets = [0, 2], sizes = [4, 32], strides = [1, 1]} : vector<4x34xbf16> to vector<4x32xbf16>
    %1101 = arith.extf %1100 : vector<4x32xbf16> to vector<4x32xf32>
    %cst_871 = arith.constant dense<0.000000e+00> : vector<8x32xf32>
    %1102 = tpu.matmul %1099, %1101, %cst_871 {dimension_numbers = #tpu.dot_dimension_numbers<[1], [0], [0], [1], [0, 0, 1, 1], [], []>} : vector<8x4xf32>, vector<4x32xf32>, vector<8x32xf32> -> vector<8x32xf32>
    %1103 = arith.addf %1097, %1102 : vector<8x32xf32>
    %c3_872 = arith.constant 3 : index
    %c0_873 = arith.constant 0 : index
    %c0_874 = arith.constant 0 : index
    %1104 = vector.load %arg4[%c3_872, %c0_873, %c0_874] : memref<12x8x4xf32, #tpu.memory_space<vmem>>, vector<1x8x4xf32>
    %1105 = vector.shape_cast %1104 : vector<1x8x4xf32> to vector<8x4xf32>
    %1106 = vector.extract_strided_slice %1083 {offsets = [0, 0], sizes = [4, 32], strides = [1, 1]} : vector<4x34xbf16> to vector<4x32xbf16>
    %1107 = arith.extf %1106 : vector<4x32xbf16> to vector<4x32xf32>
    %cst_875 = arith.constant dense<0.000000e+00> : vector<8x32xf32>
    %1108 = tpu.matmul %1105, %1107, %cst_875 {dimension_numbers = #tpu.dot_dimension_numbers<[1], [0], [0], [1], [0, 0, 1, 1], [], []>} : vector<8x4xf32>, vector<4x32xf32>, vector<8x32xf32> -> vector<8x32xf32>
    %1109 = arith.addf %1103, %1108 : vector<8x32xf32>
    %c4_876 = arith.constant 4 : index
    %c0_877 = arith.constant 0 : index
    %c0_878 = arith.constant 0 : index
    %1110 = vector.load %arg4[%c4_876, %c0_877, %c0_878] : memref<12x8x4xf32, #tpu.memory_space<vmem>>, vector<1x8x4xf32>
    %1111 = vector.shape_cast %1110 : vector<1x8x4xf32> to vector<8x4xf32>
    %1112 = vector.extract_strided_slice %1083 {offsets = [0, 1], sizes = [4, 32], strides = [1, 1]} : vector<4x34xbf16> to vector<4x32xbf16>
    %1113 = arith.extf %1112 : vector<4x32xbf16> to vector<4x32xf32>
    %cst_879 = arith.constant dense<0.000000e+00> : vector<8x32xf32>
    %1114 = tpu.matmul %1111, %1113, %cst_879 {dimension_numbers = #tpu.dot_dimension_numbers<[1], [0], [0], [1], [0, 0, 1, 1], [], []>} : vector<8x4xf32>, vector<4x32xf32>, vector<8x32xf32> -> vector<8x32xf32>
    %1115 = arith.addf %1109, %1114 : vector<8x32xf32>
    %c5_880 = arith.constant 5 : index
    %c0_881 = arith.constant 0 : index
    %c0_882 = arith.constant 0 : index
    %1116 = vector.load %arg4[%c5_880, %c0_881, %c0_882] : memref<12x8x4xf32, #tpu.memory_space<vmem>>, vector<1x8x4xf32>
    %1117 = vector.shape_cast %1116 : vector<1x8x4xf32> to vector<8x4xf32>
    %1118 = vector.extract_strided_slice %1083 {offsets = [0, 2], sizes = [4, 32], strides = [1, 1]} : vector<4x34xbf16> to vector<4x32xbf16>
    %1119 = arith.extf %1118 : vector<4x32xbf16> to vector<4x32xf32>
    %cst_883 = arith.constant dense<0.000000e+00> : vector<8x32xf32>
    %1120 = tpu.matmul %1117, %1119, %cst_883 {dimension_numbers = #tpu.dot_dimension_numbers<[1], [0], [0], [1], [0, 0, 1, 1], [], []>} : vector<8x4xf32>, vector<4x32xf32>, vector<8x32xf32> -> vector<8x32xf32>
    %1121 = arith.addf %1115, %1120 : vector<8x32xf32>
    %c0_884 = arith.constant 0 : index
    %c0_885 = arith.constant 0 : index
    %c768 = arith.constant 768 : index
    %1122 = vector.load %arg6[%c0_884, %c0_885, %c768] : memref<1x8x1024xf32, #tpu.memory_space<vmem>>, vector<1x8x32xf32>
    %1123 = vector.shape_cast %1122 : vector<1x8x32xf32> to vector<8x32xf32>
    %1124 = vector.shape_cast %1121 : vector<8x32xf32> to vector<1x8x32xf32>
    tpu.vector_store %arg6[%c0_884, %c0_885, %c768], %1124 {strides = array<i32>} : memref<1x8x1024xf32, #tpu.memory_space<vmem>>, vector<1x8x32xf32>,
    %c0_886 = arith.constant 0 : index
    %c0_887 = arith.constant 0 : index
    %c13_888 = arith.constant 13 : index
    %c0_889 = arith.constant 0 : index
    %1125 = vector.load %arg2[%c0_886, %c0_887, %c13_888, %c0_889] : memref<1x4x16x34xbf16, #tpu.memory_space<vmem>>, vector<1x4x1x34xbf16>
    %1126 = vector.shape_cast %1125 : vector<1x4x1x34xbf16> to vector<4x34xbf16>
    %c0_890 = arith.constant 0 : index
    %c0_891 = arith.constant 0 : index
    %c14 = arith.constant 14 : index
    %c0_892 = arith.constant 0 : index
    %1127 = vector.load %arg2[%c0_890, %c0_891, %c14, %c0_892] : memref<1x4x16x34xbf16, #tpu.memory_space<vmem>>, vector<1x4x1x34xbf16>
    %1128 = vector.shape_cast %1127 : vector<1x4x1x34xbf16> to vector<4x34xbf16>
    %c0_893 = arith.constant 0 : index
    %c0_894 = arith.constant 0 : index
    %1129 = vector.load %arg5[%c0_893, %c0_894] : memref<8x1xf32, #tpu.memory_space<vmem>>, vector<8x1xf32>
    %c6_895 = arith.constant 6 : index
    %c0_896 = arith.constant 0 : index
    %c0_897 = arith.constant 0 : index
    %1130 = vector.load %arg4[%c6_895, %c0_896, %c0_897] : memref<12x8x4xf32, #tpu.memory_space<vmem>>, vector<1x8x4xf32>
    %1131 = vector.shape_cast %1130 : vector<1x8x4xf32> to vector<8x4xf32>
    %1132 = vector.extract_strided_slice %1126 {offsets = [0, 0], sizes = [4, 32], strides = [1, 1]} : vector<4x34xbf16> to vector<4x32xbf16>
    %1133 = arith.extf %1132 : vector<4x32xbf16> to vector<4x32xf32>
    %cst_898 = arith.constant dense<0.000000e+00> : vector<8x32xf32>
    %1134 = tpu.matmul %1131, %1133, %cst_898 {dimension_numbers = #tpu.dot_dimension_numbers<[1], [0], [0], [1], [0, 0, 1, 1], [], []>} : vector<8x4xf32>, vector<4x32xf32>, vector<8x32xf32> -> vector<8x32xf32>
    %1135 = vector.broadcast %1129 : vector<8x1xf32> to vector<8x32xf32>
    %1136 = arith.addf %1135, %1134 : vector<8x32xf32>
    %c7_899 = arith.constant 7 : index
    %c0_900 = arith.constant 0 : index
    %c0_901 = arith.constant 0 : index
    %1137 = vector.load %arg4[%c7_899, %c0_900, %c0_901] : memref<12x8x4xf32, #tpu.memory_space<vmem>>, vector<1x8x4xf32>
    %1138 = vector.shape_cast %1137 : vector<1x8x4xf32> to vector<8x4xf32>
    %1139 = vector.extract_strided_slice %1126 {offsets = [0, 1], sizes = [4, 32], strides = [1, 1]} : vector<4x34xbf16> to vector<4x32xbf16>
    %1140 = arith.extf %1139 : vector<4x32xbf16> to vector<4x32xf32>
    %cst_902 = arith.constant dense<0.000000e+00> : vector<8x32xf32>
    %1141 = tpu.matmul %1138, %1140, %cst_902 {dimension_numbers = #tpu.dot_dimension_numbers<[1], [0], [0], [1], [0, 0, 1, 1], [], []>} : vector<8x4xf32>, vector<4x32xf32>, vector<8x32xf32> -> vector<8x32xf32>
    %1142 = arith.addf %1136, %1141 : vector<8x32xf32>
    %c8_903 = arith.constant 8 : index
    %c0_904 = arith.constant 0 : index
    %c0_905 = arith.constant 0 : index
    %1143 = vector.load %arg4[%c8_903, %c0_904, %c0_905] : memref<12x8x4xf32, #tpu.memory_space<vmem>>, vector<1x8x4xf32>
    %1144 = vector.shape_cast %1143 : vector<1x8x4xf32> to vector<8x4xf32>
    %1145 = vector.extract_strided_slice %1126 {offsets = [0, 2], sizes = [4, 32], strides = [1, 1]} : vector<4x34xbf16> to vector<4x32xbf16>
    %1146 = arith.extf %1145 : vector<4x32xbf16> to vector<4x32xf32>
    %cst_906 = arith.constant dense<0.000000e+00> : vector<8x32xf32>
    %1147 = tpu.matmul %1144, %1146, %cst_906 {dimension_numbers = #tpu.dot_dimension_numbers<[1], [0], [0], [1], [0, 0, 1, 1], [], []>} : vector<8x4xf32>, vector<4x32xf32>, vector<8x32xf32> -> vector<8x32xf32>
    %1148 = arith.addf %1142, %1147 : vector<8x32xf32>
    %c9_907 = arith.constant 9 : index
    %c0_908 = arith.constant 0 : index
    %c0_909 = arith.constant 0 : index
    %1149 = vector.load %arg4[%c9_907, %c0_908, %c0_909] : memref<12x8x4xf32, #tpu.memory_space<vmem>>, vector<1x8x4xf32>
    %1150 = vector.shape_cast %1149 : vector<1x8x4xf32> to vector<8x4xf32>
    %1151 = vector.extract_strided_slice %1128 {offsets = [0, 0], sizes = [4, 32], strides = [1, 1]} : vector<4x34xbf16> to vector<4x32xbf16>
    %1152 = arith.extf %1151 : vector<4x32xbf16> to vector<4x32xf32>
    %cst_910 = arith.constant dense<0.000000e+00> : vector<8x32xf32>
    %1153 = tpu.matmul %1150, %1152, %cst_910 {dimension_numbers = #tpu.dot_dimension_numbers<[1], [0], [0], [1], [0, 0, 1, 1], [], []>} : vector<8x4xf32>, vector<4x32xf32>, vector<8x32xf32> -> vector<8x32xf32>
    %1154 = arith.addf %1148, %1153 : vector<8x32xf32>
    %c10_911 = arith.constant 10 : index
    %c0_912 = arith.constant 0 : index
    %c0_913 = arith.constant 0 : index
    %1155 = vector.load %arg4[%c10_911, %c0_912, %c0_913] : memref<12x8x4xf32, #tpu.memory_space<vmem>>, vector<1x8x4xf32>
    %1156 = vector.shape_cast %1155 : vector<1x8x4xf32> to vector<8x4xf32>
    %1157 = vector.extract_strided_slice %1128 {offsets = [0, 1], sizes = [4, 32], strides = [1, 1]} : vector<4x34xbf16> to vector<4x32xbf16>
    %1158 = arith.extf %1157 : vector<4x32xbf16> to vector<4x32xf32>
    %cst_914 = arith.constant dense<0.000000e+00> : vector<8x32xf32>
    %1159 = tpu.matmul %1156, %1158, %cst_914 {dimension_numbers = #tpu.dot_dimension_numbers<[1], [0], [0], [1], [0, 0, 1, 1], [], []>} : vector<8x4xf32>, vector<4x32xf32>, vector<8x32xf32> -> vector<8x32xf32>
    %1160 = arith.addf %1154, %1159 : vector<8x32xf32>
    %c11_915 = arith.constant 11 : index
    %c0_916 = arith.constant 0 : index
    %c0_917 = arith.constant 0 : index
    %1161 = vector.load %arg4[%c11_915, %c0_916, %c0_917] : memref<12x8x4xf32, #tpu.memory_space<vmem>>, vector<1x8x4xf32>
    %1162 = vector.shape_cast %1161 : vector<1x8x4xf32> to vector<8x4xf32>
    %1163 = vector.extract_strided_slice %1128 {offsets = [0, 2], sizes = [4, 32], strides = [1, 1]} : vector<4x34xbf16> to vector<4x32xbf16>
    %1164 = arith.extf %1163 : vector<4x32xbf16> to vector<4x32xf32>
    %cst_918 = arith.constant dense<0.000000e+00> : vector<8x32xf32>
    %1165 = tpu.matmul %1162, %1164, %cst_918 {dimension_numbers = #tpu.dot_dimension_numbers<[1], [0], [0], [1], [0, 0, 1, 1], [], []>} : vector<8x4xf32>, vector<4x32xf32>, vector<8x32xf32> -> vector<8x32xf32>
    %1166 = arith.addf %1160, %1165 : vector<8x32xf32>
    %c0_919 = arith.constant 0 : index
    %c0_920 = arith.constant 0 : index
    %c800 = arith.constant 800 : index
    %1167 = vector.load %arg6[%c0_919, %c0_920, %c800] : memref<1x8x1024xf32, #tpu.memory_space<vmem>>, vector<1x8x32xf32>
    %1168 = vector.shape_cast %1167 : vector<1x8x32xf32> to vector<8x32xf32>
    %1169 = vector.shape_cast %1166 : vector<8x32xf32> to vector<1x8x32xf32>
    tpu.vector_store %arg6[%c0_919, %c0_920, %c800], %1169 {strides = array<i32>} : memref<1x8x1024xf32, #tpu.memory_space<vmem>>, vector<1x8x32xf32>,
    %c0_921 = arith.constant 0 : index
    %c0_922 = arith.constant 0 : index
    %c13_923 = arith.constant 13 : index
    %c0_924 = arith.constant 0 : index
    %1170 = vector.load %arg2[%c0_921, %c0_922, %c13_923, %c0_924] : memref<1x4x16x34xbf16, #tpu.memory_space<vmem>>, vector<1x4x1x34xbf16>
    %1171 = vector.shape_cast %1170 : vector<1x4x1x34xbf16> to vector<4x34xbf16>
    %c0_925 = arith.constant 0 : index
    %c0_926 = arith.constant 0 : index
    %c14_927 = arith.constant 14 : index
    %c0_928 = arith.constant 0 : index
    %1172 = vector.load %arg2[%c0_925, %c0_926, %c14_927, %c0_928] : memref<1x4x16x34xbf16, #tpu.memory_space<vmem>>, vector<1x4x1x34xbf16>
    %1173 = vector.shape_cast %1172 : vector<1x4x1x34xbf16> to vector<4x34xbf16>
    %c0_929 = arith.constant 0 : index
    %c0_930 = arith.constant 0 : index
    %1174 = vector.load %arg5[%c0_929, %c0_930] : memref<8x1xf32, #tpu.memory_space<vmem>>, vector<8x1xf32>
    %c0_931 = arith.constant 0 : index
    %c0_932 = arith.constant 0 : index
    %c0_933 = arith.constant 0 : index
    %1175 = vector.load %arg4[%c0_931, %c0_932, %c0_933] : memref<12x8x4xf32, #tpu.memory_space<vmem>>, vector<1x8x4xf32>
    %1176 = vector.shape_cast %1175 : vector<1x8x4xf32> to vector<8x4xf32>
    %1177 = vector.extract_strided_slice %1171 {offsets = [0, 0], sizes = [4, 32], strides = [1, 1]} : vector<4x34xbf16> to vector<4x32xbf16>
    %1178 = arith.extf %1177 : vector<4x32xbf16> to vector<4x32xf32>
    %cst_934 = arith.constant dense<0.000000e+00> : vector<8x32xf32>
    %1179 = tpu.matmul %1176, %1178, %cst_934 {dimension_numbers = #tpu.dot_dimension_numbers<[1], [0], [0], [1], [0, 0, 1, 1], [], []>} : vector<8x4xf32>, vector<4x32xf32>, vector<8x32xf32> -> vector<8x32xf32>
    %1180 = vector.broadcast %1174 : vector<8x1xf32> to vector<8x32xf32>
    %1181 = arith.addf %1180, %1179 : vector<8x32xf32>
    %c1_935 = arith.constant 1 : index
    %c0_936 = arith.constant 0 : index
    %c0_937 = arith.constant 0 : index
    %1182 = vector.load %arg4[%c1_935, %c0_936, %c0_937] : memref<12x8x4xf32, #tpu.memory_space<vmem>>, vector<1x8x4xf32>
    %1183 = vector.shape_cast %1182 : vector<1x8x4xf32> to vector<8x4xf32>
    %1184 = vector.extract_strided_slice %1171 {offsets = [0, 1], sizes = [4, 32], strides = [1, 1]} : vector<4x34xbf16> to vector<4x32xbf16>
    %1185 = arith.extf %1184 : vector<4x32xbf16> to vector<4x32xf32>
    %cst_938 = arith.constant dense<0.000000e+00> : vector<8x32xf32>
    %1186 = tpu.matmul %1183, %1185, %cst_938 {dimension_numbers = #tpu.dot_dimension_numbers<[1], [0], [0], [1], [0, 0, 1, 1], [], []>} : vector<8x4xf32>, vector<4x32xf32>, vector<8x32xf32> -> vector<8x32xf32>
    %1187 = arith.addf %1181, %1186 : vector<8x32xf32>
    %c2_939 = arith.constant 2 : index
    %c0_940 = arith.constant 0 : index
    %c0_941 = arith.constant 0 : index
    %1188 = vector.load %arg4[%c2_939, %c0_940, %c0_941] : memref<12x8x4xf32, #tpu.memory_space<vmem>>, vector<1x8x4xf32>
    %1189 = vector.shape_cast %1188 : vector<1x8x4xf32> to vector<8x4xf32>
    %1190 = vector.extract_strided_slice %1171 {offsets = [0, 2], sizes = [4, 32], strides = [1, 1]} : vector<4x34xbf16> to vector<4x32xbf16>
    %1191 = arith.extf %1190 : vector<4x32xbf16> to vector<4x32xf32>
    %cst_942 = arith.constant dense<0.000000e+00> : vector<8x32xf32>
    %1192 = tpu.matmul %1189, %1191, %cst_942 {dimension_numbers = #tpu.dot_dimension_numbers<[1], [0], [0], [1], [0, 0, 1, 1], [], []>} : vector<8x4xf32>, vector<4x32xf32>, vector<8x32xf32> -> vector<8x32xf32>
    %1193 = arith.addf %1187, %1192 : vector<8x32xf32>
    %c3_943 = arith.constant 3 : index
    %c0_944 = arith.constant 0 : index
    %c0_945 = arith.constant 0 : index
    %1194 = vector.load %arg4[%c3_943, %c0_944, %c0_945] : memref<12x8x4xf32, #tpu.memory_space<vmem>>, vector<1x8x4xf32>
    %1195 = vector.shape_cast %1194 : vector<1x8x4xf32> to vector<8x4xf32>
    %1196 = vector.extract_strided_slice %1173 {offsets = [0, 0], sizes = [4, 32], strides = [1, 1]} : vector<4x34xbf16> to vector<4x32xbf16>
    %1197 = arith.extf %1196 : vector<4x32xbf16> to vector<4x32xf32>
    %cst_946 = arith.constant dense<0.000000e+00> : vector<8x32xf32>
    %1198 = tpu.matmul %1195, %1197, %cst_946 {dimension_numbers = #tpu.dot_dimension_numbers<[1], [0], [0], [1], [0, 0, 1, 1], [], []>} : vector<8x4xf32>, vector<4x32xf32>, vector<8x32xf32> -> vector<8x32xf32>
    %1199 = arith.addf %1193, %1198 : vector<8x32xf32>
    %c4_947 = arith.constant 4 : index
    %c0_948 = arith.constant 0 : index
    %c0_949 = arith.constant 0 : index
    %1200 = vector.load %arg4[%c4_947, %c0_948, %c0_949] : memref<12x8x4xf32, #tpu.memory_space<vmem>>, vector<1x8x4xf32>
    %1201 = vector.shape_cast %1200 : vector<1x8x4xf32> to vector<8x4xf32>
    %1202 = vector.extract_strided_slice %1173 {offsets = [0, 1], sizes = [4, 32], strides = [1, 1]} : vector<4x34xbf16> to vector<4x32xbf16>
    %1203 = arith.extf %1202 : vector<4x32xbf16> to vector<4x32xf32>
    %cst_950 = arith.constant dense<0.000000e+00> : vector<8x32xf32>
    %1204 = tpu.matmul %1201, %1203, %cst_950 {dimension_numbers = #tpu.dot_dimension_numbers<[1], [0], [0], [1], [0, 0, 1, 1], [], []>} : vector<8x4xf32>, vector<4x32xf32>, vector<8x32xf32> -> vector<8x32xf32>
    %1205 = arith.addf %1199, %1204 : vector<8x32xf32>
    %c5_951 = arith.constant 5 : index
    %c0_952 = arith.constant 0 : index
    %c0_953 = arith.constant 0 : index
    %1206 = vector.load %arg4[%c5_951, %c0_952, %c0_953] : memref<12x8x4xf32, #tpu.memory_space<vmem>>, vector<1x8x4xf32>
    %1207 = vector.shape_cast %1206 : vector<1x8x4xf32> to vector<8x4xf32>
    %1208 = vector.extract_strided_slice %1173 {offsets = [0, 2], sizes = [4, 32], strides = [1, 1]} : vector<4x34xbf16> to vector<4x32xbf16>
    %1209 = arith.extf %1208 : vector<4x32xbf16> to vector<4x32xf32>
    %cst_954 = arith.constant dense<0.000000e+00> : vector<8x32xf32>
    %1210 = tpu.matmul %1207, %1209, %cst_954 {dimension_numbers = #tpu.dot_dimension_numbers<[1], [0], [0], [1], [0, 0, 1, 1], [], []>} : vector<8x4xf32>, vector<4x32xf32>, vector<8x32xf32> -> vector<8x32xf32>
    %1211 = arith.addf %1205, %1210 : vector<8x32xf32>
    %c0_955 = arith.constant 0 : index
    %c0_956 = arith.constant 0 : index
    %c832 = arith.constant 832 : index
    %1212 = vector.load %arg6[%c0_955, %c0_956, %c832] : memref<1x8x1024xf32, #tpu.memory_space<vmem>>, vector<1x8x32xf32>
    %1213 = vector.shape_cast %1212 : vector<1x8x32xf32> to vector<8x32xf32>
    %1214 = vector.shape_cast %1211 : vector<8x32xf32> to vector<1x8x32xf32>
    tpu.vector_store %arg6[%c0_955, %c0_956, %c832], %1214 {strides = array<i32>} : memref<1x8x1024xf32, #tpu.memory_space<vmem>>, vector<1x8x32xf32>,
    %c0_957 = arith.constant 0 : index
    %c0_958 = arith.constant 0 : index
    %c14_959 = arith.constant 14 : index
    %c0_960 = arith.constant 0 : index
    %1215 = vector.load %arg2[%c0_957, %c0_958, %c14_959, %c0_960] : memref<1x4x16x34xbf16, #tpu.memory_space<vmem>>, vector<1x4x1x34xbf16>
    %1216 = vector.shape_cast %1215 : vector<1x4x1x34xbf16> to vector<4x34xbf16>
    %c0_961 = arith.constant 0 : index
    %c0_962 = arith.constant 0 : index
    %c15 = arith.constant 15 : index
    %c0_963 = arith.constant 0 : index
    %1217 = vector.load %arg2[%c0_961, %c0_962, %c15, %c0_963] : memref<1x4x16x34xbf16, #tpu.memory_space<vmem>>, vector<1x4x1x34xbf16>
    %1218 = vector.shape_cast %1217 : vector<1x4x1x34xbf16> to vector<4x34xbf16>
    %c0_964 = arith.constant 0 : index
    %c0_965 = arith.constant 0 : index
    %1219 = vector.load %arg5[%c0_964, %c0_965] : memref<8x1xf32, #tpu.memory_space<vmem>>, vector<8x1xf32>
    %c6_966 = arith.constant 6 : index
    %c0_967 = arith.constant 0 : index
    %c0_968 = arith.constant 0 : index
    %1220 = vector.load %arg4[%c6_966, %c0_967, %c0_968] : memref<12x8x4xf32, #tpu.memory_space<vmem>>, vector<1x8x4xf32>
    %1221 = vector.shape_cast %1220 : vector<1x8x4xf32> to vector<8x4xf32>
    %1222 = vector.extract_strided_slice %1216 {offsets = [0, 0], sizes = [4, 32], strides = [1, 1]} : vector<4x34xbf16> to vector<4x32xbf16>
    %1223 = arith.extf %1222 : vector<4x32xbf16> to vector<4x32xf32>
    %cst_969 = arith.constant dense<0.000000e+00> : vector<8x32xf32>
    %1224 = tpu.matmul %1221, %1223, %cst_969 {dimension_numbers = #tpu.dot_dimension_numbers<[1], [0], [0], [1], [0, 0, 1, 1], [], []>} : vector<8x4xf32>, vector<4x32xf32>, vector<8x32xf32> -> vector<8x32xf32>
    %1225 = vector.broadcast %1219 : vector<8x1xf32> to vector<8x32xf32>
    %1226 = arith.addf %1225, %1224 : vector<8x32xf32>
    %c7_970 = arith.constant 7 : index
    %c0_971 = arith.constant 0 : index
    %c0_972 = arith.constant 0 : index
    %1227 = vector.load %arg4[%c7_970, %c0_971, %c0_972] : memref<12x8x4xf32, #tpu.memory_space<vmem>>, vector<1x8x4xf32>
    %1228 = vector.shape_cast %1227 : vector<1x8x4xf32> to vector<8x4xf32>
    %1229 = vector.extract_strided_slice %1216 {offsets = [0, 1], sizes = [4, 32], strides = [1, 1]} : vector<4x34xbf16> to vector<4x32xbf16>
    %1230 = arith.extf %1229 : vector<4x32xbf16> to vector<4x32xf32>
    %cst_973 = arith.constant dense<0.000000e+00> : vector<8x32xf32>
    %1231 = tpu.matmul %1228, %1230, %cst_973 {dimension_numbers = #tpu.dot_dimension_numbers<[1], [0], [0], [1], [0, 0, 1, 1], [], []>} : vector<8x4xf32>, vector<4x32xf32>, vector<8x32xf32> -> vector<8x32xf32>
    %1232 = arith.addf %1226, %1231 : vector<8x32xf32>
    %c8_974 = arith.constant 8 : index
    %c0_975 = arith.constant 0 : index
    %c0_976 = arith.constant 0 : index
    %1233 = vector.load %arg4[%c8_974, %c0_975, %c0_976] : memref<12x8x4xf32, #tpu.memory_space<vmem>>, vector<1x8x4xf32>
    %1234 = vector.shape_cast %1233 : vector<1x8x4xf32> to vector<8x4xf32>
    %1235 = vector.extract_strided_slice %1216 {offsets = [0, 2], sizes = [4, 32], strides = [1, 1]} : vector<4x34xbf16> to vector<4x32xbf16>
    %1236 = arith.extf %1235 : vector<4x32xbf16> to vector<4x32xf32>
    %cst_977 = arith.constant dense<0.000000e+00> : vector<8x32xf32>
    %1237 = tpu.matmul %1234, %1236, %cst_977 {dimension_numbers = #tpu.dot_dimension_numbers<[1], [0], [0], [1], [0, 0, 1, 1], [], []>} : vector<8x4xf32>, vector<4x32xf32>, vector<8x32xf32> -> vector<8x32xf32>
    %1238 = arith.addf %1232, %1237 : vector<8x32xf32>
    %c9_978 = arith.constant 9 : index
    %c0_979 = arith.constant 0 : index
    %c0_980 = arith.constant 0 : index
    %1239 = vector.load %arg4[%c9_978, %c0_979, %c0_980] : memref<12x8x4xf32, #tpu.memory_space<vmem>>, vector<1x8x4xf32>
    %1240 = vector.shape_cast %1239 : vector<1x8x4xf32> to vector<8x4xf32>
    %1241 = vector.extract_strided_slice %1218 {offsets = [0, 0], sizes = [4, 32], strides = [1, 1]} : vector<4x34xbf16> to vector<4x32xbf16>
    %1242 = arith.extf %1241 : vector<4x32xbf16> to vector<4x32xf32>
    %cst_981 = arith.constant dense<0.000000e+00> : vector<8x32xf32>
    %1243 = tpu.matmul %1240, %1242, %cst_981 {dimension_numbers = #tpu.dot_dimension_numbers<[1], [0], [0], [1], [0, 0, 1, 1], [], []>} : vector<8x4xf32>, vector<4x32xf32>, vector<8x32xf32> -> vector<8x32xf32>
    %1244 = arith.addf %1238, %1243 : vector<8x32xf32>
    %c10_982 = arith.constant 10 : index
    %c0_983 = arith.constant 0 : index
    %c0_984 = arith.constant 0 : index
    %1245 = vector.load %arg4[%c10_982, %c0_983, %c0_984] : memref<12x8x4xf32, #tpu.memory_space<vmem>>, vector<1x8x4xf32>
    %1246 = vector.shape_cast %1245 : vector<1x8x4xf32> to vector<8x4xf32>
    %1247 = vector.extract_strided_slice %1218 {offsets = [0, 1], sizes = [4, 32], strides = [1, 1]} : vector<4x34xbf16> to vector<4x32xbf16>
    %1248 = arith.extf %1247 : vector<4x32xbf16> to vector<4x32xf32>
    %cst_985 = arith.constant dense<0.000000e+00> : vector<8x32xf32>
    %1249 = tpu.matmul %1246, %1248, %cst_985 {dimension_numbers = #tpu.dot_dimension_numbers<[1], [0], [0], [1], [0, 0, 1, 1], [], []>} : vector<8x4xf32>, vector<4x32xf32>, vector<8x32xf32> -> vector<8x32xf32>
    %1250 = arith.addf %1244, %1249 : vector<8x32xf32>
    %c11_986 = arith.constant 11 : index
    %c0_987 = arith.constant 0 : index
    %c0_988 = arith.constant 0 : index
    %1251 = vector.load %arg4[%c11_986, %c0_987, %c0_988] : memref<12x8x4xf32, #tpu.memory_space<vmem>>, vector<1x8x4xf32>
    %1252 = vector.shape_cast %1251 : vector<1x8x4xf32> to vector<8x4xf32>
    %1253 = vector.extract_strided_slice %1218 {offsets = [0, 2], sizes = [4, 32], strides = [1, 1]} : vector<4x34xbf16> to vector<4x32xbf16>
    %1254 = arith.extf %1253 : vector<4x32xbf16> to vector<4x32xf32>
    %cst_989 = arith.constant dense<0.000000e+00> : vector<8x32xf32>
    %1255 = tpu.matmul %1252, %1254, %cst_989 {dimension_numbers = #tpu.dot_dimension_numbers<[1], [0], [0], [1], [0, 0, 1, 1], [], []>} : vector<8x4xf32>, vector<4x32xf32>, vector<8x32xf32> -> vector<8x32xf32>
    %1256 = arith.addf %1250, %1255 : vector<8x32xf32>
    %c0_990 = arith.constant 0 : index
    %c0_991 = arith.constant 0 : index
    %c864 = arith.constant 864 : index
    %1257 = vector.load %arg6[%c0_990, %c0_991, %c864] : memref<1x8x1024xf32, #tpu.memory_space<vmem>>, vector<1x8x32xf32>
    %1258 = vector.shape_cast %1257 : vector<1x8x32xf32> to vector<8x32xf32>
    %1259 = vector.shape_cast %1256 : vector<8x32xf32> to vector<1x8x32xf32>
    tpu.vector_store %arg6[%c0_990, %c0_991, %c864], %1259 {strides = array<i32>} : memref<1x8x1024xf32, #tpu.memory_space<vmem>>, vector<1x8x32xf32>,
    %c0_992 = arith.constant 0 : index
    %c0_993 = arith.constant 0 : index
    %c14_994 = arith.constant 14 : index
    %c0_995 = arith.constant 0 : index
    %1260 = vector.load %arg2[%c0_992, %c0_993, %c14_994, %c0_995] : memref<1x4x16x34xbf16, #tpu.memory_space<vmem>>, vector<1x4x1x34xbf16>
    %1261 = vector.shape_cast %1260 : vector<1x4x1x34xbf16> to vector<4x34xbf16>
    %c0_996 = arith.constant 0 : index
    %c0_997 = arith.constant 0 : index
    %c15_998 = arith.constant 15 : index
    %c0_999 = arith.constant 0 : index
    %1262 = vector.load %arg2[%c0_996, %c0_997, %c15_998, %c0_999] : memref<1x4x16x34xbf16, #tpu.memory_space<vmem>>, vector<1x4x1x34xbf16>
    %1263 = vector.shape_cast %1262 : vector<1x4x1x34xbf16> to vector<4x34xbf16>
    %c0_1000 = arith.constant 0 : index
    %c0_1001 = arith.constant 0 : index
    %1264 = vector.load %arg5[%c0_1000, %c0_1001] : memref<8x1xf32, #tpu.memory_space<vmem>>, vector<8x1xf32>
    %c0_1002 = arith.constant 0 : index
    %c0_1003 = arith.constant 0 : index
    %c0_1004 = arith.constant 0 : index
    %1265 = vector.load %arg4[%c0_1002, %c0_1003, %c0_1004] : memref<12x8x4xf32, #tpu.memory_space<vmem>>, vector<1x8x4xf32>
    %1266 = vector.shape_cast %1265 : vector<1x8x4xf32> to vector<8x4xf32>
    %1267 = vector.extract_strided_slice %1261 {offsets = [0, 0], sizes = [4, 32], strides = [1, 1]} : vector<4x34xbf16> to vector<4x32xbf16>
    %1268 = arith.extf %1267 : vector<4x32xbf16> to vector<4x32xf32>
    %cst_1005 = arith.constant dense<0.000000e+00> : vector<8x32xf32>
    %1269 = tpu.matmul %1266, %1268, %cst_1005 {dimension_numbers = #tpu.dot_dimension_numbers<[1], [0], [0], [1], [0, 0, 1, 1], [], []>} : vector<8x4xf32>, vector<4x32xf32>, vector<8x32xf32> -> vector<8x32xf32>
    %1270 = vector.broadcast %1264 : vector<8x1xf32> to vector<8x32xf32>
    %1271 = arith.addf %1270, %1269 : vector<8x32xf32>
    %c1_1006 = arith.constant 1 : index
    %c0_1007 = arith.constant 0 : index
    %c0_1008 = arith.constant 0 : index
    %1272 = vector.load %arg4[%c1_1006, %c0_1007, %c0_1008] : memref<12x8x4xf32, #tpu.memory_space<vmem>>, vector<1x8x4xf32>
    %1273 = vector.shape_cast %1272 : vector<1x8x4xf32> to vector<8x4xf32>
    %1274 = vector.extract_strided_slice %1261 {offsets = [0, 1], sizes = [4, 32], strides = [1, 1]} : vector<4x34xbf16> to vector<4x32xbf16>
    %1275 = arith.extf %1274 : vector<4x32xbf16> to vector<4x32xf32>
    %cst_1009 = arith.constant dense<0.000000e+00> : vector<8x32xf32>
    %1276 = tpu.matmul %1273, %1275, %cst_1009 {dimension_numbers = #tpu.dot_dimension_numbers<[1], [0], [0], [1], [0, 0, 1, 1], [], []>} : vector<8x4xf32>, vector<4x32xf32>, vector<8x32xf32> -> vector<8x32xf32>
    %1277 = arith.addf %1271, %1276 : vector<8x32xf32>
    %c2_1010 = arith.constant 2 : index
    %c0_1011 = arith.constant 0 : index
    %c0_1012 = arith.constant 0 : index
    %1278 = vector.load %arg4[%c2_1010, %c0_1011, %c0_1012] : memref<12x8x4xf32, #tpu.memory_space<vmem>>, vector<1x8x4xf32>
    %1279 = vector.shape_cast %1278 : vector<1x8x4xf32> to vector<8x4xf32>
    %1280 = vector.extract_strided_slice %1261 {offsets = [0, 2], sizes = [4, 32], strides = [1, 1]} : vector<4x34xbf16> to vector<4x32xbf16>
    %1281 = arith.extf %1280 : vector<4x32xbf16> to vector<4x32xf32>
    %cst_1013 = arith.constant dense<0.000000e+00> : vector<8x32xf32>
    %1282 = tpu.matmul %1279, %1281, %cst_1013 {dimension_numbers = #tpu.dot_dimension_numbers<[1], [0], [0], [1], [0, 0, 1, 1], [], []>} : vector<8x4xf32>, vector<4x32xf32>, vector<8x32xf32> -> vector<8x32xf32>
    %1283 = arith.addf %1277, %1282 : vector<8x32xf32>
    %c3_1014 = arith.constant 3 : index
    %c0_1015 = arith.constant 0 : index
    %c0_1016 = arith.constant 0 : index
    %1284 = vector.load %arg4[%c3_1014, %c0_1015, %c0_1016] : memref<12x8x4xf32, #tpu.memory_space<vmem>>, vector<1x8x4xf32>
    %1285 = vector.shape_cast %1284 : vector<1x8x4xf32> to vector<8x4xf32>
    %1286 = vector.extract_strided_slice %1263 {offsets = [0, 0], sizes = [4, 32], strides = [1, 1]} : vector<4x34xbf16> to vector<4x32xbf16>
    %1287 = arith.extf %1286 : vector<4x32xbf16> to vector<4x32xf32>
    %cst_1017 = arith.constant dense<0.000000e+00> : vector<8x32xf32>
    %1288 = tpu.matmul %1285, %1287, %cst_1017 {dimension_numbers = #tpu.dot_dimension_numbers<[1], [0], [0], [1], [0, 0, 1, 1], [], []>} : vector<8x4xf32>, vector<4x32xf32>, vector<8x32xf32> -> vector<8x32xf32>
    %1289 = arith.addf %1283, %1288 : vector<8x32xf32>
    %c4_1018 = arith.constant 4 : index
    %c0_1019 = arith.constant 0 : index
    %c0_1020 = arith.constant 0 : index
    %1290 = vector.load %arg4[%c4_1018, %c0_1019, %c0_1020] : memref<12x8x4xf32, #tpu.memory_space<vmem>>, vector<1x8x4xf32>
    %1291 = vector.shape_cast %1290 : vector<1x8x4xf32> to vector<8x4xf32>
    %1292 = vector.extract_strided_slice %1263 {offsets = [0, 1], sizes = [4, 32], strides = [1, 1]} : vector<4x34xbf16> to vector<4x32xbf16>
    %1293 = arith.extf %1292 : vector<4x32xbf16> to vector<4x32xf32>
    %cst_1021 = arith.constant dense<0.000000e+00> : vector<8x32xf32>
    %1294 = tpu.matmul %1291, %1293, %cst_1021 {dimension_numbers = #tpu.dot_dimension_numbers<[1], [0], [0], [1], [0, 0, 1, 1], [], []>} : vector<8x4xf32>, vector<4x32xf32>, vector<8x32xf32> -> vector<8x32xf32>
    %1295 = arith.addf %1289, %1294 : vector<8x32xf32>
    %c5_1022 = arith.constant 5 : index
    %c0_1023 = arith.constant 0 : index
    %c0_1024 = arith.constant 0 : index
    %1296 = vector.load %arg4[%c5_1022, %c0_1023, %c0_1024] : memref<12x8x4xf32, #tpu.memory_space<vmem>>, vector<1x8x4xf32>
    %1297 = vector.shape_cast %1296 : vector<1x8x4xf32> to vector<8x4xf32>
    %1298 = vector.extract_strided_slice %1263 {offsets = [0, 2], sizes = [4, 32], strides = [1, 1]} : vector<4x34xbf16> to vector<4x32xbf16>
    %1299 = arith.extf %1298 : vector<4x32xbf16> to vector<4x32xf32>
    %cst_1025 = arith.constant dense<0.000000e+00> : vector<8x32xf32>
    %1300 = tpu.matmul %1297, %1299, %cst_1025 {dimension_numbers = #tpu.dot_dimension_numbers<[1], [0], [0], [1], [0, 0, 1, 1], [], []>} : vector<8x4xf32>, vector<4x32xf32>, vector<8x32xf32> -> vector<8x32xf32>
    %1301 = arith.addf %1295, %1300 : vector<8x32xf32>
    %c0_1026 = arith.constant 0 : index
    %c0_1027 = arith.constant 0 : index
    %c896 = arith.constant 896 : index
    %1302 = vector.load %arg6[%c0_1026, %c0_1027, %c896] : memref<1x8x1024xf32, #tpu.memory_space<vmem>>, vector<1x8x32xf32>
    %1303 = vector.shape_cast %1302 : vector<1x8x32xf32> to vector<8x32xf32>
    %1304 = vector.shape_cast %1301 : vector<8x32xf32> to vector<1x8x32xf32>
    tpu.vector_store %arg6[%c0_1026, %c0_1027, %c896], %1304 {strides = array<i32>} : memref<1x8x1024xf32, #tpu.memory_space<vmem>>, vector<1x8x32xf32>,
    %c0_1028 = arith.constant 0 : index
    %c0_1029 = arith.constant 0 : index
    %c15_1030 = arith.constant 15 : index
    %c0_1031 = arith.constant 0 : index
    %1305 = vector.load %arg2[%c0_1028, %c0_1029, %c15_1030, %c0_1031] : memref<1x4x16x34xbf16, #tpu.memory_space<vmem>>, vector<1x4x1x34xbf16>
    %1306 = vector.shape_cast %1305 : vector<1x4x1x34xbf16> to vector<4x34xbf16>
    %c0_1032 = arith.constant 0 : index
    %c0_1033 = arith.constant 0 : index
    %c0_1034 = arith.constant 0 : index
    %c0_1035 = arith.constant 0 : index
    %1307 = vector.load %arg3[%c0_1032, %c0_1033, %c0_1034, %c0_1035] : memref<1x4x16x34xbf16, #tpu.memory_space<vmem>>, vector<1x4x1x34xbf16>
    %1308 = vector.shape_cast %1307 : vector<1x4x1x34xbf16> to vector<4x34xbf16>
    %c0_1036 = arith.constant 0 : index
    %c0_1037 = arith.constant 0 : index
    %1309 = vector.load %arg5[%c0_1036, %c0_1037] : memref<8x1xf32, #tpu.memory_space<vmem>>, vector<8x1xf32>
    %c6_1038 = arith.constant 6 : index
    %c0_1039 = arith.constant 0 : index
    %c0_1040 = arith.constant 0 : index
    %1310 = vector.load %arg4[%c6_1038, %c0_1039, %c0_1040] : memref<12x8x4xf32, #tpu.memory_space<vmem>>, vector<1x8x4xf32>
    %1311 = vector.shape_cast %1310 : vector<1x8x4xf32> to vector<8x4xf32>
    %1312 = vector.extract_strided_slice %1306 {offsets = [0, 0], sizes = [4, 32], strides = [1, 1]} : vector<4x34xbf16> to vector<4x32xbf16>
    %1313 = arith.extf %1312 : vector<4x32xbf16> to vector<4x32xf32>
    %cst_1041 = arith.constant dense<0.000000e+00> : vector<8x32xf32>
    %1314 = tpu.matmul %1311, %1313, %cst_1041 {dimension_numbers = #tpu.dot_dimension_numbers<[1], [0], [0], [1], [0, 0, 1, 1], [], []>} : vector<8x4xf32>, vector<4x32xf32>, vector<8x32xf32> -> vector<8x32xf32>
    %1315 = vector.broadcast %1309 : vector<8x1xf32> to vector<8x32xf32>
    %1316 = arith.addf %1315, %1314 : vector<8x32xf32>
    %c7_1042 = arith.constant 7 : index
    %c0_1043 = arith.constant 0 : index
    %c0_1044 = arith.constant 0 : index
    %1317 = vector.load %arg4[%c7_1042, %c0_1043, %c0_1044] : memref<12x8x4xf32, #tpu.memory_space<vmem>>, vector<1x8x4xf32>
    %1318 = vector.shape_cast %1317 : vector<1x8x4xf32> to vector<8x4xf32>
    %1319 = vector.extract_strided_slice %1306 {offsets = [0, 1], sizes = [4, 32], strides = [1, 1]} : vector<4x34xbf16> to vector<4x32xbf16>
    %1320 = arith.extf %1319 : vector<4x32xbf16> to vector<4x32xf32>
    %cst_1045 = arith.constant dense<0.000000e+00> : vector<8x32xf32>
    %1321 = tpu.matmul %1318, %1320, %cst_1045 {dimension_numbers = #tpu.dot_dimension_numbers<[1], [0], [0], [1], [0, 0, 1, 1], [], []>} : vector<8x4xf32>, vector<4x32xf32>, vector<8x32xf32> -> vector<8x32xf32>
    %1322 = arith.addf %1316, %1321 : vector<8x32xf32>
    %c8_1046 = arith.constant 8 : index
    %c0_1047 = arith.constant 0 : index
    %c0_1048 = arith.constant 0 : index
    %1323 = vector.load %arg4[%c8_1046, %c0_1047, %c0_1048] : memref<12x8x4xf32, #tpu.memory_space<vmem>>, vector<1x8x4xf32>
    %1324 = vector.shape_cast %1323 : vector<1x8x4xf32> to vector<8x4xf32>
    %1325 = vector.extract_strided_slice %1306 {offsets = [0, 2], sizes = [4, 32], strides = [1, 1]} : vector<4x34xbf16> to vector<4x32xbf16>
    %1326 = arith.extf %1325 : vector<4x32xbf16> to vector<4x32xf32>
    %cst_1049 = arith.constant dense<0.000000e+00> : vector<8x32xf32>
    %1327 = tpu.matmul %1324, %1326, %cst_1049 {dimension_numbers = #tpu.dot_dimension_numbers<[1], [0], [0], [1], [0, 0, 1, 1], [], []>} : vector<8x4xf32>, vector<4x32xf32>, vector<8x32xf32> -> vector<8x32xf32>
    %1328 = arith.addf %1322, %1327 : vector<8x32xf32>
    %c9_1050 = arith.constant 9 : index
    %c0_1051 = arith.constant 0 : index
    %c0_1052 = arith.constant 0 : index
    %1329 = vector.load %arg4[%c9_1050, %c0_1051, %c0_1052] : memref<12x8x4xf32, #tpu.memory_space<vmem>>, vector<1x8x4xf32>
    %1330 = vector.shape_cast %1329 : vector<1x8x4xf32> to vector<8x4xf32>
    %1331 = vector.extract_strided_slice %1308 {offsets = [0, 0], sizes = [4, 32], strides = [1, 1]} : vector<4x34xbf16> to vector<4x32xbf16>
    %1332 = arith.extf %1331 : vector<4x32xbf16> to vector<4x32xf32>
    %cst_1053 = arith.constant dense<0.000000e+00> : vector<8x32xf32>
    %1333 = tpu.matmul %1330, %1332, %cst_1053 {dimension_numbers = #tpu.dot_dimension_numbers<[1], [0], [0], [1], [0, 0, 1, 1], [], []>} : vector<8x4xf32>, vector<4x32xf32>, vector<8x32xf32> -> vector<8x32xf32>
    %1334 = arith.addf %1328, %1333 : vector<8x32xf32>
    %c10_1054 = arith.constant 10 : index
    %c0_1055 = arith.constant 0 : index
    %c0_1056 = arith.constant 0 : index
    %1335 = vector.load %arg4[%c10_1054, %c0_1055, %c0_1056] : memref<12x8x4xf32, #tpu.memory_space<vmem>>, vector<1x8x4xf32>
    %1336 = vector.shape_cast %1335 : vector<1x8x4xf32> to vector<8x4xf32>
    %1337 = vector.extract_strided_slice %1308 {offsets = [0, 1], sizes = [4, 32], strides = [1, 1]} : vector<4x34xbf16> to vector<4x32xbf16>
    %1338 = arith.extf %1337 : vector<4x32xbf16> to vector<4x32xf32>
    %cst_1057 = arith.constant dense<0.000000e+00> : vector<8x32xf32>
    %1339 = tpu.matmul %1336, %1338, %cst_1057 {dimension_numbers = #tpu.dot_dimension_numbers<[1], [0], [0], [1], [0, 0, 1, 1], [], []>} : vector<8x4xf32>, vector<4x32xf32>, vector<8x32xf32> -> vector<8x32xf32>
    %1340 = arith.addf %1334, %1339 : vector<8x32xf32>
    %c11_1058 = arith.constant 11 : index
    %c0_1059 = arith.constant 0 : index
    %c0_1060 = arith.constant 0 : index
    %1341 = vector.load %arg4[%c11_1058, %c0_1059, %c0_1060] : memref<12x8x4xf32, #tpu.memory_space<vmem>>, vector<1x8x4xf32>
    %1342 = vector.shape_cast %1341 : vector<1x8x4xf32> to vector<8x4xf32>
    %1343 = vector.extract_strided_slice %1308 {offsets = [0, 2], sizes = [4, 32], strides = [1, 1]} : vector<4x34xbf16> to vector<4x32xbf16>
    %1344 = arith.extf %1343 : vector<4x32xbf16> to vector<4x32xf32>
    %cst_1061 = arith.constant dense<0.000000e+00> : vector<8x32xf32>
    %1345 = tpu.matmul %1342, %1344, %cst_1061 {dimension_numbers = #tpu.dot_dimension_numbers<[1], [0], [0], [1], [0, 0, 1, 1], [], []>} : vector<8x4xf32>, vector<4x32xf32>, vector<8x32xf32> -> vector<8x32xf32>
    %1346 = arith.addf %1340, %1345 : vector<8x32xf32>
    %c0_1062 = arith.constant 0 : index
    %c0_1063 = arith.constant 0 : index
    %c928 = arith.constant 928 : index
    %1347 = vector.load %arg6[%c0_1062, %c0_1063, %c928] : memref<1x8x1024xf32, #tpu.memory_space<vmem>>, vector<1x8x32xf32>
    %1348 = vector.shape_cast %1347 : vector<1x8x32xf32> to vector<8x32xf32>
    %1349 = vector.shape_cast %1346 : vector<8x32xf32> to vector<1x8x32xf32>
    tpu.vector_store %arg6[%c0_1062, %c0_1063, %c928], %1349 {strides = array<i32>} : memref<1x8x1024xf32, #tpu.memory_space<vmem>>, vector<1x8x32xf32>,
    %c0_1064 = arith.constant 0 : index
    %c0_1065 = arith.constant 0 : index
    %c15_1066 = arith.constant 15 : index
    %c0_1067 = arith.constant 0 : index
    %1350 = vector.load %arg2[%c0_1064, %c0_1065, %c15_1066, %c0_1067] : memref<1x4x16x34xbf16, #tpu.memory_space<vmem>>, vector<1x4x1x34xbf16>
    %1351 = vector.shape_cast %1350 : vector<1x4x1x34xbf16> to vector<4x34xbf16>
    %c0_1068 = arith.constant 0 : index
    %c0_1069 = arith.constant 0 : index
    %c0_1070 = arith.constant 0 : index
    %c0_1071 = arith.constant 0 : index
    %1352 = vector.load %arg3[%c0_1068, %c0_1069, %c0_1070, %c0_1071] : memref<1x4x16x34xbf16, #tpu.memory_space<vmem>>, vector<1x4x1x34xbf16>
    %1353 = vector.shape_cast %1352 : vector<1x4x1x34xbf16> to vector<4x34xbf16>
    %c0_1072 = arith.constant 0 : index
    %c0_1073 = arith.constant 0 : index
    %1354 = vector.load %arg5[%c0_1072, %c0_1073] : memref<8x1xf32, #tpu.memory_space<vmem>>, vector<8x1xf32>
    %c0_1074 = arith.constant 0 : index
    %c0_1075 = arith.constant 0 : index
    %c0_1076 = arith.constant 0 : index
    %1355 = vector.load %arg4[%c0_1074, %c0_1075, %c0_1076] : memref<12x8x4xf32, #tpu.memory_space<vmem>>, vector<1x8x4xf32>
    %1356 = vector.shape_cast %1355 : vector<1x8x4xf32> to vector<8x4xf32>
    %1357 = vector.extract_strided_slice %1351 {offsets = [0, 0], sizes = [4, 32], strides = [1, 1]} : vector<4x34xbf16> to vector<4x32xbf16>
    %1358 = arith.extf %1357 : vector<4x32xbf16> to vector<4x32xf32>
    %cst_1077 = arith.constant dense<0.000000e+00> : vector<8x32xf32>
    %1359 = tpu.matmul %1356, %1358, %cst_1077 {dimension_numbers = #tpu.dot_dimension_numbers<[1], [0], [0], [1], [0, 0, 1, 1], [], []>} : vector<8x4xf32>, vector<4x32xf32>, vector<8x32xf32> -> vector<8x32xf32>
    %1360 = vector.broadcast %1354 : vector<8x1xf32> to vector<8x32xf32>
    %1361 = arith.addf %1360, %1359 : vector<8x32xf32>
    %c1_1078 = arith.constant 1 : index
    %c0_1079 = arith.constant 0 : index
    %c0_1080 = arith.constant 0 : index
    %1362 = vector.load %arg4[%c1_1078, %c0_1079, %c0_1080] : memref<12x8x4xf32, #tpu.memory_space<vmem>>, vector<1x8x4xf32>
    %1363 = vector.shape_cast %1362 : vector<1x8x4xf32> to vector<8x4xf32>
    %1364 = vector.extract_strided_slice %1351 {offsets = [0, 1], sizes = [4, 32], strides = [1, 1]} : vector<4x34xbf16> to vector<4x32xbf16>
    %1365 = arith.extf %1364 : vector<4x32xbf16> to vector<4x32xf32>
    %cst_1081 = arith.constant dense<0.000000e+00> : vector<8x32xf32>
    %1366 = tpu.matmul %1363, %1365, %cst_1081 {dimension_numbers = #tpu.dot_dimension_numbers<[1], [0], [0], [1], [0, 0, 1, 1], [], []>} : vector<8x4xf32>, vector<4x32xf32>, vector<8x32xf32> -> vector<8x32xf32>
    %1367 = arith.addf %1361, %1366 : vector<8x32xf32>
    %c2_1082 = arith.constant 2 : index
    %c0_1083 = arith.constant 0 : index
    %c0_1084 = arith.constant 0 : index
    %1368 = vector.load %arg4[%c2_1082, %c0_1083, %c0_1084] : memref<12x8x4xf32, #tpu.memory_space<vmem>>, vector<1x8x4xf32>
    %1369 = vector.shape_cast %1368 : vector<1x8x4xf32> to vector<8x4xf32>
    %1370 = vector.extract_strided_slice %1351 {offsets = [0, 2], sizes = [4, 32], strides = [1, 1]} : vector<4x34xbf16> to vector<4x32xbf16>
    %1371 = arith.extf %1370 : vector<4x32xbf16> to vector<4x32xf32>
    %cst_1085 = arith.constant dense<0.000000e+00> : vector<8x32xf32>
    %1372 = tpu.matmul %1369, %1371, %cst_1085 {dimension_numbers = #tpu.dot_dimension_numbers<[1], [0], [0], [1], [0, 0, 1, 1], [], []>} : vector<8x4xf32>, vector<4x32xf32>, vector<8x32xf32> -> vector<8x32xf32>
    %1373 = arith.addf %1367, %1372 : vector<8x32xf32>
    %c3_1086 = arith.constant 3 : index
    %c0_1087 = arith.constant 0 : index
    %c0_1088 = arith.constant 0 : index
    %1374 = vector.load %arg4[%c3_1086, %c0_1087, %c0_1088] : memref<12x8x4xf32, #tpu.memory_space<vmem>>, vector<1x8x4xf32>
    %1375 = vector.shape_cast %1374 : vector<1x8x4xf32> to vector<8x4xf32>
    %1376 = vector.extract_strided_slice %1353 {offsets = [0, 0], sizes = [4, 32], strides = [1, 1]} : vector<4x34xbf16> to vector<4x32xbf16>
    %1377 = arith.extf %1376 : vector<4x32xbf16> to vector<4x32xf32>
    %cst_1089 = arith.constant dense<0.000000e+00> : vector<8x32xf32>
    %1378 = tpu.matmul %1375, %1377, %cst_1089 {dimension_numbers = #tpu.dot_dimension_numbers<[1], [0], [0], [1], [0, 0, 1, 1], [], []>} : vector<8x4xf32>, vector<4x32xf32>, vector<8x32xf32> -> vector<8x32xf32>
    %1379 = arith.addf %1373, %1378 : vector<8x32xf32>
    %c4_1090 = arith.constant 4 : index
    %c0_1091 = arith.constant 0 : index
    %c0_1092 = arith.constant 0 : index
    %1380 = vector.load %arg4[%c4_1090, %c0_1091, %c0_1092] : memref<12x8x4xf32, #tpu.memory_space<vmem>>, vector<1x8x4xf32>
    %1381 = vector.shape_cast %1380 : vector<1x8x4xf32> to vector<8x4xf32>
    %1382 = vector.extract_strided_slice %1353 {offsets = [0, 1], sizes = [4, 32], strides = [1, 1]} : vector<4x34xbf16> to vector<4x32xbf16>
    %1383 = arith.extf %1382 : vector<4x32xbf16> to vector<4x32xf32>
    %cst_1093 = arith.constant dense<0.000000e+00> : vector<8x32xf32>
    %1384 = tpu.matmul %1381, %1383, %cst_1093 {dimension_numbers = #tpu.dot_dimension_numbers<[1], [0], [0], [1], [0, 0, 1, 1], [], []>} : vector<8x4xf32>, vector<4x32xf32>, vector<8x32xf32> -> vector<8x32xf32>
    %1385 = arith.addf %1379, %1384 : vector<8x32xf32>
    %c5_1094 = arith.constant 5 : index
    %c0_1095 = arith.constant 0 : index
    %c0_1096 = arith.constant 0 : index
    %1386 = vector.load %arg4[%c5_1094, %c0_1095, %c0_1096] : memref<12x8x4xf32, #tpu.memory_space<vmem>>, vector<1x8x4xf32>
    %1387 = vector.shape_cast %1386 : vector<1x8x4xf32> to vector<8x4xf32>
    %1388 = vector.extract_strided_slice %1353 {offsets = [0, 2], sizes = [4, 32], strides = [1, 1]} : vector<4x34xbf16> to vector<4x32xbf16>
    %1389 = arith.extf %1388 : vector<4x32xbf16> to vector<4x32xf32>
    %cst_1097 = arith.constant dense<0.000000e+00> : vector<8x32xf32>
    %1390 = tpu.matmul %1387, %1389, %cst_1097 {dimension_numbers = #tpu.dot_dimension_numbers<[1], [0], [0], [1], [0, 0, 1, 1], [], []>} : vector<8x4xf32>, vector<4x32xf32>, vector<8x32xf32> -> vector<8x32xf32>
    %1391 = arith.addf %1385, %1390 : vector<8x32xf32>
    %c0_1098 = arith.constant 0 : index
    %c0_1099 = arith.constant 0 : index
    %c960 = arith.constant 960 : index
    %1392 = vector.load %arg6[%c0_1098, %c0_1099, %c960] : memref<1x8x1024xf32, #tpu.memory_space<vmem>>, vector<1x8x32xf32>
    %1393 = vector.shape_cast %1392 : vector<1x8x32xf32> to vector<8x32xf32>
    %1394 = vector.shape_cast %1391 : vector<8x32xf32> to vector<1x8x32xf32>
    tpu.vector_store %arg6[%c0_1098, %c0_1099, %c960], %1394 {strides = array<i32>} : memref<1x8x1024xf32, #tpu.memory_space<vmem>>, vector<1x8x32xf32>,
    %c0_1100 = arith.constant 0 : index
    %c0_1101 = arith.constant 0 : index
    %c0_1102 = arith.constant 0 : index
    %c0_1103 = arith.constant 0 : index
    %1395 = vector.load %arg3[%c0_1100, %c0_1101, %c0_1102, %c0_1103] : memref<1x4x16x34xbf16, #tpu.memory_space<vmem>>, vector<1x4x1x34xbf16>
    %1396 = vector.shape_cast %1395 : vector<1x4x1x34xbf16> to vector<4x34xbf16>
    %c0_1104 = arith.constant 0 : index
    %c0_1105 = arith.constant 0 : index
    %c1_1106 = arith.constant 1 : index
    %c0_1107 = arith.constant 0 : index
    %1397 = vector.load %arg3[%c0_1104, %c0_1105, %c1_1106, %c0_1107] : memref<1x4x16x34xbf16, #tpu.memory_space<vmem>>, vector<1x4x1x34xbf16>
    %1398 = vector.shape_cast %1397 : vector<1x4x1x34xbf16> to vector<4x34xbf16>
    %c0_1108 = arith.constant 0 : index
    %c0_1109 = arith.constant 0 : index
    %1399 = vector.load %arg5[%c0_1108, %c0_1109] : memref<8x1xf32, #tpu.memory_space<vmem>>, vector<8x1xf32>
    %c6_1110 = arith.constant 6 : index
    %c0_1111 = arith.constant 0 : index
    %c0_1112 = arith.constant 0 : index
    %1400 = vector.load %arg4[%c6_1110, %c0_1111, %c0_1112] : memref<12x8x4xf32, #tpu.memory_space<vmem>>, vector<1x8x4xf32>
    %1401 = vector.shape_cast %1400 : vector<1x8x4xf32> to vector<8x4xf32>
    %1402 = vector.extract_strided_slice %1396 {offsets = [0, 0], sizes = [4, 32], strides = [1, 1]} : vector<4x34xbf16> to vector<4x32xbf16>
    %1403 = arith.extf %1402 : vector<4x32xbf16> to vector<4x32xf32>
    %cst_1113 = arith.constant dense<0.000000e+00> : vector<8x32xf32>
    %1404 = tpu.matmul %1401, %1403, %cst_1113 {dimension_numbers = #tpu.dot_dimension_numbers<[1], [0], [0], [1], [0, 0, 1, 1], [], []>} : vector<8x4xf32>, vector<4x32xf32>, vector<8x32xf32> -> vector<8x32xf32>
    %1405 = vector.broadcast %1399 : vector<8x1xf32> to vector<8x32xf32>
    %1406 = arith.addf %1405, %1404 : vector<8x32xf32>
    %c7_1114 = arith.constant 7 : index
    %c0_1115 = arith.constant 0 : index
    %c0_1116 = arith.constant 0 : index
    %1407 = vector.load %arg4[%c7_1114, %c0_1115, %c0_1116] : memref<12x8x4xf32, #tpu.memory_space<vmem>>, vector<1x8x4xf32>
    %1408 = vector.shape_cast %1407 : vector<1x8x4xf32> to vector<8x4xf32>
    %1409 = vector.extract_strided_slice %1396 {offsets = [0, 1], sizes = [4, 32], strides = [1, 1]} : vector<4x34xbf16> to vector<4x32xbf16>
    %1410 = arith.extf %1409 : vector<4x32xbf16> to vector<4x32xf32>
    %cst_1117 = arith.constant dense<0.000000e+00> : vector<8x32xf32>
    %1411 = tpu.matmul %1408, %1410, %cst_1117 {dimension_numbers = #tpu.dot_dimension_numbers<[1], [0], [0], [1], [0, 0, 1, 1], [], []>} : vector<8x4xf32>, vector<4x32xf32>, vector<8x32xf32> -> vector<8x32xf32>
    %1412 = arith.addf %1406, %1411 : vector<8x32xf32>
    %c8_1118 = arith.constant 8 : index
    %c0_1119 = arith.constant 0 : index
    %c0_1120 = arith.constant 0 : index
    %1413 = vector.load %arg4[%c8_1118, %c0_1119, %c0_1120] : memref<12x8x4xf32, #tpu.memory_space<vmem>>, vector<1x8x4xf32>
    %1414 = vector.shape_cast %1413 : vector<1x8x4xf32> to vector<8x4xf32>
    %1415 = vector.extract_strided_slice %1396 {offsets = [0, 2], sizes = [4, 32], strides = [1, 1]} : vector<4x34xbf16> to vector<4x32xbf16>
    %1416 = arith.extf %1415 : vector<4x32xbf16> to vector<4x32xf32>
    %cst_1121 = arith.constant dense<0.000000e+00> : vector<8x32xf32>
    %1417 = tpu.matmul %1414, %1416, %cst_1121 {dimension_numbers = #tpu.dot_dimension_numbers<[1], [0], [0], [1], [0, 0, 1, 1], [], []>} : vector<8x4xf32>, vector<4x32xf32>, vector<8x32xf32> -> vector<8x32xf32>
    %1418 = arith.addf %1412, %1417 : vector<8x32xf32>
    %c9_1122 = arith.constant 9 : index
    %c0_1123 = arith.constant 0 : index
    %c0_1124 = arith.constant 0 : index
    %1419 = vector.load %arg4[%c9_1122, %c0_1123, %c0_1124] : memref<12x8x4xf32, #tpu.memory_space<vmem>>, vector<1x8x4xf32>
    %1420 = vector.shape_cast %1419 : vector<1x8x4xf32> to vector<8x4xf32>
    %1421 = vector.extract_strided_slice %1398 {offsets = [0, 0], sizes = [4, 32], strides = [1, 1]} : vector<4x34xbf16> to vector<4x32xbf16>
    %1422 = arith.extf %1421 : vector<4x32xbf16> to vector<4x32xf32>
    %cst_1125 = arith.constant dense<0.000000e+00> : vector<8x32xf32>
    %1423 = tpu.matmul %1420, %1422, %cst_1125 {dimension_numbers = #tpu.dot_dimension_numbers<[1], [0], [0], [1], [0, 0, 1, 1], [], []>} : vector<8x4xf32>, vector<4x32xf32>, vector<8x32xf32> -> vector<8x32xf32>
    %1424 = arith.addf %1418, %1423 : vector<8x32xf32>
    %c10_1126 = arith.constant 10 : index
    %c0_1127 = arith.constant 0 : index
    %c0_1128 = arith.constant 0 : index
    %1425 = vector.load %arg4[%c10_1126, %c0_1127, %c0_1128] : memref<12x8x4xf32, #tpu.memory_space<vmem>>, vector<1x8x4xf32>
    %1426 = vector.shape_cast %1425 : vector<1x8x4xf32> to vector<8x4xf32>
    %1427 = vector.extract_strided_slice %1398 {offsets = [0, 1], sizes = [4, 32], strides = [1, 1]} : vector<4x34xbf16> to vector<4x32xbf16>
    %1428 = arith.extf %1427 : vector<4x32xbf16> to vector<4x32xf32>
    %cst_1129 = arith.constant dense<0.000000e+00> : vector<8x32xf32>
    %1429 = tpu.matmul %1426, %1428, %cst_1129 {dimension_numbers = #tpu.dot_dimension_numbers<[1], [0], [0], [1], [0, 0, 1, 1], [], []>} : vector<8x4xf32>, vector<4x32xf32>, vector<8x32xf32> -> vector<8x32xf32>
    %1430 = arith.addf %1424, %1429 : vector<8x32xf32>
    %c11_1130 = arith.constant 11 : index
    %c0_1131 = arith.constant 0 : index
    %c0_1132 = arith.constant 0 : index
    %1431 = vector.load %arg4[%c11_1130, %c0_1131, %c0_1132] : memref<12x8x4xf32, #tpu.memory_space<vmem>>, vector<1x8x4xf32>
    %1432 = vector.shape_cast %1431 : vector<1x8x4xf32> to vector<8x4xf32>
    %1433 = vector.extract_strided_slice %1398 {offsets = [0, 2], sizes = [4, 32], strides = [1, 1]} : vector<4x34xbf16> to vector<4x32xbf16>
    %1434 = arith.extf %1433 : vector<4x32xbf16> to vector<4x32xf32>
    %cst_1133 = arith.constant dense<0.000000e+00> : vector<8x32xf32>
    %1435 = tpu.matmul %1432, %1434, %cst_1133 {dimension_numbers = #tpu.dot_dimension_numbers<[1], [0], [0], [1], [0, 0, 1, 1], [], []>} : vector<8x4xf32>, vector<4x32xf32>, vector<8x32xf32> -> vector<8x32xf32>
    %1436 = arith.addf %1430, %1435 : vector<8x32xf32>
    %c0_1134 = arith.constant 0 : index
    %c0_1135 = arith.constant 0 : index
    %c992 = arith.constant 992 : index
    %1437 = vector.load %arg6[%c0_1134, %c0_1135, %c992] : memref<1x8x1024xf32, #tpu.memory_space<vmem>>, vector<1x8x32xf32>
    %1438 = vector.shape_cast %1437 : vector<1x8x32xf32> to vector<8x32xf32>
    %1439 = vector.shape_cast %1436 : vector<8x32xf32> to vector<1x8x32xf32>
    tpu.vector_store %arg6[%c0_1134, %c0_1135, %c992], %1439 {strides = array<i32>} : memref<1x8x1024xf32, #tpu.memory_space<vmem>>, vector<1x8x32xf32>,
    return
  }
  func.func @transform_0(%arg0: i32, %arg1: i32) -> (i32, i32, i32, i32) {
    %c0_i32 = arith.constant 0 : i32
    %c0_i32_0 = arith.constant 0 : i32
    %c0_i32_1 = arith.constant 0 : i32
    return %arg0, %c0_i32, %arg1, %c0_i32_0 : i32, i32, i32, i32
  }
  func.func @transform_1(%arg0: i32, %arg1: i32) -> (i32, i32, i32, i32) {
    %c1_i32 = arith.constant 1 : i32
    %0 = arith.addi %arg1, %c1_i32 : i32
    %c0_i32 = arith.constant 0 : i32
    %c0_i32_0 = arith.constant 0 : i32
    %c0_i32_1 = arith.constant 0 : i32
    return %arg0, %c0_i32, %0, %c0_i32_0 : i32, i32, i32, i32
  }
  func.func @transform_2(%arg0: i32, %arg1: i32) -> (i32, i32, i32) {
    %c0_i32 = arith.constant 0 : i32
    %c0_i32_0 = arith.constant 0 : i32
    %c0_i32_1 = arith.constant 0 : i32
    %c0_i32_2 = arith.constant 0 : i32
    return %c0_i32, %c0_i32_0, %c0_i32_1 : i32, i32, i32
  }
  func.func @transform_3(%arg0: i32, %arg1: i32) -> (i32, i32) {
    %c0_i32 = arith.constant 0 : i32
    %c0_i32_0 = arith.constant 0 : i32
    %c0_i32_1 = arith.constant 0 : i32
    return %c0_i32, %c0_i32_0 : i32, i32
  }
  func.func @transform_4(%arg0: i32, %arg1: i32) -> (i32, i32, i32) {
    %c0_i32 = arith.constant 0 : i32
    %c0_i32_0 = arith.constant 0 : i32
    return %arg0, %c0_i32, %arg1 : i32, i32, i32
  }
}

</mosaic_0001>

<bundles_post_ra>
// kernel: tpu_custom_call.1
= control target key start
LH: loop header
LB: loop body
LE: loop exit
PB: predicated region body
PF: predicated region fallthrough
CT: control target
= control target key end

     0   :  { %9 = vsyncpa [#allocation5], 0  ;;  %s22844_s0 = inlined_call_operand.vmem [shape: bf16[2,4,18,34], index: 0, kind: input, shape index: {}]   ;;  %s22845_s1 = inlined_call_operand.vmem [shape: bf16[2,4,18,34], index: 1, kind: input, shape index: {}]   ;;  %s22846_s2 = inlined_call_operand.vmem [shape: f32[12,8,4], index: 2, kind: input, shape index: {}]   ;;  %s22847_s3 = inlined_call_operand.vmem [shape: f32[8,1], index: 3, kind: input, shape index: {}]   ;;  %s22848_s4 = inlined_call_operand.hbm [shape: f32[2,8,1024], index: 4, kind: output, shape index: {}]  }
   0x1   :  { %11 = vsyncpa [#allocation5 + $0x1], 0  ;;  %s20144_s15 = smov 0   ;;  %s20146_s16 = smov 0  }
   0x2   :  { %s20148_s17 = smov 0   ;;  %s20150_s18 = smov 0  }
   0x3   :  { %s20152_s19 = smov 0   ;;  %s20154_s20 = smov 0  }
   0x4 LB: > { %s17248_s21 = sadd.s32 4294967295, %s20096_s20   ;;  %s17249_s22 = sadd.s32 4294967294, %s20096_s20   ;;  %s20096_s20 = sphi %s20154_s20, %s17_s20   ;;  %s20092_s19 = sphi %s20152_s19, %s22971_s19   ;;  %s20088_s18 = sphi %s20150_s18, %s22970_s18   ;;  %s20084_s17 = sphi %s20148_s17, %s22969_s17   ;;  %s20080_s16 = sphi %s20146_s16, %s22968_s16   ;;  %s20076_s15 = sphi %s20144_s15, %s22967_s15  }
   0x5   : > { %s29_s23 = sadd.s32 1, %s20092_s19  ;;  %s38_s24 = sadd.s32 1, %s20084_s17 }
   0x6   : > { %p31_p0 = scmp.ge.s32.totalorder %s29_s23, 2  ;;  %p45_p1 = scmp.ne.s32.totalorder %s20084_s17, %s20080_s16 }
   0x7   : > { %p46_p2 = scmp.eq.s32.totalorder %s20096_s20, 0  ;;  %p149_p3 = scmp.eq.s32.totalorder %s17248_s21, 1 }
   0x8   : > { %s22973_s23 = smov (%p31_p0, %s29_s23), 0  ;;  %p154_p6 = scmp.ne.s32.totalorder %s20080_s16, %s20076_s15 }
   0x9   : > { %p20183_p4 = por %p46_p2, %p45_p1  ;;  %p20187_p5 = por %p149_p3, %p45_p1 }
   0xa   : > { %s33_s27 = ssub.s32 %s20092_s19, %s22973_s23  ;;  %p155_p8 = scmp.eq.s32.totalorder %s17249_s22, 1 }
   0xb   : > { %p36_p7 = scmp.eq.s32.totalorder %s33_s27, 0  ;;  %p17251_p10 = scmp.ge.s32.totalorder %s20096_s20, 2 }
   0xc   : > { %p20198_p9 = por %p155_p8, %p154_p6 }
   0xd   : > { %s20196_s28 = scalar_select %p36_p7, %s20084_s17, %s38_s24  }
   0xe   : > { %177 = sbr.rel (%p17251_p10) target bundleno = 60 (0x3c), region = 24 }
  0x15   : > { %180 = sbr.rel (!%p20183_p4) target bundleno = 42 (0x2a), region = 28  ;;  %s182_s30 = sand.u32 (%p20183_p4), 1, %s20084_s17  }
  0x16   : > { %s19534_s5 = smul.u32 (%p20183_p4), 48, %s20092_s19  ;;  %s17252_s6 = sshll.u32 (%p20183_p4), %s182_s30, 5 }
  0x17   : > { %s184_s10 = scalar_lea.vmem (%p20183_p4), [#allocation2], %s17252_s6   ;;  %s20098_s11 = smov (%p20183_p4), 0  }
  0x18   : > { %s194_s9 = scalar_lea.vmem (%p20183_p4), %s22844_s0, %s19534_s5  }
  0x1c LB: >> { %v213_v0 = vld [vmem:[%s194_s9] sm:$0xf]  ;;  %v215_v1 = vld [vmem:[%s194_s9 + $0x4] sm:$0xf]  ;;  %v217_v2 = vld [vmem:[%s194_s9 + $0xc] sm:$0xf]  ;;  %s20100_s11 = sphi %s20098_s11, %s207_s11  }
  0x1d   : >> { %214 = vst [vmem:[%s184_s10] sm:$0xf] %v213_v0  ;;  %216 = vst [vmem:[%s184_s10 + $0x4] sm:$0xf] %v215_v1  ;;  %v219_v3 = vld [vmem:[%s194_s9 + $0x10] sm:$0xf]  ;;  %s207_s11 = sadd.s32 1, %s20100_s11  }
  0x1e   : >> { %218 = vst [vmem:[%s184_s10 + $0x8] sm:$0xf] %v217_v2  ;;  %v221_v4 = vld [vmem:[%s194_s9 + $0x18] sm:$0xf]  ;;  %v223_v5 = vld [vmem:[%s194_s9 + $0x1c] sm:$0xf] }
  0x1f   : >> { %220 = vst [vmem:[%s184_s10 + $0xc] sm:$0xf] %v219_v3  ;;  %222 = vst [vmem:[%s184_s10 + $0x10] sm:$0xf] %v221_v4  ;;  %v225_v6 = vld [vmem:[%s194_s9 + $0x24] sm:$0xf] }
  0x20   : >> { %224 = vst [vmem:[%s184_s10 + $0x14] sm:$0xf] %v223_v5  ;;  %v227_v7 = vld [vmem:[%s194_s9 + $0x28] sm:$0xf]  ;;  %226 = vst [vmem:[%s184_s10 + $0x18] sm:$0xf] %v225_v6 }
  0x21   : >> { %228 = vst [vmem:[%s184_s10 + $0x1c] sm:$0xf] %v227_v7  ;;  %p206_p11 = scmp.ge.s32.totalorder %s207_s11, 1 }
  0x23   : > { %209 = sbr.rel (!%p206_p11) target bundleno = 28 (0x1c), region = 247 }
  0x2a PF: > { %377 = sbr.rel (!%p20183_p4) target bundleno = 60 (0x3c), region = 90  ;;  %s379_s12 = sand.u32 (%p20183_p4), 1, %s20084_s17  }
  0x2b   : > { %s17263_s13 = smul.u32 (%p20183_p4), 48, %s20092_s19  ;;  %s17262_s14 = sshll.u32 (%p20183_p4), %s379_s12, 5 }
  0x2c   : > { %s381_s30 = scalar_lea.vmem (%p20183_p4), [#allocation3], %s17262_s14   ;;  %s20106_s6 = smov (%p20183_p4), 0  }
  0x2d   : > { %s17088_s24 = scalar_lea.vmem (%p20183_p4), %s22845_s1, %s17263_s13 }
  0x2e   : > { %s17127_s27 = scalar_lea.vmem (%p20183_p4), %s17088_s24, 8  }
  0x2f   : > { %s20102_s5 = smov (%p20183_p4), %s17127_s27  }
  0x31 LB: >> { %v450_v8 = vld [vmem:[%s20104_s5] sm:$0xf]  ;;  %v452_v9 = vld [vmem:[%s20104_s5 + $0xc] sm:$0xf]  ;;  %v454_v10 = vld [vmem:[%s20104_s5 + $0x18] sm:$0xf]  ;;  %s20108_s6 = sphi %s20106_s6, %s444_s6   ;;  %s20104_s5 = sphi %s20102_s5, %s20103_s5  }
  0x32   : >> { %451 = vst [vmem:[%s381_s30] sm:$0xf] %v450_v8  ;;  %453 = vst [vmem:[%s381_s30 + $0x8] sm:$0xf] %v452_v9  ;;  %v456_v11 = vld [vmem:[%s20104_s5 + $0x24] sm:$0xf]  ;;  %s444_s6 = sadd.s32 1, %s20108_s6   ;;  %s20103_s5 = smov %s17127_s27  }
  0x33   : >> { %455 = vst [vmem:[%s381_s30 + $0x10] sm:$0xf] %v454_v10  ;;  %457 = vst [vmem:[%s381_s30 + $0x18] sm:$0xf] %v456_v11  ;;  %p443_p12 = scmp.ge.s32.totalorder %s444_s6, 1 }
  0x35   : > { %446 = sbr.rel (!%p443_p12) target bundleno = 49 (0x31), region = 280 }
  0x3c PF: > { %p17268_p13 = scmp.ge.s32.totalorder %s20096_s20, 1  ;;  %p574_p0 = scmp.lt.s32.totalorder %s20096_s20, 3 }
  0x3e   : > { %p575_p1 = pnand %p17268_p13, %p574_p0 }
  0x40   : > { %578 = sbr.rel (%p575_p1) target bundleno = 1242 (0x4da), region = 152 }
  0x47   : > { %s20222_s25 = sand.u32 1, %s20080_s16   ;;  %v22849_v12 = vmov 0.0   ;;  %vm644_vm0 = vcmask 1041409   ;;  %vm647_vm1 = vcmask 1042434   ;;  %vm650_vm2 = vcmask 1043459   ;;  %v634_v47 = vld [vmem:[%s22846_s2] sm:$0xff] }
  0x48   : > { %s17269_s7 = sshll.u32 %s20222_s25, 5  ;;  %18222 = vmatprep.subr.mxu0 %v22849_v12  ;;  %18252 = vmatprep.subr.mxu1 %v22849_v12  ;;  %vm656_vm3 = vcmask 1043456   ;;  %vm20111_vm4 = vmmov 0   ;;  %vm652_vm5 = vcmask 31744   ;;  %v17289_v48 = vld [vmem:[%s22846_s2 + $0x30] sm:$0xff]  ;;  %s20112_s13 = smov 127  }
  0x49   : > { %18224 = vmatprep.mubr.msk.f32.mxu0 %vm20111_vm4, %v22849_v12  ;;  %18254 = vmatprep.mubr.msk.f32.mxu1 %vm20111_vm4, %v22849_v12  ;;  %s20233_s8 = scalar_lea.vmem [#allocation2], %s17269_s7  ;;  %s20113_s14 = smov 126   ;;  %vm1139_vm6 = vcmask 261120   ;;  %vm1663_vm7 = vcmask 523520   ;;  %vm2181_vm8 = vcmask 785920   ;;  %vm2687_vm9 = vcmask 1048320  }
  0x4a   : > { %v629_v13 = vld [vmem:[%s20233_s8] sm:$0x1]  ;;  %v630_v14 = vld [vmem:[%s20233_s8 + $0x8] sm:$0x1]  ;;  %v631_v15 = vld [vmem:[%s20233_s8 + $0x10] sm:$0x1] }
  0x4b   : > { %v632_v16 = vld [vmem:[%s20233_s8 + $0x18] sm:$0x1]  ;;  %v635_v17 = vunpack.c.l.bf16 %v629_v13  ;;  %v636_v18 = vunpack.c.l.bf16 %v630_v14  ;;  %v637_v19 = vunpack.c.l.bf16 %v631_v15  ;;  %v1141_v20 = vld [vmem:[%s20233_s8] sm:$0x1]  ;;  %v1142_v21 = vld [vmem:[%s20233_s8 + $0x8] sm:$0x1] }
  0x4c   : > { %v638_v22 = vunpack.c.l.bf16 %v632_v16  ;;  %v1143_v23 = vld [vmem:[%s20233_s8 + $0x10] sm:$0x1]  ;;  %v1144_v24 = vld [vmem:[%s20233_s8 + $0x18] sm:$0x1]  ;;  %v1152_v25 = vunpack.c.l.bf16 %v1141_v20  ;;  %v1153_v26 = vunpack.c.l.bf16 %v1142_v21  ;;  %v1145_v31 = vld [vmem:[%s20233_s8] sm:$0x2] }
  0x4d   : > { %v643_v27 = vrot.slane %v636_v18, 7  ;;  %v646_v28 = vrot.slane %v637_v19, 6  ;;  %v1154_v29 = vunpack.c.l.bf16 %v1143_v23  ;;  %v1155_v30 = vunpack.c.l.bf16 %v1144_v24  ;;  %v1146_v32 = vld [vmem:[%s20233_s8 + $0x8] sm:$0x2]  ;;  %v1147_v37 = vld [vmem:[%s20233_s8 + $0x10] sm:$0x2] }
  0x4e   : > { %v649_v33 = vrot.slane %v638_v22, 5  ;;  %v1160_v34 = vrot.slane %v1152_v25, 1  ;;  %v897_v35 = vrot.slane %v635_v17, 1  ;;  %v899_v36 = vrot.slane %v637_v19, 7  ;;  %v1148_v42 = vld [vmem:[%s20233_s8 + $0x18] sm:$0x2] }
  0x4f   : > { %v645_v38 = vsel %vm644_vm0, %v643_v27, %v635_v17  ;;  %v1162_v39 = vrot.slane %v1154_v29, 7  ;;  %v1164_v40 = vrot.slane %v1155_v30, 6  ;;  %v901_v41 = vrot.slane %v638_v22, 6  ;;  %v1665_v53 = vld [vmem:[%s20233_s8] sm:$0x1]  ;;  %s20952_s11 = scalar_lea.vmem [#allocation3], %s17269_s7 }
  0x50   : > { %v648_v43 = vsel %vm647_vm1, %v646_v28, %v645_v38  ;;  %v1161_v44 = vsel %vm644_vm0, %v1153_v26, %v1160_v34  ;;  %v898_v45 = vsel %vm644_vm0, %v636_v18, %v897_v35  ;;  %v1409_v46 = vunpack.c.l.bf16 %v1145_v31  ;;  %v1666_v54 = vld [vmem:[%s20233_s8 + $0x8] sm:$0x1]  ;;  %v1667_v55 = vld [vmem:[%s20233_s8 + $0x10] sm:$0x1]  ;;  %v1668_v60 = vld [vmem:[%s20233_s8 + $0x18] sm:$0x1] }
  0x51   : > { %v651_v49 = vsel %vm650_vm2, %v649_v33, %v648_v43  ;;  %v1163_v50 = vsel %vm647_vm1, %v1162_v39, %v1161_v44  ;;  %v900_v51 = vsel %vm647_vm1, %v899_v36, %v898_v45  ;;  %v1410_v52 = vunpack.c.l.bf16 %v1146_v32  ;;  %v2183_v61 = vld [vmem:[%s20233_s8] sm:$0x2]  ;;  %v2184_v62 = vld [vmem:[%s20233_s8 + $0x8] sm:$0x2]  ;;  %v2185_v2 = vld [vmem:[%s20233_s8 + $0x10] sm:$0x2] }
  0x52   : > { %v1165_v56 = vsel %vm650_vm2, %v1164_v40, %v1163_v50  ;;  %v20265_v57 = vsel %vm650_vm2, %v901_v41, %v900_v51  ;;  %v1411_v58 = vunpack.c.l.bf16 %v1147_v37  ;;  %v1412_v59 = vunpack.c.l.bf16 %v1148_v42  ;;  %18223 = vmatpush3.msk.msra.mxu0 %vm656_vm3, %v651_v49  ;;  %v20275_v7 = vld [vmem:[%s20233_s8 + $0x18] sm:$0x2]  ;;  %v1669_v17 = vld [vmem:[%s20233_s8] sm:$0x2]  ;;  %v1670_v18 = vld [vmem:[%s20233_s8 + $0x8] sm:$0x2] }
  0x53   : > { %v19662_v63 = vpack.i.bf16 %v1165_v56, %v651_v49  ;;  %v1417_v0 = vrot.slane %v1409_v46, 2  ;;  %v1418_v1 = vrot.slane %v1410_v52, 1  ;;  %18253 = vmatpush3.msk.msra.mxu1 %vm656_vm3, %v1165_v56  ;;  %18225 = vmatmul.mubr.msk.f32.vlgmr.msra.gmra.mrb[0].mxu0 %vm652_vm5, %v634_v47  ;;  %v1675_v4 = vunpack.c.l.bf16 %v1665_v53  ;;  %v1671_v23 = vld [vmem:[%s20233_s8 + $0x10] sm:$0x2]  ;;  %v1672_v24 = vld [vmem:[%s20233_s8 + $0x18] sm:$0x2] }
  0x54   : > { %v1421_v3 = vrot.slane %v1412_v59, 7  ;;  %v1676_v5 = vunpack.c.l.bf16 %v1666_v54  ;;  %v1677_v6 = vunpack.c.l.bf16 %v1667_v55  ;;  %18255 = vmatmul.mubr.msk.f32.vlgmr.msra.gmra.mrb[0].mxu1 %vm652_vm5, %v17289_v48  ;;  %18227 = vmatprep.subr.mxu0 %v22849_v12  ;;  %v1678_v9 = vunpack.c.l.bf16 %v1668_v60  ;;  %v2689_v36 = vld [vmem:[%s20233_s8] sm:$0x2]  ;;  %v2690_v37 = vld [vmem:[%s20233_s8 + $0x8] sm:$0x2]  ;;  %s17271_s5 = sshll.u32 %s20222_s25, 6 }
  0x55   : > { %19663 = vrot.lane.b32.xlu0 %v19662_v63, %s20112_s13  ;;  %v1419_v8 = vsel %vm644_vm0, %v1418_v1, %v1417_v0  ;;  %v2189_v10 = vunpack.c.l.bf16 %v2183_v61  ;;  %v2190_v11 = vunpack.c.l.bf16 %v2184_v62  ;;  %18257 = vmatprep.subr.mxu1 %v22849_v12  ;;  %v1683_v14 = vrot.slane %v1675_v4, 1  ;;  %v2691_v42 = vld [vmem:[%s20233_s8 + $0x10] sm:$0x2]  ;;  %v2692_v47 = vld [vmem:[%s20233_s8 + $0x18] sm:$0x2]  ;;  %s21672_s6 = scalar_lea.vmem [#allocation4], %s17271_s5 }
  0x56   : > { %v1420_v13 = vsel %vm647_vm1, %v1411_v58, %v1419_v8  ;;  %v1685_v15 = vrot.slane %v1677_v6, 7  ;;  %v2191_v16 = vunpack.c.l.bf16 %v2185_v2  ;;  %18229 = vmatprep.mubr.msk.f32.mxu0 %vm20111_vm4, %v22849_v12  ;;  %18259 = vmatprep.mubr.msk.f32.mxu1 %vm20111_vm4, %v22849_v12  ;;  %v1687_v20 = vrot.slane %v1678_v9, 6  ;;  %v3190_v51 = vld [vmem:[%s20233_s8] sm:$0x2]  ;;  %v3191_v52 = vld [vmem:[%s20233_s8 + $0x8] sm:$0x2] }
  0x57   : > { %v20290_v19 = vsel %vm650_vm2, %v1421_v3, %v1420_v13  ;;  %v2192_v21 = vunpack.c.l.bf16 %v20275_v7  ;;  %v2197_v22 = vrot.slane %v2189_v10, 2  ;;  %v1684_v26 = vsel %vm644_vm0, %v1676_v5, %v1683_v14  ;;  %v3192_v58 = vld [vmem:[%s20233_s8 + $0x10] sm:$0x2]  ;;  %v3194_v7 = vld [vmem:[%s20233_s8] sm:$0x4]  ;;  %s20115_s9 = smov 32  }
  0x58   : > { %v19672_v25 = vpack.i.bf16 %v20290_v19, %v20265_v57  ;;  %v2198_v27 = vrot.slane %v2190_v11, 1  ;;  %v1686_v28 = vsel %vm647_vm1, %v1685_v15, %v1684_v26  ;;  %v1929_v30 = vunpack.c.l.bf16 %v1669_v17  ;;  %v3195_v13 = vld [vmem:[%s20233_s8 + $0x8] sm:$0x4]  ;;  %v3196_v14 = vld [vmem:[%s20233_s8 + $0x10] sm:$0x4]  ;;  %s17018_s24 = sshll.u32 %s21672_s6, 4  ;;  %s22795_s24 = int_to_ptr.vmem [resolvable:$true] %s17018_s24 }
  0x59   : > { %19668 = vrot.lane.b32.xlu0 %v19662_v63, %s20113_s14  ;;  %v2201_v29 = vrot.slane %v2192_v21, 7  ;;  %v1930_v31 = vunpack.c.l.bf16 %v1670_v18  ;;  %v20302_v32 = vsel %vm650_vm2, %v1687_v20, %v1686_v28  ;;  %v1931_v34 = vunpack.c.l.bf16 %v1671_v23  ;;  %v3193_v63 = vld [vmem:[%s20233_s8 + $0x18] sm:$0x2]  ;;  %v3197_v20 = vld [vmem:[%s20233_s8 + $0x18] sm:$0x4]  ;;  %s19986_s5 = scalar_lea.vmem %s22795_s24, 1024 }
  0x5a   : > { %19673 = vrot.lane.b32.xlu1 %v19672_v25, %s20112_s13  ;;  %v2199_v33 = vsel %vm644_vm0, %v2198_v27, %v2197_v22  ;;  %v1932_v35 = vunpack.c.l.bf16 %v1672_v24  ;;  %v1937_v39 = vrot.slane %v1929_v30, 2  ;;  %v2443_v41 = vrot.slane %v2189_v10, 3  ;;  %v3709_v30 = vld [vmem:[%s20233_s8 + $0x8] sm:$0x2]  ;;  %p19987_p2 = scmp.ne.s32.totalorder %s22795_s24, %s19986_s5 }
  0x5b   : > { %v2200_v38 = vsel %vm647_vm1, %v2191_v16, %v2199_v33  ;;  %v1938_v40 = vrot.slane %v1930_v31, 1  ;;  %v2444_v45 = vrot.slane %v2190_v11, 2  ;;  %v2446_v46 = vrot.slane %v2191_v16, 1  ;;  %v3710_v31 = vld [vmem:[%s20233_s8 + $0x10] sm:$0x2] }
  0x5c   : > { %v20310_v43 = vsel %vm650_vm2, %v2201_v29, %v2200_v38  ;;  %v1941_v44 = vrot.slane %v1932_v35, 7  ;;  %v2695_v50 = vunpack.c.l.bf16 %v2689_v36  ;;  %v2696_v55 = vunpack.c.l.bf16 %v2690_v37  ;;  %v3708_v29 = vld [vmem:[%s20233_s8] sm:$0x2]  ;;  %v3711_v37 = vld [vmem:[%s20233_s8 + $0x18] sm:$0x2]  ;;  %p19988_p3 = pnand %p19987_p2, %p20187_p5 }
  0x5d   : > { %v19682_v48 = vpack.i.bf16 %v20310_v43, %v20302_v32  ;;  %v1939_v49 = vsel %vm644_vm0, %v1938_v40, %v1937_v39  ;;  %v2445_v54 = vsel %vm644_vm0, %v2444_v45, %v2443_v41  ;;  %v2697_v56 = vunpack.c.l.bf16 %v2691_v42  ;;  %v4226_v38 = vld [vmem:[%s20233_s8] sm:$0x4]  ;;  %v4227_v42 = vld [vmem:[%s20233_s8 + $0x8] sm:$0x4] }
  0x5e   : > { %19678 = vrot.lane.b32.xlu1 %v19672_v25, %s20113_s14  ;;  %v1940_v53 = vsel %vm647_vm1, %v1931_v34, %v1939_v49  ;;  %v2447_v60 = vsel %vm647_vm1, %v2446_v46, %v2445_v54  ;;  %v2698_v61 = vunpack.c.l.bf16 %v2692_v47  ;;  %v2703_v62 = vrot.slane %v2695_v50, 2  ;;  %v4229_v49 = vld [vmem:[%s20233_s8 + $0x18] sm:$0x4]  ;;  %p19989_p4 = pneg %p19988_p3 }
  0x5f   : > { %19683 = vrot.lane.b32.xlu0 %v19682_v48, %s20112_s13  ;;  %v20324_v59 = vsel %vm650_vm2, %v1941_v44, %v1940_v53  ;;  %v20329_v0 = vsel %vm650_vm2, %v2192_v21, %v2447_v60  ;;  %v2704_v1 = vrot.slane %v2696_v55, 1  ;;  %v3200_v2 = vunpack.c.l.bf16 %v3190_v51  ;;  %v3712_v60 = vld [vmem:[%s20233_s8] sm:$0x4] }
  0x60   : > { %v3201_v3 = vunpack.c.l.bf16 %v3191_v52  ;;  %v19692_v4 = vpack.i.bf16 %v20329_v0, %v20324_v59  ;;  %v2707_v5 = vrot.slane %v2698_v61, 7  ;;  %v3202_v6 = vunpack.c.l.bf16 %v3192_v58 }
  0x61   : > { %v2705_v8 = vsel %vm644_vm0, %v2704_v1, %v2703_v62  ;;  %v3203_v9 = vunpack.c.l.bf16 %v3193_v63  ;;  %v3208_v10 = vrot.slane %v3200_v2, 3  ;;  %v2949_v17 = vrot.slane %v2695_v50, 3  ;;  %v3713_v2 = vld [vmem:[%s20233_s8 + $0x8] sm:$0x4] }
  0x62   : > { %19688 = vrot.lane.b32.xlu1 %v19682_v48, %s20113_s14  ;;  %v3209_v11 = vrot.slane %v3201_v3, 2  ;;  %v2706_v15 = vsel %vm647_vm1, %v2697_v56, %v2705_v8  ;;  %v3211_v16 = vrot.slane %v3202_v6, 1  ;;  %v2950_v18 = vrot.slane %v2696_v55, 2  ;;  %v4228_v48 = vld [vmem:[%s20233_s8 + $0x10] sm:$0x4] }
  0x63   : > { %19693 = vrot.lane.b32.xlu0 %v19692_v4, %s20112_s13  ;;  %v20342_v21 = vsel %vm650_vm2, %v2707_v5, %v2706_v15  ;;  %v2952_v23 = vrot.slane %v2697_v56, 1  ;;  %v3454_v24 = vunpack.c.l.bf16 %v3194_v7  ;;  %v3455_v27 = vunpack.c.l.bf16 %v3195_v13  ;;  %v3714_v3 = vld [vmem:[%s20233_s8 + $0x10] sm:$0x4]  ;;  %v3715_v7 = vld [vmem:[%s20233_s8 + $0x18] sm:$0x4] }
  0x64   : > { %v3210_v22 = vsel %vm644_vm0, %v3209_v11, %v3208_v10  ;;  %v2951_v26 = vsel %vm644_vm0, %v2950_v18, %v2949_v17  ;;  %v3456_v28 = vunpack.c.l.bf16 %v3196_v14  ;;  %v3457_v35 = vunpack.c.l.bf16 %v3197_v20 }
  0x65   : > { %v3212_v25 = vsel %vm647_vm1, %v3211_v16, %v3210_v22  ;;  %v2953_v34 = vsel %vm647_vm1, %v2952_v23, %v2951_v26  ;;  %v3462_v36 = vrot.slane %v3454_v24, 4  ;;  %v3463_v41 = vrot.slane %v3455_v27, 3  ;;  %v4733_v23 = vld [vmem:[%s20233_s8] sm:$0x4] }
  0x66   : > { %19698 = vrot.lane.b32.xlu1 %v19692_v4, %s20113_s14  ;;  %v20352_v33 = vsel %vm650_vm2, %v3203_v9, %v3212_v25  ;;  %v20360_v40 = vsel %vm650_vm2, %v2698_v61, %v2953_v34  ;;  %v3465_v44 = vrot.slane %v3456_v28, 2  ;;  %v3467_v45 = vrot.slane %v3457_v35, 1  ;;  %v4734_v28 = vld [vmem:[%s20233_s8 + $0x8] sm:$0x4]  ;;  %v4735_v35 = vld [vmem:[%s20233_s8 + $0x10] sm:$0x4] }
  0x67   : > { %v19702_v39 = vpack.i.bf16 %v20352_v33, %v20342_v21  ;;  %v3718_v46 = vunpack.c.l.bf16 %v3708_v29  ;;  %v3719_v47 = vunpack.c.l.bf16 %v3709_v30  ;;  %v3464_v50 = vsel %vm644_vm0, %v3463_v41, %v3462_v36  ;;  %v4736_v36 = vld [vmem:[%s20233_s8 + $0x18] sm:$0x4] }
  0x68   : > { %v3720_v51 = vunpack.c.l.bf16 %v3710_v31  ;;  %v3721_v52 = vunpack.c.l.bf16 %v3711_v37  ;;  %v4232_v53 = vunpack.c.l.bf16 %v4226_v38  ;;  %v3466_v54 = vsel %vm647_vm1, %v3465_v44, %v3464_v50 }
  0x69   : > { %19703 = vrot.lane.b32.xlu0 %v19702_v39, %s20112_s13  ;;  %v3726_v55 = vrot.slane %v3718_v46, 3  ;;  %v3727_v56 = vrot.slane %v3719_v47, 2  ;;  %v4233_v58 = vunpack.c.l.bf16 %v4227_v42  ;;  %v20371_v61 = vsel %vm650_vm2, %v3467_v45, %v3466_v54  ;;  %v5236_v46 = vld [vmem:[%s20233_s8] sm:$0x4]  ;;  %v5237_v47 = vld [vmem:[%s20233_s8 + $0x8] sm:$0x4] }
  0x6a   : > { %19708 = vrot.lane.b32.xlu1 %v19702_v39, %s20113_s14  ;;  %v3729_v62 = vrot.slane %v3720_v51, 1  ;;  %v4234_v63 = vunpack.c.l.bf16 %v4228_v48  ;;  %v4235_v1 = vunpack.c.l.bf16 %v4229_v49  ;;  %v19712_v4 = vpack.i.bf16 %v20371_v61, %v20360_v40 }
  0x6b   : > { %v3728_v5 = vsel %vm644_vm0, %v3727_v56, %v3726_v55  ;;  %v4240_v6 = vrot.slane %v4232_v53, 4  ;;  %v4241_v9 = vrot.slane %v4233_v58, 3  ;;  %v3972_v14 = vunpack.c.l.bf16 %v3712_v60 }
  0x6c   : > { %v3730_v8 = vsel %vm647_vm1, %v3729_v62, %v3728_v5  ;;  %v4243_v10 = vrot.slane %v4234_v63, 2  ;;  %v4245_v11 = vrot.slane %v4235_v1, 1  ;;  %v3973_v15 = vunpack.c.l.bf16 %v3713_v2  ;;  %v5240_v5 = vld [vmem:[%s20233_s8] sm:$0x8] }
  0x6d   : > { %19713 = vrot.lane.b32.xlu0 %v19712_v4, %s20112_s13  ;;  %v20383_v13 = vsel %vm650_vm2, %v3721_v52, %v3730_v8  ;;  %v3974_v16 = vunpack.c.l.bf16 %v3714_v3  ;;  %v4242_v17 = vsel %vm644_vm0, %v4241_v9, %v4240_v6  ;;  %v3975_v18 = vunpack.c.l.bf16 %v3715_v7  ;;  %v5238_v52 = vld [vmem:[%s20233_s8 + $0x10] sm:$0x4]  ;;  %v5241_v6 = vld [vmem:[%s20233_s8 + $0x8] sm:$0x8] }
  0x6e   : > { %19718 = vrot.lane.b32.xlu1 %v19712_v4, %s20113_s14  ;;  %v4487_v20 = vrot.slane %v4232_v53, 5  ;;  %v4488_v22 = vrot.slane %v4233_v58, 4  ;;  %v4244_v24 = vsel %vm647_vm1, %v4243_v10, %v4242_v17  ;;  %v3980_v25 = vrot.slane %v3972_v14, 4  ;;  %v5239_v53 = vld [vmem:[%s20233_s8 + $0x18] sm:$0x4] }
  0x6f   : > { %v3981_v26 = vrot.slane %v3973_v15, 3  ;;  %v3983_v27 = vrot.slane %v3974_v16, 2  ;;  %v20390_v29 = vsel %vm650_vm2, %v4245_v11, %v4244_v24  ;;  %v3985_v30 = vrot.slane %v3975_v18, 1  ;;  %v5242_v11 = vld [vmem:[%s20233_s8 + $0x10] sm:$0x8] }
  0x70   : > { %v4489_v31 = vsel %vm644_vm0, %v4488_v22, %v4487_v20  ;;  %v4490_v34 = vrot.slane %v4234_v63, 3  ;;  %v19727_v37 = vpack.i.bf16 %v20390_v29, %v20383_v13  ;;  %v4492_v39 = vrot.slane %v4235_v1, 2  ;;  %v5243_v18 = vld [vmem:[%s20233_s8 + $0x18] sm:$0x8] }
  0x71   : > { %v3982_v38 = vsel %vm644_vm0, %v3981_v26, %v3980_v25  ;;  %v4739_v44 = vunpack.c.l.bf16 %v4733_v23  ;;  %v4740_v45 = vunpack.c.l.bf16 %v4734_v28  ;;  %v4741_v50 = vunpack.c.l.bf16 %v4735_v35  ;;  %v5755_v25 = vld [vmem:[%s20233_s8] sm:$0x4]  ;;  %v5758_v35 = vld [vmem:[%s20233_s8 + $0x18] sm:$0x4] }
  0x72   : > { %v3984_v41 = vsel %vm647_vm1, %v3983_v27, %v3982_v38  ;;  %v4491_v42 = vsel %vm647_vm1, %v4490_v34, %v4489_v31  ;;  %19728 = vrot.lane.b32.xlu1 %v19727_v37, %s20113_s14  ;;  %19723 = vrot.lane.b32.xlu0 %v19727_v37, %s20112_s13  ;;  %v4742_v51 = vunpack.c.l.bf16 %v4736_v36  ;;  %v5246_v62 = vunpack.c.l.bf16 %v5236_v46  ;;  %v5756_v31 = vld [vmem:[%s20233_s8 + $0x8] sm:$0x4]  ;;  %v5757_v34 = vld [vmem:[%s20233_s8 + $0x10] sm:$0x4] }
  0x73   : > { %v20405_v48 = vsel %vm650_vm2, %v3985_v30, %v3984_v41  ;;  %v20408_v49 = vsel %vm650_vm2, %v4492_v39, %v4491_v42  ;;  %v4747_v55 = vrot.slane %v4739_v44, 4  ;;  %v4748_v56 = vrot.slane %v4740_v45, 3  ;;  %v6274_v41 = vld [vmem:[%s20233_s8] sm:$0x8]  ;;  %v6275_v42 = vld [vmem:[%s20233_s8 + $0x8] sm:$0x8] }
  0x74   : > { %v19737_v54 = vpack.i.bf16 %v20408_v49, %v20405_v48  ;;  %v4750_v58 = vrot.slane %v4741_v50, 2  ;;  %v4752_v60 = vrot.slane %v4742_v51, 1  ;;  %v5247_v63 = vunpack.c.l.bf16 %v5237_v47 }
  0x75   : > { %v4749_v1 = vsel %vm644_vm0, %v4748_v56, %v4747_v55  ;;  %v5248_v2 = vunpack.c.l.bf16 %v5238_v52  ;;  %v5249_v3 = vunpack.c.l.bf16 %v5239_v53  ;;  %v4994_v4 = vrot.slane %v4739_v44, 5  ;;  %v6276_v53 = vld [vmem:[%s20233_s8 + $0x10] sm:$0x8] }
  0x76   : > { %19738 = vrot.lane.b32.xlu1 %v19737_v54, %s20113_s14  ;;  %19733 = vrot.lane.b32.xlu0 %v19737_v54, %s20112_s13  ;;  %v4751_v7 = vsel %vm647_vm1, %v4750_v58, %v4749_v1  ;;  %v5254_v8 = vrot.slane %v5246_v62, 5  ;;  %v5255_v9 = vrot.slane %v5247_v63, 4  ;;  %v4995_v10 = vrot.slane %v4740_v45, 4  ;;  %v6277_v54 = vld [vmem:[%s20233_s8 + $0x18] sm:$0x8] }
  0x77   : > { %v20422_v14 = vsel %vm650_vm2, %v4752_v60, %v4751_v7  ;;  %v5257_v15 = vrot.slane %v5248_v2, 3  ;;  %v5259_v16 = vrot.slane %v5249_v3, 2  ;;  %v4997_v17 = vrot.slane %v4741_v50, 3  ;;  %v5759_v3 = vld [vmem:[%s20233_s8] sm:$0x8] }
  0x78   : > { %v5256_v20 = vsel %vm644_vm0, %v5255_v9, %v5254_v8  ;;  %v4996_v22 = vsel %vm644_vm0, %v4995_v10, %v4994_v4  ;;  %v4999_v23 = vrot.slane %v4742_v51, 2  ;;  %v5501_v24 = vunpack.c.l.bf16 %v5240_v5  ;;  %v5760_v8 = vld [vmem:[%s20233_s8 + $0x8] sm:$0x8]  ;;  %v5761_v9 = vld [vmem:[%s20233_s8 + $0x10] sm:$0x8] }
  0x79   : > { %v5258_v26 = vsel %vm647_vm1, %v5257_v15, %v5256_v20  ;;  %v4998_v27 = vsel %vm647_vm1, %v4997_v17, %v4996_v22  ;;  %v5502_v28 = vunpack.c.l.bf16 %v5241_v6  ;;  %v5503_v30 = vunpack.c.l.bf16 %v5242_v11 }
  0x7a   : > { %v20434_v36 = vsel %vm650_vm2, %v5259_v16, %v5258_v26  ;;  %v20437_v37 = vsel %vm650_vm2, %v4999_v23, %v4998_v27  ;;  %v5504_v38 = vunpack.c.l.bf16 %v5243_v18  ;;  %v5509_v39 = vrot.slane %v5501_v24, 6  ;;  %v5762_v16 = vld [vmem:[%s20233_s8 + $0x18] sm:$0x8] }
  0x7b   : > { %v19747_v44 = vpack.i.bf16 %v20434_v36, %v20422_v14  ;;  %v5510_v45 = vrot.slane %v5502_v28, 5  ;;  %v5512_v46 = vrot.slane %v5503_v30, 4  ;;  %v5765_v50 = vunpack.c.l.bf16 %v5755_v25 }
  0x7c   : > { %v5514_v47 = vrot.slane %v5504_v38, 3  ;;  %v5766_v51 = vunpack.c.l.bf16 %v5756_v31  ;;  %v5767_v52 = vunpack.c.l.bf16 %v5757_v34  ;;  %v5768_v56 = vunpack.c.l.bf16 %v5758_v35  ;;  %v6781_v34 = vld [vmem:[%s20233_s8] sm:$0x8] }
  0x7d   : > { %19748 = vrot.lane.b32.xlu1 %v19747_v44, %s20113_s14  ;;  %19743 = vrot.lane.b32.xlu0 %v19747_v44, %s20112_s13  ;;  %v5511_v55 = vsel %vm644_vm0, %v5510_v45, %v5509_v39  ;;  %v6280_v58 = vunpack.c.l.bf16 %v6274_v41  ;;  %v6281_v60 = vunpack.c.l.bf16 %v6275_v42  ;;  %v5773_v63 = vrot.slane %v5765_v50, 5  ;;  %v6782_v42 = vld [vmem:[%s20233_s8 + $0x8] sm:$0x8]  ;;  %v6783_v50 = vld [vmem:[%s20233_s8 + $0x10] sm:$0x8] }
  0x7e   : > { %v5513_v62 = vsel %vm647_vm1, %v5512_v46, %v5511_v55  ;;  %v5774_v1 = vrot.slane %v5766_v51, 4  ;;  %v5776_v2 = vrot.slane %v5767_v52, 3  ;;  %v5778_v5 = vrot.slane %v5768_v56, 2  ;;  %v6784_v51 = vld [vmem:[%s20233_s8 + $0x18] sm:$0x8] }
  0x7f   : > { %v20451_v4 = vsel %vm650_vm2, %v5514_v47, %v5513_v62  ;;  %v6282_v6 = vunpack.c.l.bf16 %v6276_v53  ;;  %v6283_v7 = vunpack.c.l.bf16 %v6277_v54  ;;  %v6288_v15 = vrot.slane %v6280_v58, 6  ;;  %v7284_v62 = vld [vmem:[%s20233_s8] sm:$0x8] }
  0x80   : > { %v19757_v10 = vpack.i.bf16 %v20451_v4, %v20437_v37  ;;  %v5775_v11 = vsel %vm644_vm0, %v5774_v1, %v5773_v63  ;;  %v6289_v18 = vrot.slane %v6281_v60, 5  ;;  %v6020_v24 = vunpack.c.l.bf16 %v5759_v3  ;;  %v7285_v63 = vld [vmem:[%s20233_s8 + $0x8] sm:$0x8] }
  0x81   : > { %v5777_v17 = vsel %vm647_vm1, %v5776_v2, %v5775_v11  ;;  %v6291_v20 = vrot.slane %v6282_v6, 4  ;;  %v6293_v22 = vrot.slane %v6283_v7, 3  ;;  %v6021_v25 = vunpack.c.l.bf16 %v5760_v8 }
  0x82   : > { %19758 = vrot.lane.b32.xlu1 %v19757_v10, %s20113_s14  ;;  %19753 = vrot.lane.b32.xlu0 %v19757_v10, %s20112_s13  ;;  %v20463_v23 = vsel %vm650_vm2, %v5778_v5, %v5777_v17  ;;  %v6022_v26 = vunpack.c.l.bf16 %v5761_v9  ;;  %v6290_v27 = vsel %vm644_vm0, %v6289_v18, %v6288_v15  ;;  %v6023_v28 = vunpack.c.l.bf16 %v5762_v16  ;;  %v7288_v18 = vld [vmem:[%s20233_s8 + $0x4] sm:$0x1] }
  0x83   : > { %v6535_v30 = vrot.slane %v6280_v58, 7  ;;  %v6536_v31 = vrot.slane %v6281_v60, 6  ;;  %v6292_v35 = vsel %vm647_vm1, %v6291_v20, %v6290_v27  ;;  %v6028_v38 = vrot.slane %v6020_v24, 6  ;;  %v7290_v27 = vld [vmem:[%s20233_s8 + $0x14] sm:$0x1] }
  0x84   : > { %v6029_v39 = vrot.slane %v6021_v25, 5  ;;  %v6031_v41 = vrot.slane %v6022_v26, 4  ;;  %v20470_v44 = vsel %vm650_vm2, %v6293_v22, %v6292_v35  ;;  %v6033_v45 = vrot.slane %v6023_v28, 3  ;;  %v7289_v26 = vld [vmem:[%s20233_s8 + $0xc] sm:$0x1] }
  0x85   : > { %v6537_v46 = vsel %vm644_vm0, %v6536_v31, %v6535_v30  ;;  %v6538_v47 = vrot.slane %v6282_v6, 5  ;;  %v19767_v52 = vpack.i.bf16 %v20470_v44, %v20463_v23  ;;  %v6540_v54 = vrot.slane %v6283_v7, 4  ;;  %v7286_v6 = vld [vmem:[%s20233_s8 + $0x10] sm:$0x8]  ;;  %v7287_v7 = vld [vmem:[%s20233_s8 + $0x18] sm:$0x8] }
  0x86   : > { %v6030_v53 = vsel %vm644_vm0, %v6029_v39, %v6028_v38  ;;  %v6787_v58 = vunpack.c.l.bf16 %v6781_v34  ;;  %v6788_v60 = vunpack.c.l.bf16 %v6782_v42  ;;  %v6789_v3 = vunpack.c.l.bf16 %v6783_v50  ;;  %v7291_v35 = vld [vmem:[%s20233_s8 + $0x1c] sm:$0x1] }
  0x87   : > { %v6032_v55 = vsel %vm647_vm1, %v6031_v41, %v6030_v53  ;;  %v6539_v56 = vsel %vm647_vm1, %v6538_v47, %v6537_v46  ;;  %19768 = vrot.lane.b32.xlu1 %v19767_v52, %s20113_s14  ;;  %19763 = vrot.lane.b32.xlu0 %v19767_v52, %s20112_s13  ;;  %v6790_v5 = vunpack.c.l.bf16 %v6784_v51  ;;  %v7294_v16 = vunpack.c.l.bf16 %v7284_v62 }
  0x88   : > { %v20485_v1 = vsel %vm650_vm2, %v6033_v45, %v6032_v55  ;;  %v20488_v2 = vsel %vm650_vm2, %v6540_v54, %v6539_v56  ;;  %v6795_v9 = vrot.slane %v6787_v58, 6  ;;  %v6796_v10 = vrot.slane %v6788_v60, 5  ;;  %v7802_v45 = vld [vmem:[%s20233_s8] sm:$0x8]  ;;  %v7803_v56 = vld [vmem:[%s20233_s8 + $0x8] sm:$0x8] }
  0x89   : > { %v19777_v8 = vpack.i.bf16 %v20488_v2, %v20485_v1  ;;  %v6798_v11 = vrot.slane %v6789_v3, 4  ;;  %v6800_v15 = vrot.slane %v6790_v5, 3  ;;  %v7295_v17 = vunpack.c.l.bf16 %v7285_v63 }
  0x8a   : > { %v6797_v20 = vsel %vm644_vm0, %v6796_v10, %v6795_v9  ;;  %v7296_v22 = vunpack.c.l.bf16 %v7286_v6  ;;  %v7297_v24 = vunpack.c.l.bf16 %v7287_v7  ;;  %v7042_v25 = vrot.slane %v6787_v58, 7  ;;  %v7804_v58 = vld [vmem:[%s20233_s8 + $0x10] sm:$0x8]  ;;  %v8320_v6 = vld [vmem:[%s20233_s8 + $0x4] sm:$0x1] }
  0x8b   : > { %19778 = vrot.lane.b32.xlu1 %v19777_v8, %s20113_s14  ;;  %19773 = vrot.lane.b32.xlu0 %v19777_v8, %s20112_s13  ;;  %v6799_v28 = vsel %vm647_vm1, %v6798_v11, %v6797_v20  ;;  %v7302_v30 = vrot.slane %v7294_v16, 7  ;;  %v7303_v31 = vrot.slane %v7295_v17, 6  ;;  %v7043_v34 = vrot.slane %v6788_v60, 6  ;;  %v7805_v60 = vld [vmem:[%s20233_s8 + $0x18] sm:$0x8] }
  0x8c   : > { %v20503_v38 = vsel %vm650_vm2, %v6800_v15, %v6799_v28  ;;  %v7305_v39 = vrot.slane %v7296_v22, 5  ;;  %v7307_v41 = vrot.slane %v7297_v24, 4  ;;  %v7045_v42 = vrot.slane %v6789_v3, 5  ;;  %v8321_v7 = vld [vmem:[%s20233_s8 + $0xc] sm:$0x1] }
  0x8d   : > { %v7304_v46 = vsel %vm644_vm0, %v7303_v31, %v7302_v30  ;;  %v7044_v47 = vsel %vm644_vm0, %v7043_v34, %v7042_v25  ;;  %v7047_v50 = vrot.slane %v6790_v5, 4  ;;  %v7549_v51 = vunpack.c.l.bf16 %v7288_v18  ;;  %v8322_v18 = vld [vmem:[%s20233_s8 + $0x14] sm:$0x1]  ;;  %v8323_v20 = vld [vmem:[%s20233_s8 + $0x1c] sm:$0x1] }
  0x8e   : > { %v7306_v52 = vsel %vm647_vm1, %v7305_v39, %v7304_v46  ;;  %v7046_v53 = vsel %vm647_vm1, %v7045_v42, %v7044_v47  ;;  %v7550_v54 = vunpack.c.l.bf16 %v7289_v26  ;;  %v7551_v55 = vunpack.c.l.bf16 %v7290_v27  ;;  %v7806_v27 = vld [vmem:[%s20233_s8 + $0x4] sm:$0x1]  ;;  %v7808_v46 = vld [vmem:[%s20233_s8 + $0x14] sm:$0x1]  ;;  %v7809_v47 = vld [vmem:[%s20233_s8 + $0x1c] sm:$0x1] }
  0x8f   : > { %v20514_v62 = vsel %vm650_vm2, %v7307_v41, %v7306_v52  ;;  %v20517_v63 = vsel %vm650_vm2, %v7047_v50, %v7046_v53  ;;  %v7552_v3 = vunpack.c.l.bf16 %v7291_v35  ;;  %v7812_v5 = vunpack.c.l.bf16 %v7802_v45  ;;  %v7807_v35 = vld [vmem:[%s20233_s8 + $0xc] sm:$0x1] }
  0x90   : > { %v19787_v8 = vpack.i.bf16 %v20514_v62, %v20503_v38  ;;  %v7557_v9 = vrot.slane %v7550_v54, 7  ;;  %v7559_v10 = vrot.slane %v7551_v55, 6  ;;  %v7813_v15 = vunpack.c.l.bf16 %v7803_v56 }
  0x91   : > { %v7561_v11 = vrot.slane %v7552_v3, 5  ;;  %v7814_v16 = vunpack.c.l.bf16 %v7804_v58  ;;  %v7815_v17 = vunpack.c.l.bf16 %v7805_v60  ;;  %v7820_v24 = vrot.slane %v7812_v5, 7  ;;  %v8825_v58 = vld [vmem:[%s20233_s8 + $0x4] sm:$0x1] }
  0x92   : > { %19788 = vrot.lane.b32.xlu1 %v19787_v8, %s20113_s14  ;;  %19783 = vrot.lane.b32.xlu0 %v19787_v8, %s20112_s13  ;;  %v7558_v22 = vsel %vm644_vm0, %v7557_v9, %v7549_v51  ;;  %v8326_v25 = vunpack.c.l.bf16 %v8320_v6  ;;  %v8327_v26 = vunpack.c.l.bf16 %v8321_v7  ;;  %v7821_v30 = vrot.slane %v7813_v15, 6  ;;  %v8826_v7 = vld [vmem:[%s20233_s8 + $0xc] sm:$0x1]  ;;  %v8827_v8 = vld [vmem:[%s20233_s8 + $0x14] sm:$0x1] }
  0x93   : > { %v7560_v28 = vsel %vm647_vm1, %v7559_v10, %v7558_v22  ;;  %v7823_v31 = vrot.slane %v7814_v16, 5  ;;  %v7825_v34 = vrot.slane %v7815_v17, 4  ;;  %v8328_v41 = vunpack.c.l.bf16 %v8322_v18  ;;  %v8828_v16 = vld [vmem:[%s20233_s8 + $0x1c] sm:$0x1] }
  0x94   : > { %v20532_v39 = vsel %vm650_vm2, %v7561_v11, %v7560_v28  ;;  %v8329_v42 = vunpack.c.l.bf16 %v8323_v20  ;;  %v8334_v45 = vrot.slane %v8327_v26, 7  ;;  %v7822_v51 = vsel %vm644_vm0, %v7821_v30, %v7820_v24  ;;  %v9326_v24 = vld [vmem:[%s20233_s8 + $0x4] sm:$0x1] }
  0x95   : > { %v19797_v50 = vpack.i.bf16 %v20532_v39, %v20517_v63  ;;  %v8067_v52 = vunpack.c.l.bf16 %v7806_v27  ;;  %v7824_v53 = vsel %vm647_vm1, %v7823_v31, %v7822_v51  ;;  %v8336_v55 = vrot.slane %v8328_v41, 6  ;;  %v9327_v31 = vld [vmem:[%s20233_s8 + $0xc] sm:$0x1] }
  0x96   : > { %v8335_v54 = vsel %vm644_vm0, %v8334_v45, %v8326_v25  ;;  %v8338_v56 = vrot.slane %v8329_v42, 5  ;;  %v20545_v60 = vsel %vm650_vm2, %v7825_v34, %v7824_v53  ;;  %v8068_v3 = vunpack.c.l.bf16 %v7807_v35 }
  0x97   : > { %19798 = vrot.lane.b32.xlu1 %v19797_v50, %s20113_s14  ;;  %19793 = vrot.lane.b32.xlu0 %v19797_v50, %s20112_s13  ;;  %v8069_v5 = vunpack.c.l.bf16 %v7808_v46  ;;  %v8070_v6 = vunpack.c.l.bf16 %v7809_v47  ;;  %v8337_v9 = vsel %vm647_vm1, %v8336_v55, %v8335_v54  ;;  %v8580_v10 = vrot.slane %v8326_v25, 1  ;;  %v9329_v47 = vld [vmem:[%s20233_s8 + $0x1c] sm:$0x1] }
  0x98   : > { %v8582_v11 = vrot.slane %v8328_v41, 7  ;;  %v8584_v15 = vrot.slane %v8329_v42, 6  ;;  %v20552_v17 = vsel %vm650_vm2, %v8338_v56, %v8337_v9  ;;  %v8075_v18 = vrot.slane %v8068_v3, 7  ;;  %v9328_v42 = vld [vmem:[%s20233_s8 + $0x14] sm:$0x1] }
  0x99   : > { %v8077_v20 = vrot.slane %v8069_v5, 6  ;;  %v8079_v22 = vrot.slane %v8070_v6, 5  ;;  %v19807_v27 = vpack.i.bf16 %v20552_v17, %v20545_v60  ;;  %v8581_v28 = vsel %vm644_vm0, %v8327_v26, %v8580_v10  ;;  %v9330_v3 = vld [vmem:[%s20233_s8 + $0x4] sm:$0x2]  ;;  %v9331_v9 = vld [vmem:[%s20233_s8 + $0xc] sm:$0x2] }
  0x9a   : > { %v8831_v30 = vunpack.c.l.bf16 %v8825_v58  ;;  %v8076_v25 = vsel %vm644_vm0, %v8075_v18, %v8067_v52  ;;  %v8583_v34 = vsel %vm647_vm1, %v8582_v11, %v8581_v28  ;;  %v8832_v35 = vunpack.c.l.bf16 %v8826_v7  ;;  %v9332_v10 = vld [vmem:[%s20233_s8 + $0x14] sm:$0x2] }
  0x9b   : > { %v8833_v41 = vunpack.c.l.bf16 %v8827_v8  ;;  %19808 = vrot.lane.b32.xlu1 %v19807_v27, %s20113_s14  ;;  %19803 = vrot.lane.b32.xlu0 %v19807_v27, %s20112_s13  ;;  %v8078_v45 = vsel %vm647_vm1, %v8077_v20, %v8076_v25  ;;  %v20566_v46 = vsel %vm650_vm2, %v8584_v15, %v8583_v34  ;;  %v8834_v26 = vunpack.c.l.bf16 %v8828_v16  ;;  %v9333_v20 = vld [vmem:[%s20233_s8 + $0x1c] sm:$0x2] }
  0x9c   : > { %22892 = vst [vmem:[#allocation7_spill] sm:$0xff] %v20566_v46  ;;  %v9336_v50 = vunpack.c.l.bf16 %v9326_v24  ;;  %v20570_v51 = vsel %vm650_vm2, %v8079_v22, %v8078_v45  ;;  %v8839_v52 = vrot.slane %v8832_v35, 7  ;;  %v9337_v54 = vunpack.c.l.bf16 %v9327_v31  ;;  %v9845_v45 = vld [vmem:[%s20233_s8 + $0x14] sm:$0x1] }
  0x9d   : > { %22893 = vst [vmem:[#allocation8_spill] sm:$0xff] %v20570_v51  ;;  %v8841_v53 = vrot.slane %v8833_v41, 6  ;;  %v19817_v55 = vpack.i.bf16 %v20566_v46, %v20570_v51  ;;  %v8843_v56 = vrot.slane %v8834_v26, 5  ;;  %v9338_v58 = vunpack.c.l.bf16 %v9328_v42  ;;  %v9844_v42 = vld [vmem:[%s20233_s8 + $0xc] sm:$0x1] }
  0x9e   : > { %v8840_v5 = vsel %vm644_vm0, %v8839_v52, %v8831_v30  ;;  %v9339_v6 = vunpack.c.l.bf16 %v9329_v47  ;;  %v9344_v7 = vrot.slane %v9336_v50, 1  ;;  %v9085_v8 = vrot.slane %v8831_v30, 1  ;;  %v21016_v51 = vld [vmem:[%s20952_s11 + $0x10] sm:$0x1] }
  0x9f   : > { %19818 = vrot.lane.b32.xlu1 %v19817_v55, %s20113_s14  ;;  %19813 = vrot.lane.b32.xlu0 %v19817_v55, %s20112_s13  ;;  %v8842_v11 = vsel %vm647_vm1, %v8841_v53, %v8840_v5  ;;  %v9346_v15 = vrot.slane %v9338_v58, 7  ;;  %v9087_v16 = vrot.slane %v8833_v41, 7  ;;  %v9089_v18 = vrot.slane %v8834_v26, 6  ;;  %v9843_v41 = vld [vmem:[%s20233_s8 + $0x4] sm:$0x1] }
  0xa0   : > { %v20583_v22 = vsel %vm650_vm2, %v8843_v56, %v8842_v11  ;;  %v9345_v24 = vsel %vm644_vm0, %v9337_v54, %v9344_v7  ;;  %v9348_v27 = vrot.slane %v9339_v6, 6  ;;  %v9086_v28 = vsel %vm644_vm0, %v8832_v35, %v9085_v8  ;;  %v9846_v35 = vld [vmem:[%s20233_s8 + $0x1c] sm:$0x1]  ;;  %v10360_v53 = vld [vmem:[%s20233_s8 + $0x4] sm:$0x2] }
  0xa1   : > { %22894 = vst [vmem:[#allocation9_spill] sm:$0xff] %v20583_v22  ;;  %v9347_v30 = vsel %vm647_vm1, %v9346_v15, %v9345_v24  ;;  %v9088_v31 = vsel %vm647_vm1, %v9087_v16, %v9086_v28  ;;  %v9590_v25 = vunpack.c.l.bf16 %v9330_v3  ;;  %v9591_v34 = vunpack.c.l.bf16 %v9331_v9  ;;  %v10361_v54 = vld [vmem:[%s20233_s8 + $0xc] sm:$0x2]  ;;  %v10362_v3 = vld [vmem:[%s20233_s8 + $0x14] sm:$0x2] }
  0xa2   : > { %v20593_v26 = vsel %vm650_vm2, %v9348_v27, %v9347_v30  ;;  %v20596_v47 = vsel %vm650_vm2, %v9089_v18, %v9088_v31  ;;  %v9592_v50 = vunpack.c.l.bf16 %v9332_v10  ;;  %v9593_v52 = vunpack.c.l.bf16 %v9333_v20  ;;  %v20605_v9 = vld [vmem:[%s20233_s8 + $0x1c] sm:$0x2]  ;;  %v9847_v28 = vld [vmem:[%s20233_s8 + $0x4] sm:$0x2]  ;;  %v9848_v30 = vld [vmem:[%s20233_s8 + $0xc] sm:$0x2] }
  0xa3   : > { %22895 = vst [vmem:[#allocation10_spill] sm:$0xff] %v20593_v26  ;;  %22896 = vst [vmem:[#allocation11_spill] sm:$0xff] %v20596_v47  ;;  %v19827_v55 = vpack.i.bf16 %v20593_v26, %v20583_v22  ;;  %v9598_v56 = vrot.slane %v9590_v25, 2  ;;  %v9599_v58 = vrot.slane %v9591_v34, 1  ;;  %v9853_v6 = vunpack.c.l.bf16 %v9843_v41 }
  0xa4   : > { %v9602_v5 = vrot.slane %v9593_v52, 7  ;;  %v9854_v7 = vunpack.c.l.bf16 %v9844_v42  ;;  %v9855_v8 = vunpack.c.l.bf16 %v9845_v45  ;;  %v9856_v11 = vunpack.c.l.bf16 %v9846_v35  ;;  %v9849_v42 = vld [vmem:[%s20233_s8 + $0x14] sm:$0x2]  ;;  %v9850_v45 = vld [vmem:[%s20233_s8 + $0x1c] sm:$0x2] }
  0xa5   : > { %19828 = vrot.lane.b32.xlu1 %v19827_v55, %s20113_s14  ;;  %19823 = vrot.lane.b32.xlu0 %v19827_v55, %s20112_s13  ;;  %v9600_v10 = vsel %vm644_vm0, %v9599_v58, %v9598_v56  ;;  %v10366_v15 = vunpack.c.l.bf16 %v10360_v53  ;;  %v10367_v16 = vunpack.c.l.bf16 %v10361_v54  ;;  %v9861_v20 = vrot.slane %v9853_v6, 1 }
  0xa6   : > { %v9601_v18 = vsel %vm647_vm1, %v9592_v50, %v9600_v10  ;;  %v9863_v24 = vrot.slane %v9855_v8, 7  ;;  %v10368_v27 = vunpack.c.l.bf16 %v10362_v3  ;;  %v9865_v25 = vrot.slane %v9856_v11, 6  ;;  %v10866_v8 = vld [vmem:[%s20233_s8 + $0xc] sm:$0x2] }
  0xa7   : > { %v20614_v31 = vsel %vm650_vm2, %v9602_v5, %v9601_v18  ;;  %v10369_v34 = vunpack.c.l.bf16 %v20605_v9  ;;  %v10374_v41 = vrot.slane %v10366_v15, 2  ;;  %v9862_v50 = vsel %vm644_vm0, %v9854_v7, %v9861_v20  ;;  %v10865_v7 = vld [vmem:[%s20233_s8 + $0x4] sm:$0x2]  ;;  %v10867_v20 = vld [vmem:[%s20233_s8 + $0x14] sm:$0x2] }
  0xa8   : > { %22897 = vst [vmem:[#allocation12_spill] sm:$0xff] %v20614_v31  ;;  %v19837_v52 = vpack.i.bf16 %v20614_v31, %v20596_v47  ;;  %v10375_v35 = vrot.slane %v10367_v16, 1  ;;  %v9864_v53 = vsel %vm647_vm1, %v9863_v24, %v9862_v50  ;;  %v10107_v55 = vunpack.c.l.bf16 %v9847_v28  ;;  %v11366_v50 = vld [vmem:[%s20233_s8 + $0x4] sm:$0x2]  ;;  %v13936_v31 = vld [vmem:[%s20233_s8 + $0xc] sm:$0x8] }
  0xa9   : > { %v10378_v54 = vrot.slane %v10369_v34, 7  ;;  %v10108_v56 = vunpack.c.l.bf16 %v9848_v30  ;;  %v20626_v58 = vsel %vm650_vm2, %v9865_v25, %v9864_v53  ;;  %v10109_v5 = vunpack.c.l.bf16 %v9849_v42 }
  0xaa   : > { %19838 = vrot.lane.b32.xlu1 %v19837_v52, %s20113_s14  ;;  %19833 = vrot.lane.b32.xlu0 %v19837_v52, %s20112_s13  ;;  %22898 = vst [vmem:[#allocation13_spill] sm:$0xff] %v20626_v58  ;;  %v10376_v3 = vsel %vm644_vm0, %v10375_v35, %v10374_v41  ;;  %v10110_v6 = vunpack.c.l.bf16 %v9850_v45  ;;  %v10115_v10 = vrot.slane %v10107_v55, 2  ;;  %v10620_v18 = vrot.slane %v10366_v15, 3  ;;  %v10868_v41 = vld [vmem:[%s20233_s8 + $0x1c] sm:$0x2] }
  0xab   : > { %v10377_v9 = vsel %vm647_vm1, %v10368_v27, %v10376_v3  ;;  %v10116_v11 = vrot.slane %v10108_v56, 1  ;;  %v10621_v30 = vrot.slane %v10367_v16, 2  ;;  %v10623_v25 = vrot.slane %v10368_v27, 1  ;;  %v11367_v35 = vld [vmem:[%s20233_s8 + $0xc] sm:$0x2] }
  0xac   : > { %v20634_v24 = vsel %vm650_vm2, %v10378_v54, %v10377_v9  ;;  %v10119_v28 = vrot.slane %v10110_v6, 7  ;;  %v10871_v52 = vunpack.c.l.bf16 %v10865_v7  ;;  %v10872_v55 = vunpack.c.l.bf16 %v10866_v8  ;;  %v11368_v56 = vld [vmem:[%s20233_s8 + $0x14] sm:$0x2] }
  0xad   : > { %22899 = vst [vmem:[#allocation14_spill] sm:$0xff] %v20634_v24  ;;  %v19847_v42 = vpack.i.bf16 %v20634_v24, %v20626_v58  ;;  %v10117_v45 = vsel %vm644_vm0, %v10116_v11, %v10115_v10  ;;  %v10622_v53 = vsel %vm644_vm0, %v10621_v30, %v10620_v18  ;;  %v10873_v54 = vunpack.c.l.bf16 %v10867_v20  ;;  %v13935_v58 = vld [vmem:[%s20233_s8 + $0x4] sm:$0x8] }
  0xae   : > { %v10118_v15 = vsel %vm647_vm1, %v10109_v5, %v10117_v45  ;;  %v10624_v27 = vsel %vm647_vm1, %v10623_v25, %v10622_v53  ;;  %v10874_v3 = vunpack.c.l.bf16 %v10868_v41  ;;  %v10879_v6 = vrot.slane %v10871_v52, 2  ;;  %v11369_v5 = vld [vmem:[%s20233_s8 + $0x1c] sm:$0x2]  ;;  %v11371_v45 = vld [vmem:[%s20233_s8 + $0xc] sm:$0x4] }
  0xaf   : > { %19848 = vrot.lane.b32.xlu1 %v19847_v42, %s20113_s14  ;;  %19843 = vrot.lane.b32.xlu0 %v19847_v42, %s20112_s13  ;;  %v20648_v16 = vsel %vm650_vm2, %v10119_v28, %v10118_v15  ;;  %v20653_v7 = vsel %vm650_vm2, %v10369_v34, %v10624_v27  ;;  %v10880_v8 = vrot.slane %v10872_v55, 1  ;;  %v11376_v9 = vunpack.c.l.bf16 %v11366_v50  ;;  %v11370_v28 = vld [vmem:[%s20233_s8 + $0x4] sm:$0x4]  ;;  %v11372_v15 = vld [vmem:[%s20233_s8 + $0x14] sm:$0x4] }
  0xb0   : > { %22900 = vst [vmem:[#allocation15_spill] sm:$0xff] %v20648_v16  ;;  %22901 = vst [vmem:[#allocation16_spill] sm:$0xff] %v20653_v7  ;;  %v11377_v10 = vunpack.c.l.bf16 %v11367_v35  ;;  %v19857_v11 = vpack.i.bf16 %v20653_v7, %v20648_v16  ;;  %v10883_v18 = vrot.slane %v10874_v3, 7  ;;  %v11378_v20 = vunpack.c.l.bf16 %v11368_v56  ;;  %v11373_v56 = vld [vmem:[%s20233_s8 + $0x1c] sm:$0x4] }
  0xb1   : > { %v10881_v30 = vsel %vm644_vm0, %v10880_v8, %v10879_v6  ;;  %v11379_v25 = vunpack.c.l.bf16 %v11369_v5  ;;  %v11384_v41 = vrot.slane %v11376_v9, 3  ;;  %v11125_v35 = vrot.slane %v10871_v52, 3  ;;  %v11885_v52 = vld [vmem:[%s20233_s8 + $0xc] sm:$0x2]  ;;  %v12405_v7 = vld [vmem:[%s20233_s8 + $0x1c] sm:$0x4] }
  0xb2   : > { %v11385_v42 = vrot.slane %v11377_v10, 2  ;;  %v10882_v34 = vsel %vm647_vm1, %v10873_v54, %v10881_v30  ;;  %v11387_v50 = vrot.slane %v11378_v20, 1  ;;  %v11126_v53 = vrot.slane %v10872_v55, 2  ;;  %v11884_v20 = vld [vmem:[%s20233_s8 + $0x4] sm:$0x2] }
  0xb3   : > { %19858 = vrot.lane.b32.xlu1 %v19857_v11, %s20113_s14  ;;  %19853 = vrot.lane.b32.xlu0 %v19857_v11, %s20112_s13  ;;  %v20666_v27 = vsel %vm650_vm2, %v10883_v18, %v10882_v34  ;;  %v11128_v5 = vrot.slane %v10873_v54, 1  ;;  %v11630_v8 = vunpack.c.l.bf16 %v11370_v28  ;;  %v11631_v11 = vunpack.c.l.bf16 %v11371_v45  ;;  %v11886_v55 = vld [vmem:[%s20233_s8 + $0x14] sm:$0x2]  ;;  %v11887_v28 = vld [vmem:[%s20233_s8 + $0x1c] sm:$0x2] }
  0xb4   : > { %22902 = vst [vmem:[#allocation17_spill] sm:$0xff] %v20666_v27  ;;  %v11386_v6 = vsel %vm644_vm0, %v11385_v42, %v11384_v41  ;;  %v11127_v10 = vsel %vm644_vm0, %v11126_v53, %v11125_v35  ;;  %v11632_v30 = vunpack.c.l.bf16 %v11372_v15  ;;  %v11633_v41 = vunpack.c.l.bf16 %v11373_v56  ;;  %v12402_v42 = vld [vmem:[%s20233_s8 + $0x4] sm:$0x4]  ;;  %v12403_v35 = vld [vmem:[%s20233_s8 + $0xc] sm:$0x4] }
  0xb5   : > { %v11388_v9 = vsel %vm647_vm1, %v11387_v50, %v11386_v6  ;;  %v11129_v34 = vsel %vm647_vm1, %v11128_v5, %v11127_v10  ;;  %v11638_v54 = vrot.slane %v11630_v8, 4  ;;  %v11639_v15 = vrot.slane %v11631_v11, 3  ;;  %v11889_v16 = vld [vmem:[%s20233_s8 + $0xc] sm:$0x4] }
  0xb6   : > { %v20675_v18 = vsel %vm650_vm2, %v11379_v25, %v11388_v9  ;;  %v20683_v45 = vsel %vm650_vm2, %v10874_v3, %v11129_v34  ;;  %v11641_v53 = vrot.slane %v11632_v30, 2  ;;  %v11643_v6 = vrot.slane %v11633_v41, 1  ;;  %v12404_v9 = vld [vmem:[%s20233_s8 + $0x14] sm:$0x4] }
  0xb7   : > { %22903 = vst [vmem:[#allocation18_spill] sm:$0xff] %v20675_v18  ;;  %v19867_v50 = vpack.i.bf16 %v20675_v18, %v20666_v27  ;;  %22904 = vst [vmem:[#allocation19_spill] sm:$0xff] %v20683_v45  ;;  %v11894_v12 = vunpack.c.l.bf16 %v11884_v20  ;;  %v11895_v25 = vunpack.c.l.bf16 %v11885_v52  ;;  %v11640_v56 = vsel %vm644_vm0, %v11639_v15, %v11638_v54  ;;  %v11888_v52 = vld [vmem:[%s20233_s8 + $0x4] sm:$0x4] }
  0xb8   : > { %v11896_v5 = vunpack.c.l.bf16 %v11886_v55  ;;  %v11897_v3 = vunpack.c.l.bf16 %v11887_v28  ;;  %v12408_v8 = vunpack.c.l.bf16 %v12402_v42  ;;  %v11642_v10 = vsel %vm647_vm1, %v11641_v53, %v11640_v56  ;;  %v11891_v42 = vld [vmem:[%s20233_s8 + $0x1c] sm:$0x4] }
  0xb9   : > { %19868 = vrot.lane.b32.xlu1 %v19867_v50, %s20113_s14  ;;  %19863 = vrot.lane.b32.xlu0 %v19867_v50, %s20112_s13  ;;  %v11902_v11 = vrot.slane %v11894_v12, 3  ;;  %v11903_v30 = vrot.slane %v11895_v25, 2  ;;  %v12409_v20 = vunpack.c.l.bf16 %v12403_v35  ;;  %v20694_v34 = vsel %vm650_vm2, %v11643_v6, %v11642_v10  ;;  %v11890_v50 = vld [vmem:[%s20233_s8 + $0x14] sm:$0x4] }
  0xba   : > { %22905 = vst [vmem:[#allocation20_spill] sm:$0xff] %v20694_v34  ;;  %v11905_v41 = vrot.slane %v11896_v5, 1  ;;  %v12410_v18 = vunpack.c.l.bf16 %v12404_v9  ;;  %v12411_v27 = vunpack.c.l.bf16 %v12405_v7  ;;  %v19877_v55 = vpack.i.bf16 %v20694_v34, %v20683_v45  ;;  %v20714_v45 = vld [vmem:[%s20233_s8 + $0xc] sm:$0x4] }
  0xbb   : > { %v11904_v54 = vsel %vm644_vm0, %v11903_v30, %v11902_v11  ;;  %v12416_v28 = vrot.slane %v12408_v8, 4  ;;  %v12417_v15 = vrot.slane %v12409_v20, 3  ;;  %v12148_v6 = vunpack.c.l.bf16 %v11888_v52  ;;  %v20710_v30 = vld [vmem:[%s20233_s8 + $0x4] sm:$0x4] }
  0xbc   : > { %v11906_v12 = vsel %vm647_vm1, %v11905_v41, %v11904_v54  ;;  %v12419_v35 = vrot.slane %v12410_v18, 2  ;;  %v12421_v53 = vrot.slane %v12411_v27, 1  ;;  %v12149_v25 = vunpack.c.l.bf16 %v11889_v16 }
  0xbd   : > { %19878 = vrot.lane.b32.xlu1 %v19877_v55, %s20113_s14  ;;  %19873 = vrot.lane.b32.xlu0 %v19877_v55, %s20112_s13  ;;  %v20706_v7 = vsel %vm650_vm2, %v11897_v3, %v11906_v12  ;;  %v12150_v9 = vunpack.c.l.bf16 %v11890_v50  ;;  %v12418_v56 = vsel %vm644_vm0, %v12417_v15, %v12416_v28  ;;  %v12151_v5 = vunpack.c.l.bf16 %v11891_v42  ;;  %v20729_v12 = vld [vmem:[%s20233_s8 + $0x14] sm:$0x4]  ;;  %v20732_v15 = vld [vmem:[%s20233_s8 + $0x1c] sm:$0x4] }
  0xbe   : > { %22906 = vst [vmem:[#allocation21_spill] sm:$0xff] %v20706_v7  ;;  %v12663_v10 = vrot.slane %v12408_v8, 5  ;;  %v12664_v11 = vrot.slane %v12409_v20, 4  ;;  %v12420_v41 = vsel %vm647_vm1, %v12419_v35, %v12418_v56  ;;  %v12156_v54 = vrot.slane %v12148_v6, 4  ;;  %v20723_v20 = vld [vmem:[%s22846_s2 + $0x8] sm:$0xff] }
  0xbf   : > { %v12157_v34 = vrot.slane %v12149_v25, 3  ;;  %v12159_v55 = vrot.slane %v12150_v9, 2  ;;  %v20717_v3 = vsel %vm650_vm2, %v12421_v53, %v12420_v41  ;;  %v12161_v16 = vrot.slane %v12151_v5, 1  ;;  %v13413_v9 = vld [vmem:[%s20233_s8 + $0xc] sm:$0x4] }
  0xc0   : > { %22907 = vst [vmem:[#allocation22_spill] sm:$0xff] %v20717_v3  ;;  %v12665_v8 = vsel %vm644_vm0, %v12664_v11, %v12663_v10  ;;  %v12666_v52 = vrot.slane %v12410_v18, 3  ;;  %v19887_v50 = vpack.i.bf16 %v20717_v3, %v20706_v7  ;;  %v12668_v42 = vrot.slane %v12411_v27, 2  ;;  %v20737_v18 = vld [vmem:[%s22846_s2 + $0x38] sm:$0xff]  ;;  %v13414_v41 = vld [vmem:[%s20233_s8 + $0x14] sm:$0x4] }
  0xc1   : > { %v12158_v28 = vsel %vm644_vm0, %v12157_v34, %v12156_v54  ;;  %v12915_v25 = vunpack.c.l.bf16 %v20710_v30  ;;  %v12916_v27 = vunpack.c.l.bf16 %v20714_v45  ;;  %v13412_v34 = vld [vmem:[%s20233_s8 + $0x4] sm:$0x4]  ;;  %v13415_v54 = vld [vmem:[%s20233_s8 + $0x1c] sm:$0x4]  ;;  %v12917_v45 = vunpack.c.l.bf16 %v20729_v12 }
  0xc2   : > { %v12160_v53 = vsel %vm647_vm1, %v12159_v55, %v12158_v28  ;;  %v12667_v6 = vsel %vm647_vm1, %v12666_v52, %v12665_v8  ;;  %19888 = vrot.lane.b32.xlu1 %v19887_v50, %s20113_s14  ;;  %19883 = vrot.lane.b32.xlu0 %v19887_v50, %s20112_s13  ;;  %v12918_v55 = vunpack.c.l.bf16 %v20732_v15  ;;  %v13423_v50 = vunpack.c.l.bf16 %v13413_v9 }
  0xc3   : > { %v20748_v10 = vsel %vm650_vm2, %v12161_v16, %v12160_v53  ;;  %v20751_v11 = vsel %vm650_vm2, %v12668_v42, %v12667_v6  ;;  %v12923_v8 = vrot.slane %v12915_v25, 4  ;;  %v12924_v52 = vrot.slane %v12916_v27, 3 }
  0xc4   : > { %22908 = vst [vmem:[#allocation23_spill] sm:$0xff] %v20748_v10  ;;  %22909 = vst [vmem:[#allocation24_spill] sm:$0xff] %v20751_v11  ;;  %v19897_v30 = vpack.i.bf16 %v20751_v11, %v20748_v10  ;;  %v13422_v16 = vunpack.c.l.bf16 %v13412_v34  ;;  %v12926_v42 = vrot.slane %v12917_v45, 2  ;;  %v12928_v12 = vrot.slane %v12918_v55, 1  ;;  %v13418_v10 = vld [vmem:[%s20233_s8 + $0x14] sm:$0x8] }
  0xc5   : > { %v13424_v15 = vunpack.c.l.bf16 %v13414_v41  ;;  %v12925_v34 = vsel %vm644_vm0, %v12924_v52, %v12923_v8  ;;  %v13431_v41 = vrot.slane %v13423_v50, 4  ;;  %v13170_v52 = vrot.slane %v12915_v25, 5  ;;  %v20792_v25 = vld [vmem:[%s22846_s2 + $0x40] sm:$0xff] }
  0xc6   : > { %v13430_v9 = vrot.slane %v13422_v16, 5  ;;  %v12927_v11 = vsel %vm647_vm1, %v12926_v42, %v12925_v34  ;;  %v20781_v16 = vld [vmem:[%s22846_s2 + $0x10] sm:$0xff]  ;;  %19898 = vrot.lane.b32.xlu1 %v19897_v30, %s20113_s14  ;;  %19893 = vrot.lane.b32.xlu0 %v19897_v30, %s20112_s13 }
  0xc7   : > { %v19664_v35 = vpop.permute.xlu0 %19663  ;;  %v20786_v50 = vsel %vm650_vm2, %v12928_v12, %v12927_v11  ;;  %v13679_v11 = vunpack.c.l.bf16 %v13418_v10 }
  0xc8   : > { %v19666_v56 = vunpack.i.h.bf16 %v19664_v35  ;;  %v19665_v5 = vunpack.i.l.bf16 %v19664_v35  ;;  %v13425_v35 = vunpack.c.l.bf16 %v13415_v54  ;;  %v13417_v54 = vld [vmem:[%s20233_s8 + $0xc] sm:$0x8]  ;;  %22911 = vst [vmem:[#allocation25_spill] sm:$0xff] %v20786_v50  ;;  %v13432_v42 = vsel %vm644_vm0, %v13431_v41, %v13430_v9  ;;  %v13931_v9 = vld [vmem:[%s20233_s8 + $0x4] sm:$0x4] }
  0xc9   : > { %v13678_v34 = vunpack.c.l.bf16 %v13417_v54  ;;  %v13932_v41 = vld [vmem:[%s20233_s8 + $0xc] sm:$0x4]  ;;  %v13933_v54 = vld [vmem:[%s20233_s8 + $0x14] sm:$0x4] }
  0xca   : > { %18228 = vmatpush3.msk.msra.mxu0 %vm656_vm3, %v19665_v5  ;;  %18258 = vmatpush3.msk.msra.mxu1 %vm656_vm3, %v19666_v56  ;;  %v22910_v56 = vmov 0.0   ;;  %v13416_v5 = vld [vmem:[%s20233_s8 + $0x4] sm:$0x8]  ;;  %v13435_v8 = vrot.slane %v13425_v35, 2  ;;  %v13419_v35 = vld [vmem:[%s20233_s8 + $0x1c] sm:$0x8] }
  0xcb   : > { %18230 = vmatmul.mubr.msk.f32.vlgmr.msra.gmra.mrb[0].mxu0 %vm652_vm5, %v20723_v20  ;;  %18260 = vmatmul.mubr.msk.f32.vlgmr.msra.gmra.mrb[0].mxu1 %vm652_vm5, %v20737_v18  ;;  %v19669_v28 = vpop.permute.xlu0 %19668  ;;  %v13680_v30 = vunpack.c.l.bf16 %v13419_v35  ;;  %v13934_v35 = vld [vmem:[%s20233_s8 + $0x1c] sm:$0x4] }
  0xcc   : > { %v19671_v53 = vunpack.i.h.bf16 %v19669_v28  ;;  %v19670_v6 = vunpack.i.l.bf16 %v19669_v28  ;;  %18232 = vmatprep.subr.mxu0 %v22910_v56  ;;  %18262 = vmatprep.subr.mxu1 %v22910_v56  ;;  %v13433_v28 = vrot.slane %v13424_v15, 3 }
  0xcd   : > { %18234 = vmatprep.mubr.msk.f32.mxu0 %vm20111_vm4, %v22910_v56  ;;  %18264 = vmatprep.mubr.msk.f32.mxu1 %vm20111_vm4, %v22910_v56 }
  0xce   : > { %18233 = vmatpush3.msk.msra.mxu0 %vm656_vm3, %v19670_v6  ;;  %18263 = vmatpush3.msk.msra.mxu1 %vm656_vm3, %v19671_v53  ;;  %v13171_v53 = vrot.slane %v12916_v27, 4  ;;  %v13434_v15 = vsel %vm647_vm1, %v13433_v28, %v13432_v42  ;;  %v13677_v6 = vunpack.c.l.bf16 %v13416_v5  ;;  %v13173_v27 = vrot.slane %v12917_v45, 3  ;;  %v19674_v45 = vpop.permute.xlu1 %19673 }
  0xcf   : > { %18237 = vmatprep.subr.mxu0 %v22910_v56  ;;  %18267 = vmatprep.subr.mxu1 %v22910_v56  ;;  %v20799_v12 = vsel %vm650_vm2, %v13435_v8, %v13434_v15  ;;  %v13686_v5 = vrot.slane %v13678_v34, 5  ;;  %v13175_v28 = vrot.slane %v12918_v55, 2  ;;  %v13688_v8 = vrot.slane %v13679_v11, 4 }
  0xd0   : > { %22912 = vst [vmem:[#allocation26_spill] sm:$0xff] %v20799_v12  ;;  %v19907_v3 = vpack.i.bf16 %v20799_v12, %v20786_v50  ;;  %v13172_v7 = vsel %vm644_vm0, %v13171_v53, %v13170_v52  ;;  %v13685_v10 = vrot.slane %v13677_v6, 6  ;;  %v13941_v52 = vunpack.c.l.bf16 %v13931_v9  ;;  %v14450_v6 = vld [vmem:[%s20233_s8 + $0x4] sm:$0x8]  ;;  %v20830_v9 = vld [vmem:[%s20233_s8 + $0x14] sm:$0x8] }
  0xd1   : > { %v13942_v42 = vunpack.c.l.bf16 %v13932_v41  ;;  %v13174_v53 = vsel %vm647_vm1, %v13173_v27, %v13172_v7  ;;  %v13690_v15 = vrot.slane %v13680_v30, 3  ;;  %v13943_v34 = vunpack.c.l.bf16 %v13933_v54  ;;  %v20833_v41 = vld [vmem:[%s20233_s8 + $0x1c] sm:$0x8] }
  0xd2   : > { %v19675_v11 = vunpack.i.l.bf16 %v19674_v45  ;;  %19908 = vrot.lane.b32.xlu1 %v19907_v3, %s20113_s14  ;;  %19903 = vrot.lane.b32.xlu0 %v19907_v3, %s20112_s13  ;;  %v13949_v7 = vrot.slane %v13941_v52, 5  ;;  %v20838_v30 = vld [vmem:[%s22846_s2 + $0x18] sm:$0xff]  ;;  %v20846_v3 = vsel %vm650_vm2, %v13175_v28, %v13174_v53  ;;  %v13944_v54 = vunpack.c.l.bf16 %v13934_v35  ;;  %v19679_v53 = vpop.permute.xlu1 %19678 }
  0xd3   : > { %18235 = vmatmul.mubr.msk.f32.vlgmr.msra.gmra.mrb[0].mxu0 %vm652_vm5, %v20781_v16  ;;  %18265 = vmatmul.mubr.msk.f32.vlgmr.msra.gmra.mrb[0].mxu1 %vm652_vm5, %v20792_v25  ;;  %v13950_v27 = vrot.slane %v13942_v42, 4  ;;  %22913 = vst [vmem:[#allocation27_spill] sm:$0xff] %v20846_v3  ;;  %v19676_v52 = vunpack.i.h.bf16 %v19674_v45  ;;  %v13952_v42 = vrot.slane %v13943_v34, 3  ;;  %v14458_v50 = vunpack.c.l.bf16 %v20830_v9 }
  0xd4   : > { %18238 = vmatpush3.msk.msra.mxu0 %vm656_vm3, %v20265_v57  ;;  %18239 = vmatprep.mubr.msk.f32.mxu0 %vm20111_vm4, %v22910_v56  ;;  %v13687_v57 = vsel %vm644_vm0, %v13686_v5, %v13685_v10  ;;  %v20843_v10 = vld [vmem:[%s22846_s2 + $0x48] sm:$0xff]  ;;  %v22866_v24 = vunpack.c.l.bf16 %v20833_v41  ;;  %v19681_v9 = vunpack.i.h.bf16 %v19679_v53 }
  0xd5   : > { %18268 = vmatpush3.msk.msra.mxu1 %vm656_vm3, %v20290_v19  ;;  %18269 = vmatprep.mubr.msk.f32.mxu1 %vm20111_vm4, %v22910_v56  ;;  %v13689_v55 = vsel %vm647_vm1, %v13688_v8, %v13687_v57  ;;  %v14451_v19 = vld [vmem:[%s20233_s8 + $0xc] sm:$0x8]  ;;  %v14456_v8 = vunpack.c.l.bf16 %v14450_v6  ;;  %v13951_v57 = vsel %vm644_vm0, %v13950_v27, %v13949_v7  ;;  %v14467_v6 = vrot.slane %v14458_v50, 4 }
  0xd6   : > { %18242 = vmatprep.subr.mxu0 %v22910_v56  ;;  %18272 = vmatprep.subr.mxu1 %v22910_v56  ;;  %v20849_v5 = vsel %vm650_vm2, %v13690_v15, %v13689_v55  ;;  %v14457_v12 = vunpack.c.l.bf16 %v14451_v19  ;;  %v13954_v15 = vrot.slane %v13944_v54, 2  ;;  %v13953_v55 = vsel %vm647_vm1, %v13952_v42, %v13951_v57  ;;  %v13937_v19 = vld [vmem:[%s20233_s8 + $0x14] sm:$0x8] }
  0xd7   : > { %22914 = vst [vmem:[#allocation28_spill] sm:$0xff] %v20849_v5  ;;  %v19917_v45 = vpack.i.bf16 %v20849_v5, %v20846_v3  ;;  %v14464_v28 = vrot.slane %v14456_v8, 6  ;;  %v14469_v34 = vrot.slane %v22866_v24, 3  ;;  %v14197_v7 = vunpack.c.l.bf16 %v13936_v31  ;;  %v20886_v31 = vld [vmem:[%s22846_s2 + $0x50] sm:$0xff]  ;;  %v20896_v5 = vld [vmem:[%s20233_s8 + $0x4] sm:$0x8] }
  0xd8   : > { %v14465_v35 = vrot.slane %v14457_v12, 5  ;;  %v20889_v42 = vsel %vm650_vm2, %v13954_v15, %v13953_v55  ;;  %v14712_v24 = vrot.slane %v14457_v12, 6  ;;  %v20905_v15 = vld [vmem:[%s20233_s8 + $0xc] sm:$0x8]  ;;  %v15460_v55 = vld [vmem:[%s20233_s8 + $0x4] sm:$0x8] }
  0xd9   : > { %19918 = vrot.lane.b32.xlu1 %v19917_v45, %s20113_s14  ;;  %19913 = vrot.lane.b32.xlu0 %v19917_v45, %s20112_s13  ;;  %22915 = vst [vmem:[#allocation29_spill] sm:$0xff] %v20889_v42  ;;  %v14198_v45 = vunpack.c.l.bf16 %v13937_v19 }
  0xda   : > { %v14466_v27 = vsel %vm644_vm0, %v14465_v35, %v14464_v28  ;;  %v13938_v28 = vld [vmem:[%s20233_s8 + $0x1c] sm:$0x8] }
  0xdb   : > { %18240 = vmatmul.mubr.msk.f32.vlgmr.msra.gmra.mrb[0].mxu0 %vm652_vm5, %v20838_v30  ;;  %18270 = vmatmul.mubr.msk.f32.vlgmr.msra.gmra.mrb[0].mxu1 %vm652_vm5, %v20843_v10  ;;  %v14468_v54 = vsel %vm647_vm1, %v14467_v6, %v14466_v27  ;;  %v14205_v6 = vrot.slane %v14197_v7, 5  ;;  %v14711_v27 = vrot.slane %v14456_v8, 7  ;;  %v14199_v12 = vunpack.c.l.bf16 %v13938_v28  ;;  %v15462_v28 = vld [vmem:[%s20233_s8 + $0x14] sm:$0x8] }
  0xdc   : > { %18243 = vmatpush3.msk.msra.mxu0 %vm656_vm3, %v19675_v11  ;;  %18244 = vmatprep.mubr.msk.f32.mxu0 %vm20111_vm4, %v22910_v56  ;;  %v14196_v11 = vunpack.c.l.bf16 %v13935_v58  ;;  %v20881_v58 = vld [vmem:[%s22846_s2 + $0x20] sm:$0xff]  ;;  %v20892_v57 = vsel %vm650_vm2, %v14469_v34, %v14468_v54  ;;  %v15461_v34 = vld [vmem:[%s20233_s8 + $0xc] sm:$0x8]  ;;  %v14207_v19 = vrot.slane %v14198_v45, 4  ;;  %v14714_v7 = vrot.slane %v14458_v50, 5  ;;  %v20935_v50 = vld [vmem:[%s22846_s2 + $0x58] sm:$0xff] }
  0xdd   : > { %18273 = vmatpush3.msk.msra.mxu1 %vm656_vm3, %v19676_v52  ;;  %18274 = vmatprep.mubr.msk.f32.mxu1 %vm20111_vm4, %v22910_v56  ;;  %v19680_v52 = vunpack.i.l.bf16 %v19679_v53  ;;  %22916 = vst [vmem:[#allocation30_spill] sm:$0xff] %v20892_v57  ;;  %v19927_v53 = vpack.i.bf16 %v20892_v57, %v20889_v42  ;;  %v20920_v54 = vld [vmem:[%s20233_s8 + $0x14] sm:$0x8]  ;;  %v15470_v57 = vunpack.c.l.bf16 %v15460_v55  ;;  %v15471_v42 = vunpack.c.l.bf16 %v15461_v34  ;;  %v15463_v34 = vld [vmem:[%s20233_s8 + $0x1c] sm:$0x8] }
  0xde   : > { %18247 = vmatprep.subr.mxu0 %v22910_v56  ;;  %18277 = vmatprep.subr.mxu1 %v22910_v56  ;;  %v14204_v35 = vrot.slane %v14196_v11, 6  ;;  %v14713_v11 = vsel %vm644_vm0, %v14712_v24, %v14711_v27  ;;  %v20930_v24 = vld [vmem:[%s22846_s2 + $0x28] sm:$0xff]  ;;  %v14209_v45 = vrot.slane %v14199_v12, 3  ;;  %v14965_v55 = vunpack.c.l.bf16 %v20920_v54 }
  0xdf   : > { %19928 = vrot.lane.b32.xlu1 %v19927_v53, %s20113_s14  ;;  %19923 = vrot.lane.b32.xlu0 %v19927_v53, %s20112_s13  ;;  %v14715_v53 = vsel %vm647_vm1, %v14714_v7, %v14713_v11  ;;  %v15472_v3 = vunpack.c.l.bf16 %v15462_v28  ;;  %v15478_v22 = vrot.slane %v15470_v57, 7  ;;  %v15479_v46 = vrot.slane %v15471_v42, 6  ;;  %v15465_v12 = vld [vmem:[%s20952_s11 + $0x8] sm:$0x1] }
  0xe0   : > { %v14206_v8 = vsel %vm644_vm0, %v14205_v6, %v14204_v35  ;;  %v22917_v35 = vunpack.c.l.bf16 %v20833_v41  ;;  %v14974_v11 = vrot.slane %v14965_v55, 4 }
  0xe1   : > { %v14208_v27 = vsel %vm647_vm1, %v14207_v19, %v14206_v8  ;;  %v15473_v19 = vunpack.c.l.bf16 %v15463_v34  ;;  %v15481_v7 = vrot.slane %v15472_v3, 5  ;;  %v15480_v28 = vsel %vm644_vm0, %v15479_v46, %v15478_v22  ;;  %v19985_v3 = vld [vmem:[%s22846_s2 + $0x30] sm:$0xff]  ;;  %v19689_v46 = vpop.permute.xlu1 %19688 }
  0xe2   : > { %v14716_v6 = vrot.slane %v22917_v35, 4  ;;  %v20960_v42 = vsel %vm650_vm2, %v14209_v45, %v14208_v27  ;;  %v15466_v45 = vld [vmem:[%s20952_s11 + $0x10] sm:$0x1]  ;;  %v15726_v35 = vunpack.c.l.bf16 %v15465_v12 }
  0xe3   : > { %18245 = vmatmul.mubr.msk.f32.vlgmr.msra.gmra.mrb[0].mxu0 %vm652_vm5, %v20881_v58  ;;  %18275 = vmatmul.mubr.msk.f32.vlgmr.msra.gmra.mrb[0].mxu1 %vm652_vm5, %v20886_v31  ;;  %22918 = vst [vmem:[#allocation31_spill] sm:$0xff] %v20960_v42  ;;  %v15727_v12 = vunpack.c.l.bf16 %v15466_v45 }
  0xe4   : > { %18248 = vmatpush3.msk.msra.mxu0 %vm656_vm3, %v19680_v52  ;;  %18249 = vmatprep.mubr.msk.f32.mxu0 %vm20111_vm4, %v22910_v56  ;;  %v14963_v52 = vunpack.c.l.bf16 %v20896_v5  ;;  %v19684_v5 = vpop.permute.xlu0 %19683  ;;  %v20963_v57 = vsel %vm650_vm2, %v14716_v6, %v14715_v53  ;;  %v15482_v53 = vsel %vm647_vm1, %v15481_v7, %v15480_v28  ;;  %v15221_v28 = vrot.slane %v14965_v55, 5 }
  0xe5   : > { %18278 = vmatpush3.msk.msra.mxu1 %vm656_vm3, %v19681_v9  ;;  %18279 = vmatprep.mubr.msk.f32.mxu1 %vm20111_vm4, %v22910_v56  ;;  %v14964_v9 = vunpack.c.l.bf16 %v20905_v15  ;;  %v20942_v15 = vld [vmem:[%s20233_s8 + $0x1c] sm:$0x8]  ;;  %v19685_v41 = vunpack.i.l.bf16 %v19684_v5  ;;  %22919 = vst [vmem:[#allocation32_spill] sm:$0xff] %v20963_v57 }
  0xe6   : > { %18282 = vmatprep.subr.mxu0 %v22910_v56  ;;  %18312 = vmatprep.subr.mxu1 %v22910_v56  ;;  %v14971_v47 = vrot.slane %v14963_v52, 6  ;;  %v22875_v8 = vunpack.c.l.bf16 %v20942_v15  ;;  %v15218_v6 = vrot.slane %v14963_v52, 7  ;;  %v15733_v52 = vrot.slane %v15726_v35, 7 }
  0xe7   : > { %v14972_v26 = vrot.slane %v14964_v9, 5  ;;  %v15219_v34 = vrot.slane %v14964_v9, 6  ;;  %v19691_v35 = vunpack.i.h.bf16 %v19689_v46 }
  0xe8   : > { %v14976_v22 = vrot.slane %v22875_v8, 3 }
  0xe9   : > { %v14973_v54 = vsel %vm644_vm0, %v14972_v26, %v14971_v47  ;;  %v19937_v26 = vpack.i.bf16 %v20963_v57, %v20960_v42  ;;  %v15464_v47 = vld [vmem:[%s20952_s11] sm:$0x1]  ;;  %v15980_v57 = vld [vmem:[%s20233_s8 + $0x14] sm:$0x8] }
  0xea   : > { %v14975_v27 = vsel %vm647_vm1, %v14974_v11, %v14973_v54  ;;  %v15979_v11 = vld [vmem:[%s20233_s8 + $0xc] sm:$0x8]  ;;  %v21004_v54 = vld [vmem:[%s20952_s11 + $0x8] sm:$0x1] }
  0xeb   : > { %18250 = vmatmul.mubr.msk.f32.vlgmr.msra.gmra.mrb[0].mxu0 %vm652_vm5, %v20930_v24  ;;  %18280 = vmatmul.mubr.msk.f32.vlgmr.msra.gmra.mrb[0].mxu1 %vm652_vm5, %v20935_v50  ;;  %v21007_v9 = vsel %vm650_vm2, %v14976_v22, %v14975_v27  ;;  %v15989_v42 = vunpack.c.l.bf16 %v15979_v11  ;;  %v16503_v22 = vunpack.c.l.bf16 %v21004_v54  ;;  %v19699_v54 = vpop.permute.xlu1 %19698 }
  0xec   : > { %18283 = vmatpush3.msk.msra.mxu0 %vm656_vm3, %v20302_v32  ;;  %18284 = vmatprep.mubr.msk.f32.mxu0 %vm20111_vm4, %v22910_v56  ;;  %v19686_v32 = vunpack.i.h.bf16 %v19684_v5  ;;  %v15483_v5 = vrot.slane %v15473_v19, 4  ;;  %v15725_v19 = vunpack.c.l.bf16 %v15464_v47  ;;  %v15735_v47 = vrot.slane %v15727_v12, 6 }
  0xed   : > { %18313 = vmatpush3.msk.msra.mxu1 %vm656_vm3, %v20310_v43  ;;  %18314 = vmatprep.mubr.msk.f32.mxu1 %vm20111_vm4, %v22910_v56  ;;  %v19984_v43 = vld [vmem:[%s22846_s2] sm:$0xff]  ;;  %v16504_v12 = vunpack.c.l.bf16 %v21016_v51 }
  0xee   : > { %18287 = vmatprep.subr.mxu0 %v22910_v56  ;;  %18317 = vmatprep.subr.mxu1 %v22910_v56  ;;  %v21010_v7 = vsel %vm650_vm2, %v15483_v5, %v15482_v53  ;;  %v15734_v8 = vsel %vm644_vm0, %v15733_v52, %v15725_v19  ;;  %v15997_v19 = vrot.slane %v15989_v42, 6  ;;  %v20114_v42 = vmov 0  }
  0xef   : > { %18285 = vmatmul.mubr.msk.f32.vlgmr.msra.gmra.mrb[2].mxu0 %vm652_vm5, %v19984_v43  ;;  %18315 = vmatmul.mubr.msk.f32.vlgmr.msra.gmra.mrb[2].mxu1 %vm652_vm5, %v19985_v3  ;;  %v15978_v43 = vld [vmem:[%s20233_s8 + $0x4] sm:$0x8]  ;;  %v15220_v3 = vsel %vm644_vm0, %v15219_v34, %v15218_v6  ;;  %v19947_v55 = vpack.i.bf16 %v21010_v7, %v21007_v9  ;;  %v22920_v6 = vunpack.c.l.bf16 %v20942_v15  ;;  %v15990_v34 = vunpack.c.l.bf16 %v15980_v57 }
  0xf0   : > { %18288 = vmatpush3.msk.msra.mxu0 %vm656_vm3, %v19685_v41  ;;  %18289 = vmatprep.mubr.msk.f32.mxu0 %vm20111_vm4, %v22910_v56  ;;  %v15467_v41 = vld [vmem:[%s20952_s11 + $0x18] sm:$0x1]  ;;  %v15222_v5 = vsel %vm647_vm1, %v15221_v28, %v15220_v3 }
  0xf1   : > { %18318 = vmatpush3.msk.msra.mxu1 %vm656_vm3, %v19686_v32  ;;  %18319 = vmatprep.mubr.msk.f32.mxu1 %vm20111_vm4, %v22910_v56  ;;  %v19690_v32 = vunpack.i.l.bf16 %v19689_v46  ;;  %v15728_v45 = vunpack.c.l.bf16 %v15467_v41  ;;  %v16496_v46 = vld [vmem:[%s20952_s11] sm:$0x1]  ;;  %v15223_v27 = vrot.slane %v22920_v6, 4  ;;  %v16499_v41 = vld [vmem:[%s20952_s11 + $0x18] sm:$0x1]  ;;  %v15999_v28 = vrot.slane %v15990_v34, 5 }
  0xf2   : > { %18292 = vmatprep.subr.mxu0 %v22910_v56  ;;  %18322 = vmatprep.subr.mxu1 %v22910_v56  ;;  %v16502_v52 = vunpack.c.l.bf16 %v16496_v46  ;;  %v16505_v11 = vunpack.c.l.bf16 %v16499_v41  ;;  %v15982_v46 = vld [vmem:[%s20952_s11] sm:$0x1] }
  0xf3   : > { %19938 = vrot.lane.b32.xlu1 %v19937_v26, %s20113_s14  ;;  %19933 = vrot.lane.b32.xlu0 %v19937_v26, %s20112_s13  ;;  %v15988_v26 = vunpack.c.l.bf16 %v15978_v43  ;;  %v15737_v53 = vrot.slane %v15728_v45, 5  ;;  %v16510_v43 = vrot.slane %v16503_v22, 7  ;;  %v21047_v57 = vsel %vm650_vm2, %v15223_v27, %v15222_v5 }
  0xf4   : > { %22921 = vst [vmem:[#allocation33_spill] sm:$0xff] %v21047_v57  ;;  %19983 = vset.pattern.permute.xlu1 %v20114_v42  ;;  %19982 = vset.pattern.permute.xlu0 %v20114_v42  ;;  %v16512_v45 = vrot.slane %v16504_v12, 6  ;;  %v16514_v6 = vrot.slane %v16505_v11, 5  ;;  %v16756_v34 = vrot.slane %v16502_v52, 1 }
  0xf5   : > { %v15996_v15 = vrot.slane %v15988_v26, 7  ;;  %v16511_v3 = vsel %vm644_vm0, %v16510_v43, %v16502_v52 }
  0xf6   : > { %v16513_v27 = vsel %vm647_vm1, %v16512_v45, %v16511_v3  ;;  %v16757_v52 = vsel %vm644_vm0, %v16503_v22, %v16756_v34  ;;  %v16760_v45 = vrot.slane %v16505_v11, 6  ;;  %v19700_v22 = vunpack.i.l.bf16 %v19699_v54  ;;  %v21210_v34 = vld [vmem:[%s22846_s2 + $0x40] sm:$0xff] }
  0xf7   : > { %18290 = vmatmul.mubr.msk.f32.vlgmr.msra.gmra.mrb[2].mxu0 %vm652_vm5, %v20723_v20  ;;  %18320 = vmatmul.mubr.msk.f32.vlgmr.msra.gmra.mrb[2].mxu1 %vm652_vm5, %v20737_v18  ;;  %v15736_v20 = vsel %vm647_vm1, %v15735_v47, %v15734_v8  ;;  %v15981_v18 = vld [vmem:[%s20233_s8 + $0x1c] sm:$0x8]  ;;  %v15983_v8 = vld [vmem:[%s20952_s11 + $0x8] sm:$0x1]  ;;  %v15984_v47 = vld [vmem:[%s20952_s11 + $0x10] sm:$0x1]  ;;  %v19701_v3 = vunpack.i.h.bf16 %v19699_v54 }
  0xf8   : > { %18293 = vmatpush3.msk.msra.mxu0 %vm656_vm3, %v19690_v32  ;;  %18294 = vmatprep.mubr.msk.f32.mxu0 %vm20111_vm4, %v22910_v56  ;;  %v21050_v51 = vsel %vm650_vm2, %v15737_v53, %v15736_v20  ;;  %v15991_v32 = vunpack.c.l.bf16 %v15981_v18  ;;  %v16244_v26 = vunpack.c.l.bf16 %v15983_v8  ;;  %v15985_v53 = vld [vmem:[%s20952_s11 + $0x18] sm:$0x1]  ;;  %v16245_v20 = vunpack.c.l.bf16 %v15984_v47 }
  0xf9   : > { %18323 = vmatpush3.msk.msra.mxu1 %vm656_vm3, %v19691_v35  ;;  %18324 = vmatprep.mubr.msk.f32.mxu1 %vm20111_vm4, %v22910_v56  ;;  %22922 = vst [vmem:[#allocation34_spill] sm:$0xff] %v21050_v51  ;;  %v15998_v35 = vsel %vm644_vm0, %v15997_v19, %v15996_v15  ;;  %v21081_v15 = vsel %vm650_vm2, %v16514_v6, %v16513_v27  ;;  %v16246_v19 = vunpack.c.l.bf16 %v15985_v53  ;;  %v21178_v6 = vld [vmem:[%s22846_s2 + $0x38] sm:$0xff] }
  0xfa   : > { %18297 = vmatprep.subr.mxu0 %v22910_v56  ;;  %18327 = vmatprep.subr.mxu1 %v22910_v56  ;;  %v16001_v5 = vrot.slane %v15991_v32, 4  ;;  %v16251_v18 = vrot.slane %v16244_v26, 7  ;;  %22924 = vst [vmem:[#allocation36_spill] sm:$0xff] %v21081_v15  ;;  %v16253_v8 = vrot.slane %v16245_v20, 6  ;;  %v16758_v32 = vrot.slane %v16504_v12, 7  ;;  %v21143_v26 = vld [vmem:[%s22846_s2 + $0x30] sm:$0xff] }
  0xfb   : > { %19948 = vrot.lane.b32.xlu1 %v19947_v55, %s20113_s14  ;;  %19943 = vrot.lane.b32.xlu0 %v19947_v55, %s20112_s13  ;;  %v19957_v55 = vpack.i.bf16 %v21050_v51, %v21047_v57  ;;  %v16255_v12 = vrot.slane %v16246_v19, 5 }
  0xff   : > { %18295 = vmatmul.mubr.msk.f32.vlgmr.msra.gmra.mrb[2].mxu0 %vm652_vm5, %v20781_v16  ;;  %18325 = vmatmul.mubr.msk.f32.vlgmr.msra.gmra.mrb[2].mxu1 %vm652_vm5, %v20792_v25  ;;  %v19694_v16 = vpop.permute.xlu0 %19693  ;;  %v16000_v25 = vsel %vm647_vm1, %v15999_v28, %v15998_v35 }
 0x100   : > { %18298 = vmatpush3.msk.msra.mxu0 %vm656_vm3, %v20324_v59  ;;  %18299 = vmatprep.mubr.msk.f32.mxu0 %vm20111_vm4, %v22910_v56  ;;  %v16243_v59 = vunpack.c.l.bf16 %v15982_v46  ;;  %v21078_v41 = vsel %vm650_vm2, %v16001_v5, %v16000_v25  ;;  %v19696_v43 = vunpack.i.h.bf16 %v19694_v16  ;;  %v21173_v5 = vld [vmem:[%s22846_s2 + $0x8] sm:$0xff] }
 0x101   : > { %18328 = vmatpush3.msk.msra.mxu1 %vm656_vm3, %v20329_v0  ;;  %18329 = vmatprep.mubr.msk.f32.mxu1 %vm20111_vm4, %v22910_v56  ;;  %v19695_v0 = vunpack.i.l.bf16 %v19694_v16  ;;  %22923 = vst [vmem:[#allocation35_spill] sm:$0xff] %v21078_v41  ;;  %v19967_v28 = vpack.i.bf16 %v21081_v15, %v21078_v41 }
 0x102   : > { %18302 = vmatprep.subr.mxu0 %v22910_v56  ;;  %18332 = vmatprep.subr.mxu1 %v22910_v56  ;;  %v16252_v42 = vsel %vm644_vm0, %v16251_v18, %v16243_v59  ;;  %v21205_v18 = vld [vmem:[%s22846_s2 + $0x10] sm:$0xff] }
 0x103   : > { %19958 = vrot.lane.b32.xlu1 %v19957_v55, %s20113_s14  ;;  %19953 = vrot.lane.b32.xlu0 %v19957_v55, %s20112_s13 }
 0x107   : > { %18300 = vmatmul.mubr.msk.f32.vlgmr.msra.gmra.mrb[2].mxu0 %vm652_vm5, %v20838_v30  ;;  %18330 = vmatmul.mubr.msk.f32.vlgmr.msra.gmra.mrb[2].mxu1 %vm652_vm5, %v20843_v10  ;;  %v16254_v30 = vsel %vm647_vm1, %v16253_v8, %v16252_v42  ;;  %v16759_v10 = vsel %vm647_vm1, %v16758_v32, %v16757_v52  ;;  %v21263_v52 = vld [vmem:[%s22846_s2 + $0x20] sm:$0xff] }
 0x108   : > { %18303 = vmatpush3.msk.msra.mxu0 %vm656_vm3, %v19695_v0  ;;  %18304 = vmatprep.mubr.msk.f32.mxu0 %vm20111_vm4, %v22910_v56  ;;  %v21106_v11 = vsel %vm650_vm2, %v16255_v12, %v16254_v30  ;;  %v21109_v35 = vsel %vm650_vm2, %v16760_v45, %v16759_v10 }
 0x109   : > { %18333 = vmatpush3.msk.msra.mxu1 %vm656_vm3, %v19696_v43  ;;  %18334 = vmatprep.mubr.msk.f32.mxu1 %vm20111_vm4, %v22910_v56  ;;  %22925 = vst [vmem:[#allocation37_spill] sm:$0xff] %v21106_v11  ;;  %22926 = vst [vmem:[#allocation38_spill] sm:$0xff] %v21109_v35  ;;  %v19977_v47 = vpack.i.bf16 %v21109_v35, %v21106_v11  ;;  %v21568_v11 = vld [vmem:[%s22846_s2 + $0x30] sm:$0xff] }
 0x10a   : > { %18307 = vmatprep.subr.mxu0 %v22910_v56  ;;  %18337 = vmatprep.subr.mxu1 %v22910_v56 }
 0x10b   : > { %19968 = vrot.lane.b32.xlu1 %v19967_v28, %s20113_s14  ;;  %19963 = vrot.lane.b32.xlu0 %v19967_v28, %s20112_s13  ;;  %v21268_v28 = vld [vmem:[%s22846_s2 + $0x50] sm:$0xff] }
 0x10f   : > { %18305 = vmatmul.mubr.msk.f32.vlgmr.msra.gmra.mrb[2].mxu0 %vm652_vm5, %v20881_v58  ;;  %18335 = vmatmul.mubr.msk.f32.vlgmr.msra.gmra.mrb[2].mxu1 %vm652_vm5, %v20886_v31  ;;  %v19704_v58 = vpop.permute.xlu0 %19703  ;;  %v21138_v31 = vld [vmem:[%s22846_s2] sm:$0xff] }
 0x110   : > { %18308 = vmatpush3.msk.msra.mxu0 %vm656_vm3, %v19700_v22  ;;  %18309 = vmatprep.mubr.msk.f32.mxu0 %vm20111_vm4, %v22910_v56 }
 0x111   : > { %18338 = vmatpush3.msk.msra.mxu1 %vm656_vm3, %v19701_v3  ;;  %18339 = vmatprep.mubr.msk.f32.mxu1 %vm20111_vm4, %v22910_v56  ;;  %v21295_v3 = vld [vmem:[%s22846_s2 + $0x28] sm:$0xff] }
 0x112   : > { %18342 = vmatprep.subr.mxu0 %v22910_v56  ;;  %18372 = vmatprep.subr.mxu1 %v22910_v56 }
 0x113   : > { %19978 = vrot.lane.b32.xlu1 %v19977_v47, %s20113_s14  ;;  %19973 = vrot.lane.b32.xlu0 %v19977_v47, %s20112_s13  ;;  %v19714_v55 = vpop.permute.xlu0 %19713  ;;  %v21300_v47 = vld [vmem:[%s22846_s2 + $0x58] sm:$0xff]  ;;  %s20116_s14 = smov 64   ;;  %s20117_s13 = smov 96  }
 0x114   : > { %v19715_v43 = vunpack.i.l.bf16 %v19714_v55  ;;  %v19716_v8 = vunpack.i.h.bf16 %v19714_v55 }
 0x117   : > { %18310 = vmatmul.mubr.msk.f32.vlgmr.msra.gmra.mrb[2].mxu0 %vm652_vm5, %v20930_v24  ;;  %18340 = vmatmul.mubr.msk.f32.vlgmr.msra.gmra.mrb[2].mxu1 %vm652_vm5, %v20935_v50  ;;  %v19705_v24 = vunpack.i.l.bf16 %v19704_v58  ;;  %v19709_v50 = vpop.permute.xlu1 %19708  ;;  %v21180_v27 = vpop.permute.xlu0 %19723 }
 0x118   : > { %18343 = vmatpush3.msk.msra.mxu0 %vm656_vm3, %v20342_v21  ;;  %18344 = vmatprep.mubr.msk.f32.mxu0 %vm20111_vm4, %v22910_v56  ;;  %v19706_v21 = vunpack.i.h.bf16 %v19704_v58  ;;  %v19710_v16 = vunpack.i.l.bf16 %v19709_v50  ;;  %v19711_v25 = vunpack.i.h.bf16 %v19709_v50  ;;  %v19725_v58 = vunpack.i.l.bf16 %v21180_v27 }
 0x119   : > { %18373 = vmatpush3.msk.msra.mxu1 %vm656_vm3, %v20352_v33  ;;  %18374 = vmatprep.mubr.msk.f32.mxu1 %vm20111_vm4, %v22910_v56  ;;  %v21161_v33 = vld [vmem:[%s22847_s3] sm:$0xff]  ;;  %v19726_v50 = vunpack.i.h.bf16 %v21180_v27 }
 0x11a   : > { %18347 = vmatprep.subr.mxu0 %v22910_v56  ;;  %18377 = vmatprep.subr.mxu1 %v22910_v56 }
 0x11b   : > { %18345 = vmatmul.mubr.msk.f32.vlgmr.msra.gmra.mrb[4].mxu0 %vm652_vm5, %v21138_v31  ;;  %18375 = vmatmul.mubr.msk.f32.vlgmr.msra.gmra.mrb[4].mxu1 %vm652_vm5, %v21143_v26  ;;  %v19719_v46 = vpop.permute.xlu1 %19718  ;;  %v21198_v59 = vpop.permute.xlu0 %19733 }
 0x11c   : > { %18348 = vmatpush3.msk.msra.mxu0 %vm656_vm3, %v19705_v24  ;;  %18349 = vmatprep.mubr.msk.f32.mxu0 %vm20111_vm4, %v22910_v56  ;;  %v19720_v12 = vunpack.i.l.bf16 %v19719_v46  ;;  %v19721_v30 = vunpack.i.h.bf16 %v19719_v46 }
 0x11d   : > { %18378 = vmatpush3.msk.msra.mxu1 %vm656_vm3, %v19706_v21  ;;  %18379 = vmatprep.mubr.msk.f32.mxu1 %vm20111_vm4, %v22910_v56 }
 0x11e   : > { %18352 = vmatprep.subr.mxu0 %v22910_v56  ;;  %18382 = vmatprep.subr.mxu1 %v22910_v56 }
 0x11f   : > { %1243 = vperm.xlu1 %19983, %v21161_v33   ;;  %731 = vperm.xlu0 %19982, %v21161_v33   ;;  %v21182_v53 = vpop.permute.xlu1 %19728  ;;  %v21222_v19 = vpop.permute.xlu0 %19743 }
 0x120   : > { %v19730_v55 = vunpack.i.l.bf16 %v21182_v53  ;;  %v19731_v46 = vunpack.i.h.bf16 %v21182_v53 }
 0x123   : > { %18350 = vmatmul.mubr.msk.f32.vlgmr.msra.gmra.mrb[4].mxu0 %vm652_vm5, %v21173_v5  ;;  %18380 = vmatmul.mubr.msk.f32.vlgmr.msra.gmra.mrb[4].mxu1 %vm652_vm5, %v21178_v6  ;;  %v21196_v20 = vpop.permute.xlu1 %19738  ;;  %v21244_v42 = vpop.permute.xlu0 %19753 }
 0x124   : > { %18353 = vmatpush3.msk.msra.mxu0 %vm656_vm3, %v19710_v16  ;;  %18354 = vmatprep.mubr.msk.f32.mxu0 %vm20111_vm4, %v22910_v56 }
 0x125   : > { %18383 = vmatpush3.msk.msra.mxu1 %vm656_vm3, %v19711_v25  ;;  %18384 = vmatprep.mubr.msk.f32.mxu1 %vm20111_vm4, %v22910_v56 }
 0x126   : > { %18357 = vmatprep.subr.mxu0 %v22910_v56  ;;  %18387 = vmatprep.subr.mxu1 %v22910_v56 }
 0x127   : > { %1766 = vperm.xlu0 %19982, %v21161_v33   ;;  %3291 = vperm.xlu1 %19983, %v21161_v33   ;;  %v21220_v0 = vpop.permute.xlu1 %19748  ;;  %v21272_v54 = vpop.permute.xlu0 %19763 }
 0x128   : > { %v19766_v15 = vunpack.i.h.bf16 %v21272_v54 }
 0x12b   : > { %18355 = vmatmul.mubr.msk.f32.vlgmr.msra.gmra.mrb[4].mxu0 %vm652_vm5, %v21205_v18  ;;  %18385 = vmatmul.mubr.msk.f32.vlgmr.msra.gmra.mrb[4].mxu1 %vm652_vm5, %v21210_v34  ;;  %v21242_v32 = vpop.permute.xlu1 %19758  ;;  %v21288_v22 = vpop.permute.xlu0 %19773 }
 0x12c   : > { %18358 = vmatpush3.msk.msra.mxu0 %vm656_vm3, %v20360_v40  ;;  %18359 = vmatprep.mubr.msk.f32.mxu0 %vm20111_vm4, %v22910_v56  ;;  %v21235_v40 = vld [vmem:[%s22846_s2 + $0x18] sm:$0xff] }
 0x12d   : > { %18388 = vmatpush3.msk.msra.mxu1 %vm656_vm3, %v20371_v61  ;;  %18389 = vmatprep.mubr.msk.f32.mxu1 %vm20111_vm4, %v22910_v56  ;;  %v21240_v61 = vld [vmem:[%s22846_s2 + $0x48] sm:$0xff] }
 0x12e   : > { %18362 = vmatprep.subr.mxu0 %v22910_v56  ;;  %18392 = vmatprep.subr.mxu1 %v22910_v56 }
 0x12f   : > { %2280 = vperm.xlu0 %19982, %v21161_v33   ;;  %3809 = vperm.xlu1 %19983, %v21161_v33   ;;  %v21270_v45 = vpop.permute.xlu1 %19768  ;;  %v21313_v21 = vpop.permute.xlu0 %19783 }
 0x130   : > { %v19771_v57 = vunpack.i.h.bf16 %v21270_v45 }
 0x133   : > { %18360 = vmatmul.mubr.msk.f32.vlgmr.msra.gmra.mrb[4].mxu0 %vm652_vm5, %v21235_v40  ;;  %18390 = vmatmul.mubr.msk.f32.vlgmr.msra.gmra.mrb[4].mxu1 %vm652_vm5, %v21240_v61  ;;  %v21286_v10 = vpop.permute.xlu1 %19778 }
 0x134   : > { %18363 = vmatpush3.msk.msra.mxu0 %vm656_vm3, %v19715_v43  ;;  %18364 = vmatprep.mubr.msk.f32.mxu0 %vm20111_vm4, %v22910_v56  ;;  %v19735_v43 = vunpack.i.l.bf16 %v21198_v59 }
 0x135   : > { %18393 = vmatpush3.msk.msra.mxu1 %vm656_vm3, %v19716_v8  ;;  %18394 = vmatprep.mubr.msk.f32.mxu1 %vm20111_vm4, %v22910_v56 }
 0x136   : > { %18367 = vmatprep.subr.mxu0 %v22910_v56  ;;  %18397 = vmatprep.subr.mxu1 %v22910_v56 }
 0x137   : > { %4324 = vperm.xlu1 %19983, %v21161_v33   ;;  %2786 = vperm.xlu0 %19982, %v21161_v33   ;;  %v21311_v24 = vpop.permute.xlu1 %19788 }
 0x13b   : > { %18365 = vmatmul.mubr.msk.f32.vlgmr.msra.gmra.mrb[4].mxu0 %vm652_vm5, %v21263_v52  ;;  %18395 = vmatmul.mubr.msk.f32.vlgmr.msra.gmra.mrb[4].mxu1 %vm652_vm5, %v21268_v28 }
 0x13c   : > { %18368 = vmatpush3.msk.msra.mxu0 %vm656_vm3, %v19720_v12  ;;  %18369 = vmatprep.mubr.msk.f32.mxu0 %vm20111_vm4, %v22910_v56  ;;  %v19736_v12 = vunpack.i.h.bf16 %v21198_v59 }
 0x13d   : > { %18398 = vmatpush3.msk.msra.mxu1 %vm656_vm3, %v19721_v30  ;;  %18399 = vmatprep.mubr.msk.f32.mxu1 %vm20111_vm4, %v22910_v56  ;;  %v19740_v30 = vunpack.i.l.bf16 %v21196_v20 }
 0x13e   : > { %18402 = vmatprep.subr.mxu0 %v22910_v56  ;;  %18432 = vmatprep.subr.mxu1 %v22910_v56 }
 0x13f   : > { %4831 = vperm.xlu1 %19983, %v21161_v33   ;;  %5338 = vperm.xlu0 %19982, %v21161_v33  }
 0x143   : > { %18370 = vmatmul.mubr.msk.f32.vlgmr.msra.gmra.mrb[4].mxu0 %vm652_vm5, %v21295_v3  ;;  %18400 = vmatmul.mubr.msk.f32.vlgmr.msra.gmra.mrb[4].mxu1 %vm652_vm5, %v21300_v47 }
 0x144   : > { %18403 = vmatpush3.msk.msra.mxu0 %vm656_vm3, %v20383_v13  ;;  %18404 = vmatprep.mubr.msk.f32.mxu0 %vm20111_vm4, %v22910_v56  ;;  %v21334_v13 = vpop.permute.xlu1 %19798 }
 0x145   : > { %18433 = vmatpush3.msk.msra.mxu1 %vm656_vm3, %v20390_v29  ;;  %18434 = vmatprep.mubr.msk.f32.mxu1 %vm20111_vm4, %v22910_v56  ;;  %v21336_v29 = vpop.permute.xlu0 %19793 }
 0x146   : > { %18407 = vmatprep.subr.mxu0 %v22910_v56  ;;  %18437 = vmatprep.subr.mxu1 %v22910_v56 }
 0x147   : > { %18405 = vmatmul.mubr.msk.f32.vlgmr.msra.gmra.mrb[6].mxu0 %vm652_vm5, %v21138_v31  ;;  %18435 = vmatmul.mubr.msk.f32.vlgmr.msra.gmra.mrb[6].mxu1 %vm652_vm5, %v21143_v26 }
 0x148   : > { %18408 = vmatpush3.msk.msra.mxu0 %vm656_vm3, %v19725_v58  ;;  %18409 = vmatprep.mubr.msk.f32.mxu0 %vm20111_vm4, %v22910_v56  ;;  %v21349_v16 = vpop.permute.xlu1 %19808  ;;  %v19741_v58 = vunpack.i.h.bf16 %v21196_v20 }
 0x149   : > { %18438 = vmatpush3.msk.msra.mxu1 %vm656_vm3, %v19726_v50  ;;  %18439 = vmatprep.mubr.msk.f32.mxu1 %vm20111_vm4, %v22910_v56  ;;  %v21351_v25 = vpop.permute.xlu0 %19803 }
 0x14a   : > { %18412 = vmatprep.subr.mxu0 %v22910_v56  ;;  %18442 = vmatprep.subr.mxu1 %v22910_v56 }
 0x14b   : > { %7386 = vperm.xlu1 %19983, %v21161_v33   ;;  %9427 = vperm.xlu0 %19982, %v21161_v33  }
 0x14c   : > { %v21360_v27 = vpop.permute.xlu1 %19818 }
 0x14d   : > { %v21362_v53 = vpop.permute.xlu0 %19813 }
 0x14f   : > { %18410 = vmatmul.mubr.msk.f32.vlgmr.msra.gmra.mrb[6].mxu0 %vm652_vm5, %v21173_v5  ;;  %18440 = vmatmul.mubr.msk.f32.vlgmr.msra.gmra.mrb[6].mxu1 %vm652_vm5, %v21178_v6 }
 0x150   : > { %18413 = vmatpush3.msk.msra.mxu0 %vm656_vm3, %v19730_v55  ;;  %18414 = vmatprep.mubr.msk.f32.mxu0 %vm20111_vm4, %v22910_v56 }
 0x151   : > { %18443 = vmatpush3.msk.msra.mxu1 %vm656_vm3, %v19731_v46  ;;  %18444 = vmatprep.mubr.msk.f32.mxu1 %vm20111_vm4, %v22910_v56  ;;  %v21383_v8 = vpop.permute.xlu0 %19823 }
 0x152   : > { %18417 = vmatprep.subr.mxu0 %v22910_v56  ;;  %18447 = vmatprep.subr.mxu1 %v22910_v56 }
 0x153   : > { %11467 = vperm.xlu1 %19983, %v21161_v33   ;;  %13514 = vperm.xlu0 %19982, %v21161_v33  }
 0x155   : > { %v21400_v59 = vpop.permute.xlu0 %19833 }
 0x157   : > { %18415 = vmatmul.mubr.msk.f32.vlgmr.msra.gmra.mrb[6].mxu0 %vm652_vm5, %v21205_v18  ;;  %18445 = vmatmul.mubr.msk.f32.vlgmr.msra.gmra.mrb[6].mxu1 %vm652_vm5, %v21210_v34 }
 0x158   : > { %18418 = vmatpush3.msk.msra.mxu0 %vm656_vm3, %v20405_v48  ;;  %18419 = vmatprep.mubr.msk.f32.mxu0 %vm20111_vm4, %v22910_v56  ;;  %v21381_v48 = vpop.permute.xlu1 %19828 }
 0x159   : > { %18448 = vmatpush3.msk.msra.mxu1 %vm656_vm3, %v20408_v49  ;;  %18449 = vmatprep.mubr.msk.f32.mxu1 %vm20111_vm4, %v22910_v56  ;;  %v21415_v55 = vpop.permute.xlu0 %19843 }
 0x15a   : > { %18422 = vmatprep.subr.mxu0 %v22910_v56  ;;  %18452 = vmatprep.subr.mxu1 %v22910_v56 }
 0x15b   : > { %15562 = vperm.xlu1 %19983, %v21161_v33   ;;  %5857 = vperm.xlu0 %19982, %v21161_v33  }
 0x15c   : > { %v21398_v49 = vpop.permute.xlu1 %19838 }
 0x15d   : > { %v21426_v46 = vpop.permute.xlu0 %19853 }
 0x15f   : > { %18420 = vmatmul.mubr.msk.f32.vlgmr.msra.gmra.mrb[6].mxu0 %vm652_vm5, %v21235_v40  ;;  %18450 = vmatmul.mubr.msk.f32.vlgmr.msra.gmra.mrb[6].mxu1 %vm652_vm5, %v21240_v61 }
 0x160   : > { %18423 = vmatpush3.msk.msra.mxu0 %vm656_vm3, %v19735_v43  ;;  %18424 = vmatprep.mubr.msk.f32.mxu0 %vm20111_vm4, %v22910_v56  ;;  %v21413_v50 = vpop.permute.xlu1 %19848  ;;  %v19745_v43 = vunpack.i.l.bf16 %v21222_v19 }
 0x161   : > { %18453 = vmatpush3.msk.msra.mxu1 %vm656_vm3, %v19736_v12  ;;  %18454 = vmatprep.mubr.msk.f32.mxu1 %vm20111_vm4, %v22910_v56  ;;  %v19746_v12 = vunpack.i.h.bf16 %v21222_v19 }
 0x162   : > { %18427 = vmatprep.subr.mxu0 %v22910_v56  ;;  %18457 = vmatprep.subr.mxu1 %v22910_v56 }
 0x163   : > { %7904 = vperm.xlu1 %19983, %v21161_v33   ;;  %9944 = vperm.xlu0 %19982, %v21161_v33  }
 0x164   : > { %v21424_v20 = vpop.permute.xlu1 %19858 }
 0x167   : > { %18425 = vmatmul.mubr.msk.f32.vlgmr.msra.gmra.mrb[6].mxu0 %vm652_vm5, %v21263_v52  ;;  %18455 = vmatmul.mubr.msk.f32.vlgmr.msra.gmra.mrb[6].mxu1 %vm652_vm5, %v21268_v28 }
 0x168   : > { %18428 = vmatpush3.msk.msra.mxu0 %vm656_vm3, %v19740_v30  ;;  %18429 = vmatprep.mubr.msk.f32.mxu0 %vm20111_vm4, %v22910_v56 }
 0x169   : > { %18458 = vmatpush3.msk.msra.mxu1 %vm656_vm3, %v19741_v58  ;;  %18459 = vmatprep.mubr.msk.f32.mxu1 %vm20111_vm4, %v22910_v56 }
 0x16a   : > { %18462 = vmatprep.subr.mxu0 %v22910_v56  ;;  %18492 = vmatprep.subr.mxu1 %v22910_v56 }
 0x16b   : > { %11985 = vperm.xlu1 %19983, %v21161_v33   ;;  %14033 = vperm.xlu0 %19982, %v21161_v33  }
 0x16f   : > { %18430 = vmatmul.mubr.msk.f32.vlgmr.msra.gmra.mrb[6].mxu0 %vm652_vm5, %v21295_v3  ;;  %18460 = vmatmul.mubr.msk.f32.vlgmr.msra.gmra.mrb[6].mxu1 %vm652_vm5, %v21300_v47 }
 0x170   : > { %18463 = vmatpush3.msk.msra.mxu0 %vm656_vm3, %v20422_v14  ;;  %18464 = vmatprep.mubr.msk.f32.mxu0 %vm20111_vm4, %v22910_v56  ;;  %v21451_v14 = vpop.permute.xlu1 %19868 }
 0x171   : > { %18493 = vmatpush3.msk.msra.mxu1 %vm656_vm3, %v20434_v36  ;;  %18494 = vmatprep.mubr.msk.f32.mxu1 %vm20111_vm4, %v22910_v56  ;;  %v21453_v36 = vpop.permute.xlu0 %19863 }
 0x172   : > { %18467 = vmatprep.subr.mxu0 %v22910_v56  ;;  %18497 = vmatprep.subr.mxu1 %v22910_v56 }
 0x173   : > { %18465 = vmatmul.mubr.msk.f32.vlgmr.msra.gmra.mrb[8].mxu0 %vm652_vm5, %v21138_v31  ;;  %18495 = vmatmul.mubr.msk.f32.vlgmr.msra.gmra.mrb[8].mxu1 %vm652_vm5, %v21143_v26  ;;  %v19750_v31 = vunpack.i.l.bf16 %v21220_v0  ;;  %v19751_v26 = vunpack.i.h.bf16 %v21220_v0 }
 0x174   : > { %18468 = vmatpush3.msk.msra.mxu0 %vm656_vm3, %v19745_v43  ;;  %18469 = vmatprep.mubr.msk.f32.mxu0 %vm20111_vm4, %v22910_v56  ;;  %v21464_v19 = vpop.permute.xlu1 %19878  ;;  %v19756_v43 = vunpack.i.h.bf16 %v21244_v42 }
 0x175   : > { %18498 = vmatpush3.msk.msra.mxu1 %vm656_vm3, %v19746_v12  ;;  %18499 = vmatprep.mubr.msk.f32.mxu1 %vm20111_vm4, %v22910_v56  ;;  %v21466_v30 = vpop.permute.xlu0 %19873 }
 0x176   : > { %18472 = vmatprep.subr.mxu0 %v22910_v56  ;;  %18502 = vmatprep.subr.mxu1 %v22910_v56 }
 0x177   : > { %16080 = vperm.xlu1 %19983, %v21161_v33   ;;  %6372 = vperm.xlu0 %19982, %v21161_v33  }
 0x17b   : > { %18470 = vmatmul.mubr.msk.f32.vlgmr.msra.gmra.mrb[8].mxu0 %vm652_vm5, %v21173_v5  ;;  %18500 = vmatmul.mubr.msk.f32.vlgmr.msra.gmra.mrb[8].mxu1 %vm652_vm5, %v21178_v6  ;;  %v21482_v5 = vpop.permute.xlu1 %19888  ;;  %v21484_v6 = vpop.permute.xlu0 %19883 }
 0x17c   : > { %18473 = vmatpush3.msk.msra.mxu0 %vm656_vm3, %v19750_v31  ;;  %18474 = vmatprep.mubr.msk.f32.mxu0 %vm20111_vm4, %v22910_v56  ;;  %v6785_v31 = vld [vmem:[%s22847_s3] sm:$0xff] }
 0x17d   : > { %18503 = vmatpush3.msk.msra.mxu1 %vm656_vm3, %v19751_v26  ;;  %18504 = vmatprep.mubr.msk.f32.mxu1 %vm20111_vm4, %v22910_v56  ;;  %v19761_v26 = vunpack.i.h.bf16 %v21242_v32 }
 0x17e   : > { %18477 = vmatprep.subr.mxu0 %v22910_v56  ;;  %18507 = vmatprep.subr.mxu1 %v22910_v56 }
 0x17f   : > { %8417 = vperm.xlu1 %19983, %v21161_v33   ;;  %10457 = vperm.xlu0 %19982, %v21161_v33   ;;  %v21500_v0 = vpop.permute.xlu1 %19898  ;;  %v21502_v58 = vpop.permute.xlu0 %19893 }
 0x183   : > { %18475 = vmatmul.mubr.msk.f32.vlgmr.msra.gmra.mrb[8].mxu0 %vm652_vm5, %v21205_v18  ;;  %18505 = vmatmul.mubr.msk.f32.vlgmr.msra.gmra.mrb[8].mxu1 %vm652_vm5, %v21210_v34  ;;  %v21517_v12 = vpop.permute.xlu0 %19903 }
 0x184   : > { %18478 = vmatpush3.msk.msra.mxu0 %vm656_vm3, %v20437_v37  ;;  %18479 = vmatprep.mubr.msk.f32.mxu0 %vm20111_vm4, %v22910_v56  ;;  %v19755_v37 = vunpack.i.l.bf16 %v21244_v42  ;;  %v19760_v42 = vunpack.i.l.bf16 %v21242_v32 }
 0x185   : > { %18508 = vmatpush3.msk.msra.mxu1 %vm656_vm3, %v20451_v4  ;;  %18509 = vmatprep.mubr.msk.f32.mxu1 %vm20111_vm4, %v22910_v56  ;;  %v21515_v4 = vpop.permute.xlu1 %19908 }
 0x186   : > { %18482 = vmatprep.subr.mxu0 %v22910_v56  ;;  %18512 = vmatprep.subr.mxu1 %v22910_v56 }
 0x187   : > { %12500 = vperm.xlu1 %19983, %v21161_v33   ;;  %14548 = vperm.xlu0 %19982, %v21161_v33   ;;  %v21532_v35 = vpop.permute.xlu0 %19913 }
 0x18b   : > { %18480 = vmatmul.mubr.msk.f32.vlgmr.msra.gmra.mrb[8].mxu0 %vm652_vm5, %v21235_v40  ;;  %18510 = vmatmul.mubr.msk.f32.vlgmr.msra.gmra.mrb[8].mxu1 %vm652_vm5, %v21240_v61 }
 0x18c   : > { %18483 = vmatpush3.msk.msra.mxu0 %vm656_vm3, %v19755_v37  ;;  %18484 = vmatprep.mubr.msk.f32.mxu0 %vm20111_vm4, %v22910_v56  ;;  %v21530_v37 = vpop.permute.xlu1 %19918 }
 0x18d   : > { %18513 = vmatpush3.msk.msra.mxu1 %vm656_vm3, %v19756_v43  ;;  %18514 = vmatprep.mubr.msk.f32.mxu1 %vm20111_vm4, %v22910_v56  ;;  %v21549_v43 = vpop.permute.xlu0 %19923 }
 0x18e   : > { %18487 = vmatprep.subr.mxu0 %v22910_v56  ;;  %18517 = vmatprep.subr.mxu1 %v22910_v56 }
 0x18f   : > { %16593 = vperm.xlu1 %19983, %v21161_v33   ;;  %6879 = vperm.xlu0 %19982, %v6785_v31  }
 0x190   : > { %v21547_v32 = vpop.permute.xlu1 %19928 }
 0x191   : > { %v21579_v41 = vpop.permute.xlu0 %19933 }
 0x193   : > { %18485 = vmatmul.mubr.msk.f32.vlgmr.msra.gmra.mrb[8].mxu0 %vm652_vm5, %v21263_v52  ;;  %18515 = vmatmul.mubr.msk.f32.vlgmr.msra.gmra.mrb[8].mxu1 %vm652_vm5, %v21268_v28 }
 0x194   : > { %18488 = vmatpush3.msk.msra.mxu0 %vm656_vm3, %v19760_v42  ;;  %18489 = vmatprep.mubr.msk.f32.mxu0 %vm20111_vm4, %v22910_v56  ;;  %v19765_v42 = vunpack.i.l.bf16 %v21272_v54  ;;  %v21598_v54 = vld [vmem:[%s22846_s2 + $0x8] sm:$0xff] }
 0x195   : > { %18518 = vmatpush3.msk.msra.mxu1 %vm656_vm3, %v19761_v26  ;;  %18519 = vmatprep.mubr.msk.f32.mxu1 %vm20111_vm4, %v22910_v56  ;;  %v21563_v26 = vld [vmem:[%s22846_s2] sm:$0xff]  ;;  %v21607_v51 = vpop.permute.xlu0 %19943 }
 0x196   : > { %18522 = vmatprep.subr.mxu0 %v22910_v56  ;;  %18552 = vmatprep.subr.mxu1 %v22910_v56 }
 0x197   : > { %8922 = vperm.xlu1 %19983, %v21161_v33   ;;  %10962 = vperm.xlu0 %19982, %v6785_v31  }
 0x19b   : > { %18490 = vmatmul.mubr.msk.f32.vlgmr.msra.gmra.mrb[8].mxu0 %vm652_vm5, %v21295_v3  ;;  %18520 = vmatmul.mubr.msk.f32.vlgmr.msra.gmra.mrb[8].mxu1 %vm652_vm5, %v21300_v47 }
 0x19c   : > { %18523 = vmatpush3.msk.msra.mxu0 %vm656_vm3, %v20463_v23  ;;  %18524 = vmatprep.mubr.msk.f32.mxu0 %vm20111_vm4, %v22910_v56  ;;  %v21577_v23 = vpop.permute.xlu1 %19938 }
 0x19d   : > { %18553 = vmatpush3.msk.msra.mxu1 %vm656_vm3, %v20470_v44  ;;  %18554 = vmatprep.mubr.msk.f32.mxu1 %vm20111_vm4, %v22910_v56  ;;  %v19770_v44 = vunpack.i.l.bf16 %v21270_v45 }
 0x19e   : > { %18527 = vmatprep.subr.mxu0 %v22910_v56  ;;  %18557 = vmatprep.subr.mxu1 %v22910_v56 }
 0x19f   : > { %18525 = vmatmul.mubr.msk.f32.vlgmr.msra.gmra.mrb[10].mxu0 %vm652_vm5, %v21563_v26  ;;  %18555 = vmatmul.mubr.msk.f32.vlgmr.msra.gmra.mrb[10].mxu1 %vm652_vm5, %v21568_v11 }
 0x1a0   : > { %18528 = vmatpush3.msk.msra.mxu0 %vm656_vm3, %v19765_v42  ;;  %18529 = vmatprep.mubr.msk.f32.mxu0 %vm20111_vm4, %v22910_v56  ;;  %v21605_v42 = vpop.permute.xlu1 %19948 }
 0x1a1   : > { %18558 = vmatpush3.msk.msra.mxu1 %vm656_vm3, %v19766_v15  ;;  %18559 = vmatprep.mubr.msk.f32.mxu1 %vm20111_vm4, %v22910_v56  ;;  %v21603_v15 = vld [vmem:[%s22846_s2 + $0x38] sm:$0xff] }
 0x1a2   : > { %18532 = vmatprep.subr.mxu0 %v22910_v56  ;;  %18562 = vmatprep.subr.mxu1 %v22910_v56 }
 0x1a3   : > { %13007 = vperm.xlu1 %19983, %v21161_v33   ;;  %15055 = vperm.xlu0 %19982, %v6785_v31   ;;  %v21622_v31 = vpop.permute.xlu0 %19953 }
 0x1a4   : > { %v21620_v33 = vpop.permute.xlu1 %19958 }
 0x1a7   : > { %18530 = vmatmul.mubr.msk.f32.vlgmr.msra.gmra.mrb[10].mxu0 %vm652_vm5, %v21598_v54  ;;  %18560 = vmatmul.mubr.msk.f32.vlgmr.msra.gmra.mrb[10].mxu1 %vm652_vm5, %v21603_v15 }
 0x1a8   : > { %18533 = vmatpush3.msk.msra.mxu0 %vm656_vm3, %v19770_v44  ;;  %18534 = vmatprep.mubr.msk.f32.mxu0 %vm20111_vm4, %v22910_v56  ;;  %v21630_v45 = vpop.permute.xlu1 %19968 }
 0x1a9   : > { %18563 = vmatpush3.msk.msra.mxu1 %vm656_vm3, %v19771_v57  ;;  %18564 = vmatprep.mubr.msk.f32.mxu1 %vm20111_vm4, %v22910_v56  ;;  %22927 = vst [vmem:[#allocation39_spill] sm:$0xff] %v21630_v45  ;;  %v21632_v57 = vpop.permute.xlu0 %19963 }
 0x1aa   : > { %18537 = vmatprep.subr.mxu0 %v22910_v56  ;;  %18567 = vmatprep.subr.mxu1 %v22910_v56  ;;  %22928 = vst [vmem:[#allocation40_spill] sm:$0xff] %v21632_v57 }
 0x1ac   : > { %v21646_v44 = vpop.permute.xlu1 %19978 }
 0x1ad   : > { %22929 = vst [vmem:[#allocation41_spill] sm:$0xff] %v21646_v44 }
 0x1af   : > { %18535 = vmatmul.mubr.msk.f32.vlgmr.msra.gmra.mrb[10].mxu0 %vm652_vm5, %v21205_v18  ;;  %18565 = vmatmul.mubr.msk.f32.vlgmr.msra.gmra.mrb[10].mxu1 %vm652_vm5, %v21210_v34  ;;  %v19775_v18 = vunpack.i.l.bf16 %v21288_v22  ;;  %v19776_v34 = vunpack.i.h.bf16 %v21288_v22 }
 0x1b0   : > { %18538 = vmatpush3.msk.msra.mxu0 %vm656_vm3, %v20485_v1  ;;  %18539 = vmatprep.mubr.msk.f32.mxu0 %vm20111_vm4, %v22910_v56  ;;  %v21648_v1 = vpop.permute.xlu0 %19973 }
 0x1b1   : > { %18568 = vmatpush3.msk.msra.mxu1 %vm656_vm3, %v20488_v2  ;;  %18569 = vmatprep.mubr.msk.f32.mxu1 %vm20111_vm4, %v22910_v56  ;;  %22930 = vst [vmem:[#allocation42_spill] sm:$0xff] %v21648_v1  ;;  %v19780_v2 = vunpack.i.l.bf16 %v21286_v10 }
 0x1b2   : > { %18542 = vmatprep.subr.mxu0 %v22910_v56  ;;  %18572 = vmatprep.subr.mxu1 %v22910_v56 }
 0x1b4   : > { %v732_v22 = vpop.permute.xlu0 %731 }
 0x1b7   : > { %18540 = vmatmul.mubr.msk.f32.vlgmr.msra.gmra.mrb[10].mxu0 %vm652_vm5, %v21235_v40  ;;  %18570 = vmatmul.mubr.msk.f32.vlgmr.msra.gmra.mrb[10].mxu1 %vm652_vm5, %v21240_v61  ;;  %v1244_v40 = vpop.permute.xlu1 %1243  ;;  %v19781_v61 = vunpack.i.h.bf16 %v21286_v10  ;;  %v19785_v10 = vunpack.i.l.bf16 %v21313_v21 }
 0x1b8   : > { %18543 = vmatpush3.msk.msra.mxu0 %vm656_vm3, %v19775_v18  ;;  %18544 = vmatprep.mubr.msk.f32.mxu0 %vm20111_vm4, %v22910_v56 }
 0x1b9   : > { %18573 = vmatpush3.msk.msra.mxu1 %vm656_vm3, %v19776_v34  ;;  %18574 = vmatprep.mubr.msk.f32.mxu1 %vm20111_vm4, %v22910_v56 }
 0x1ba   : > { %18547 = vmatprep.subr.mxu0 %v22910_v56  ;;  %18577 = vmatprep.subr.mxu1 %v22910_v56 }
 0x1be   : > { %v1134_v18 = vpop.f32.mrb[0].mxu0  ;;  %v1654_v44 = vpop.f32.mrb[0].mxu1 }
 0x1bf   : > { %v19182_v1 = vadd.f32 %v1134_v18, %v732_v22  ;;  %v19183_v45 = vadd.f32 %v1654_v44, %v1244_v40  ;;  %v18251_v34 = vpop.f32.mrb[1].mxu0  ;;  %v18281_v57 = vpop.f32.mrb[1].mxu1  ;;  %18545 = vmatmul.mubr.msk.f32.vlgmr.msra.gmra.mrb[10].mxu0 %vm652_vm5, %v21263_v52  ;;  %18575 = vmatmul.mubr.msk.f32.vlgmr.msra.gmra.mrb[10].mxu1 %vm652_vm5, %v21268_v28 }
 0x1c0   : > { %18548 = vmatpush3.msk.msra.mxu0 %vm656_vm3, %v19780_v2  ;;  %18549 = vmatprep.mubr.msk.f32.mxu0 %vm20111_vm4, %v22910_v56  ;;  %v21734_v57 = vld [vmem:[%s22846_s2 + $0x40] sm:$0xff]  ;;  %v19796_v2 = vunpack.i.h.bf16 %v21336_v29  ;;  %v1767_v22 = vpop.permute.xlu0 %1766 }
 0x1c1   : > { %1140 = vst.msk [vmem:[%s21672_s6] sm:$0xff] %vm1139_vm6, %v19182_v1  ;;  %1660 = vrot.lane.b32.xlu1 %v19183_v45, %s20115_s9  ;;  %18578 = vmatpush3.msk.msra.mxu1 %vm656_vm3, %v19781_v61  ;;  %v19786_v45 = vunpack.i.h.bf16 %v21313_v21  ;;  %v21729_v21 = vld [vmem:[%s22846_s2 + $0x10] sm:$0xff]  ;;  %v19795_v1 = vunpack.i.l.bf16 %v21336_v29  ;;  %v19800_v29 = vunpack.i.l.bf16 %v21334_v13  ;;  %v19801_v61 = vunpack.i.h.bf16 %v21334_v13 }
 0x1c2   : > { %18579 = vmatprep.mubr.msk.f32.mxu1 %vm20111_vm4, %v22910_v56  ;;  %18582 = vmatprep.subr.mxu0 %v22910_v56  ;;  %v19805_v13 = vunpack.i.l.bf16 %v21351_v25 }
 0x1c3   : > { %18612 = vmatprep.subr.mxu1 %v22910_v56 }
 0x1c7   : > { %18550 = vmatmul.mubr.msk.f32.vlgmr.msra.gmra.mrb[10].mxu0 %vm652_vm5, %v21295_v3  ;;  %18580 = vmatmul.mubr.msk.f32.vlgmr.msra.gmra.mrb[10].mxu1 %vm652_vm5, %v21300_v47 }
 0x1c8   : > { %18583 = vmatpush3.msk.msra.mxu0 %vm656_vm3, %v20503_v38  ;;  %18584 = vmatprep.mubr.msk.f32.mxu0 %vm20111_vm4, %v22910_v56  ;;  %v19790_v38 = vunpack.i.l.bf16 %v21311_v24 }
 0x1c9   : > { %18613 = vmatpush3.msk.msra.mxu1 %vm656_vm3, %v20514_v62  ;;  %18614 = vmatprep.mubr.msk.f32.mxu1 %vm20111_vm4, %v22910_v56  ;;  %v19791_v62 = vunpack.i.h.bf16 %v21311_v24  ;;  %v21724_v24 = vpop.permute.xlu1 %3291 }
 0x1ca   : > { %18587 = vmatprep.subr.mxu0 %v22910_v56  ;;  %18617 = vmatprep.subr.mxu1 %v22910_v56 }
 0x1cb   : > { %18585 = vmatmul.mubr.msk.f32.vlgmr.msra.gmra.mrb[12].mxu0 %vm652_vm5, %v21563_v26  ;;  %18615 = vmatmul.mubr.msk.f32.vlgmr.msra.gmra.mrb[12].mxu1 %vm652_vm5, %v21568_v11 }
 0x1cc   : > { %18588 = vmatpush3.msk.msra.mxu0 %vm656_vm3, %v19785_v10  ;;  %18589 = vmatprep.mubr.msk.f32.mxu0 %vm20111_vm4, %v22910_v56 }
 0x1cd   : > { %18618 = vmatpush3.msk.msra.mxu1 %vm656_vm3, %v19786_v45  ;;  %18619 = vmatprep.mubr.msk.f32.mxu1 %vm20111_vm4, %v22910_v56  ;;  %v21748_v44 = vpop.permute.xlu1 %3809 }
 0x1ce   : > { %18592 = vmatprep.subr.mxu0 %v22910_v56  ;;  %18622 = vmatprep.subr.mxu1 %v22910_v56 }
 0x1d1   : > { %v21768_v40 = vpop.permute.xlu1 %4324 }
 0x1d3   : > { %18590 = vmatmul.mubr.msk.f32.vlgmr.msra.gmra.mrb[12].mxu0 %vm652_vm5, %v21598_v54  ;;  %18620 = vmatmul.mubr.msk.f32.vlgmr.msra.gmra.mrb[12].mxu1 %vm652_vm5, %v21603_v15 }
 0x1d4   : > { %18593 = vmatpush3.msk.msra.mxu0 %vm656_vm3, %v19790_v38  ;;  %18594 = vmatprep.mubr.msk.f32.mxu0 %vm20111_vm4, %v22910_v56 }
 0x1d5   : > { %18623 = vmatpush3.msk.msra.mxu1 %vm656_vm3, %v19791_v62  ;;  %18624 = vmatprep.mubr.msk.f32.mxu1 %vm20111_vm4, %v22910_v56  ;;  %v21780_v18 = vpop.permute.xlu1 %4831 }
 0x1d6   : > { %18597 = vmatprep.subr.mxu0 %v22910_v56  ;;  %18627 = vmatprep.subr.mxu1 %v22910_v56 }
 0x1db   : > { %18595 = vmatmul.mubr.msk.f32.vlgmr.msra.gmra.mrb[12].mxu0 %vm652_vm5, %v21729_v21  ;;  %18625 = vmatmul.mubr.msk.f32.vlgmr.msra.gmra.mrb[12].mxu1 %vm652_vm5, %v21734_v57 }
 0x1dc   : > { %18598 = vmatpush3.msk.msra.mxu0 %vm656_vm3, %v20517_v63  ;;  %18599 = vmatprep.mubr.msk.f32.mxu0 %vm20111_vm4, %v22910_v56  ;;  %v21756_v63 = vld [vmem:[%s22846_s2 + $0x18] sm:$0xff] }
 0x1dd   : > { %18628 = vmatpush3.msk.msra.mxu1 %vm656_vm3, %v20532_v39  ;;  %18629 = vmatprep.mubr.msk.f32.mxu1 %vm20111_vm4, %v22910_v56  ;;  %v21761_v39 = vld [vmem:[%s22846_s2 + $0x48] sm:$0xff] }
 0x1de   : > { %18602 = vmatprep.subr.mxu0 %v22910_v56  ;;  %18632 = vmatprep.subr.mxu1 %v22910_v56 }
 0x1e3   : > { %18600 = vmatmul.mubr.msk.f32.vlgmr.msra.gmra.mrb[12].mxu0 %vm652_vm5, %v21756_v63  ;;  %18630 = vmatmul.mubr.msk.f32.vlgmr.msra.gmra.mrb[12].mxu1 %vm652_vm5, %v21761_v39 }
 0x1e4   : > { %18603 = vmatpush3.msk.msra.mxu0 %vm656_vm3, %v19795_v1  ;;  %18604 = vmatprep.mubr.msk.f32.mxu0 %vm20111_vm4, %v22910_v56  ;;  %v2281_v1 = vpop.permute.xlu0 %2280 }
 0x1e5   : > { %18633 = vmatpush3.msk.msra.mxu1 %vm656_vm3, %v19796_v2  ;;  %18634 = vmatprep.mubr.msk.f32.mxu1 %vm20111_vm4, %v22910_v56  ;;  %v19806_v2 = vunpack.i.h.bf16 %v21351_v25  ;;  %v22931_v25 = vld [vmem:[#allocation8_spill] sm:$0xff] }
 0x1e6   : > { %18607 = vmatprep.subr.mxu0 %v22910_v56  ;;  %18637 = vmatprep.subr.mxu1 %v22910_v56 }
 0x1ea   : > { %v2172_v34 = vpop.f32.mrb[2].mxu0  ;;  %v2678_v10 = vpop.f32.mrb[2].mxu1 }
 0x1eb   : > { %v19184_v45 = vadd.f32 %v2172_v34, %v1767_v22  ;;  %v18311_v38 = vpop.f32.mrb[3].mxu0  ;;  %v18341_v62 = vpop.f32.mrb[3].mxu1  ;;  %18605 = vmatmul.mubr.msk.f32.vlgmr.msra.gmra.mrb[12].mxu0 %vm652_vm5, %v21263_v52  ;;  %18635 = vmatmul.mubr.msk.f32.vlgmr.msra.gmra.mrb[12].mxu1 %vm652_vm5, %v21268_v28  ;;  %v19185_v52 = vadd.f32 %v2678_v10, %v2281_v1  ;;  %v22932_v22 = vld [vmem:[#allocation7_spill] sm:$0xff]  ;;  %v19816_v34 = vunpack.i.h.bf16 %v21362_v53  ;;  %v19821_v1 = vunpack.i.h.bf16 %v21360_v27 }
 0x1ec   : > { %18608 = vmatpush3.msk.msra.mxu0 %vm656_vm3, %v19800_v29  ;;  %18609 = vmatprep.mubr.msk.f32.mxu0 %vm20111_vm4, %v22910_v56  ;;  %v21796_v28 = vpop.permute.xlu1 %7386  ;;  %v21882_v38 = vld [vmem:[%s22846_s2 + $0x20] sm:$0xff]  ;;  %v21887_v62 = vld [vmem:[%s22846_s2 + $0x50] sm:$0xff] }
 0x1ed   : > { %2178 = vrot.lane.b32.xlu1 %v19184_v45, %s20116_s14  ;;  %18638 = vmatpush3.msk.msra.mxu1 %vm656_vm3, %v19801_v61  ;;  %v19815_v61 = vunpack.i.l.bf16 %v21362_v53  ;;  %v19820_v53 = vunpack.i.l.bf16 %v21360_v27  ;;  %v2787_v45 = vpop.permute.xlu0 %2786 }
 0x1ee   : > { %18639 = vmatprep.mubr.msk.f32.mxu1 %vm20111_vm4, %v22910_v56  ;;  %18642 = vmatprep.subr.mxu0 %v22910_v56 }
 0x1ef   : > { %18672 = vmatprep.subr.mxu1 %v22910_v56 }
 0x1f1   : > { %2684 = vrot.lane.b32.xlu1 %v19185_v52, %s20117_s13 }
 0x1f3   : > { %18610 = vmatmul.mubr.msk.f32.vlgmr.msra.gmra.mrb[12].mxu0 %vm652_vm5, %v21295_v3  ;;  %18640 = vmatmul.mubr.msk.f32.vlgmr.msra.gmra.mrb[12].mxu1 %vm652_vm5, %v21300_v47  ;;  %v19811_v3 = vunpack.i.h.bf16 %v21349_v16 }
 0x1f4   : > { %18643 = vmatpush3.msk.msra.mxu0 %vm656_vm3, %v20545_v60  ;;  %18644 = vmatprep.mubr.msk.f32.mxu0 %vm20111_vm4, %v22910_v56  ;;  %v21818_v60 = vpop.permute.xlu1 %11467 }
 0x1f5   : > { %18673 = vmatpush3.msk.msra.mxu1 %vm656_vm3, %v20552_v17  ;;  %18674 = vmatprep.mubr.msk.f32.mxu1 %vm20111_vm4, %v22910_v56  ;;  %v19810_v17 = vunpack.i.l.bf16 %v21349_v16 }
 0x1f6   : > { %18647 = vmatprep.subr.mxu0 %v22910_v56  ;;  %18677 = vmatprep.subr.mxu1 %v22910_v56 }
 0x1f7   : > { %18645 = vmatmul.mubr.msk.f32.vlgmr.msra.gmra.mrb[14].mxu0 %vm652_vm5, %v21563_v26  ;;  %18675 = vmatmul.mubr.msk.f32.vlgmr.msra.gmra.mrb[14].mxu1 %vm652_vm5, %v21568_v11 }
 0x1f8   : > { %18648 = vmatpush3.msk.msra.mxu0 %vm656_vm3, %v19805_v13  ;;  %18649 = vmatprep.mubr.msk.f32.mxu0 %vm20111_vm4, %v22910_v56  ;;  %v21830_v47 = vpop.permute.xlu1 %15562 }
 0x1f9   : > { %18678 = vmatpush3.msk.msra.mxu1 %vm656_vm3, %v19806_v2  ;;  %18679 = vmatprep.mubr.msk.f32.mxu1 %vm20111_vm4, %v22910_v56 }
 0x1fa   : > { %18652 = vmatprep.subr.mxu0 %v22910_v56  ;;  %18682 = vmatprep.subr.mxu1 %v22910_v56 }
 0x1fc   : > { %v21844_v16 = vpop.permute.xlu1 %7904 }
 0x1ff   : > { %18650 = vmatmul.mubr.msk.f32.vlgmr.msra.gmra.mrb[14].mxu0 %vm652_vm5, %v21598_v54  ;;  %18680 = vmatmul.mubr.msk.f32.vlgmr.msra.gmra.mrb[14].mxu1 %vm652_vm5, %v21603_v15 }
 0x200   : > { %18653 = vmatpush3.msk.msra.mxu0 %vm656_vm3, %v19810_v17  ;;  %18654 = vmatprep.mubr.msk.f32.mxu0 %vm20111_vm4, %v22910_v56  ;;  %v21858_v29 = vpop.permute.xlu1 %11985 }
 0x201   : > { %18683 = vmatpush3.msk.msra.mxu1 %vm656_vm3, %v19811_v3  ;;  %18684 = vmatprep.mubr.msk.f32.mxu1 %vm20111_vm4, %v22910_v56 }
 0x202   : > { %18657 = vmatprep.subr.mxu0 %v22910_v56  ;;  %18687 = vmatprep.subr.mxu1 %v22910_v56 }
 0x204   : > { %v21868_v10 = vpop.permute.xlu1 %16080 }
 0x207   : > { %18655 = vmatmul.mubr.msk.f32.vlgmr.msra.gmra.mrb[14].mxu0 %vm652_vm5, %v21729_v21  ;;  %18685 = vmatmul.mubr.msk.f32.vlgmr.msra.gmra.mrb[14].mxu1 %vm652_vm5, %v21734_v57 }
 0x208   : > { %18658 = vmatpush3.msk.msra.mxu0 %vm656_vm3, %v22931_v25  ;;  %18659 = vmatprep.mubr.msk.f32.mxu0 %vm20111_vm4, %v22910_v56  ;;  %v21890_v52 = vpop.permute.xlu1 %8417 }
 0x209   : > { %18688 = vmatpush3.msk.msra.mxu1 %vm656_vm3, %v22932_v22  ;;  %18689 = vmatprep.mubr.msk.f32.mxu1 %vm20111_vm4, %v22910_v56 }
 0x20a   : > { %18662 = vmatprep.subr.mxu0 %v22910_v56  ;;  %18692 = vmatprep.subr.mxu1 %v22910_v56 }
 0x20c   : > { %v21908_v27 = vpop.permute.xlu1 %12500 }
 0x20f   : > { %18660 = vmatmul.mubr.msk.f32.vlgmr.msra.gmra.mrb[14].mxu0 %vm652_vm5, %v21756_v63  ;;  %18690 = vmatmul.mubr.msk.f32.vlgmr.msra.gmra.mrb[14].mxu1 %vm652_vm5, %v21761_v39 }
 0x210   : > { %18663 = vmatpush3.msk.msra.mxu0 %vm656_vm3, %v19815_v61  ;;  %18664 = vmatprep.mubr.msk.f32.mxu0 %vm20111_vm4, %v22910_v56  ;;  %v21918_v61 = vld [vmem:[%s22846_s2 + $0x58] sm:$0xff] }
 0x211   : > { %18693 = vmatpush3.msk.msra.mxu1 %vm656_vm3, %v19816_v34  ;;  %18694 = vmatprep.mubr.msk.f32.mxu1 %vm20111_vm4, %v22910_v56  ;;  %v19825_v34 = vunpack.i.l.bf16 %v21383_v8 }
 0x212   : > { %18667 = vmatprep.subr.mxu0 %v22910_v56  ;;  %18697 = vmatprep.subr.mxu1 %v22910_v56 }
 0x216   : > { %v3184_v13 = vpop.f32.mrb[4].mxu0  ;;  %v3698_v2 = vpop.f32.mrb[4].mxu1 }
 0x217   : > { %v19186_v17 = vadd.f32 %v3184_v13, %v2787_v45  ;;  %v19187_v3 = vadd.f32 %v3698_v2, %v21724_v24  ;;  %v18371_v25 = vpop.f32.mrb[5].mxu0  ;;  %v18401_v22 = vpop.f32.mrb[5].mxu1  ;;  %18665 = vmatmul.mubr.msk.f32.vlgmr.msra.gmra.mrb[14].mxu0 %vm652_vm5, %v21882_v38  ;;  %18695 = vmatmul.mubr.msk.f32.vlgmr.msra.gmra.mrb[14].mxu1 %vm652_vm5, %v21887_v62  ;;  %v21913_v24 = vld [vmem:[%s22846_s2 + $0x28] sm:$0xff]  ;;  %v19826_v45 = vunpack.i.h.bf16 %v21383_v8  ;;  %v19830_v2 = vunpack.i.l.bf16 %v21381_v48 }
 0x218   : > { %18668 = vmatpush3.msk.msra.mxu0 %vm656_vm3, %v19820_v53  ;;  %18669 = vmatprep.mubr.msk.f32.mxu0 %vm20111_vm4, %v22910_v56  ;;  %v22933_v53 = vld [vmem:[#allocation9_spill] sm:$0xff]  ;;  %v21934_v13 = vpop.permute.xlu1 %16593  ;;  %v22935_v25 = vld [vmem:[#allocation11_spill] sm:$0xff]  ;;  %v22936_v22 = vld [vmem:[#allocation12_spill] sm:$0xff] }
 0x219   : > { %3189 = vst.msk [vmem:[%s21672_s6 + $0x8] sm:$0xff] %vm1139_vm6, %v19186_v17  ;;  %3704 = vrot.lane.b32.xlu0 %v19187_v3, %s20115_s9  ;;  %18698 = vmatpush3.msk.msra.mxu1 %vm656_vm3, %v19821_v1  ;;  %v22934_v1 = vld [vmem:[#allocation10_spill] sm:$0xff]  ;;  %v19831_v17 = vunpack.i.h.bf16 %v21381_v48 }
 0x21a   : > { %18699 = vmatprep.mubr.msk.f32.mxu1 %vm20111_vm4, %v22910_v56  ;;  %18702 = vmatprep.subr.mxu0 %v22910_v56 }
 0x21b   : > { %18732 = vmatprep.subr.mxu1 %v22910_v56 }
 0x21c   : > { %v21950_v8 = vpop.permute.xlu1 %8922 }
 0x21f   : > { %18670 = vmatmul.mubr.msk.f32.vlgmr.msra.gmra.mrb[14].mxu0 %vm652_vm5, %v21913_v24  ;;  %18700 = vmatmul.mubr.msk.f32.vlgmr.msra.gmra.mrb[14].mxu1 %vm652_vm5, %v21918_v61 }
 0x220   : > { %18703 = vmatpush3.msk.msra.mxu0 %vm656_vm3, %v22933_v53  ;;  %18704 = vmatprep.mubr.msk.f32.mxu0 %vm20111_vm4, %v22910_v56  ;;  %v19836_v53 = vunpack.i.h.bf16 %v21400_v59 }
 0x221   : > { %18733 = vmatpush3.msk.msra.mxu1 %vm656_vm3, %v22934_v1  ;;  %18734 = vmatprep.mubr.msk.f32.mxu1 %vm20111_vm4, %v22910_v56  ;;  %v22000_v1 = vpop.permute.xlu0 %5338 }
 0x222   : > { %18707 = vmatprep.subr.mxu0 %v22910_v56  ;;  %18737 = vmatprep.subr.mxu1 %v22910_v56  ;;  %v21961_v3 = vpop.permute.xlu1 %13007 }
 0x223   : > { %18705 = vmatmul.mubr.msk.f32.vlgmr.msra.gmra.mrb[16].mxu0 %vm652_vm5, %v21563_v26  ;;  %18735 = vmatmul.mubr.msk.f32.vlgmr.msra.gmra.mrb[16].mxu1 %vm652_vm5, %v21568_v11 }
 0x224   : > { %18708 = vmatpush3.msk.msra.mxu0 %vm656_vm3, %v19825_v34  ;;  %18709 = vmatprep.mubr.msk.f32.mxu0 %vm20111_vm4, %v22910_v56  ;;  %v19835_v34 = vunpack.i.l.bf16 %v21400_v59  ;;  %v19840_v59 = vunpack.i.l.bf16 %v21398_v49 }
 0x225   : > { %18738 = vmatpush3.msk.msra.mxu1 %vm656_vm3, %v19826_v45  ;;  %18739 = vmatprep.mubr.msk.f32.mxu1 %vm20111_vm4, %v22910_v56  ;;  %v19841_v45 = vunpack.i.h.bf16 %v21398_v49 }
 0x226   : > { %18712 = vmatprep.subr.mxu0 %v22910_v56  ;;  %18742 = vmatprep.subr.mxu1 %v22910_v56 }
 0x22b   : > { %18710 = vmatmul.mubr.msk.f32.vlgmr.msra.gmra.mrb[16].mxu0 %vm652_vm5, %v21598_v54  ;;  %18740 = vmatmul.mubr.msk.f32.vlgmr.msra.gmra.mrb[16].mxu1 %vm652_vm5, %v21603_v15 }
 0x22c   : > { %18713 = vmatpush3.msk.msra.mxu0 %vm656_vm3, %v19830_v2  ;;  %18714 = vmatprep.mubr.msk.f32.mxu0 %vm20111_vm4, %v22910_v56 }
 0x22d   : > { %18743 = vmatpush3.msk.msra.mxu1 %vm656_vm3, %v19831_v17  ;;  %18744 = vmatprep.mubr.msk.f32.mxu1 %vm20111_vm4, %v22910_v56 }
 0x22e   : > { %18717 = vmatprep.subr.mxu0 %v22910_v56  ;;  %18747 = vmatprep.subr.mxu1 %v22910_v56 }
 0x233   : > { %18745 = vmatmul.mubr.msk.f32.vlgmr.msra.gmra.mrb[16].mxu1 %vm652_vm5, %v21734_v57  ;;  %v1661_v48 = vpop.permute.xlu1 %1660  ;;  %18715 = vmatmul.mubr.msk.f32.vlgmr.msra.gmra.mrb[16].mxu0 %vm652_vm5, %v21729_v21 }
 0x234   : > { %1664 = vst.msk [vmem:[%s21672_s6] sm:$0xff] %vm1663_vm7, %v1661_v48  ;;  %18718 = vmatpush3.msk.msra.mxu0 %vm656_vm3, %v22935_v25  ;;  %18719 = vmatprep.mubr.msk.f32.mxu0 %vm20111_vm4, %v22910_v56 }
 0x235   : > { %18748 = vmatpush3.msk.msra.mxu1 %vm656_vm3, %v22936_v22  ;;  %18749 = vmatprep.mubr.msk.f32.mxu1 %vm20111_vm4, %v22910_v56 }
 0x236   : > { %18722 = vmatprep.subr.mxu0 %v22910_v56  ;;  %18752 = vmatprep.subr.mxu1 %v22910_v56 }
 0x23b   : > { %18720 = vmatmul.mubr.msk.f32.vlgmr.msra.gmra.mrb[16].mxu0 %vm652_vm5, %v21756_v63  ;;  %18750 = vmatmul.mubr.msk.f32.vlgmr.msra.gmra.mrb[16].mxu1 %vm652_vm5, %v21761_v39 }
 0x23c   : > { %18723 = vmatpush3.msk.msra.mxu0 %vm656_vm3, %v19835_v34  ;;  %18724 = vmatprep.mubr.msk.f32.mxu0 %vm20111_vm4, %v22910_v56  ;;  %v19845_v34 = vunpack.i.l.bf16 %v21415_v55 }
 0x23d   : > { %18753 = vmatpush3.msk.msra.mxu1 %vm656_vm3, %v19836_v53  ;;  %18754 = vmatprep.mubr.msk.f32.mxu1 %vm20111_vm4, %v22910_v56  ;;  %v22937_v53 = vld [vmem:[#allocation13_spill] sm:$0xff] }
 0x23e   : > { %18727 = vmatprep.subr.mxu0 %v22910_v56  ;;  %18757 = vmatprep.subr.mxu1 %v22910_v56 }
 0x242   : > { %v4216_v2 = vpop.f32.mrb[6].mxu0  ;;  %v4723_v17 = vpop.f32.mrb[6].mxu1 }
 0x243   : > { %v19188_v48 = vadd.f32 %v4216_v2, %v21748_v44  ;;  %v18431_v25 = vpop.f32.mrb[7].mxu0  ;;  %v18461_v22 = vpop.f32.mrb[7].mxu1  ;;  %18725 = vmatmul.mubr.msk.f32.vlgmr.msra.gmra.mrb[16].mxu0 %vm652_vm5, %v21882_v38  ;;  %18755 = vmatmul.mubr.msk.f32.vlgmr.msra.gmra.mrb[16].mxu1 %vm652_vm5, %v21887_v62  ;;  %v19189_v49 = vadd.f32 %v4723_v17, %v21768_v40  ;;  %v19846_v40 = vunpack.i.h.bf16 %v21415_v55  ;;  %v19850_v55 = vunpack.i.l.bf16 %v21413_v50 }
 0x244   : > { %18728 = vmatpush3.msk.msra.mxu0 %vm656_vm3, %v19840_v59  ;;  %18729 = vmatprep.mubr.msk.f32.mxu0 %vm20111_vm4, %v22910_v56  ;;  %v22018_v44 = vpop.permute.xlu0 %9427  ;;  %v22938_v59 = vld [vmem:[#allocation14_spill] sm:$0xff]  ;;  %v19851_v2 = vunpack.i.h.bf16 %v21413_v50  ;;  %v22939_v25 = vld [vmem:[#allocation15_spill] sm:$0xff]  ;;  %v22940_v22 = vld [vmem:[#allocation16_spill] sm:$0xff] }
 0x245   : > { %4222 = vrot.lane.b32.xlu0 %v19188_v48, %s20116_s14  ;;  %18758 = vmatpush3.msk.msra.mxu1 %vm656_vm3, %v19841_v45 }
 0x246   : > { %18759 = vmatprep.mubr.msk.f32.mxu1 %vm20111_vm4, %v22910_v56  ;;  %18762 = vmatprep.subr.mxu0 %v22910_v56 }
 0x247   : > { %18792 = vmatprep.subr.mxu1 %v22910_v56 }
 0x248   : > { %v22040_v45 = vpop.permute.xlu0 %13514 }
 0x249   : > { %4729 = vrot.lane.b32.xlu0 %v19189_v49, %s20117_s13 }
 0x24b   : > { %18730 = vmatmul.mubr.msk.f32.vlgmr.msra.gmra.mrb[16].mxu0 %vm652_vm5, %v21913_v24  ;;  %18760 = vmatmul.mubr.msk.f32.vlgmr.msra.gmra.mrb[16].mxu1 %vm652_vm5, %v21918_v61 }
 0x24c   : > { %18763 = vmatpush3.msk.msra.mxu0 %vm656_vm3, %v22937_v53  ;;  %18764 = vmatprep.mubr.msk.f32.mxu0 %vm20111_vm4, %v22910_v56  ;;  %v22052_v17 = vpop.permute.xlu0 %5857  ;;  %v19855_v53 = vunpack.i.l.bf16 %v21426_v46 }
 0x24d   : > { %18793 = vmatpush3.msk.msra.mxu1 %vm656_vm3, %v22938_v59  ;;  %18794 = vmatprep.mubr.msk.f32.mxu1 %vm20111_vm4, %v22910_v56 }
 0x24e   : > { %18767 = vmatprep.subr.mxu0 %v22910_v56  ;;  %18797 = vmatprep.subr.mxu1 %v22910_v56 }
 0x24f   : > { %18765 = vmatmul.mubr.msk.f32.vlgmr.msra.gmra.mrb[18].mxu0 %vm652_vm5, %v21563_v26  ;;  %18795 = vmatmul.mubr.msk.f32.vlgmr.msra.gmra.mrb[18].mxu1 %vm652_vm5, %v21568_v11 }
 0x250   : > { %18768 = vmatpush3.msk.msra.mxu0 %vm656_vm3, %v19845_v34  ;;  %18769 = vmatprep.mubr.msk.f32.mxu0 %vm20111_vm4, %v22910_v56  ;;  %v22066_v50 = vpop.permute.xlu0 %9944 }
 0x251   : > { %18798 = vmatpush3.msk.msra.mxu1 %vm656_vm3, %v19846_v40  ;;  %18799 = vmatprep.mubr.msk.f32.mxu1 %vm20111_vm4, %v22910_v56  ;;  %v19856_v40 = vunpack.i.h.bf16 %v21426_v46  ;;  %v19860_v46 = vunpack.i.l.bf16 %v21424_v20 }
 0x252   : > { %18772 = vmatprep.subr.mxu0 %v22910_v56  ;;  %18802 = vmatprep.subr.mxu1 %v22910_v56 }
 0x254   : > { %v22082_v49 = vpop.permute.xlu0 %14033 }
 0x257   : > { %18770 = vmatmul.mubr.msk.f32.vlgmr.msra.gmra.mrb[18].mxu0 %vm652_vm5, %v21598_v54  ;;  %18800 = vmatmul.mubr.msk.f32.vlgmr.msra.gmra.mrb[18].mxu1 %vm652_vm5, %v21603_v15 }
 0x258   : > { %18773 = vmatpush3.msk.msra.mxu0 %vm656_vm3, %v19850_v55  ;;  %18774 = vmatprep.mubr.msk.f32.mxu0 %vm20111_vm4, %v22910_v56  ;;  %v22094_v59 = vpop.permute.xlu0 %6372  ;;  %v19861_v55 = vunpack.i.h.bf16 %v21424_v20 }
 0x259   : > { %18803 = vmatpush3.msk.msra.mxu1 %vm656_vm3, %v19851_v2  ;;  %18804 = vmatprep.mubr.msk.f32.mxu1 %vm20111_vm4, %v22910_v56 }
 0x25a   : > { %18777 = vmatprep.subr.mxu0 %v22910_v56  ;;  %18807 = vmatprep.subr.mxu1 %v22910_v56 }
 0x25c   : > { %v22106_v2 = vpop.permute.xlu0 %10457 }
 0x25f   : > { %18775 = vmatmul.mubr.msk.f32.vlgmr.msra.gmra.mrb[18].mxu0 %vm652_vm5, %v21729_v21  ;;  %18805 = vmatmul.mubr.msk.f32.vlgmr.msra.gmra.mrb[18].mxu1 %vm652_vm5, %v21734_v57  ;;  %v2179_v48 = vpop.permute.xlu1 %2178 }
 0x260   : > { %2182 = vst.msk [vmem:[%s21672_s6] sm:$0xff] %vm2181_vm8, %v2179_v48  ;;  %18778 = vmatpush3.msk.msra.mxu0 %vm656_vm3, %v22939_v25  ;;  %18779 = vmatprep.mubr.msk.f32.mxu0 %vm20111_vm4, %v22910_v56  ;;  %v22125_v20 = vpop.permute.xlu0 %14548 }
 0x261   : > { %18808 = vmatpush3.msk.msra.mxu1 %vm656_vm3, %v22940_v22  ;;  %18809 = vmatprep.mubr.msk.f32.mxu1 %vm20111_vm4, %v22910_v56 }
 0x262   : > { %18782 = vmatprep.subr.mxu0 %v22910_v56  ;;  %18812 = vmatprep.subr.mxu1 %v22910_v56 }
 0x263   : > { %v2685_v34 = vpop.permute.xlu1 %2684 }
 0x264   : > { %2688 = vst.msk [vmem:[%s21672_s6] sm:$0xff] %vm2687_vm9, %v2685_v34 }
 0x267   : > { %18780 = vmatmul.mubr.msk.f32.vlgmr.msra.gmra.mrb[18].mxu0 %vm652_vm5, %v21756_v63  ;;  %18810 = vmatmul.mubr.msk.f32.vlgmr.msra.gmra.mrb[18].mxu1 %vm652_vm5, %v21761_v39 }
 0x268   : > { %18783 = vmatpush3.msk.msra.mxu0 %vm656_vm3, %v19855_v53  ;;  %18784 = vmatprep.mubr.msk.f32.mxu0 %vm20111_vm4, %v22910_v56 }
 0x269   : > { %18813 = vmatpush3.msk.msra.mxu1 %vm656_vm3, %v19856_v40  ;;  %18814 = vmatprep.mubr.msk.f32.mxu1 %vm20111_vm4, %v22910_v56 }
 0x26a   : > { %18787 = vmatprep.subr.mxu0 %v22910_v56  ;;  %18817 = vmatprep.subr.mxu1 %v22910_v56 }
 0x26e   : > { %v5230_v48 = vpop.f32.mrb[8].mxu0  ;;  %v5745_v25 = vpop.f32.mrb[8].mxu1 }
 0x26f   : > { %v19190_v22 = vadd.f32 %v5230_v48, %v21780_v18  ;;  %v19191_v34 = vadd.f32 %v5745_v25, %v22000_v1  ;;  %v18491_v53 = vpop.f32.mrb[9].mxu0  ;;  %v18521_v40 = vpop.f32.mrb[9].mxu1  ;;  %18785 = vmatmul.mubr.msk.f32.vlgmr.msra.gmra.mrb[18].mxu0 %vm652_vm5, %v21882_v38  ;;  %18815 = vmatmul.mubr.msk.f32.vlgmr.msra.gmra.mrb[18].mxu1 %vm652_vm5, %v21887_v62  ;;  %v19865_v18 = vunpack.i.l.bf16 %v21453_v36  ;;  %v22941_v1 = vld [vmem:[#allocation17_spill] sm:$0xff] }
 0x270   : > { %18788 = vmatpush3.msk.msra.mxu0 %vm656_vm3, %v19860_v46  ;;  %18789 = vmatprep.mubr.msk.f32.mxu0 %vm20111_vm4, %v22910_v56  ;;  %v19866_v46 = vunpack.i.h.bf16 %v21453_v36  ;;  %v22141_v48 = vpop.permute.xlu0 %6879  ;;  %v19881_v53 = vunpack.i.h.bf16 %v21464_v19 }
 0x271   : > { %5235 = vst.msk [vmem:[%s21672_s6 + $0x10] sm:$0xff] %vm1139_vm6, %v19190_v22  ;;  %5751 = vrot.lane.b32.xlu1 %v19191_v34, %s20115_s9  ;;  %18818 = vmatpush3.msk.msra.mxu1 %vm656_vm3, %v19861_v55  ;;  %v22942_v55 = vld [vmem:[#allocation18_spill] sm:$0xff]  ;;  %v19875_v22 = vunpack.i.l.bf16 %v21466_v30  ;;  %v19876_v34 = vunpack.i.h.bf16 %v21466_v30  ;;  %v19880_v30 = vunpack.i.l.bf16 %v21464_v19 }
 0x272   : > { %18819 = vmatprep.mubr.msk.f32.mxu1 %vm20111_vm4, %v22910_v56  ;;  %18822 = vmatprep.subr.mxu0 %v22910_v56 }
 0x273   : > { %18852 = vmatprep.subr.mxu1 %v22910_v56 }
 0x274   : > { %v22157_v36 = vpop.permute.xlu0 %10962 }
 0x277   : > { %18790 = vmatmul.mubr.msk.f32.vlgmr.msra.gmra.mrb[18].mxu0 %vm652_vm5, %v21913_v24  ;;  %18820 = vmatmul.mubr.msk.f32.vlgmr.msra.gmra.mrb[18].mxu1 %vm652_vm5, %v21918_v61 }
 0x278   : > { %18823 = vmatpush3.msk.msra.mxu0 %vm656_vm3, %v22941_v1  ;;  %18824 = vmatprep.mubr.msk.f32.mxu0 %vm20111_vm4, %v22910_v56  ;;  %v22168_v25 = vpop.permute.xlu0 %15055 }
 0x279   : > { %18853 = vmatpush3.msk.msra.mxu1 %vm656_vm3, %v22942_v55  ;;  %18854 = vmatprep.mubr.msk.f32.mxu1 %vm20111_vm4, %v22910_v56 }
 0x27a   : > { %18827 = vmatprep.subr.mxu0 %v22910_v56  ;;  %18857 = vmatprep.subr.mxu1 %v22910_v56 }
 0x27b   : > { %18825 = vmatmul.mubr.msk.f32.vlgmr.msra.gmra.mrb[20].mxu0 %vm652_vm5, %v21563_v26  ;;  %18855 = vmatmul.mubr.msk.f32.vlgmr.msra.gmra.mrb[20].mxu1 %vm652_vm5, %v21568_v11  ;;  %v19870_v26 = vunpack.i.l.bf16 %v21451_v14  ;;  %v19871_v11 = vunpack.i.h.bf16 %v21451_v14 }
 0x27c   : > { %18828 = vmatpush3.msk.msra.mxu0 %vm656_vm3, %v19865_v18  ;;  %18829 = vmatprep.mubr.msk.f32.mxu0 %vm20111_vm4, %v22910_v56 }
 0x27d   : > { %18858 = vmatpush3.msk.msra.mxu1 %vm656_vm3, %v19866_v46  ;;  %18859 = vmatprep.mubr.msk.f32.mxu1 %vm20111_vm4, %v22910_v56 }
 0x27e   : > { %18832 = vmatprep.subr.mxu0 %v22910_v56  ;;  %18862 = vmatprep.subr.mxu1 %v22910_v56 }
 0x283   : > { %18830 = vmatmul.mubr.msk.f32.vlgmr.msra.gmra.mrb[20].mxu0 %vm652_vm5, %v21598_v54  ;;  %18860 = vmatmul.mubr.msk.f32.vlgmr.msra.gmra.mrb[20].mxu1 %vm652_vm5, %v21603_v15  ;;  %v22943_v54 = vld [vmem:[#allocation19_spill] sm:$0xff]  ;;  %v22944_v15 = vld [vmem:[#allocation20_spill] sm:$0xff] }
 0x284   : > { %18833 = vmatpush3.msk.msra.mxu0 %vm656_vm3, %v19870_v26  ;;  %18834 = vmatprep.mubr.msk.f32.mxu0 %vm20111_vm4, %v22910_v56  ;;  %v22945_v26 = vld [vmem:[#allocation21_spill] sm:$0xff] }
 0x285   : > { %18863 = vmatpush3.msk.msra.mxu1 %vm656_vm3, %v19871_v11  ;;  %18864 = vmatprep.mubr.msk.f32.mxu1 %vm20111_vm4, %v22910_v56  ;;  %v22240_v11 = vld [vmem:[%s22846_s2 + $0x30] sm:$0xff] }
 0x286   : > { %18837 = vmatprep.subr.mxu0 %v22910_v56  ;;  %18867 = vmatprep.subr.mxu1 %v22910_v56 }
 0x28b   : > { %18865 = vmatmul.mubr.msk.f32.vlgmr.msra.gmra.mrb[20].mxu1 %vm652_vm5, %v21734_v57  ;;  %v3705_v14 = vpop.permute.xlu0 %3704  ;;  %18835 = vmatmul.mubr.msk.f32.vlgmr.msra.gmra.mrb[20].mxu0 %vm652_vm5, %v21729_v21 }
 0x28c   : > { %3707 = vst.msk [vmem:[%s21672_s6 + $0x8] sm:$0xff] %vm1663_vm7, %v3705_v14  ;;  %18838 = vmatpush3.msk.msra.mxu0 %vm656_vm3, %v22943_v54  ;;  %18839 = vmatprep.mubr.msk.f32.mxu0 %vm20111_vm4, %v22910_v56  ;;  %v19886_v14 = vunpack.i.h.bf16 %v21484_v6  ;;  %v22946_v54 = vld [vmem:[#allocation22_spill] sm:$0xff] }
 0x28d   : > { %18868 = vmatpush3.msk.msra.mxu1 %vm656_vm3, %v22944_v15  ;;  %18869 = vmatprep.mubr.msk.f32.mxu1 %vm20111_vm4, %v22910_v56  ;;  %v22265_v15 = vld [vmem:[%s22846_s2 + $0x8] sm:$0xff] }
 0x28e   : > { %18842 = vmatprep.subr.mxu0 %v22910_v56  ;;  %18872 = vmatprep.subr.mxu1 %v22910_v56 }
 0x293   : > { %18840 = vmatmul.mubr.msk.f32.vlgmr.msra.gmra.mrb[20].mxu0 %vm652_vm5, %v21756_v63  ;;  %18870 = vmatmul.mubr.msk.f32.vlgmr.msra.gmra.mrb[20].mxu1 %vm652_vm5, %v21761_v39 }
 0x294   : > { %18843 = vmatpush3.msk.msra.mxu0 %vm656_vm3, %v19875_v22  ;;  %18844 = vmatprep.mubr.msk.f32.mxu0 %vm20111_vm4, %v22910_v56  ;;  %v22270_v22 = vld [vmem:[%s22846_s2 + $0x38] sm:$0xff] }
 0x295   : > { %18873 = vmatpush3.msk.msra.mxu1 %vm656_vm3, %v19876_v34  ;;  %18874 = vmatprep.mubr.msk.f32.mxu1 %vm20111_vm4, %v22910_v56  ;;  %v19891_v34 = vunpack.i.h.bf16 %v21482_v5 }
 0x296   : > { %18847 = vmatprep.subr.mxu0 %v22910_v56  ;;  %18877 = vmatprep.subr.mxu1 %v22910_v56 }
 0x29a   : > { %v6264_v40 = vpop.f32.mrb[10].mxu0  ;;  %v6771_v18 = vpop.f32.mrb[10].mxu1 }
 0x29b   : > { %v19192_v1 = vadd.f32 %v6264_v40, %v22052_v17  ;;  %v18551_v46 = vpop.f32.mrb[11].mxu0  ;;  %v18581_v55 = vpop.f32.mrb[11].mxu1  ;;  %18845 = vmatmul.mubr.msk.f32.vlgmr.msra.gmra.mrb[20].mxu0 %vm652_vm5, %v21882_v38  ;;  %18875 = vmatmul.mubr.msk.f32.vlgmr.msra.gmra.mrb[20].mxu1 %vm652_vm5, %v21887_v62  ;;  %v19193_v19 = vadd.f32 %v6771_v18, %v22094_v59  ;;  %v19885_v17 = vunpack.i.l.bf16 %v21484_v6  ;;  %v22235_v59 = vld [vmem:[%s22846_s2] sm:$0xff]  ;;  %v19890_v6 = vunpack.i.l.bf16 %v21482_v5 }
 0x29c   : > { %18848 = vmatpush3.msk.msra.mxu0 %vm656_vm3, %v19880_v30  ;;  %18849 = vmatprep.mubr.msk.f32.mxu0 %vm20111_vm4, %v22910_v56  ;;  %v22947_v30 = vld [vmem:[#allocation23_spill] sm:$0xff]  ;;  %v19895_v18 = vunpack.i.l.bf16 %v21502_v58  ;;  %v19901_v46 = vunpack.i.h.bf16 %v21500_v0 }
 0x29d   : > { %6270 = vrot.lane.b32.xlu1 %v19192_v1, %s20116_s14  ;;  %18878 = vmatpush3.msk.msra.mxu1 %vm656_vm3, %v19881_v53  ;;  %v22948_v53 = vld [vmem:[#allocation24_spill] sm:$0xff]  ;;  %v19896_v1 = vunpack.i.h.bf16 %v21502_v58  ;;  %v19900_v58 = vunpack.i.l.bf16 %v21500_v0  ;;  %v19905_v0 = vunpack.i.l.bf16 %v21517_v12 }
 0x29e   : > { %18879 = vmatprep.mubr.msk.f32.mxu1 %vm20111_vm4, %v22910_v56  ;;  %18882 = vmatprep.subr.mxu0 %v22910_v56 }
 0x29f   : > { %18912 = vmatprep.subr.mxu1 %v22910_v56 }
 0x2a1   : > { %6777 = vrot.lane.b32.xlu1 %v19193_v19, %s20117_s13 }
 0x2a3   : > { %18850 = vmatmul.mubr.msk.f32.vlgmr.msra.gmra.mrb[20].mxu0 %vm652_vm5, %v21913_v24  ;;  %18880 = vmatmul.mubr.msk.f32.vlgmr.msra.gmra.mrb[20].mxu1 %vm652_vm5, %v21918_v61 }
 0x2a4   : > { %18883 = vmatpush3.msk.msra.mxu0 %vm656_vm3, %v22945_v26  ;;  %18884 = vmatprep.mubr.msk.f32.mxu0 %vm20111_vm4, %v22910_v56 }
 0x2a5   : > { %18913 = vmatpush3.msk.msra.mxu1 %vm656_vm3, %v22946_v54  ;;  %18914 = vmatprep.mubr.msk.f32.mxu1 %vm20111_vm4, %v22910_v56 }
 0x2a6   : > { %18887 = vmatprep.subr.mxu0 %v22910_v56  ;;  %18917 = vmatprep.subr.mxu1 %v22910_v56 }
 0x2a7   : > { %18885 = vmatmul.mubr.msk.f32.vlgmr.msra.gmra.mrb[22].mxu0 %vm652_vm5, %v22235_v59  ;;  %18915 = vmatmul.mubr.msk.f32.vlgmr.msra.gmra.mrb[22].mxu1 %vm652_vm5, %v22240_v11 }
 0x2a8   : > { %18888 = vmatpush3.msk.msra.mxu0 %vm656_vm3, %v19885_v17  ;;  %18889 = vmatprep.mubr.msk.f32.mxu0 %vm20111_vm4, %v22910_v56 }
 0x2a9   : > { %18918 = vmatpush3.msk.msra.mxu1 %vm656_vm3, %v19886_v14  ;;  %18919 = vmatprep.mubr.msk.f32.mxu1 %vm20111_vm4, %v22910_v56 }
 0x2aa   : > { %18892 = vmatprep.subr.mxu0 %v22910_v56  ;;  %18922 = vmatprep.subr.mxu1 %v22910_v56 }
 0x2af   : > { %18890 = vmatmul.mubr.msk.f32.vlgmr.msra.gmra.mrb[22].mxu0 %vm652_vm5, %v22265_v15  ;;  %18920 = vmatmul.mubr.msk.f32.vlgmr.msra.gmra.mrb[22].mxu1 %vm652_vm5, %v22270_v22 }
 0x2b0   : > { %18893 = vmatpush3.msk.msra.mxu0 %vm656_vm3, %v19890_v6  ;;  %18894 = vmatprep.mubr.msk.f32.mxu0 %vm20111_vm4, %v22910_v56  ;;  %v22950_v6 = vld [vmem:[#allocation26_spill] sm:$0xff] }
 0x2b1   : > { %18923 = vmatpush3.msk.msra.mxu1 %vm656_vm3, %v19891_v34  ;;  %18924 = vmatprep.mubr.msk.f32.mxu1 %vm20111_vm4, %v22910_v56  ;;  %v19911_v34 = vunpack.i.h.bf16 %v21515_v4 }
 0x2b2   : > { %18897 = vmatprep.subr.mxu0 %v22910_v56  ;;  %18927 = vmatprep.subr.mxu1 %v22910_v56 }
 0x2b7   : > { %18895 = vmatmul.mubr.msk.f32.vlgmr.msra.gmra.mrb[22].mxu0 %vm652_vm5, %v21729_v21  ;;  %18925 = vmatmul.mubr.msk.f32.vlgmr.msra.gmra.mrb[22].mxu1 %vm652_vm5, %v21734_v57  ;;  %v4223_v5 = vpop.permute.xlu0 %4222 }
 0x2b8   : > { %4225 = vst.msk [vmem:[%s21672_s6 + $0x8] sm:$0xff] %vm2181_vm8, %v4223_v5  ;;  %18898 = vmatpush3.msk.msra.mxu0 %vm656_vm3, %v22947_v30  ;;  %18899 = vmatprep.mubr.msk.f32.mxu0 %vm20111_vm4, %v22910_v56  ;;  %v22951_v5 = vld [vmem:[#allocation27_spill] sm:$0xff]  ;;  %v22952_v30 = vld [vmem:[#allocation28_spill] sm:$0xff] }
 0x2b9   : > { %18928 = vmatpush3.msk.msra.mxu1 %vm656_vm3, %v22948_v53  ;;  %18929 = vmatprep.mubr.msk.f32.mxu1 %vm20111_vm4, %v22910_v56 }
 0x2ba   : > { %18902 = vmatprep.subr.mxu0 %v22910_v56  ;;  %18932 = vmatprep.subr.mxu1 %v22910_v56 }
 0x2bb   : > { %v4730_v40 = vpop.permute.xlu0 %4729 }
 0x2bc   : > { %4732 = vst.msk [vmem:[%s21672_s6 + $0x8] sm:$0xff] %vm2687_vm9, %v4730_v40 }
 0x2bf   : > { %18900 = vmatmul.mubr.msk.f32.vlgmr.msra.gmra.mrb[22].mxu0 %vm652_vm5, %v21756_v63  ;;  %18930 = vmatmul.mubr.msk.f32.vlgmr.msra.gmra.mrb[22].mxu1 %vm652_vm5, %v21761_v39 }
 0x2c0   : > { %18903 = vmatpush3.msk.msra.mxu0 %vm656_vm3, %v19895_v18  ;;  %18904 = vmatprep.mubr.msk.f32.mxu0 %vm20111_vm4, %v22910_v56 }
 0x2c1   : > { %18933 = vmatpush3.msk.msra.mxu1 %vm656_vm3, %v19896_v1  ;;  %18934 = vmatprep.mubr.msk.f32.mxu1 %vm20111_vm4, %v22910_v56 }
 0x2c2   : > { %18907 = vmatprep.subr.mxu0 %v22910_v56  ;;  %18937 = vmatprep.subr.mxu1 %v22910_v56 }
 0x2c6   : > { %v7278_v55 = vpop.f32.mrb[12].mxu0  ;;  %v7792_v19 = vpop.f32.mrb[12].mxu1 }
 0x2c7   : > { %v19194_v17 = vadd.f32 %v7278_v55, %v22141_v48  ;;  %v19195_v26 = vadd.f32 %v7792_v19, %v21796_v28  ;;  %v18611_v14 = vpop.f32.mrb[13].mxu0  ;;  %v18641_v54 = vpop.f32.mrb[13].mxu1  ;;  %18905 = vmatmul.mubr.msk.f32.vlgmr.msra.gmra.mrb[22].mxu0 %vm652_vm5, %v21882_v38  ;;  %18935 = vmatmul.mubr.msk.f32.vlgmr.msra.gmra.mrb[22].mxu1 %vm652_vm5, %v21887_v62  ;;  %v22949_v28 = vld [vmem:[#allocation25_spill] sm:$0xff]  ;;  %v19906_v48 = vunpack.i.h.bf16 %v21517_v12  ;;  %v19910_v12 = vunpack.i.l.bf16 %v21515_v4  ;;  %v22476_v19 = vld [vmem:[%s22846_s2 + $0x40] sm:$0xff] }
 0x2c8   : > { %18908 = vmatpush3.msk.msra.mxu0 %vm656_vm3, %v19900_v58  ;;  %18909 = vmatprep.mubr.msk.f32.mxu0 %vm20111_vm4, %v22910_v56  ;;  %v22953_v58 = vld [vmem:[#allocation29_spill] sm:$0xff]  ;;  %v19931_v55 = vunpack.i.h.bf16 %v21547_v32  ;;  %v22956_v14 = vld [vmem:[#allocation32_spill] sm:$0xff] }
 0x2c9   : > { %7283 = vst.msk [vmem:[%s21672_s6 + $0x18] sm:$0xff] %vm1139_vm6, %v19194_v17  ;;  %7798 = vrot.lane.b32.xlu0 %v19195_v26, %s20115_s9  ;;  %18938 = vmatpush3.msk.msra.mxu1 %vm656_vm3, %v19901_v46  ;;  %v22954_v46 = vld [vmem:[#allocation30_spill] sm:$0xff]  ;;  %v22955_v26 = vld [vmem:[#allocation31_spill] sm:$0xff] }
 0x2ca   : > { %18939 = vmatprep.mubr.msk.f32.mxu1 %vm20111_vm4, %v22910_v56  ;;  %18942 = vmatprep.subr.mxu0 %v22910_v56 }
 0x2cb   : > { %18972 = vmatprep.subr.mxu1 %v22910_v56 }
 0x2cf   : > { %18910 = vmatmul.mubr.msk.f32.vlgmr.msra.gmra.mrb[22].mxu0 %vm652_vm5, %v21913_v24  ;;  %18940 = vmatmul.mubr.msk.f32.vlgmr.msra.gmra.mrb[22].mxu1 %vm652_vm5, %v21918_v61 }
 0x2d0   : > { %18943 = vmatpush3.msk.msra.mxu0 %vm656_vm3, %v22949_v28  ;;  %18944 = vmatprep.mubr.msk.f32.mxu0 %vm20111_vm4, %v22910_v56  ;;  %v22500_v28 = vld [vmem:[%s22846_s2 + $0x18] sm:$0xff] }
 0x2d1   : > { %18973 = vmatpush3.msk.msra.mxu1 %vm656_vm3, %v22950_v6  ;;  %18974 = vmatprep.mubr.msk.f32.mxu1 %vm20111_vm4, %v22910_v56  ;;  %v19936_v6 = vunpack.i.h.bf16 %v21579_v41 }
 0x2d2   : > { %18947 = vmatprep.subr.mxu0 %v22910_v56  ;;  %18977 = vmatprep.subr.mxu1 %v22910_v56 }
 0x2d3   : > { %18945 = vmatmul.mubr.msk.f32.vlgmr.msra.gmra.mrb[24].mxu0 %vm652_vm5, %v22235_v59  ;;  %18975 = vmatmul.mubr.msk.f32.vlgmr.msra.gmra.mrb[24].mxu1 %vm652_vm5, %v22240_v11 }
 0x2d4   : > { %18948 = vmatpush3.msk.msra.mxu0 %vm656_vm3, %v19905_v0  ;;  %18949 = vmatprep.mubr.msk.f32.mxu0 %vm20111_vm4, %v22910_v56  ;;  %v19935_v0 = vunpack.i.l.bf16 %v21579_v41  ;;  %v19940_v41 = vunpack.i.l.bf16 %v21577_v23 }
 0x2d5   : > { %18978 = vmatpush3.msk.msra.mxu1 %vm656_vm3, %v19906_v48  ;;  %18979 = vmatprep.mubr.msk.f32.mxu1 %vm20111_vm4, %v22910_v56  ;;  %v22505_v48 = vld [vmem:[%s22846_s2 + $0x48] sm:$0xff] }
 0x2d6   : > { %18952 = vmatprep.subr.mxu0 %v22910_v56  ;;  %18982 = vmatprep.subr.mxu1 %v22910_v56 }
 0x2db   : > { %18950 = vmatmul.mubr.msk.f32.vlgmr.msra.gmra.mrb[24].mxu0 %vm652_vm5, %v22265_v15  ;;  %18980 = vmatmul.mubr.msk.f32.vlgmr.msra.gmra.mrb[24].mxu1 %vm652_vm5, %v22270_v22 }
 0x2dc   : > { %18953 = vmatpush3.msk.msra.mxu0 %vm656_vm3, %v19910_v12  ;;  %18954 = vmatprep.mubr.msk.f32.mxu0 %vm20111_vm4, %v22910_v56  ;;  %v19941_v12 = vunpack.i.h.bf16 %v21577_v23  ;;  %v19945_v23 = vunpack.i.l.bf16 %v21607_v51 }
 0x2dd   : > { %18983 = vmatpush3.msk.msra.mxu1 %vm656_vm3, %v19911_v34  ;;  %18984 = vmatprep.mubr.msk.f32.mxu1 %vm20111_vm4, %v22910_v56 }
 0x2de   : > { %18957 = vmatprep.subr.mxu0 %v22910_v56  ;;  %18987 = vmatprep.subr.mxu1 %v22910_v56 }
 0x2e3   : > { %18955 = vmatmul.mubr.msk.f32.vlgmr.msra.gmra.mrb[24].mxu0 %vm652_vm5, %v21729_v21  ;;  %18985 = vmatmul.mubr.msk.f32.vlgmr.msra.gmra.mrb[24].mxu1 %vm652_vm5, %v21734_v57  ;;  %v5752_v4 = vpop.permute.xlu1 %5751  ;;  %v19915_v21 = vunpack.i.l.bf16 %v21532_v35  ;;  %v19916_v57 = vunpack.i.h.bf16 %v21532_v35  ;;  %v19920_v35 = vunpack.i.l.bf16 %v21530_v37 }
 0x2e4   : > { %5754 = vst.msk [vmem:[%s21672_s6 + $0x10] sm:$0xff] %vm1663_vm7, %v5752_v4  ;;  %18958 = vmatpush3.msk.msra.mxu0 %vm656_vm3, %v22951_v5  ;;  %18959 = vmatprep.mubr.msk.f32.mxu0 %vm20111_vm4, %v22910_v56 }
 0x2e5   : > { %18988 = vmatpush3.msk.msra.mxu1 %vm656_vm3, %v22952_v30  ;;  %18989 = vmatprep.mubr.msk.f32.mxu1 %vm20111_vm4, %v22910_v56 }
 0x2e6   : > { %18962 = vmatprep.subr.mxu0 %v22910_v56  ;;  %18992 = vmatprep.subr.mxu1 %v22910_v56 }
 0x2eb   : > { %18960 = vmatmul.mubr.msk.f32.vlgmr.msra.gmra.mrb[24].mxu0 %vm652_vm5, %v21756_v63  ;;  %18990 = vmatmul.mubr.msk.f32.vlgmr.msra.gmra.mrb[24].mxu1 %vm652_vm5, %v21761_v39  ;;  %v19921_v63 = vunpack.i.h.bf16 %v21530_v37 }
 0x2ec   : > { %18963 = vmatpush3.msk.msra.mxu0 %vm656_vm3, %v19915_v21  ;;  %18964 = vmatprep.mubr.msk.f32.mxu0 %vm20111_vm4, %v22910_v56 }
 0x2ed   : > { %18993 = vmatpush3.msk.msra.mxu1 %vm656_vm3, %v19916_v57  ;;  %18994 = vmatprep.mubr.msk.f32.mxu1 %vm20111_vm4, %v22910_v56 }
 0x2ee   : > { %18967 = vmatprep.subr.mxu0 %v22910_v56  ;;  %18997 = vmatprep.subr.mxu1 %v22910_v56 }
 0x2f2   : > { %v8310_v53 = vpop.f32.mrb[14].mxu0  ;;  %v8815_v39 = vpop.f32.mrb[14].mxu1 }
 0x2f3   : > { %v19196_v40 = vadd.f32 %v8310_v53, %v21844_v16  ;;  %v18671_v18 = vpop.f32.mrb[15].mxu0  ;;  %v18701_v1 = vpop.f32.mrb[15].mxu1  ;;  %18965 = vmatmul.mubr.msk.f32.vlgmr.msra.gmra.mrb[24].mxu0 %vm652_vm5, %v21882_v38  ;;  %18995 = vmatmul.mubr.msk.f32.vlgmr.msra.gmra.mrb[24].mxu1 %vm652_vm5, %v21887_v62  ;;  %v19197_v37 = vadd.f32 %v8815_v39, %v21890_v52  ;;  %v19925_v16 = vunpack.i.l.bf16 %v21549_v43  ;;  %v19926_v52 = vunpack.i.h.bf16 %v21549_v43 }
 0x2f4   : > { %18968 = vmatpush3.msk.msra.mxu0 %vm656_vm3, %v19920_v35  ;;  %18969 = vmatprep.mubr.msk.f32.mxu0 %vm20111_vm4, %v22910_v56  ;;  %v19930_v43 = vunpack.i.l.bf16 %v21547_v32  ;;  %v22471_v32 = vld [vmem:[%s22846_s2 + $0x10] sm:$0xff]  ;;  %v19961_v35 = vunpack.i.h.bf16 %v21620_v33  ;;  %v22646_v1 = vld [vmem:[%s22846_s2 + $0x58] sm:$0xff] }
 0x2f5   : > { %8316 = vrot.lane.b32.xlu0 %v19196_v40, %s20116_s14  ;;  %18998 = vmatpush3.msk.msra.mxu1 %vm656_vm3, %v19921_v63 }
 0x2f6   : > { %18999 = vmatprep.mubr.msk.f32.mxu1 %vm20111_vm4, %v22910_v56  ;;  %19002 = vmatprep.subr.mxu0 %v22910_v56 }
 0x2f7   : > { %19032 = vmatprep.subr.mxu1 %v22910_v56 }
 0x2f9   : > { %8821 = vrot.lane.b32.xlu0 %v19197_v37, %s20117_s13 }
 0x2fb   : > { %18970 = vmatmul.mubr.msk.f32.vlgmr.msra.gmra.mrb[24].mxu0 %vm652_vm5, %v21913_v24  ;;  %19000 = vmatmul.mubr.msk.f32.vlgmr.msra.gmra.mrb[24].mxu1 %vm652_vm5, %v21918_v61 }
 0x2fc   : > { %19003 = vmatpush3.msk.msra.mxu0 %vm656_vm3, %v22953_v58  ;;  %19004 = vmatprep.mubr.msk.f32.mxu0 %vm20111_vm4, %v22910_v56 }
 0x2fd   : > { %19033 = vmatpush3.msk.msra.mxu1 %vm656_vm3, %v22954_v46  ;;  %19034 = vmatprep.mubr.msk.f32.mxu1 %vm20111_vm4, %v22910_v56  ;;  %v22962_v46 = vld [vmem:[#allocation39_spill] sm:$0xff] }
 0x2fe   : > { %19007 = vmatprep.subr.mxu0 %v22910_v56  ;;  %19037 = vmatprep.subr.mxu1 %v22910_v56 }
 0x2ff   : > { %19005 = vmatmul.mubr.msk.f32.vlgmr.msra.gmra.mrb[26].mxu0 %vm652_vm5, %v22235_v59  ;;  %19035 = vmatmul.mubr.msk.f32.vlgmr.msra.gmra.mrb[26].mxu1 %vm652_vm5, %v22240_v11 }
 0x300   : > { %19008 = vmatpush3.msk.msra.mxu0 %vm656_vm3, %v19925_v16  ;;  %19009 = vmatprep.mubr.msk.f32.mxu0 %vm20111_vm4, %v22910_v56  ;;  %v22960_v16 = vld [vmem:[#allocation35_spill] sm:$0xff] }
 0x301   : > { %19038 = vmatpush3.msk.msra.mxu1 %vm656_vm3, %v19926_v52  ;;  %19039 = vmatprep.mubr.msk.f32.mxu1 %vm20111_vm4, %v22910_v56  ;;  %v22961_v52 = vld [vmem:[#allocation36_spill] sm:$0xff] }
 0x302   : > { %19012 = vmatprep.subr.mxu0 %v22910_v56  ;;  %19042 = vmatprep.subr.mxu1 %v22910_v56 }
 0x307   : > { %19010 = vmatmul.mubr.msk.f32.vlgmr.msra.gmra.mrb[26].mxu0 %vm652_vm5, %v22265_v15  ;;  %19040 = vmatmul.mubr.msk.f32.vlgmr.msra.gmra.mrb[26].mxu1 %vm652_vm5, %v22270_v22 }
 0x308   : > { %19013 = vmatpush3.msk.msra.mxu0 %vm656_vm3, %v19930_v43  ;;  %19014 = vmatprep.mubr.msk.f32.mxu0 %vm20111_vm4, %v22910_v56  ;;  %v19971_v43 = vunpack.i.h.bf16 %v22962_v46 }
 0x309   : > { %19043 = vmatpush3.msk.msra.mxu1 %vm656_vm3, %v19931_v55  ;;  %19044 = vmatprep.mubr.msk.f32.mxu1 %vm20111_vm4, %v22910_v56 }
 0x30a   : > { %19017 = vmatprep.subr.mxu0 %v22910_v56  ;;  %19047 = vmatprep.subr.mxu1 %v22910_v56 }
 0x30f   : > { %19015 = vmatmul.mubr.msk.f32.vlgmr.msra.gmra.mrb[26].mxu0 %vm652_vm5, %v22471_v32  ;;  %19045 = vmatmul.mubr.msk.f32.vlgmr.msra.gmra.mrb[26].mxu1 %vm652_vm5, %v22476_v19  ;;  %v6271_v17 = vpop.permute.xlu1 %6270 }
 0x310   : > { %6273 = vst.msk [vmem:[%s21672_s6 + $0x10] sm:$0xff] %vm2181_vm8, %v6271_v17  ;;  %19018 = vmatpush3.msk.msra.mxu0 %vm656_vm3, %v22955_v26  ;;  %19019 = vmatprep.mubr.msk.f32.mxu0 %vm20111_vm4, %v22910_v56  ;;  %v22966_v26 = vld [vmem:[#allocation41_spill] sm:$0xff] }
 0x311   : > { %19048 = vmatpush3.msk.msra.mxu1 %vm656_vm3, %v22956_v14  ;;  %19049 = vmatprep.mubr.msk.f32.mxu1 %vm20111_vm4, %v22910_v56  ;;  %v19980_v14 = vunpack.i.l.bf16 %v22966_v26 }
 0x312   : > { %19022 = vmatprep.subr.mxu0 %v22910_v56  ;;  %19052 = vmatprep.subr.mxu1 %v22910_v56 }
 0x313   : > { %v6778_v54 = vpop.permute.xlu1 %6777 }
 0x314   : > { %6780 = vst.msk [vmem:[%s21672_s6 + $0x10] sm:$0xff] %vm2687_vm9, %v6778_v54  ;;  %v19981_v54 = vunpack.i.h.bf16 %v22966_v26 }
 0x317   : > { %19020 = vmatmul.mubr.msk.f32.vlgmr.msra.gmra.mrb[26].mxu0 %vm652_vm5, %v22500_v28  ;;  %19050 = vmatmul.mubr.msk.f32.vlgmr.msra.gmra.mrb[26].mxu1 %vm652_vm5, %v22505_v48 }
 0x318   : > { %19023 = vmatpush3.msk.msra.mxu0 %vm656_vm3, %v19935_v0  ;;  %19024 = vmatprep.mubr.msk.f32.mxu0 %vm20111_vm4, %v22910_v56 }
 0x319   : > { %19053 = vmatpush3.msk.msra.mxu1 %vm656_vm3, %v19936_v6  ;;  %19054 = vmatprep.mubr.msk.f32.mxu1 %vm20111_vm4, %v22910_v56 }
 0x31a   : > { %19027 = vmatprep.subr.mxu0 %v22910_v56  ;;  %19057 = vmatprep.subr.mxu1 %v22910_v56 }
 0x31e   : > { %v9320_v34 = vpop.f32.mrb[16].mxu0  ;;  %v9833_v4 = vpop.f32.mrb[16].mxu1 }
 0x31f   : > { %v19198_v5 = vadd.f32 %v9320_v34, %v21950_v8  ;;  %v19199_v30 = vadd.f32 %v9833_v4, %v22018_v44  ;;  %v18731_v21 = vpop.f32.mrb[17].mxu0  ;;  %v18761_v57 = vpop.f32.mrb[17].mxu1  ;;  %19025 = vmatmul.mubr.msk.f32.vlgmr.msra.gmra.mrb[26].mxu0 %vm652_vm5, %v21882_v38  ;;  %19055 = vmatmul.mubr.msk.f32.vlgmr.msra.gmra.mrb[26].mxu1 %vm652_vm5, %v21887_v62  ;;  %v19946_v38 = vunpack.i.h.bf16 %v21607_v51  ;;  %v22958_v62 = vld [vmem:[#allocation34_spill] sm:$0xff]  ;;  %v22615_v8 = vld [vmem:[%s22846_s2 + $0x20] sm:$0xff]  ;;  %v22620_v44 = vld [vmem:[%s22846_s2 + $0x50] sm:$0xff] }
 0x320   : > { %19028 = vmatpush3.msk.msra.mxu0 %vm656_vm3, %v19940_v41  ;;  %19029 = vmatprep.mubr.msk.f32.mxu0 %vm20111_vm4, %v22910_v56 }
 0x321   : > { %9325 = vst.msk [vmem:[%s21672_s6 + $0x20] sm:$0xff] %vm1139_vm6, %v19198_v5  ;;  %9839 = vrot.lane.b32.xlu1 %v19199_v30, %s20115_s9  ;;  %19058 = vmatpush3.msk.msra.mxu1 %vm656_vm3, %v19941_v12 }
 0x322   : > { %19059 = vmatprep.mubr.msk.f32.mxu1 %vm20111_vm4, %v22910_v56  ;;  %19062 = vmatprep.subr.mxu0 %v22910_v56 }
 0x323   : > { %19092 = vmatprep.subr.mxu1 %v22910_v56 }
 0x327   : > { %19030 = vmatmul.mubr.msk.f32.vlgmr.msra.gmra.mrb[26].mxu0 %vm652_vm5, %v21913_v24  ;;  %19060 = vmatmul.mubr.msk.f32.vlgmr.msra.gmra.mrb[26].mxu1 %vm652_vm5, %v21918_v61  ;;  %v19955_v24 = vunpack.i.l.bf16 %v21622_v31  ;;  %v19956_v61 = vunpack.i.h.bf16 %v21622_v31  ;;  %v19960_v31 = vunpack.i.l.bf16 %v21620_v33 }
 0x328   : > { %19063 = vmatpush3.msk.msra.mxu0 %vm656_vm3, %v21007_v9  ;;  %19064 = vmatprep.mubr.msk.f32.mxu0 %vm20111_vm4, %v22910_v56  ;;  %v19950_v9 = vunpack.i.l.bf16 %v21605_v42 }
 0x329   : > { %19093 = vmatpush3.msk.msra.mxu1 %vm656_vm3, %v21010_v7  ;;  %19094 = vmatprep.mubr.msk.f32.mxu1 %vm20111_vm4, %v22910_v56  ;;  %v19951_v7 = vunpack.i.h.bf16 %v21605_v42  ;;  %v22957_v42 = vld [vmem:[#allocation33_spill] sm:$0xff] }
 0x32a   : > { %19067 = vmatprep.subr.mxu0 %v22910_v56  ;;  %19097 = vmatprep.subr.mxu1 %v22910_v56 }
 0x32b   : > { %19065 = vmatmul.mubr.msk.f32.vlgmr.msra.gmra.mrb[28].mxu0 %vm652_vm5, %v22235_v59  ;;  %19095 = vmatmul.mubr.msk.f32.vlgmr.msra.gmra.mrb[28].mxu1 %vm652_vm5, %v22240_v11 }
 0x32c   : > { %19068 = vmatpush3.msk.msra.mxu0 %vm656_vm3, %v19945_v23  ;;  %19069 = vmatprep.mubr.msk.f32.mxu0 %vm20111_vm4, %v22910_v56 }
 0x32d   : > { %19098 = vmatpush3.msk.msra.mxu1 %vm656_vm3, %v19946_v38  ;;  %19099 = vmatprep.mubr.msk.f32.mxu1 %vm20111_vm4, %v22910_v56 }
 0x32e   : > { %19072 = vmatprep.subr.mxu0 %v22910_v56  ;;  %19102 = vmatprep.subr.mxu1 %v22910_v56 }
 0x333   : > { %19070 = vmatmul.mubr.msk.f32.vlgmr.msra.gmra.mrb[28].mxu0 %vm652_vm5, %v22265_v15  ;;  %19100 = vmatmul.mubr.msk.f32.vlgmr.msra.gmra.mrb[28].mxu1 %vm652_vm5, %v22270_v22 }
 0x334   : > { %19073 = vmatpush3.msk.msra.mxu0 %vm656_vm3, %v19950_v9  ;;  %19074 = vmatprep.mubr.msk.f32.mxu0 %vm20111_vm4, %v22910_v56 }
 0x335   : > { %19103 = vmatpush3.msk.msra.mxu1 %vm656_vm3, %v19951_v7  ;;  %19104 = vmatprep.mubr.msk.f32.mxu1 %vm20111_vm4, %v22910_v56 }
 0x336   : > { %19077 = vmatprep.subr.mxu0 %v22910_v56  ;;  %19107 = vmatprep.subr.mxu1 %v22910_v56 }
 0x33b   : > { %19075 = vmatmul.mubr.msk.f32.vlgmr.msra.gmra.mrb[28].mxu0 %vm652_vm5, %v22471_v32  ;;  %19105 = vmatmul.mubr.msk.f32.vlgmr.msra.gmra.mrb[28].mxu1 %vm652_vm5, %v22476_v19  ;;  %v7799_v51 = vpop.permute.xlu0 %7798 }
 0x33c   : > { %7801 = vst.msk [vmem:[%s21672_s6 + $0x18] sm:$0xff] %vm1663_vm7, %v7799_v51  ;;  %19078 = vmatpush3.msk.msra.mxu0 %vm656_vm3, %v22957_v42  ;;  %19079 = vmatprep.mubr.msk.f32.mxu0 %vm20111_vm4, %v22910_v56 }
 0x33d   : > { %19108 = vmatpush3.msk.msra.mxu1 %vm656_vm3, %v22958_v62  ;;  %19109 = vmatprep.mubr.msk.f32.mxu1 %vm20111_vm4, %v22910_v56 }
 0x33e   : > { %19082 = vmatprep.subr.mxu0 %v22910_v56  ;;  %19112 = vmatprep.subr.mxu1 %v22910_v56 }
 0x343   : > { %19080 = vmatmul.mubr.msk.f32.vlgmr.msra.gmra.mrb[28].mxu0 %vm652_vm5, %v22500_v28  ;;  %19110 = vmatmul.mubr.msk.f32.vlgmr.msra.gmra.mrb[28].mxu1 %vm652_vm5, %v22505_v48 }
 0x344   : > { %19083 = vmatpush3.msk.msra.mxu0 %vm656_vm3, %v19955_v24  ;;  %19084 = vmatprep.mubr.msk.f32.mxu0 %vm20111_vm4, %v22910_v56 }
 0x345   : > { %19113 = vmatpush3.msk.msra.mxu1 %vm656_vm3, %v19956_v61  ;;  %19114 = vmatprep.mubr.msk.f32.mxu1 %vm20111_vm4, %v22910_v56 }
 0x346   : > { %19087 = vmatprep.subr.mxu0 %v22910_v56  ;;  %19117 = vmatprep.subr.mxu1 %v22910_v56 }
 0x34a   : > { %v10350_v63 = vpop.f32.mrb[18].mxu0  ;;  %v10855_v53 = vpop.f32.mrb[18].mxu1 }
 0x34b   : > { %v19200_v39 = vadd.f32 %v10350_v63, %v22066_v50  ;;  %v18791_v40 = vpop.f32.mrb[19].mxu0  ;;  %v18821_v18 = vpop.f32.mrb[19].mxu1  ;;  %19085 = vmatmul.mubr.msk.f32.vlgmr.msra.gmra.mrb[28].mxu0 %vm652_vm5, %v22615_v8  ;;  %19115 = vmatmul.mubr.msk.f32.vlgmr.msra.gmra.mrb[28].mxu1 %vm652_vm5, %v22620_v44  ;;  %v19201_v33 = vadd.f32 %v10855_v53, %v22106_v2  ;;  %v22641_v50 = vld [vmem:[%s22846_s2 + $0x28] sm:$0xff] }
 0x34c   : > { %19088 = vmatpush3.msk.msra.mxu0 %vm656_vm3, %v19960_v31  ;;  %19089 = vmatprep.mubr.msk.f32.mxu0 %vm20111_vm4, %v22910_v56  ;;  %v22959_v2 = vld [vmem:[#allocation40_spill] sm:$0xff] }
 0x34d   : > { %10356 = vrot.lane.b32.xlu1 %v19200_v39, %s20116_s14  ;;  %19118 = vmatpush3.msk.msra.mxu1 %vm656_vm3, %v19961_v35  ;;  %v19965_v37 = vunpack.i.l.bf16 %v22959_v2  ;;  %v19966_v58 = vunpack.i.h.bf16 %v22959_v2 }
 0x34e   : > { %19119 = vmatprep.mubr.msk.f32.mxu1 %vm20111_vm4, %v22910_v56  ;;  %19122 = vmatprep.subr.mxu0 %v22910_v56 }
 0x34f   : > { %19152 = vmatprep.subr.mxu1 %v22910_v56 }
 0x351   : > { %10861 = vrot.lane.b32.xlu1 %v19201_v33, %s20117_s13 }
 0x353   : > { %19090 = vmatmul.mubr.msk.f32.vlgmr.msra.gmra.mrb[28].mxu0 %vm652_vm5, %v22641_v50  ;;  %19120 = vmatmul.mubr.msk.f32.vlgmr.msra.gmra.mrb[28].mxu1 %vm652_vm5, %v22646_v1 }
 0x354   : > { %19123 = vmatpush3.msk.msra.mxu0 %vm656_vm3, %v22960_v16  ;;  %19124 = vmatprep.mubr.msk.f32.mxu0 %vm20111_vm4, %v22910_v56 }
 0x355   : > { %19153 = vmatpush3.msk.msra.mxu1 %vm656_vm3, %v22961_v52  ;;  %19154 = vmatprep.mubr.msk.f32.mxu1 %vm20111_vm4, %v22910_v56 }
 0x356   : > { %19127 = vmatprep.subr.mxu0 %v22910_v56  ;;  %19157 = vmatprep.subr.mxu1 %v22910_v56 }
 0x357   : > { %19125 = vmatmul.mubr.msk.f32.vlgmr.msra.gmra.mrb[30].mxu0 %vm652_vm5, %v22235_v59  ;;  %19155 = vmatmul.mubr.msk.f32.vlgmr.msra.gmra.mrb[30].mxu1 %vm652_vm5, %v22240_v11  ;;  %v19970_v59 = vunpack.i.l.bf16 %v22962_v46 }
 0x358   : > { %19128 = vmatpush3.msk.msra.mxu0 %vm656_vm3, %v19965_v37  ;;  %19129 = vmatprep.mubr.msk.f32.mxu0 %vm20111_vm4, %v22910_v56 }
 0x359   : > { %19158 = vmatpush3.msk.msra.mxu1 %vm656_vm3, %v19966_v58  ;;  %19159 = vmatprep.mubr.msk.f32.mxu1 %vm20111_vm4, %v22910_v56 }
 0x35a   : > { %19132 = vmatprep.subr.mxu0 %v22910_v56  ;;  %19162 = vmatprep.subr.mxu1 %v22910_v56 }
 0x35f   : > { %19130 = vmatmul.mubr.msk.f32.vlgmr.msra.gmra.mrb[30].mxu0 %vm652_vm5, %v22265_v15  ;;  %19160 = vmatmul.mubr.msk.f32.vlgmr.msra.gmra.mrb[30].mxu1 %vm652_vm5, %v22270_v22  ;;  %v22963_v15 = vld [vmem:[#allocation37_spill] sm:$0xff]  ;;  %v22964_v22 = vld [vmem:[#allocation38_spill] sm:$0xff] }
 0x360   : > { %19133 = vmatpush3.msk.msra.mxu0 %vm656_vm3, %v19970_v59  ;;  %19134 = vmatprep.mubr.msk.f32.mxu0 %vm20111_vm4, %v22910_v56 }
 0x361   : > { %19163 = vmatpush3.msk.msra.mxu1 %vm656_vm3, %v19971_v43  ;;  %19164 = vmatprep.mubr.msk.f32.mxu1 %vm20111_vm4, %v22910_v56 }
 0x362   : > { %19137 = vmatprep.subr.mxu0 %v22910_v56  ;;  %19167 = vmatprep.subr.mxu1 %v22910_v56 }
 0x367   : > { %19135 = vmatmul.mubr.msk.f32.vlgmr.msra.gmra.mrb[30].mxu0 %vm652_vm5, %v22471_v32  ;;  %19165 = vmatmul.mubr.msk.f32.vlgmr.msra.gmra.mrb[30].mxu1 %vm652_vm5, %v22476_v19  ;;  %v8317_v11 = vpop.permute.xlu0 %8316  ;;  %v22965_v32 = vld [vmem:[#allocation42_spill] sm:$0xff] }
 0x368   : > { %8319 = vst.msk [vmem:[%s21672_s6 + $0x18] sm:$0xff] %vm2181_vm8, %v8317_v11  ;;  %19138 = vmatpush3.msk.msra.mxu0 %vm656_vm3, %v22963_v15  ;;  %19139 = vmatprep.mubr.msk.f32.mxu0 %vm20111_vm4, %v22910_v56  ;;  %v19975_v19 = vunpack.i.l.bf16 %v22965_v32  ;;  %v19976_v17 = vunpack.i.h.bf16 %v22965_v32 }
 0x369   : > { %19168 = vmatpush3.msk.msra.mxu1 %vm656_vm3, %v22964_v22  ;;  %19169 = vmatprep.mubr.msk.f32.mxu1 %vm20111_vm4, %v22910_v56 }
 0x36a   : > { %19142 = vmatprep.subr.mxu0 %v22910_v56  ;;  %19172 = vmatprep.subr.mxu1 %v22910_v56 }
 0x36b   : > { %v8822_v55 = vpop.permute.xlu0 %8821 }
 0x36c   : > { %8824 = vst.msk [vmem:[%s21672_s6 + $0x18] sm:$0xff] %vm2687_vm9, %v8822_v55 }
 0x36f   : > { %19140 = vmatmul.mubr.msk.f32.vlgmr.msra.gmra.mrb[30].mxu0 %vm652_vm5, %v22500_v28  ;;  %19170 = vmatmul.mubr.msk.f32.vlgmr.msra.gmra.mrb[30].mxu1 %vm652_vm5, %v22505_v48 }
 0x370   : > { %19143 = vmatpush3.msk.msra.mxu0 %vm656_vm3, %v19975_v19  ;;  %19144 = vmatprep.mubr.msk.f32.mxu0 %vm20111_vm4, %v22910_v56 }
 0x371   : > { %19173 = vmatpush3.msk.msra.mxu1 %vm656_vm3, %v19976_v17  ;;  %19174 = vmatprep.mubr.msk.f32.mxu1 %vm20111_vm4, %v22910_v56 }
 0x372   : > { %19147 = vmatprep.subr.mxu0 %v22910_v56  ;;  %19177 = vmatprep.subr.mxu1 %v22910_v56 }
 0x376   : > { %v11360_v0 = vpop.f32.mrb[20].mxu0  ;;  %v11874_v28 = vpop.f32.mrb[20].mxu1 }
 0x377   : > { %v19202_v48 = vadd.f32 %v11360_v0, %v22157_v36  ;;  %v19203_v6 = vadd.f32 %v11874_v28, %v21818_v60  ;;  %v18851_v41 = vpop.f32.mrb[21].mxu0  ;;  %v18881_v12 = vpop.f32.mrb[21].mxu1  ;;  %19145 = vmatmul.mubr.msk.f32.vlgmr.msra.gmra.mrb[30].mxu0 %vm652_vm5, %v22615_v8  ;;  %19175 = vmatmul.mubr.msk.f32.vlgmr.msra.gmra.mrb[30].mxu1 %vm652_vm5, %v22620_v44 }
 0x378   : > { %19148 = vmatpush3.msk.msra.mxu0 %vm656_vm3, %v19980_v14  ;;  %19149 = vmatprep.mubr.msk.f32.mxu0 %vm20111_vm4, %v22910_v56 }
 0x379   : > { %11365 = vst.msk [vmem:[%s21672_s6 + $0x28] sm:$0xff] %vm1139_vm6, %v19202_v48  ;;  %11880 = vrot.lane.b32.xlu0 %v19203_v6, %s20115_s9  ;;  %19178 = vmatpush3.msk.msra.mxu1 %vm656_vm3, %v19981_v54 }
 0x37a   : > { %19179 = vmatprep.mubr.msk.f32.mxu1 %vm20111_vm4, %v22910_v56 }
 0x37f   : > { %19150 = vmatmul.mubr.msk.f32.vlgmr.msra.gmra.mrb[30].mxu0 %vm652_vm5, %v22641_v50  ;;  %19180 = vmatmul.mubr.msk.f32.vlgmr.msra.gmra.mrb[30].mxu1 %vm652_vm5, %v22646_v1 }
 0x393   : > { %v9840_v60 = vpop.permute.xlu1 %9839 }
 0x394   : > { %9842 = vst.msk [vmem:[%s21672_s6 + $0x20] sm:$0xff] %vm1663_vm7, %v9840_v60 }
 0x3a2   : > { %v12392_v36 = vpop.f32.mrb[22].mxu0  ;;  %v12899_v34 = vpop.f32.mrb[22].mxu1 }
 0x3a3   : > { %v19204_v4 = vadd.f32 %v12392_v36, %v21858_v29  ;;  %v18911_v5 = vpop.f32.mrb[23].mxu0  ;;  %v18941_v30 = vpop.f32.mrb[23].mxu1  ;;  %v19205_v56 = vadd.f32 %v12899_v34, %v21908_v27 }
 0x3a5   : > { %12398 = vrot.lane.b32.xlu0 %v19204_v4, %s20116_s14 }
 0x3a9   : > { %12905 = vrot.lane.b32.xlu0 %v19205_v56, %s20117_s13 }
 0x3bf   : > { %v10357_v21 = vpop.permute.xlu1 %10356 }
 0x3c0   : > { %10359 = vst.msk [vmem:[%s21672_s6 + $0x20] sm:$0xff] %vm2181_vm8, %v10357_v21 }
 0x3c3   : > { %v10862_v57 = vpop.permute.xlu1 %10861 }
 0x3c4   : > { %10864 = vst.msk [vmem:[%s21672_s6 + $0x20] sm:$0xff] %vm2687_vm9, %v10862_v57 }
 0x3ce   : > { %v13406_v23 = vpop.f32.mrb[24].mxu0  ;;  %v13921_v38 = vpop.f32.mrb[24].mxu1 }
 0x3cf   : > { %v19206_v29 = vadd.f32 %v13406_v23, %v21961_v3  ;;  %v19207_v9 = vadd.f32 %v13921_v38, %v22040_v45  ;;  %v18971_v7 = vpop.f32.mrb[25].mxu0  ;;  %v19001_v51 = vpop.f32.mrb[25].mxu1 }
 0x3d1   : > { %13411 = vst.msk [vmem:[%s21672_s6 + $0x30] sm:$0xff] %vm1139_vm6, %v19206_v29  ;;  %13927 = vrot.lane.b32.xlu1 %v19207_v9, %s20115_s9 }
 0x3eb   : > { %v11881_v27 = vpop.permute.xlu0 %11880 }
 0x3ec   : > { %11883 = vst.msk [vmem:[%s21672_s6 + $0x28] sm:$0xff] %vm1663_vm7, %v11881_v27 }
 0x3fa   : > { %v14440_v42 = vpop.f32.mrb[26].mxu0  ;;  %v14947_v62 = vpop.f32.mrb[26].mxu1 }
 0x3fb   : > { %v19208_v24 = vadd.f32 %v14440_v42, %v22082_v49  ;;  %v19031_v61 = vpop.f32.mrb[27].mxu0  ;;  %v19061_v3 = vpop.f32.mrb[27].mxu1  ;;  %v19209_v45 = vadd.f32 %v14947_v62, %v22125_v20 }
 0x3fd   : > { %14446 = vrot.lane.b32.xlu1 %v19208_v24, %s20116_s14 }
 0x401   : > { %14953 = vrot.lane.b32.xlu1 %v19209_v45, %s20117_s13 }
 0x417   : > { %v12399_v31 = vpop.permute.xlu0 %12398 }
 0x418   : > { %12401 = vst.msk [vmem:[%s21672_s6 + $0x28] sm:$0xff] %vm2181_vm8, %v12399_v31 }
 0x41b   : > { %v12906_v8 = vpop.permute.xlu0 %12905 }
 0x41c   : > { %12908 = vst.msk [vmem:[%s21672_s6 + $0x28] sm:$0xff] %vm2687_vm9, %v12906_v8 }
 0x426   : > { %v15454_v44 = vpop.f32.mrb[28].mxu0  ;;  %v15968_v35 = vpop.f32.mrb[28].mxu1 }
 0x427   : > { %v19210_v49 = vadd.f32 %v15454_v44, %v22168_v25  ;;  %v19211_v63 = vadd.f32 %v15968_v35, %v21830_v47  ;;  %v19091_v53 = vpop.f32.mrb[29].mxu0  ;;  %v19121_v39 = vpop.f32.mrb[29].mxu1 }
 0x429   : > { %15459 = vst.msk [vmem:[%s21672_s6 + $0x38] sm:$0xff] %vm1139_vm6, %v19210_v49  ;;  %15974 = vrot.lane.b32.xlu0 %v19211_v63, %s20115_s9  ;;  %s17837_s9 = sshll.u32 %s20088_s18, 10  ;;  %s20118_s18 = smov [#allocation4]  }
 0x42a   : > { %s22793_s30 = scalar_lea.hbm %s22848_s4, %s17837_s9  ;;  %s19990_s10 = sshll.u32 %s20118_s18, 4  ;;  %s19991_s10 = int_to_ptr.vmem [resolvable:$false] %s19990_s10 }
 0x42b   : > { %s19992_s11 = scalar_lea.vmem %s19991_s10, 2048  ;;  %p19993_p6 = scmp.lt.s32.totalorder %s22795_s24, %s19991_s10 }
 0x42c   : > { %p19994_p7 = scmp.lt.s32.totalorder %s19992_s11, %s19986_s5 }
 0x42e   : > { %p19995_p8 = por %p19994_p7, %p19993_p6 }
 0x430   : > { %p19996_p11 = pnand %p19995_p8, %p19989_p4 }
 0x443   : > { %v13928_v20 = vpop.permute.xlu1 %13927 }
 0x444   : > { %13930 = vst.msk [vmem:[%s21672_s6 + $0x30] sm:$0xff] %vm1663_vm7, %v13928_v20 }
 0x452   : > { %v16486_v40 = vpop.f32.mrb[30].mxu0  ;;  %v16991_v18 = vpop.f32.mrb[30].mxu1 }
 0x453   : > { %v19212_v25 = vadd.f32 %v16486_v40, %v21868_v10  ;;  %v19151_v47 = vpop.f32.mrb[31].mxu0  ;;  %v19181_v33 = vpop.f32.mrb[31].mxu1  ;;  %v19213_v50 = vadd.f32 %v16991_v18, %v21934_v13 }
 0x455   : > { %16492 = vrot.lane.b32.xlu0 %v19212_v25, %s20116_s14 }
 0x459   : > { %16997 = vrot.lane.b32.xlu0 %v19213_v50, %s20117_s13  ;;  %s17002_s13 = scalar_lea.sflag [#allocation5], %s20222_s25 }
 0x46f   : > { %v14447_v1 = vpop.permute.xlu1 %14446 }
 0x470   : > { %14449 = vst.msk [vmem:[%s21672_s6 + $0x30] sm:$0xff] %vm2181_vm8, %v14447_v1 }
 0x473   : > { %v14954_v2 = vpop.permute.xlu1 %14953 }
 0x474   : > { %14956 = vst.msk [vmem:[%s21672_s6 + $0x30] sm:$0xff] %vm2687_vm9, %v14954_v2 }
 0x49b   : > { %v15975_v37 = vpop.permute.xlu0 %15974 }
 0x49c   : > { %15977 = vst.msk [vmem:[%s21672_s6 + $0x38] sm:$0xff] %vm1663_vm7, %v15975_v37 }
 0x4c7   : > { %v16493_v10 = vpop.permute.xlu0 %16492 }
 0x4c8   : > { %16495 = vst.msk [vmem:[%s21672_s6 + $0x38] sm:$0xff] %vm2181_vm8, %v16493_v10 }
 0x4cb   : > { %v16998_v13 = vpop.permute.xlu0 %16997 }
 0x4cc   : > { %17000 = vst.msk [vmem:[%s21672_s6 + $0x38] sm:$0xff] %vm2687_vm9, %v16998_v13 }
 0x4cd   : > { %19999 = shalt.err (!%p19996_p11)
}
 0x4ce   : > { %s20000_s25 = scalar_lea.hbm %s22793_s30, 1024  ;;  %s20004_s12 = scalar_lea.hbm %s22848_s4, 2048 }
 0x4cf   : > { %p20001_p12 = scmp.ne.s32.totalorder %s22793_s30, %s20000_s25  ;;  %p20005_p1 = scmp.lt.u32.totalorder %s22793_s30, %s22848_s4 }
 0x4d0   : > { %p20006_p2 = scmp.lt.u32.totalorder %s20004_s12, %s20000_s25  ;;  %p20008_p4 = scmp.lt.u32.totalorder %s20000_s25, %s22793_s30 }
 0x4d1   : > { %p20002_p13 = pnand %p20001_p12, %p20187_p5 }
 0x4d2   : > { %p20007_p3 = por %p20006_p2, %p20005_p1 }
 0x4d3   : > { %p20003_p0 = pneg %p20002_p13 }
 0x4d4   : > { %p20009_p6 = por %p20008_p4, %p20007_p3 }
 0x4d6   : > { %p20010_p7 = pnand %p20009_p6, %p20003_p0 }
 0x4d8   : > { %20013 = shalt.err (!%p20010_p7)
}
 0x4d9   : > { %19535 = dma.vmem_to_hbm [thread:$0]  (%p20187_p5), %s22795_s24, 1024, %s22793_s30, %s17002_s13  }
 0x4da PF: > { %s17030_s8 = sand.u32 1, %s20076_s15   ;;  %p19538_p8 = pnand %p17251_p10, %p20198_p9 }
 0x4db   : > { %s17031_s9 = scalar_lea.sflag [#allocation5], %s17030_s8 }
 0x4dc   : > { %20071 = dma.done.wait (!%p19538_p8), %s17031_s9, 1024  }
 0x4dd   : > { %20073 = vsyncadd (!%p19538_p8), %s17031_s9, 4294966272  ;;  %s17_s20 = sadd.s32 1, %s20096_s20   ;;  %s22967_s15 = smov %s20080_s16 }
 0x4de   : > { %p14_p11 = scmp.ge.s32.totalorder %s17_s20, 4   ;;  %s22968_s16 = smov %s20084_s17 }
 0x4df   : > { %s22969_s17 = smov %s20196_s28  ;;  %s22970_s18 = smov %s20092_s19 }
 0x4e0   : > { %s22971_s19 = smov %s22973_s23  ;;  %16 = sbr.rel (!%p14_p11) target bundleno = 4 (0x4), region = 291 }
 0x4e7   :  { %17036 = vsyncpa [#allocation5], 1 }
 0x4e8   :  { %17038 = vsyncpa [#allocation5 + $0x1], 1 }

</bundles_post_ra>
